<compile_context>
chip_gen: v6e
topology: v6e:2x2x1
jax: 0.10.0
libtpu: 0.0.40
codegen_flags: <defaults>
</compile_context>

<pallas_src>
import jax
import jax.numpy as jnp
from jax.experimental import pallas as pl
from jax.experimental.pallas import tpu as pltpu

NEG_SLOPE_ATT = 0.2    # GATv2 attention leaky_relu (PyG default negative_slope)
NEG_SLOPE_ACT = 0.01   # nn.LeakyReLU default (BasicGNN act + head act)
GN_EPS = 1e-5          # GraphNorm eps

B = 8           # graphs per pallas_call (grid axis, "parallel")
N = 32          # nodes per graph
F_IN = 8        # num_node_features
EDGE_DIM = 8    # edge_dim
HIDDEN = 128    # hidden_size
N_LAYERS = 3
N_ACTIONS = 4   # N must be divisible by n_actions

LANE = 128      # lane width (head output padded to this -> unmasked stores)
ROW_BLOCK = 8   # target-row tile for the attention block (native sublane count)

# Packed (1,128) parameter rows: layer l uses rows [8l .. 8l+6], head uses rows 24/25.
ROW_B_L, ROW_B_R, ROW_ATT, ROW_BIAS, ROW_GN_W, ROW_GN_B, ROW_GN_MS = range(7)
ROW_HEAD_B1 = N_LAYERS * 8
ROW_HEAD_B2 = N_LAYERS * 8 + 1
N_ROWS = 32


def _leaky_relu(x, slope):
    return jnp.where(x >= 0, x, slope * x)


def _dotf(a, b):
    # Exact-f32 MXU matmul, shared by kernel and reference so both round identically.
    return jnp.dot(a, b, preferred_element_type=jnp.float32,
                   precision=jax.lax.Precision.HIGHEST)


# ----------------------------- Fused Pallas kernel ---------------------------

def fused_gat_kernel(x_ref, adj_ref, e_ref, w_lr0_ref, w_lr12_ref, we_ref,
                     rows_ref, w1_ref, w2p_ref, out_ref, alpha_ref, xr_ref):
    n, c = N, HIDDEN
    nb = n // ROW_BLOCK

    h = x_ref[...]                                                   # (N, F_in)
    for l in range(N_LAYERS):
        r0 = 8 * l
        b_l   = rows_ref[r0 + ROW_B_L:  r0 + ROW_B_L + 1, :]
        b_r   = rows_ref[r0 + ROW_B_R:  r0 + ROW_B_R + 1, :]
        att   = rows_ref[r0 + ROW_ATT:  r0 + ROW_ATT + 1, :]
        bias  = rows_ref[r0 + ROW_BIAS: r0 + ROW_BIAS + 1, :]
        gn_w  = rows_ref[r0 + ROW_GN_W: r0 + ROW_GN_W + 1, :]
        gn_b  = rows_ref[r0 + ROW_GN_B: r0 + ROW_GN_B + 1, :]
        gn_ms = rows_ref[r0 + ROW_GN_MS: r0 + ROW_GN_MS + 1, :]

        # Fused [lin_l | lin_r] projection (one MXU push), split along lanes.
        w_lr = w_lr0_ref[...] if l == 0 else w_lr12_ref[l - 1]
        xlr = _dotf(h, w_lr)                                         # (N, 2C)
        xl = xlr[:, :c] + b_l                                        # source projection
        xr = xlr[:, c:] + b_r                                        # target projection
        xr_ref[...] = xr                                             # scratch for dyn. row slices

        we = we_ref[l * EDGE_DIM:(l + 1) * EDGE_DIM, :]              # (E, C)
        att3 = att.reshape(1, 1, c)                                  # hoisted out of the loop

        # Row-tiled GATv2 attention: fori_loop bounds the (RB, N, C) logit cube to one block.
        # alpha rows are written to VMEM scratch; aggregation is ONE matmul after the loop.
        def blk(qb, carry):
            ro = pl.multiple_of(qb * ROW_BLOCK, ROW_BLOCK)
            eo = pl.multiple_of(qb * (ROW_BLOCK * n), ROW_BLOCK * n)
            ep = _dotf(e_ref[pl.ds(eo, ROW_BLOCK * n), :], we)       # (RB*N, C) edge projection
            xr_blk = xr_ref[pl.ds(ro, ROW_BLOCK), :]                 # (RB, C)
            # GATv2 logits: score[i,j] = att . leaky_relu(x_l[j] + x_r[i] + e_proj[i,j])
            g = xr_blk[:, None, :] + xl[None, :, :] + ep.reshape(ROW_BLOCK, n, c)
            g = _leaky_relu(g, NEG_SLOPE_ATT)
            # Lane reduce kept on VPU/XLU (MXU mat-vec alternative needs a (RB*N,1)->(RB,N)
            # relayout that would likely eat the gain at this size).
            score = jnp.sum(g * att3, axis=-1)                       # (RB, N)
            # Masked segment-softmax (pyg.utils.softmax): no incoming edges -> alpha = 0.
            adj_blk = adj_ref[pl.ds(ro, ROW_BLOCK), :]
            score = jnp.where(adj_blk > 0, score, -1e30)
            row_max = jnp.max(score, axis=1, keepdims=True)
            p = jnp.exp(score - row_max) * adj_blk
            alpha_ref[pl.ds(ro, ROW_BLOCK), :] = p / (jnp.sum(p, axis=1, keepdims=True) + 1e-16)
            return carry

        jax.lax.fori_loop(0, nb, blk, 0)

        # Single merged aggregation matmul per layer: out[i] = sum_j alpha[i,j] x_l[j] + bias.
        out = _dotf(alpha_ref[...], xl) + bias

        if l < N_LAYERS - 1:
            # GraphNorm (per graph) then LeakyReLU activation.
            mean = jnp.mean(out, axis=0, keepdims=True)
            cen = out - mean * gn_ms
            var = jnp.mean(cen * cen, axis=0, keepdims=True)
            out = gn_w * cen * jax.lax.rsqrt(var + GN_EPS) + gn_b
            out = _leaky_relu(out, NEG_SLOPE_ACT)
        h = out

    # Value head: Linear -> LeakyReLU -> Linear (Dropout p=0 is identity).
    # w2 is zero-padded to 128 output lanes -> lane-dense unmasked store; col 0 is the value.
    b1 = rows_ref[ROW_HEAD_B1:ROW_HEAD_B1 + 1, :]
    b2 = rows_ref[ROW_HEAD_B2:ROW_HEAD_B2 + 1, :]
    h1 = _leaky_relu(_dotf(h, w1_ref[...]) + b1, NEG_SLOPE_ACT)
    out_ref[...] = _dotf(h1, w2p_ref[...]) + b2


# ----------------------------- Pallas wrapper --------------------------------

def gat_network_forward(x, adj, e_flat, params):
    b = x.shape[0]
    grid_spec = pltpu.PrefetchScalarGridSpec(
        num_scalar_prefetch=0,
        grid=(b,),
        in_specs=[
            pl.BlockSpec((None, N, F_IN), lambda i: (i, 0, 0)),
            pl.BlockSpec((None, N, N), lambda i: (i, 0, 0)),
            pl.BlockSpec((None, N * N, EDGE_DIM), lambda i: (i, 0, 0)),
            # Weights: constant block index -> fetched once, stay VMEM-resident.
            pl.BlockSpec((F_IN, 2 * HIDDEN), lambda i: (0, 0)),
            pl.BlockSpec((N_LAYERS - 1, HIDDEN, 2 * HIDDEN), lambda i: (0, 0, 0)),
            pl.BlockSpec((N_LAYERS * EDGE_DIM, HIDDEN), lambda i: (0, 0)),
            pl.BlockSpec((N_ROWS, HIDDEN), lambda i: (0, 0)),
            pl.BlockSpec((HIDDEN, HIDDEN), lambda i: (0, 0)),
            pl.BlockSpec((HIDDEN, LANE), lambda i: (0, 0)),
        ],
        out_specs=pl.BlockSpec((None, N, LANE), lambda i: (i, 0, 0)),
        scratch_shapes=[
            pltpu.VMEM((N, N), jnp.float32),        # alpha (attention weights)
            pltpu.VMEM((N, HIDDEN), jnp.float32),   # x_r (target projections)
        ],
    )
    out = pl.pallas_call(
        fused_gat_kernel,
        out_shape=jax.ShapeDtypeStruct((b, N, LANE), jnp.float32),
        grid_spec=grid_spec,
        compiler_params=pltpu.CompilerParams(dimension_semantics=("parallel",)),
    )(x, adj, e_flat, params["w_lr0"], params["w_lr12"], params["we_all"],
      params["rows"], params["w1"], params["w2p"])
    # Glue: pick the real head column, reshape like the PyTorch module (batch concat order).
    return out[:, :, 0].reshape(-1, N_ACTIONS)


# ----------------------------- Pure-JAX reference ----------------------------

def gat_network_ref(x, adj, e_flat, params):
    """Per-graph reference with the exact same f32 math as the kernel (vmapped in main)."""
    n, c = N, HIDDEN
    rows = params["rows"]
    h = x
    for l in range(N_LAYERS):
        r0 = 8 * l
        b_l, b_r, att, bias, gn_w, gn_b, gn_ms = (rows[r0 + k][None, :] for k in range(7))
        w_lr = params["w_lr0"] if l == 0 else params["w_lr12"][l - 1]
        xlr = _dotf(h, w_lr)
        xl = xlr[:, :c] + b_l
        xr = xlr[:, c:] + b_r
        ep = _dotf(e_flat, params["we_all"][l * EDGE_DIM:(l + 1) * EDGE_DIM]).reshape(n, n, c)
        g = _leaky_relu(xr[:, None, :] + xl[None, :, :] + ep, NEG_SLOPE_ATT)
        score = jnp.sum(g * att[None, :, :], axis=-1)
        score = jnp.where(adj > 0, score, -1e30)
        p = jnp.exp(score - jnp.max(score, axis=1, keepdims=True)) * adj
        alpha = p / (jnp.sum(p, axis=1, keepdims=True) + 1e-16)
        out = _dotf(alpha, xl) + bias
        if l < N_LAYERS - 1:
            mean = jnp.mean(out, axis=0, keepdims=True)
            cen = out - mean * gn_ms
            var = jnp.mean(cen * cen, axis=0, keepdims=True)
            out = gn_w * cen * jax.lax.rsqrt(var + GN_EPS) + gn_b
            out = _leaky_relu(out, NEG_SLOPE_ACT)
        h = out
    b1 = rows[ROW_HEAD_B1][None, :]
    b2 = rows[ROW_HEAD_B2][None, :]
    h1 = _leaky_relu(_dotf(h, params["w1"]) + b1, NEG_SLOPE_ACT)
    y = _dotf(h1, params["w2p"]) + b2
    return y[:, 0]


# ----------------------------- Parameter init --------------------------------

def init_params(key):
    keys = iter(jax.random.split(key, 32))

    def dense(fan_in, shape):
        return jax.random.normal(next(keys), shape, jnp.float32) / jnp.sqrt(jnp.float32(fan_in))

    w_lr0 = dense(F_IN, (F_IN, 2 * HIDDEN))                            # [ lin_l | lin_r ] fused
    w_lr12 = jnp.stack([dense(HIDDEN, (HIDDEN, 2 * HIDDEN)) for _ in range(N_LAYERS - 1)])
    we_all = jnp.concatenate([dense(EDGE_DIM, (EDGE_DIM, HIDDEN)) for _ in range(N_LAYERS)], 0)

    # All (1,128) parameter rows packed into one (32,128) slab (fewer tiny DMAs).
    rows = jnp.zeros((N_ROWS, HIDDEN), jnp.float32)
    for l in range(N_LAYERS):
        r0 = 8 * l
        rows = rows.at[r0 + ROW_B_L].set(0.1 * dense(1.0, (HIDDEN,)))   # lin_l bias
        rows = rows.at[r0 + ROW_B_R].set(0.1 * dense(1.0, (HIDDEN,)))   # lin_r bias
        rows = rows.at[r0 + ROW_ATT].set(dense(HIDDEN, (HIDDEN,)))      # attention vector
        rows = rows.at[r0 + ROW_BIAS].set(0.1 * dense(1.0, (HIDDEN,)))  # conv output bias
        rows = rows.at[r0 + ROW_GN_W].set(1.0)                          # GraphNorm weight
        rows = rows.at[r0 + ROW_GN_B].set(0.1 * dense(1.0, (HIDDEN,)))  # GraphNorm bias
        rows = rows.at[r0 + ROW_GN_MS].set(1.0)                         # GraphNorm mean_scale
    rows = rows.at[ROW_HEAD_B1].set(0.1 * dense(1.0, (HIDDEN,)))        # head Linear(H,H) bias
    rows = rows.at[ROW_HEAD_B2, 0].set(0.1 * dense(1.0, (1,))[0])       # head Linear(H,1) bias

    w1 = dense(HIDDEN, (HIDDEN, HIDDEN))
    w2 = jnp.sqrt(2.0) * dense(HIDDEN, (HIDDEN, 1))                     # layer_init(std=sqrt(2))
    w2p = jnp.zeros((HIDDEN, LANE), jnp.float32).at[:, 0:1].set(w2)     # lane-dense pad
    return dict(w_lr0=w_lr0, w_lr12=w_lr12, we_all=we_all, rows=rows, w1=w1, w2p=w2p)


# ----------------------------- Main -------------------------------------------

if __name__ == "__main__":
    key = jax.random.PRNGKey(0)
    k_x, k_e, k_p = jax.random.split(key, 3)

    # Deterministic topology (ring + skip connections), shared by all B graphs; per-graph features.
    src, dst = [], []
    for i in range(N):
        src += [i, i, i]
        dst += [(i + 1) % N, (i + 3) % N, (i + 7) % N]
    src = jnp.array(src, jnp.int32)
    dst = jnp.array(dst, jnp.int32)
    E = src.shape[0]

    x = jax.random.normal(k_x, (B, N, F_IN), jnp.float32)               # data.x (batched)
    edge_attr = jax.random.normal(k_e, (B, E, EDGE_DIM), jnp.float32)   # data.edge_attr

    # Densify the sparse graph (glue): adj[target, source], dense edge features.
    adj = jnp.zeros((N, N), jnp.float32).at[dst, src].set(1.0)
    adj_b = jnp.tile(adj[None], (B, 1, 1))
    edge_dense = (jnp.zeros((B, N, N, EDGE_DIM), jnp.float32)
                  .at[:, dst, src, :].set(edge_attr))
    e_flat = edge_dense.reshape(B, N * N, EDGE_DIM)

    params = init_params(k_p)

    fwd = jax.jit(gat_network_forward)
    y = jax.block_until_ready(fwd(x, adj_b, e_flat, params))

    y_ref = jax.vmap(lambda xg, ag, eg: gat_network_ref(xg, ag, eg, params))(x, adj_b, e_flat)
    y_ref = y_ref.reshape(-1, N_ACTIONS)

    assert y.shape == (B * N // N_ACTIONS, N_ACTIONS), y.shape
    assert bool(jnp.all(jnp.isfinite(y)))
    assert bool(jnp.allclose(y, y_ref, atol=2e-3, rtol=2e-3)), (
        "mismatch vs JAX reference, max abs err = %g" % float(jnp.max(jnp.abs(y - y_ref))))

    print("KERNEL_OK")
</pallas_src>

<mosaic_0001>
module attributes {stable_mosaic.version = 11 : i64} {
  func.func @fused_gat_kernel(%arg0: i32, %arg1: memref<1x32x8xf32, #tpu.memory_space<vmem>>, %arg2: memref<1x32x32xf32, #tpu.memory_space<vmem>>, %arg3: memref<1x1024x8xf32, #tpu.memory_space<vmem>>, %arg4: memref<8x256xf32, #tpu.memory_space<vmem>>, %arg5: memref<2x128x256xf32, #tpu.memory_space<vmem>>, %arg6: memref<24x128xf32, #tpu.memory_space<vmem>>, %arg7: memref<32x128xf32, #tpu.memory_space<vmem>>, %arg8: memref<128x128xf32, #tpu.memory_space<vmem>>, %arg9: memref<128x128xf32, #tpu.memory_space<vmem>>, %arg10: memref<1x32x128xf32, #tpu.memory_space<vmem>>, %arg11: memref<32x32xf32, #tpu.memory_space<vmem>>, %arg12: memref<32x128xf32, #tpu.memory_space<vmem>>) attributes {dimension_semantics = [#tpu.dimension_semantics<parallel>], iteration_bounds = array<i64: 8>, scalar_prefetch = 0 : i64, scratch_operands = 2 : i64, tpu.core_type = #tpu.core_type<tc>, window_params = [{transform_indices = @transform_0, window_bounds = array<i64: 1, 32, 8>}, {transform_indices = @transform_1, window_bounds = array<i64: 1, 32, 32>}, {transform_indices = @transform_2, window_bounds = array<i64: 1, 1024, 8>}, {pipeline_mode = #tpu.pipeline_mode<synchronous>, transform_indices = @transform_3, window_bounds = array<i64: 8, 256>}, {pipeline_mode = #tpu.pipeline_mode<synchronous>, transform_indices = @transform_4, window_bounds = array<i64: 2, 128, 256>}, {pipeline_mode = #tpu.pipeline_mode<synchronous>, transform_indices = @transform_5, window_bounds = array<i64: 24, 128>}, {pipeline_mode = #tpu.pipeline_mode<synchronous>, transform_indices = @transform_6, window_bounds = array<i64: 32, 128>}, {pipeline_mode = #tpu.pipeline_mode<synchronous>, transform_indices = @transform_7, window_bounds = array<i64: 128, 128>}, {pipeline_mode = #tpu.pipeline_mode<synchronous>, transform_indices = @transform_8, window_bounds = array<i64: 128, 128>}, {transform_indices = @transform_9, window_bounds = array<i64: 1, 32, 128>}]} {
    %c0 = arith.constant 0 : index
    %c0_0 = arith.constant 0 : index
    %c0_1 = arith.constant 0 : index
    %0 = vector.load %arg1[%c0, %c0_0, %c0_1] : memref<1x32x8xf32, #tpu.memory_space<vmem>>, vector<1x32x8xf32>
    %1 = vector.shape_cast %0 : vector<1x32x8xf32> to vector<32x8xf32>
    %c0_2 = arith.constant 0 : index
    %c0_3 = arith.constant 0 : index
    %2 = vector.load %arg7[%c0_2, %c0_3] : memref<32x128xf32, #tpu.memory_space<vmem>>, vector<1x128xf32>
    %c1 = arith.constant 1 : index
    %c0_4 = arith.constant 0 : index
    %3 = vector.load %arg7[%c1, %c0_4] : memref<32x128xf32, #tpu.memory_space<vmem>>, vector<1x128xf32>
    %c2 = arith.constant 2 : index
    %c0_5 = arith.constant 0 : index
    %4 = vector.load %arg7[%c2, %c0_5] : memref<32x128xf32, #tpu.memory_space<vmem>>, vector<1x128xf32>
    %c3 = arith.constant 3 : index
    %c0_6 = arith.constant 0 : index
    %5 = vector.load %arg7[%c3, %c0_6] : memref<32x128xf32, #tpu.memory_space<vmem>>, vector<1x128xf32>
    %c4 = arith.constant 4 : index
    %c0_7 = arith.constant 0 : index
    %6 = vector.load %arg7[%c4, %c0_7] : memref<32x128xf32, #tpu.memory_space<vmem>>, vector<1x128xf32>
    %c5 = arith.constant 5 : index
    %c0_8 = arith.constant 0 : index
    %7 = vector.load %arg7[%c5, %c0_8] : memref<32x128xf32, #tpu.memory_space<vmem>>, vector<1x128xf32>
    %c6 = arith.constant 6 : index
    %c0_9 = arith.constant 0 : index
    %8 = vector.load %arg7[%c6, %c0_9] : memref<32x128xf32, #tpu.memory_space<vmem>>, vector<1x128xf32>
    %c0_10 = arith.constant 0 : index
    %c0_11 = arith.constant 0 : index
    %9 = vector.load %arg4[%c0_10, %c0_11] : memref<8x256xf32, #tpu.memory_space<vmem>>, vector<8x256xf32>
    %cst = arith.constant dense<0.000000e+00> : vector<32x256xf32>
    %10 = tpu.matmul %1, %9, %cst {dimension_numbers = #tpu.dot_dimension_numbers<[1], [0], [0], [1], [0, 0, 1, 1], [], []>, precision = #tpu.contract_precision<fp32>} : vector<32x8xf32>, vector<8x256xf32>, vector<32x256xf32> -> vector<32x256xf32>
    %11 = vector.extract_strided_slice %10 {offsets = [0, 0], sizes = [32, 128], strides = [1, 1]} : vector<32x256xf32> to vector<32x128xf32>
    %12 = vector.broadcast %2 : vector<1x128xf32> to vector<32x128xf32>
    %13 = arith.addf %11, %12 : vector<32x128xf32>
    %14 = vector.extract_strided_slice %10 {offsets = [0, 128], sizes = [32, 128], strides = [1, 1]} : vector<32x256xf32> to vector<32x128xf32>
    %15 = vector.broadcast %3 : vector<1x128xf32> to vector<32x128xf32>
    %16 = arith.addf %14, %15 : vector<32x128xf32>
    %c0_12 = arith.constant 0 : index
    %c0_13 = arith.constant 0 : index
    %17 = vector.load %arg12[%c0_12, %c0_13] : memref<32x128xf32, #tpu.memory_space<vmem>>, vector<32x128xf32>
    tpu.vector_store %arg12[%c0_12, %c0_13], %16 {strides = array<i32>} : memref<32x128xf32, #tpu.memory_space<vmem>>, vector<32x128xf32>,
    %c0_14 = arith.constant 0 : index
    %c0_15 = arith.constant 0 : index
    %18 = vector.load %arg6[%c0_14, %c0_15] : memref<24x128xf32, #tpu.memory_space<vmem>>, vector<8x128xf32>
    %19 = vector.shape_cast %4 : vector<1x128xf32> to vector<1x1x128xf32>
    %c0_i32 = arith.constant 0 : i32
    %c4_i32 = arith.constant 4 : i32
    %20 = arith.addi %c0_i32, %c4_i32 : i32
    %c1_i32 = arith.constant 1 : i32
    scf.for %arg13 = %c0_i32 to %20 step %c1_i32  : i32 {
      %c8_i32 = arith.constant 8 : i32
      %140 = arith.muli %arg13, %c8_i32 : i32
      %141 = tpu.assume_multiple %140, 8 : i32
      %c256_i32 = arith.constant 256 : i32
      %142 = arith.muli %arg13, %c256_i32 : i32
      %143 = tpu.assume_multiple %142, 256 : i32
      %c0_88 = arith.constant 0 : index
      %144 = arith.index_cast %143 : i32 to index
      %c0_89 = arith.constant 0 : index
      %145 = vector.load %arg3[%c0_88, %144, %c0_89] : memref<1x1024x8xf32, #tpu.memory_space<vmem>>, vector<1x256x8xf32>
      %146 = vector.shape_cast %145 : vector<1x256x8xf32> to vector<256x8xf32>
      %cst_90 = arith.constant dense<0.000000e+00> : vector<256x128xf32>
      %147 = tpu.matmul %146, %18, %cst_90 {dimension_numbers = #tpu.dot_dimension_numbers<[1], [0], [0], [1], [0, 0, 1, 1], [], []>, precision = #tpu.contract_precision<fp32>} : vector<256x8xf32>, vector<8x128xf32>, vector<256x128xf32> -> vector<256x128xf32>
      %148 = arith.index_cast %141 : i32 to index
      %c0_91 = arith.constant 0 : index
      %149 = vector.load %arg12[%148, %c0_91] : memref<32x128xf32, #tpu.memory_space<vmem>>, vector<8x128xf32>
      %150 = vector.shape_cast %149 : vector<8x128xf32> to vector<8x1x128xf32>
      %151 = vector.shape_cast %13 : vector<32x128xf32> to vector<1x32x128xf32>
      %152 = vector.broadcast %150 : vector<8x1x128xf32> to vector<8x32x128xf32>
      %153 = vector.broadcast %151 : vector<1x32x128xf32> to vector<8x32x128xf32>
      %154 = arith.addf %152, %153 : vector<8x32x128xf32>
      %155 = vector.shape_cast %147 : vector<256x128xf32> to vector<8x32x128xf32>
      %156 = arith.addf %154, %155 : vector<8x32x128xf32>
      %cst_92 = arith.constant 0.000000e+00 : f32
      %157 = vector.broadcast %cst_92 : f32 to vector<8x32x128xf32>
      %158 = arith.cmpf oge, %156, %157 : vector<8x32x128xf32>
      %cst_93 = arith.constant 2.000000e-01 : f32
      %159 = vector.broadcast %cst_93 : f32 to vector<8x32x128xf32>
      %160 = arith.mulf %159, %156 : vector<8x32x128xf32>
      %161 = arith.select %158, %156, %160 : vector<8x32x128xi1>, vector<8x32x128xf32>
      %162 = vector.broadcast %19 : vector<1x1x128xf32> to vector<8x32x128xf32>
      %163 = arith.mulf %161, %162 : vector<8x32x128xf32>
      %cst_94 = arith.constant dense<0.000000e+00> : vector<8x32xf32>
      %164 = vector.multi_reduction <add>, %163, %cst_94 [2] : vector<8x32x128xf32> to vector<8x32xf32>
      %c0_95 = arith.constant 0 : index
      %165 = arith.index_cast %141 : i32 to index
      %c0_96 = arith.constant 0 : index
      %166 = vector.load %arg2[%c0_95, %165, %c0_96] : memref<1x32x32xf32, #tpu.memory_space<vmem>>, vector<1x8x32xf32>
      %167 = vector.shape_cast %166 : vector<1x8x32xf32> to vector<8x32xf32>
      %cst_97 = arith.constant 0.000000e+00 : f32
      %168 = vector.broadcast %cst_97 : f32 to vector<8x32xf32>
      %169 = arith.cmpf ogt, %167, %168 : vector<8x32xf32>
      %cst_98 = arith.constant -1.000000e+30 : f32
      %170 = vector.broadcast %cst_98 : f32 to vector<8x32xf32>
      %171 = arith.select %169, %164, %170 : vector<8x32xi1>, vector<8x32xf32>
      %cst_99 = arith.constant dense<0xFF800000> : vector<8xf32>
      %172 = vector.multi_reduction <maximumf>, %171, %cst_99 [1] : vector<8x32xf32> to vector<8xf32>
      %173 = vector.shape_cast %172 : vector<8xf32> to vector<8x1xf32>
      %174 = vector.broadcast %173 : vector<8x1xf32> to vector<8x32xf32>
      %175 = arith.subf %171, %174 : vector<8x32xf32>
      %176 = math.exp %175 : vector<8x32xf32>
      %177 = arith.mulf %176, %167 : vector<8x32xf32>
      %cst_100 = arith.constant dense<0.000000e+00> : vector<8xf32>
      %178 = vector.multi_reduction <add>, %177, %cst_100 [1] : vector<8x32xf32> to vector<8xf32>
      %179 = vector.shape_cast %178 : vector<8xf32> to vector<8x1xf32>
      %cst_101 = arith.constant 1.000000e-16 : f32
      %180 = vector.broadcast %cst_101 : f32 to vector<8x1xf32>
      %181 = arith.addf %179, %180 : vector<8x1xf32>
      %182 = vector.broadcast %181 : vector<8x1xf32> to vector<8x32xf32>
      %183 = arith.divf %177, %182 : vector<8x32xf32>
      %184 = arith.index_cast %141 : i32 to index
      %c0_102 = arith.constant 0 : index
      %185 = vector.load %arg11[%184, %c0_102] : memref<32x32xf32, #tpu.memory_space<vmem>>, vector<8x32xf32>
      tpu.vector_store %arg11[%184, %c0_102], %183 {strides = array<i32>} : memref<32x32xf32, #tpu.memory_space<vmem>>, vector<8x32xf32>,
    }
    %c4_i32_16 = arith.constant 4 : i32
    %c0_17 = arith.constant 0 : index
    %c0_18 = arith.constant 0 : index
    %21 = vector.load %arg11[%c0_17, %c0_18] : memref<32x32xf32, #tpu.memory_space<vmem>>, vector<32x32xf32>
    %cst_19 = arith.constant dense<0.000000e+00> : vector<32x128xf32>
    %22 = tpu.matmul %21, %13, %cst_19 {dimension_numbers = #tpu.dot_dimension_numbers<[1], [0], [0], [1], [0, 0, 1, 1], [], []>, precision = #tpu.contract_precision<fp32>} : vector<32x32xf32>, vector<32x128xf32>, vector<32x128xf32> -> vector<32x128xf32>
    %23 = vector.broadcast %5 : vector<1x128xf32> to vector<32x128xf32>
    %24 = arith.addf %22, %23 : vector<32x128xf32>
    %cst_20 = arith.constant dense<0.000000e+00> : vector<128xf32>
    %25 = vector.multi_reduction <add>, %24, %cst_20 [0] : vector<32x128xf32> to vector<128xf32>
    %26 = vector.shape_cast %25 : vector<128xf32> to vector<1x128xf32>
    %cst_21 = arith.constant 3.200000e+01 : f32
    %27 = vector.broadcast %cst_21 : f32 to vector<1x128xf32>
    %28 = arith.divf %26, %27 : vector<1x128xf32>
    %29 = arith.mulf %28, %8 : vector<1x128xf32>
    %30 = vector.broadcast %29 : vector<1x128xf32> to vector<32x128xf32>
    %31 = arith.subf %24, %30 : vector<32x128xf32>
    %32 = arith.mulf %31, %31 : vector<32x128xf32>
    %cst_22 = arith.constant dense<0.000000e+00> : vector<128xf32>
    %33 = vector.multi_reduction <add>, %32, %cst_22 [0] : vector<32x128xf32> to vector<128xf32>
    %34 = vector.shape_cast %33 : vector<128xf32> to vector<1x128xf32>
    %cst_23 = arith.constant 3.200000e+01 : f32
    %35 = vector.broadcast %cst_23 : f32 to vector<1x128xf32>
    %36 = arith.divf %34, %35 : vector<1x128xf32>
    %37 = vector.broadcast %6 : vector<1x128xf32> to vector<32x128xf32>
    %38 = arith.mulf %37, %31 : vector<32x128xf32>
    %cst_24 = arith.constant 9.99999974E-6 : f32
    %39 = vector.broadcast %cst_24 : f32 to vector<1x128xf32>
    %40 = arith.addf %36, %39 : vector<1x128xf32>
    %41 = math.rsqrt %40 : vector<1x128xf32>
    %42 = vector.broadcast %41 : vector<1x128xf32> to vector<32x128xf32>
    %43 = arith.mulf %38, %42 : vector<32x128xf32>
    %44 = vector.broadcast %7 : vector<1x128xf32> to vector<32x128xf32>
    %45 = arith.addf %43, %44 : vector<32x128xf32>
    %cst_25 = arith.constant 0.000000e+00 : f32
    %46 = vector.broadcast %cst_25 : f32 to vector<32x128xf32>
    %47 = arith.cmpf oge, %45, %46 : vector<32x128xf32>
    %cst_26 = arith.constant 0.00999999977 : f32
    %48 = vector.broadcast %cst_26 : f32 to vector<32x128xf32>
    %49 = arith.mulf %48, %45 : vector<32x128xf32>
    %50 = arith.select %47, %45, %49 : vector<32x128xi1>, vector<32x128xf32>
    %c8 = arith.constant 8 : index
    %c0_27 = arith.constant 0 : index
    %51 = vector.load %arg7[%c8, %c0_27] : memref<32x128xf32, #tpu.memory_space<vmem>>, vector<1x128xf32>
    %c9 = arith.constant 9 : index
    %c0_28 = arith.constant 0 : index
    %52 = vector.load %arg7[%c9, %c0_28] : memref<32x128xf32, #tpu.memory_space<vmem>>, vector<1x128xf32>
    %c10 = arith.constant 10 : index
    %c0_29 = arith.constant 0 : index
    %53 = vector.load %arg7[%c10, %c0_29] : memref<32x128xf32, #tpu.memory_space<vmem>>, vector<1x128xf32>
    %c11 = arith.constant 11 : index
    %c0_30 = arith.constant 0 : index
    %54 = vector.load %arg7[%c11, %c0_30] : memref<32x128xf32, #tpu.memory_space<vmem>>, vector<1x128xf32>
    %c12 = arith.constant 12 : index
    %c0_31 = arith.constant 0 : index
    %55 = vector.load %arg7[%c12, %c0_31] : memref<32x128xf32, #tpu.memory_space<vmem>>, vector<1x128xf32>
    %c13 = arith.constant 13 : index
    %c0_32 = arith.constant 0 : index
    %56 = vector.load %arg7[%c13, %c0_32] : memref<32x128xf32, #tpu.memory_space<vmem>>, vector<1x128xf32>
    %c14 = arith.constant 14 : index
    %c0_33 = arith.constant 0 : index
    %57 = vector.load %arg7[%c14, %c0_33] : memref<32x128xf32, #tpu.memory_space<vmem>>, vector<1x128xf32>
    %c0_34 = arith.constant 0 : index
    %c0_35 = arith.constant 0 : index
    %c0_36 = arith.constant 0 : index
    %58 = vector.load %arg5[%c0_34, %c0_35, %c0_36] : memref<2x128x256xf32, #tpu.memory_space<vmem>>, vector<1x128x256xf32>
    %59 = vector.shape_cast %58 : vector<1x128x256xf32> to vector<128x256xf32>
    %cst_37 = arith.constant dense<0.000000e+00> : vector<32x256xf32>
    %60 = tpu.matmul %50, %59, %cst_37 {dimension_numbers = #tpu.dot_dimension_numbers<[1], [0], [0], [1], [0, 0, 1, 1], [], []>, precision = #tpu.contract_precision<fp32>} : vector<32x128xf32>, vector<128x256xf32>, vector<32x256xf32> -> vector<32x256xf32>
    %61 = vector.extract_strided_slice %60 {offsets = [0, 0], sizes = [32, 128], strides = [1, 1]} : vector<32x256xf32> to vector<32x128xf32>
    %62 = vector.broadcast %51 : vector<1x128xf32> to vector<32x128xf32>
    %63 = arith.addf %61, %62 : vector<32x128xf32>
    %64 = vector.extract_strided_slice %60 {offsets = [0, 128], sizes = [32, 128], strides = [1, 1]} : vector<32x256xf32> to vector<32x128xf32>
    %65 = vector.broadcast %52 : vector<1x128xf32> to vector<32x128xf32>
    %66 = arith.addf %64, %65 : vector<32x128xf32>
    %c0_38 = arith.constant 0 : index
    %c0_39 = arith.constant 0 : index
    %67 = vector.load %arg12[%c0_38, %c0_39] : memref<32x128xf32, #tpu.memory_space<vmem>>, vector<32x128xf32>
    tpu.vector_store %arg12[%c0_38, %c0_39], %66 {strides = array<i32>} : memref<32x128xf32, #tpu.memory_space<vmem>>, vector<32x128xf32>,
    %c8_40 = arith.constant 8 : index
    %c0_41 = arith.constant 0 : index
    %68 = vector.load %arg6[%c8_40, %c0_41] : memref<24x128xf32, #tpu.memory_space<vmem>>, vector<8x128xf32>
    %69 = vector.shape_cast %53 : vector<1x128xf32> to vector<1x1x128xf32>
    %c0_i32_42 = arith.constant 0 : i32
    %c4_i32_43 = arith.constant 4 : i32
    %70 = arith.addi %c0_i32_42, %c4_i32_43 : i32
    %c1_i32_44 = arith.constant 1 : i32
    scf.for %arg13 = %c0_i32_42 to %70 step %c1_i32_44  : i32 {
      %c8_i32 = arith.constant 8 : i32
      %140 = arith.muli %arg13, %c8_i32 : i32
      %141 = tpu.assume_multiple %140, 8 : i32
      %c256_i32 = arith.constant 256 : i32
      %142 = arith.muli %arg13, %c256_i32 : i32
      %143 = tpu.assume_multiple %142, 256 : i32
      %c0_88 = arith.constant 0 : index
      %144 = arith.index_cast %143 : i32 to index
      %c0_89 = arith.constant 0 : index
      %145 = vector.load %arg3[%c0_88, %144, %c0_89] : memref<1x1024x8xf32, #tpu.memory_space<vmem>>, vector<1x256x8xf32>
      %146 = vector.shape_cast %145 : vector<1x256x8xf32> to vector<256x8xf32>
      %cst_90 = arith.constant dense<0.000000e+00> : vector<256x128xf32>
      %147 = tpu.matmul %146, %68, %cst_90 {dimension_numbers = #tpu.dot_dimension_numbers<[1], [0], [0], [1], [0, 0, 1, 1], [], []>, precision = #tpu.contract_precision<fp32>} : vector<256x8xf32>, vector<8x128xf32>, vector<256x128xf32> -> vector<256x128xf32>
      %148 = arith.index_cast %141 : i32 to index
      %c0_91 = arith.constant 0 : index
      %149 = vector.load %arg12[%148, %c0_91] : memref<32x128xf32, #tpu.memory_space<vmem>>, vector<8x128xf32>
      %150 = vector.shape_cast %149 : vector<8x128xf32> to vector<8x1x128xf32>
      %151 = vector.shape_cast %63 : vector<32x128xf32> to vector<1x32x128xf32>
      %152 = vector.broadcast %150 : vector<8x1x128xf32> to vector<8x32x128xf32>
      %153 = vector.broadcast %151 : vector<1x32x128xf32> to vector<8x32x128xf32>
      %154 = arith.addf %152, %153 : vector<8x32x128xf32>
      %155 = vector.shape_cast %147 : vector<256x128xf32> to vector<8x32x128xf32>
      %156 = arith.addf %154, %155 : vector<8x32x128xf32>
      %cst_92 = arith.constant 0.000000e+00 : f32
      %157 = vector.broadcast %cst_92 : f32 to vector<8x32x128xf32>
      %158 = arith.cmpf oge, %156, %157 : vector<8x32x128xf32>
      %cst_93 = arith.constant 2.000000e-01 : f32
      %159 = vector.broadcast %cst_93 : f32 to vector<8x32x128xf32>
      %160 = arith.mulf %159, %156 : vector<8x32x128xf32>
      %161 = arith.select %158, %156, %160 : vector<8x32x128xi1>, vector<8x32x128xf32>
      %162 = vector.broadcast %69 : vector<1x1x128xf32> to vector<8x32x128xf32>
      %163 = arith.mulf %161, %162 : vector<8x32x128xf32>
      %cst_94 = arith.constant dense<0.000000e+00> : vector<8x32xf32>
      %164 = vector.multi_reduction <add>, %163, %cst_94 [2] : vector<8x32x128xf32> to vector<8x32xf32>
      %c0_95 = arith.constant 0 : index
      %165 = arith.index_cast %141 : i32 to index
      %c0_96 = arith.constant 0 : index
      %166 = vector.load %arg2[%c0_95, %165, %c0_96] : memref<1x32x32xf32, #tpu.memory_space<vmem>>, vector<1x8x32xf32>
      %167 = vector.shape_cast %166 : vector<1x8x32xf32> to vector<8x32xf32>
      %cst_97 = arith.constant 0.000000e+00 : f32
      %168 = vector.broadcast %cst_97 : f32 to vector<8x32xf32>
      %169 = arith.cmpf ogt, %167, %168 : vector<8x32xf32>
      %cst_98 = arith.constant -1.000000e+30 : f32
      %170 = vector.broadcast %cst_98 : f32 to vector<8x32xf32>
      %171 = arith.select %169, %164, %170 : vector<8x32xi1>, vector<8x32xf32>
      %cst_99 = arith.constant dense<0xFF800000> : vector<8xf32>
      %172 = vector.multi_reduction <maximumf>, %171, %cst_99 [1] : vector<8x32xf32> to vector<8xf32>
      %173 = vector.shape_cast %172 : vector<8xf32> to vector<8x1xf32>
      %174 = vector.broadcast %173 : vector<8x1xf32> to vector<8x32xf32>
      %175 = arith.subf %171, %174 : vector<8x32xf32>
      %176 = math.exp %175 : vector<8x32xf32>
      %177 = arith.mulf %176, %167 : vector<8x32xf32>
      %cst_100 = arith.constant dense<0.000000e+00> : vector<8xf32>
      %178 = vector.multi_reduction <add>, %177, %cst_100 [1] : vector<8x32xf32> to vector<8xf32>
      %179 = vector.shape_cast %178 : vector<8xf32> to vector<8x1xf32>
      %cst_101 = arith.constant 1.000000e-16 : f32
      %180 = vector.broadcast %cst_101 : f32 to vector<8x1xf32>
      %181 = arith.addf %179, %180 : vector<8x1xf32>
      %182 = vector.broadcast %181 : vector<8x1xf32> to vector<8x32xf32>
      %183 = arith.divf %177, %182 : vector<8x32xf32>
      %184 = arith.index_cast %141 : i32 to index
      %c0_102 = arith.constant 0 : index
      %185 = vector.load %arg11[%184, %c0_102] : memref<32x32xf32, #tpu.memory_space<vmem>>, vector<8x32xf32>
      tpu.vector_store %arg11[%184, %c0_102], %183 {strides = array<i32>} : memref<32x32xf32, #tpu.memory_space<vmem>>, vector<8x32xf32>,
    }
    %c4_i32_45 = arith.constant 4 : i32
    %c0_46 = arith.constant 0 : index
    %c0_47 = arith.constant 0 : index
    %71 = vector.load %arg11[%c0_46, %c0_47] : memref<32x32xf32, #tpu.memory_space<vmem>>, vector<32x32xf32>
    %cst_48 = arith.constant dense<0.000000e+00> : vector<32x128xf32>
    %72 = tpu.matmul %71, %63, %cst_48 {dimension_numbers = #tpu.dot_dimension_numbers<[1], [0], [0], [1], [0, 0, 1, 1], [], []>, precision = #tpu.contract_precision<fp32>} : vector<32x32xf32>, vector<32x128xf32>, vector<32x128xf32> -> vector<32x128xf32>
    %73 = vector.broadcast %54 : vector<1x128xf32> to vector<32x128xf32>
    %74 = arith.addf %72, %73 : vector<32x128xf32>
    %cst_49 = arith.constant dense<0.000000e+00> : vector<128xf32>
    %75 = vector.multi_reduction <add>, %74, %cst_49 [0] : vector<32x128xf32> to vector<128xf32>
    %76 = vector.shape_cast %75 : vector<128xf32> to vector<1x128xf32>
    %cst_50 = arith.constant 3.200000e+01 : f32
    %77 = vector.broadcast %cst_50 : f32 to vector<1x128xf32>
    %78 = arith.divf %76, %77 : vector<1x128xf32>
    %79 = arith.mulf %78, %57 : vector<1x128xf32>
    %80 = vector.broadcast %79 : vector<1x128xf32> to vector<32x128xf32>
    %81 = arith.subf %74, %80 : vector<32x128xf32>
    %82 = arith.mulf %81, %81 : vector<32x128xf32>
    %cst_51 = arith.constant dense<0.000000e+00> : vector<128xf32>
    %83 = vector.multi_reduction <add>, %82, %cst_51 [0] : vector<32x128xf32> to vector<128xf32>
    %84 = vector.shape_cast %83 : vector<128xf32> to vector<1x128xf32>
    %cst_52 = arith.constant 3.200000e+01 : f32
    %85 = vector.broadcast %cst_52 : f32 to vector<1x128xf32>
    %86 = arith.divf %84, %85 : vector<1x128xf32>
    %87 = vector.broadcast %55 : vector<1x128xf32> to vector<32x128xf32>
    %88 = arith.mulf %87, %81 : vector<32x128xf32>
    %cst_53 = arith.constant 9.99999974E-6 : f32
    %89 = vector.broadcast %cst_53 : f32 to vector<1x128xf32>
    %90 = arith.addf %86, %89 : vector<1x128xf32>
    %91 = math.rsqrt %90 : vector<1x128xf32>
    %92 = vector.broadcast %91 : vector<1x128xf32> to vector<32x128xf32>
    %93 = arith.mulf %88, %92 : vector<32x128xf32>
    %94 = vector.broadcast %56 : vector<1x128xf32> to vector<32x128xf32>
    %95 = arith.addf %93, %94 : vector<32x128xf32>
    %cst_54 = arith.constant 0.000000e+00 : f32
    %96 = vector.broadcast %cst_54 : f32 to vector<32x128xf32>
    %97 = arith.cmpf oge, %95, %96 : vector<32x128xf32>
    %cst_55 = arith.constant 0.00999999977 : f32
    %98 = vector.broadcast %cst_55 : f32 to vector<32x128xf32>
    %99 = arith.mulf %98, %95 : vector<32x128xf32>
    %100 = arith.select %97, %95, %99 : vector<32x128xi1>, vector<32x128xf32>
    %c16 = arith.constant 16 : index
    %c0_56 = arith.constant 0 : index
    %101 = vector.load %arg7[%c16, %c0_56] : memref<32x128xf32, #tpu.memory_space<vmem>>, vector<1x128xf32>
    %c17 = arith.constant 17 : index
    %c0_57 = arith.constant 0 : index
    %102 = vector.load %arg7[%c17, %c0_57] : memref<32x128xf32, #tpu.memory_space<vmem>>, vector<1x128xf32>
    %c18 = arith.constant 18 : index
    %c0_58 = arith.constant 0 : index
    %103 = vector.load %arg7[%c18, %c0_58] : memref<32x128xf32, #tpu.memory_space<vmem>>, vector<1x128xf32>
    %c19 = arith.constant 19 : index
    %c0_59 = arith.constant 0 : index
    %104 = vector.load %arg7[%c19, %c0_59] : memref<32x128xf32, #tpu.memory_space<vmem>>, vector<1x128xf32>
    %c1_60 = arith.constant 1 : index
    %c0_61 = arith.constant 0 : index
    %c0_62 = arith.constant 0 : index
    %105 = vector.load %arg5[%c1_60, %c0_61, %c0_62] : memref<2x128x256xf32, #tpu.memory_space<vmem>>, vector<1x128x256xf32>
    %106 = vector.shape_cast %105 : vector<1x128x256xf32> to vector<128x256xf32>
    %cst_63 = arith.constant dense<0.000000e+00> : vector<32x256xf32>
    %107 = tpu.matmul %100, %106, %cst_63 {dimension_numbers = #tpu.dot_dimension_numbers<[1], [0], [0], [1], [0, 0, 1, 1], [], []>, precision = #tpu.contract_precision<fp32>} : vector<32x128xf32>, vector<128x256xf32>, vector<32x256xf32> -> vector<32x256xf32>
    %108 = vector.extract_strided_slice %107 {offsets = [0, 0], sizes = [32, 128], strides = [1, 1]} : vector<32x256xf32> to vector<32x128xf32>
    %109 = vector.broadcast %101 : vector<1x128xf32> to vector<32x128xf32>
    %110 = arith.addf %108, %109 : vector<32x128xf32>
    %111 = vector.extract_strided_slice %107 {offsets = [0, 128], sizes = [32, 128], strides = [1, 1]} : vector<32x256xf32> to vector<32x128xf32>
    %112 = vector.broadcast %102 : vector<1x128xf32> to vector<32x128xf32>
    %113 = arith.addf %111, %112 : vector<32x128xf32>
    %c0_64 = arith.constant 0 : index
    %c0_65 = arith.constant 0 : index
    %114 = vector.load %arg12[%c0_64, %c0_65] : memref<32x128xf32, #tpu.memory_space<vmem>>, vector<32x128xf32>
    tpu.vector_store %arg12[%c0_64, %c0_65], %113 {strides = array<i32>} : memref<32x128xf32, #tpu.memory_space<vmem>>, vector<32x128xf32>,
    %c16_66 = arith.constant 16 : index
    %c0_67 = arith.constant 0 : index
    %115 = vector.load %arg6[%c16_66, %c0_67] : memref<24x128xf32, #tpu.memory_space<vmem>>, vector<8x128xf32>
    %116 = vector.shape_cast %103 : vector<1x128xf32> to vector<1x1x128xf32>
    %c0_i32_68 = arith.constant 0 : i32
    %c4_i32_69 = arith.constant 4 : i32
    %117 = arith.addi %c0_i32_68, %c4_i32_69 : i32
    %c1_i32_70 = arith.constant 1 : i32
    scf.for %arg13 = %c0_i32_68 to %117 step %c1_i32_70  : i32 {
      %c8_i32 = arith.constant 8 : i32
      %140 = arith.muli %arg13, %c8_i32 : i32
      %141 = tpu.assume_multiple %140, 8 : i32
      %c256_i32 = arith.constant 256 : i32
      %142 = arith.muli %arg13, %c256_i32 : i32
      %143 = tpu.assume_multiple %142, 256 : i32
      %c0_88 = arith.constant 0 : index
      %144 = arith.index_cast %143 : i32 to index
      %c0_89 = arith.constant 0 : index
      %145 = vector.load %arg3[%c0_88, %144, %c0_89] : memref<1x1024x8xf32, #tpu.memory_space<vmem>>, vector<1x256x8xf32>
      %146 = vector.shape_cast %145 : vector<1x256x8xf32> to vector<256x8xf32>
      %cst_90 = arith.constant dense<0.000000e+00> : vector<256x128xf32>
      %147 = tpu.matmul %146, %115, %cst_90 {dimension_numbers = #tpu.dot_dimension_numbers<[1], [0], [0], [1], [0, 0, 1, 1], [], []>, precision = #tpu.contract_precision<fp32>} : vector<256x8xf32>, vector<8x128xf32>, vector<256x128xf32> -> vector<256x128xf32>
      %148 = arith.index_cast %141 : i32 to index
      %c0_91 = arith.constant 0 : index
      %149 = vector.load %arg12[%148, %c0_91] : memref<32x128xf32, #tpu.memory_space<vmem>>, vector<8x128xf32>
      %150 = vector.shape_cast %149 : vector<8x128xf32> to vector<8x1x128xf32>
      %151 = vector.shape_cast %110 : vector<32x128xf32> to vector<1x32x128xf32>
      %152 = vector.broadcast %150 : vector<8x1x128xf32> to vector<8x32x128xf32>
      %153 = vector.broadcast %151 : vector<1x32x128xf32> to vector<8x32x128xf32>
      %154 = arith.addf %152, %153 : vector<8x32x128xf32>
      %155 = vector.shape_cast %147 : vector<256x128xf32> to vector<8x32x128xf32>
      %156 = arith.addf %154, %155 : vector<8x32x128xf32>
      %cst_92 = arith.constant 0.000000e+00 : f32
      %157 = vector.broadcast %cst_92 : f32 to vector<8x32x128xf32>
      %158 = arith.cmpf oge, %156, %157 : vector<8x32x128xf32>
      %cst_93 = arith.constant 2.000000e-01 : f32
      %159 = vector.broadcast %cst_93 : f32 to vector<8x32x128xf32>
      %160 = arith.mulf %159, %156 : vector<8x32x128xf32>
      %161 = arith.select %158, %156, %160 : vector<8x32x128xi1>, vector<8x32x128xf32>
      %162 = vector.broadcast %116 : vector<1x1x128xf32> to vector<8x32x128xf32>
      %163 = arith.mulf %161, %162 : vector<8x32x128xf32>
      %cst_94 = arith.constant dense<0.000000e+00> : vector<8x32xf32>
      %164 = vector.multi_reduction <add>, %163, %cst_94 [2] : vector<8x32x128xf32> to vector<8x32xf32>
      %c0_95 = arith.constant 0 : index
      %165 = arith.index_cast %141 : i32 to index
      %c0_96 = arith.constant 0 : index
      %166 = vector.load %arg2[%c0_95, %165, %c0_96] : memref<1x32x32xf32, #tpu.memory_space<vmem>>, vector<1x8x32xf32>
      %167 = vector.shape_cast %166 : vector<1x8x32xf32> to vector<8x32xf32>
      %cst_97 = arith.constant 0.000000e+00 : f32
      %168 = vector.broadcast %cst_97 : f32 to vector<8x32xf32>
      %169 = arith.cmpf ogt, %167, %168 : vector<8x32xf32>
      %cst_98 = arith.constant -1.000000e+30 : f32
      %170 = vector.broadcast %cst_98 : f32 to vector<8x32xf32>
      %171 = arith.select %169, %164, %170 : vector<8x32xi1>, vector<8x32xf32>
      %cst_99 = arith.constant dense<0xFF800000> : vector<8xf32>
      %172 = vector.multi_reduction <maximumf>, %171, %cst_99 [1] : vector<8x32xf32> to vector<8xf32>
      %173 = vector.shape_cast %172 : vector<8xf32> to vector<8x1xf32>
      %174 = vector.broadcast %173 : vector<8x1xf32> to vector<8x32xf32>
      %175 = arith.subf %171, %174 : vector<8x32xf32>
      %176 = math.exp %175 : vector<8x32xf32>
      %177 = arith.mulf %176, %167 : vector<8x32xf32>
      %cst_100 = arith.constant dense<0.000000e+00> : vector<8xf32>
      %178 = vector.multi_reduction <add>, %177, %cst_100 [1] : vector<8x32xf32> to vector<8xf32>
      %179 = vector.shape_cast %178 : vector<8xf32> to vector<8x1xf32>
      %cst_101 = arith.constant 1.000000e-16 : f32
      %180 = vector.broadcast %cst_101 : f32 to vector<8x1xf32>
      %181 = arith.addf %179, %180 : vector<8x1xf32>
      %182 = vector.broadcast %181 : vector<8x1xf32> to vector<8x32xf32>
      %183 = arith.divf %177, %182 : vector<8x32xf32>
      %184 = arith.index_cast %141 : i32 to index
      %c0_102 = arith.constant 0 : index
      %185 = vector.load %arg11[%184, %c0_102] : memref<32x32xf32, #tpu.memory_space<vmem>>, vector<8x32xf32>
      tpu.vector_store %arg11[%184, %c0_102], %183 {strides = array<i32>} : memref<32x32xf32, #tpu.memory_space<vmem>>, vector<8x32xf32>,
    }
    %c4_i32_71 = arith.constant 4 : i32
    %c0_72 = arith.constant 0 : index
    %c0_73 = arith.constant 0 : index
    %118 = vector.load %arg11[%c0_72, %c0_73] : memref<32x32xf32, #tpu.memory_space<vmem>>, vector<32x32xf32>
    %cst_74 = arith.constant dense<0.000000e+00> : vector<32x128xf32>
    %119 = tpu.matmul %118, %110, %cst_74 {dimension_numbers = #tpu.dot_dimension_numbers<[1], [0], [0], [1], [0, 0, 1, 1], [], []>, precision = #tpu.contract_precision<fp32>} : vector<32x32xf32>, vector<32x128xf32>, vector<32x128xf32> -> vector<32x128xf32>
    %120 = vector.broadcast %104 : vector<1x128xf32> to vector<32x128xf32>
    %121 = arith.addf %119, %120 : vector<32x128xf32>
    %c24 = arith.constant 24 : index
    %c0_75 = arith.constant 0 : index
    %122 = vector.load %arg7[%c24, %c0_75] : memref<32x128xf32, #tpu.memory_space<vmem>>, vector<1x128xf32>
    %c25 = arith.constant 25 : index
    %c0_76 = arith.constant 0 : index
    %123 = vector.load %arg7[%c25, %c0_76] : memref<32x128xf32, #tpu.memory_space<vmem>>, vector<1x128xf32>
    %c0_77 = arith.constant 0 : index
    %c0_78 = arith.constant 0 : index
    %124 = vector.load %arg8[%c0_77, %c0_78] : memref<128x128xf32, #tpu.memory_space<vmem>>, vector<128x128xf32>
    %cst_79 = arith.constant dense<0.000000e+00> : vector<32x128xf32>
    %125 = tpu.matmul %121, %124, %cst_79 {dimension_numbers = #tpu.dot_dimension_numbers<[1], [0], [0], [1], [0, 0, 1, 1], [], []>, precision = #tpu.contract_precision<fp32>} : vector<32x128xf32>, vector<128x128xf32>, vector<32x128xf32> -> vector<32x128xf32>
    %126 = vector.broadcast %122 : vector<1x128xf32> to vector<32x128xf32>
    %127 = arith.addf %125, %126 : vector<32x128xf32>
    %cst_80 = arith.constant 0.000000e+00 : f32
    %128 = vector.broadcast %cst_80 : f32 to vector<32x128xf32>
    %129 = arith.cmpf oge, %127, %128 : vector<32x128xf32>
    %cst_81 = arith.constant 0.00999999977 : f32
    %130 = vector.broadcast %cst_81 : f32 to vector<32x128xf32>
    %131 = arith.mulf %130, %127 : vector<32x128xf32>
    %132 = arith.select %129, %127, %131 : vector<32x128xi1>, vector<32x128xf32>
    %c0_82 = arith.constant 0 : index
    %c0_83 = arith.constant 0 : index
    %133 = vector.load %arg9[%c0_82, %c0_83] : memref<128x128xf32, #tpu.memory_space<vmem>>, vector<128x128xf32>
    %cst_84 = arith.constant dense<0.000000e+00> : vector<32x128xf32>
    %134 = tpu.matmul %132, %133, %cst_84 {dimension_numbers = #tpu.dot_dimension_numbers<[1], [0], [0], [1], [0, 0, 1, 1], [], []>, precision = #tpu.contract_precision<fp32>} : vector<32x128xf32>, vector<128x128xf32>, vector<32x128xf32> -> vector<32x128xf32>
    %135 = vector.broadcast %123 : vector<1x128xf32> to vector<32x128xf32>
    %136 = arith.addf %134, %135 : vector<32x128xf32>
    %c0_85 = arith.constant 0 : index
    %c0_86 = arith.constant 0 : index
    %c0_87 = arith.constant 0 : index
    %137 = vector.load %arg10[%c0_85, %c0_86, %c0_87] : memref<1x32x128xf32, #tpu.memory_space<vmem>>, vector<1x32x128xf32>
    %138 = vector.shape_cast %137 : vector<1x32x128xf32> to vector<32x128xf32>
    %139 = vector.shape_cast %136 : vector<32x128xf32> to vector<1x32x128xf32>
    tpu.vector_store %arg10[%c0_85, %c0_86, %c0_87], %139 {strides = array<i32>} : memref<1x32x128xf32, #tpu.memory_space<vmem>>, vector<1x32x128xf32>,
    return
  }
  func.func @transform_0(%arg0: i32) -> (i32, i32, i32) {
    %c0_i32 = arith.constant 0 : i32
    %c0_i32_0 = arith.constant 0 : i32
    %c0_i32_1 = arith.constant 0 : i32
    return %arg0, %c0_i32, %c0_i32_0 : i32, i32, i32
  }
  func.func @transform_1(%arg0: i32) -> (i32, i32, i32) {
    %c0_i32 = arith.constant 0 : i32
    %c0_i32_0 = arith.constant 0 : i32
    %c0_i32_1 = arith.constant 0 : i32
    return %arg0, %c0_i32, %c0_i32_0 : i32, i32, i32
  }
  func.func @transform_2(%arg0: i32) -> (i32, i32, i32) {
    %c0_i32 = arith.constant 0 : i32
    %c0_i32_0 = arith.constant 0 : i32
    %c0_i32_1 = arith.constant 0 : i32
    return %arg0, %c0_i32, %c0_i32_0 : i32, i32, i32
  }
  func.func @transform_3(%arg0: i32) -> (i32, i32) {
    %c0_i32 = arith.constant 0 : i32
    %c0_i32_0 = arith.constant 0 : i32
    %c0_i32_1 = arith.constant 0 : i32
    return %c0_i32, %c0_i32_0 : i32, i32
  }
  func.func @transform_4(%arg0: i32) -> (i32, i32, i32) {
    %c0_i32 = arith.constant 0 : i32
    %c0_i32_0 = arith.constant 0 : i32
    %c0_i32_1 = arith.constant 0 : i32
    %c0_i32_2 = arith.constant 0 : i32
    return %c0_i32, %c0_i32_0, %c0_i32_1 : i32, i32, i32
  }
  func.func @transform_5(%arg0: i32) -> (i32, i32) {
    %c0_i32 = arith.constant 0 : i32
    %c0_i32_0 = arith.constant 0 : i32
    %c0_i32_1 = arith.constant 0 : i32
    return %c0_i32, %c0_i32_0 : i32, i32
  }
  func.func @transform_6(%arg0: i32) -> (i32, i32) {
    %c0_i32 = arith.constant 0 : i32
    %c0_i32_0 = arith.constant 0 : i32
    %c0_i32_1 = arith.constant 0 : i32
    return %c0_i32, %c0_i32_0 : i32, i32
  }
  func.func @transform_7(%arg0: i32) -> (i32, i32) {
    %c0_i32 = arith.constant 0 : i32
    %c0_i32_0 = arith.constant 0 : i32
    %c0_i32_1 = arith.constant 0 : i32
    return %c0_i32, %c0_i32_0 : i32, i32
  }
  func.func @transform_8(%arg0: i32) -> (i32, i32) {
    %c0_i32 = arith.constant 0 : i32
    %c0_i32_0 = arith.constant 0 : i32
    %c0_i32_1 = arith.constant 0 : i32
    return %c0_i32, %c0_i32_0 : i32, i32
  }
  func.func @transform_9(%arg0: i32) -> (i32, i32, i32) {
    %c0_i32 = arith.constant 0 : i32
    %c0_i32_0 = arith.constant 0 : i32
    %c0_i32_1 = arith.constant 0 : i32
    return %arg0, %c0_i32, %c0_i32_0 : i32, i32, i32
  }
}

</mosaic_0001>

<bundles_post_ra>
// kernel: squeeze.1
= control target key start
LH: loop header
LB: loop body
LE: loop exit
PB: predicated region body
PF: predicated region fallthrough
CT: control target
= control target key end

     0   :  { %vm3_vm0 = vcmask 31744   ;;  %s84_s8 = smov 116   ;;  %s85_s13 = smov 120   ;;  %s167_s0 = inlined_call_operand.vmem [shape: f32[8,32], index: 0, kind: input, shape index: {}]   ;;  %s168_s1 = inlined_call_operand.vmem [shape: f32[64,4], index: 1, kind: output, shape index: {}]  }
   0x1   :  { %v6_v0 = vld [vmem:[%s167_s0] sm:$0xff]   ;;  %s83_s0 = smov 124   ;;  %s86_s14 = smov 112  }
   0x2   :  { %7 = vrot.lane.b32.xlu0 %v6_v0, %s83_s0  ;;  %23 = vrot.lane.b32.xlu1 %v6_v0, %s84_s8  ;;  %4 = vst.msk [vmem:[%s168_s1] ss:$8 sm:$0xf] %vm3_vm0, %v6_v0   ;;  %5 = vst.msk [vmem:[%s168_s1] ss:$8 sm:$0xf0] %vm3_vm0, %v6_v0  }
   0x3   :  { %s87_s15 = smov 108   ;;  %s88_s16 = smov 104  }
   0x4   :  { %s89_s17 = smov 100  }
   0x6   :  { %15 = vrot.lane.b32.xlu0 %v6_v0, %s85_s13  ;;  %31 = vrot.lane.b32.xlu1 %v6_v0, %s86_s14 }
   0xa   :  { %39 = vrot.lane.b32.xlu0 %v6_v0, %s87_s15  ;;  %47 = vrot.lane.b32.xlu1 %v6_v0, %s88_s16 }
   0xe   :  { %55 = vrot.lane.b32.xlu0 %v6_v0, %s89_s17 }
  0x74   :  { %v8_v1 = vpop.permute.xlu0 %7   ;;  %v24_v2 = vpop.permute.xlu1 %23  }
  0x75   :  { %62 = vst.msk [vmem:[%s168_s1 + $0x1] ss:$8 sm:$0xf] %vm3_vm0, %v8_v1   ;;  %63 = vst.msk [vmem:[%s168_s1 + $0x1] ss:$8 sm:$0xf0] %vm3_vm0, %v8_v1  }
  0x76   :  { %66 = vst.msk [vmem:[%s168_s1 + $0x3] ss:$8 sm:$0xf] %vm3_vm0, %v24_v2   ;;  %67 = vst.msk [vmem:[%s168_s1 + $0x3] ss:$8 sm:$0xf0] %vm3_vm0, %v24_v2  }
  0x78   :  { %v16_v3 = vpop.permute.xlu0 %15   ;;  %v32_v4 = vpop.permute.xlu1 %31  }
  0x79   :  { %64 = vst.msk [vmem:[%s168_s1 + $0x2] ss:$8 sm:$0xf] %vm3_vm0, %v16_v3   ;;  %65 = vst.msk [vmem:[%s168_s1 + $0x2] ss:$8 sm:$0xf0] %vm3_vm0, %v16_v3  }
  0x7a   :  { %68 = vst.msk [vmem:[%s168_s1 + $0x4] ss:$8 sm:$0xf] %vm3_vm0, %v32_v4   ;;  %69 = vst.msk [vmem:[%s168_s1 + $0x4] ss:$8 sm:$0xf0] %vm3_vm0, %v32_v4  }
  0x7c   :  { %v40_v5 = vpop.permute.xlu0 %39   ;;  %v48_v6 = vpop.permute.xlu1 %47  }
  0x7d   :  { %70 = vst.msk [vmem:[%s168_s1 + $0x5] ss:$8 sm:$0xf] %vm3_vm0, %v40_v5   ;;  %71 = vst.msk [vmem:[%s168_s1 + $0x5] ss:$8 sm:$0xf0] %vm3_vm0, %v40_v5  }
  0x7e   :  { %72 = vst.msk [vmem:[%s168_s1 + $0x6] ss:$8 sm:$0xf] %vm3_vm0, %v48_v6   ;;  %73 = vst.msk [vmem:[%s168_s1 + $0x6] ss:$8 sm:$0xf0] %vm3_vm0, %v48_v6  }
  0x80   :  { %v56_v7 = vpop.permute.xlu0 %55  }
  0x81   :  { %74 = vst.msk [vmem:[%s168_s1 + $0x7] ss:$8 sm:$0xf] %vm3_vm0, %v56_v7   ;;  %75 = vst.msk [vmem:[%s168_s1 + $0x7] ss:$8 sm:$0xf0] %vm3_vm0, %v56_v7  }

// kernel: gat_network_forward.1
= control target key start
LH: loop header
LB: loop body
LE: loop exit
PB: predicated region body
PF: predicated region fallthrough
CT: control target
= control target key end

     0   :  { %s17189_s30 = smov 0   ;;  %s23228_s0 = inlined_call_operand.vmem [shape: f32[8,32,8], index: 0, kind: input, shape index: {}]   ;;  %s23229_s1 = inlined_call_operand.vmem [shape: f32[8,32,32], index: 1, kind: input, shape index: {}]   ;;  %s23230_s2 = inlined_call_operand.vmem [shape: f32[8,1024,8], index: 2, kind: input, shape index: {}]   ;;  %s23231_s3 = inlined_call_operand.vmem [shape: f32[8,256], index: 3, kind: input, shape index: {}]   ;;  %s23232_s4 = inlined_call_operand.vmem [shape: f32[2,128,256], index: 4, kind: input, shape index: {}]   ;;  %s23233_s5 = inlined_call_operand.vmem [shape: f32[24,128], index: 5, kind: input, shape index: {}]   ;;  %s23234_s6 = inlined_call_operand.vmem [shape: f32[32,128], index: 6, kind: input, shape index: {}]   ;;  %s23235_s7 = inlined_call_operand.vmem [shape: f32[128,128], index: 7, kind: input, shape index: {}]   ;;  %s23236_s8 = inlined_call_operand.vmem [shape: f32[128,128], index: 8, kind: input, shape index: {}]   ;;  %s23237_s9 = inlined_call_operand.vmem [shape: f32[8,32,128], index: 9, kind: output, shape index: {}]  }
   0x1 LB: > { %s14391_s10 = sadd.s32 4294967295, %s17123_s30   ;;  %p14395_p0 = scmp.ge.s32.totalorder %s17123_s30, 1  ;;  %s17123_s30 = sphi %s17189_s30, %s19_s30  }
   0x2   : > { %p307_p1 = scmp.lt.s32.totalorder %s17123_s30, 9 }
   0x4   : > { %p308_p2 = pnand %p14395_p0, %p307_p1 }
   0x6   : > { %311 = sbr.rel (%p308_p2) target bundleno = 4928 (0x1340), region = 56 }
   0xb   : > { %v17200_v0 = vld [vmem:[%s23234_s6 + $0x2] ss:$0 sm:$0xff]  ;;  %v17205_v1 = vld [vmem:[%s23234_s6 + $0x3] ss:$0 sm:$0xff]  ;;  %v17210_v2 = vld [vmem:[%s23234_s6 + $0x4] ss:$0 sm:$0xff] }
   0xc   : > { %23729 = vst [vmem:[#allocation4_spill] sm:$0xff] %v17200_v0  ;;  %23730 = vst [vmem:[#allocation5_spill] sm:$0xff] %v17205_v1  ;;  %v17215_v3 = vld [vmem:[%s23234_s6 + $0x5] ss:$0 sm:$0xff]  ;;  %v17220_v4 = vld [vmem:[%s23234_s6 + $0x6] sm:$0x1] }
   0xd   : > { %23731 = vst [vmem:[#allocation6_spill] sm:$0xff] %v17210_v2  ;;  %23732 = vst [vmem:[#allocation7_spill] sm:$0xff] %v17215_v3  ;;  %v385_v5 = vld [vmem:[%s23231_s3 + $0x8] sm:$0xff]  ;;  %v384_v7 = vld [vmem:[%s23231_s3] sm:$0xff]  ;;  %v23238_v8 = vmov 0.0   ;;  %p353_p3 = scmp.lt.s32.totalorder %s14391_s10, 7 }
   0xe   : > { %23733 = vst [vmem:[#allocation8_spill] sm:$0xff] %v17220_v4  ;;  %v429_v6 = vand.u32 4294901760, %v385_v5  ;;  %465 = vmatprep.mubr.f32.mxu0 %v23238_v8  ;;  %584 = vmatprep.mubr.f32.mxu1 %v23238_v8  ;;  %v17230_v9 = vand.u32 4294901760, %v384_v7  ;;  %vm386_vm0 = vcmask 64512   ;;  %v17316_v46 = vld [vmem:[%s23233_s5] sm:$0xff] }
   0xf   : > { %s24586_s10 = smov (!%p353_p3, %s14391_s10), 7  ;;  %23734 = vst [vmem:[#allocation9_spill] sm:$0xff] %v17316_v46 }
  0x10   : > { %430 = vmatprep.subr.mxu0 %v429_v6  ;;  %v541_v10 = vsub.f32 %v385_v5, %v429_v6  ;;  %v17234_v11 = vsub.f32 %v384_v7, %v17230_v9  ;;  %s14462_s25 = sshll.u32 %s24586_s10, 5  ;;  %s14464_s26 = sshll.u32 %s24586_s10, 10 }
  0x11   : > { %432 = vmatpush1.msra.mxu0 %v17230_v9  ;;  %s357_s29 = scalar_lea.vmem %s23228_s0, %s14462_s25  ;;  %s17243_s13 = scalar_lea.vmem %s23229_s1, %s14462_s25 }
  0x12   : > { %v542_v12 = vand.u32 4294901760, %v541_v10  ;;  %645 = vmatprep.subr.mxu0 %v541_v10  ;;  %v548_v13 = vand.u32 4294901760, %v17234_v11  ;;  %s17248_s16 = scalar_lea.vmem %s23230_s2, %s14464_s26  ;;  %s17253_s18 = scalar_lea.vmem %s23237_s9, %s14462_s25  ;;  %v373_v15 = vld [vmem:[%s357_s29] sm:$0xff]  ;;  %v374_v16 = vld [vmem:[%s357_s29 + $0x8] sm:$0xff]  ;;  %v375_v17 = vld [vmem:[%s357_s29 + $0x10] sm:$0xff] }
  0x13   : > { %v388_v19 = vsel %vm386_vm0, %v373_v15, 0  ;;  %v391_v20 = vsel %vm386_vm0, %v374_v16, 0  ;;  %v394_v21 = vsel %vm386_vm0, %v375_v17, 0  ;;  %v376_v22 = vld [vmem:[%s357_s29 + $0x18] sm:$0xff]  ;;  %s17332_s25 = smov 0  }
  0x14   : > { %v543_v14 = vsub.f32 %v541_v10, %v542_v12  ;;  %v549_v18 = vsub.f32 %v17234_v11, %v548_v13  ;;  %v17261_v24 = vand.u32 4294901760, %v388_v19  ;;  %v17263_v25 = vand.u32 4294901760, %v391_v20 }
  0x15   : > { %v17265_v26 = vand.u32 4294901760, %v394_v21  ;;  %v397_v28 = vsel %vm386_vm0, %v376_v22, 0 }
  0x16   : > { %v544_v23 = vand.u32 4294901760, %v543_v14  ;;  %v550_v27 = vand.u32 4294901760, %v549_v18  ;;  %v467_v29 = vsub.f32 %v388_v19, %v17261_v24  ;;  %v478_v30 = vsub.f32 %v391_v20, %v17263_v25 }
  0x17   : > { %v489_v31 = vsub.f32 %v394_v21, %v17265_v26  ;;  %v17271_v32 = vand.u32 4294901760, %v397_v28 }
  0x18   : > { %545 = vmatprep.subr.mxu1 %v544_v23  ;;  %v468_v33 = vand.u32 4294901760, %v467_v29  ;;  %v479_v34 = vand.u32 4294901760, %v478_v30 }
  0x19   : > { %551 = vmatpush1.msra.mxu1 %v550_v27  ;;  %v490_v37 = vand.u32 4294901760, %v489_v31  ;;  %v500_v38 = vsub.f32 %v397_v28, %v17271_v32 }
  0x1a   : > { %586 = vmatmul.mubr.f32.vlgmr.msra.gmra.mxu1 %v17261_v24  ;;  %745 = vmatprep.subr.mxu1 %v429_v6  ;;  %v469_v35 = vsub.f32 %v467_v29, %v468_v33  ;;  %v480_v36 = vsub.f32 %v478_v30, %v479_v34 }
  0x1b   : > { %747 = vmatpush1.msra.mxu1 %v17230_v9  ;;  %591 = vmatprep.mubr.f32.mxu1 %v23238_v8  ;;  %v491_v41 = vsub.f32 %v489_v31, %v490_v37  ;;  %v501_v42 = vand.u32 4294901760, %v500_v38 }
  0x1c   : > { %947 = vmatprep.subr.mxu1 %v429_v6  ;;  %v470_v39 = vand.u32 4294901760, %v469_v35  ;;  %v481_v40 = vand.u32 4294901760, %v480_v36 }
  0x1d   : > { %v492_v43 = vand.u32 4294901760, %v491_v41  ;;  %v502_v44 = vsub.f32 %v500_v38, %v501_v42 }
  0x1e   : > { %593 = vmatmul.mubr.f32.gmra.mxu1 %v17263_v25  ;;  %471 = vmatmul.mubr.f32.vlgmr.msra.gmra.mxu0 %v470_v39 }
  0x1f   : > { %598 = vmatprep.mubr.f32.mxu1 %v23238_v8  ;;  %648 = vmatpush1.msra.mxu0 %v17234_v11  ;;  %v503_v45 = vand.u32 4294901760, %v502_v44 }
  0x20   : > { %476 = vmatprep.mubr.f32.mxu0 %v23238_v8  ;;  %850 = vmatprep.subr.mxu0 %v542_v12 }
  0x22   : > { %600 = vmatmul.mubr.f32.gmra.mxu1 %v17265_v26  ;;  %482 = vmatmul.mubr.f32.gmra.mxu0 %v481_v40  ;;  %v14404_v40 = vld [vmem:[%s23234_s6] ss:$0 sm:$0xff] }
  0x23   : > { %605 = vmatprep.mubr.f32.mxu1 %v23238_v8  ;;  %487 = vmatprep.mubr.f32.mxu0 %v23238_v8 }
  0x26   : > { %607 = vmatmul.mubr.f32.gmra.mxu1 %v17271_v32  ;;  %493 = vmatmul.mubr.f32.gmra.mxu0 %v492_v43 }
  0x27   : > { %780 = vmatprep.mubr.f32.mxu1 %v23238_v8  ;;  %498 = vmatprep.mubr.f32.mxu0 %v23238_v8 }
  0x2a   : > { %784 = vmatmul.mubr.f32.vlgmr.msra.gmra.mxu1 %v468_v33  ;;  %504 = vmatmul.mubr.f32.gmra.mxu0 %v503_v45 }
  0x2b   : > { %949 = vmatpush1.msra.mxu1 %v17230_v9  ;;  %789 = vmatprep.mubr.f32.mxu1 %v23238_v8 }
  0x2c   : > { %681 = vmatprep.mubr.f32.mxu0 %v23238_v8 }
  0x2e   : > { %793 = vmatmul.mubr.f32.gmra.mxu1 %v479_v34  ;;  %684 = vmatmul.mubr.f32.vlgmr.msra.gmra.mxu0 %v467_v29 }
  0x2f   : > { %798 = vmatprep.mubr.f32.mxu1 %v23238_v8  ;;  %854 = vmatpush1.msra.mxu0 %v548_v13 }
  0x30   : > { %689 = vmatprep.mubr.f32.mxu0 %v23238_v8 }
  0x32   : > { %802 = vmatmul.mubr.f32.gmra.mxu1 %v490_v37  ;;  %692 = vmatmul.mubr.f32.gmra.mxu0 %v478_v30 }
  0x33   : > { %807 = vmatprep.mubr.f32.mxu1 %v23238_v8  ;;  %697 = vmatprep.mubr.f32.mxu0 %v23238_v8 }
  0x36   : > { %811 = vmatmul.mubr.f32.gmra.mxu1 %v501_v42  ;;  %700 = vmatmul.mubr.f32.gmra.mxu0 %v489_v31 }
  0x37   : > { %982 = vmatprep.mubr.f32.mxu1 %v23238_v8  ;;  %705 = vmatprep.mubr.f32.mxu0 %v23238_v8 }
  0x3a   : > { %984 = vmatmul.mubr.f32.vlgmr.msra.gmra.mxu1 %v17261_v24  ;;  %708 = vmatmul.mubr.f32.gmra.mxu0 %v500_v38 }
  0x3b   : > { %989 = vmatprep.mubr.f32.mxu1 %v23238_v8  ;;  %887 = vmatprep.mubr.f32.mxu0 %v23238_v8 }
  0x3e   : > { %991 = vmatmul.mubr.f32.gmra.mxu1 %v17263_v25  ;;  %889 = vmatmul.mubr.f32.vlgmr.msra.gmra.mxu0 %v17261_v24 }
  0x3f   : > { %996 = vmatprep.mubr.f32.mxu1 %v23238_v8  ;;  %894 = vmatprep.mubr.f32.mxu0 %v23238_v8 }
  0x42   : > { %998 = vmatmul.mubr.f32.gmra.mxu1 %v17265_v26  ;;  %896 = vmatmul.mubr.f32.gmra.mxu0 %v17263_v25 }
  0x43   : > { %1003 = vmatprep.mubr.f32.mxu1 %v23238_v8  ;;  %901 = vmatprep.mubr.f32.mxu0 %v23238_v8 }
  0x46   : > { %1005 = vmatmul.mubr.f32.gmra.mxu1 %v17271_v32  ;;  %903 = vmatmul.mubr.f32.gmra.mxu0 %v17265_v26 }
  0x47   : > { %908 = vmatprep.mubr.f32.mxu0 %v23238_v8 }
  0x4a   : > { %910 = vmatmul.mubr.f32.gmra.mxu0 %v17271_v32 }
  0xda   : > { %v587_v47 = vpop.f32.mrf.mxu1 }
  0xdc   : > { %v589_v48 = vpop.f32.mrf.mxu1 }
  0xde   : > { %v594_v49 = vpop.f32.mrf.mxu1  ;;  %v472_v50 = vpop.f32.mrf.mxu0 }
  0xdf   : > { %v588_v18 = vadd.f32 %v587_v47, %v472_v50 }
  0xe0   : > { %v596_v51 = vpop.f32.mrf.mxu1  ;;  %v474_v52 = vpop.f32.mrf.mxu0 }
  0xe1   : > { %v590_v21 = vadd.f32 %v589_v48, %v474_v52  ;;  %v14405_v48 = vld [vmem:[%s23234_s6 + $0x1] ss:$0 sm:$0xff] }
  0xe2   : > { %v601_v53 = vpop.f32.mrf.mxu1  ;;  %v483_v54 = vpop.f32.mrf.mxu0 }
  0xe3   : > { %v595_v25 = vadd.f32 %v594_v49, %v483_v54 }
  0xe4   : > { %v603_v55 = vpop.f32.mrf.mxu1  ;;  %v485_v56 = vpop.f32.mrf.mxu0 }
  0xe5   : > { %v597_v29 = vadd.f32 %v596_v51, %v485_v56 }
  0xe6   : > { %v608_v57 = vpop.f32.mrf.mxu1  ;;  %v494_v58 = vpop.f32.mrf.mxu0 }
  0xe7   : > { %v602_v32 = vadd.f32 %v601_v53, %v494_v58 }
  0xe8   : > { %v610_v59 = vpop.f32.mrf.mxu1  ;;  %v496_v60 = vpop.f32.mrf.mxu0 }
  0xe9   : > { %v604_v38 = vadd.f32 %v603_v55, %v496_v60 }
  0xea   : > { %v785_v61 = vpop.f32.mrf.mxu1  ;;  %v505_v62 = vpop.f32.mrf.mxu0 }
  0xeb   : > { %v609_v45 = vadd.f32 %v608_v57, %v505_v62 }
  0xec   : > { %v787_v63 = vpop.f32.mrf.mxu1  ;;  %v507_v5 = vpop.f32.mrf.mxu0 }
  0xed   : > { %v611_v55 = vadd.f32 %v610_v59, %v507_v5 }
  0xee   : > { %v794_v6 = vpop.f32.mrf.mxu1  ;;  %v685_v7 = vpop.f32.mrf.mxu0 }
  0xef   : > { %v686_v22 = vadd.f32 %v685_v7, %v588_v18 }
  0xf0   : > { %v796_v9 = vpop.f32.mrf.mxu1  ;;  %v687_v10 = vpop.f32.mrf.mxu0 }
  0xf1   : > { %v688_v26 = vadd.f32 %v687_v10, %v590_v21  ;;  %v786_v30 = vadd.f32 %v785_v61, %v686_v22 }
  0xf2   : > { %v803_v11 = vpop.f32.mrf.mxu1  ;;  %v693_v12 = vpop.f32.mrf.mxu0 }
  0xf3   : > { %v694_v31 = vadd.f32 %v693_v12, %v595_v25  ;;  %v788_v35 = vadd.f32 %v787_v63, %v688_v26 }
  0xf4   : > { %v805_v13 = vpop.f32.mrf.mxu1  ;;  %v695_v14 = vpop.f32.mrf.mxu0 }
  0xf5   : > { %v696_v36 = vadd.f32 %v695_v14, %v597_v29  ;;  %v795_v42 = vadd.f32 %v794_v6, %v694_v31 }
  0xf6   : > { %v812_v15 = vpop.f32.mrf.mxu1  ;;  %v701_v16 = vpop.f32.mrf.mxu0 }
  0xf7   : > { %v702_v39 = vadd.f32 %v701_v16, %v602_v32  ;;  %v797_v51 = vadd.f32 %v796_v9, %v696_v36 }
  0xf8   : > { %v814_v17 = vpop.f32.mrf.mxu1  ;;  %v703_v19 = vpop.f32.mrf.mxu0 }
  0xf9   : > { %v704_v47 = vadd.f32 %v703_v19, %v604_v38  ;;  %v804_v56 = vadd.f32 %v803_v11, %v702_v39 }
  0xfa   : > { %v985_v20 = vpop.f32.mrf.mxu1  ;;  %v709_v23 = vpop.f32.mrf.mxu0 }
  0xfb   : > { %v710_v60 = vadd.f32 %v709_v23, %v609_v45  ;;  %v806_v57 = vadd.f32 %v805_v13, %v704_v47 }
  0xfc   : > { %v987_v24 = vpop.f32.mrf.mxu1  ;;  %v711_v27 = vpop.f32.mrf.mxu0 }
  0xfd   : > { %v712_v10 = vadd.f32 %v711_v27, %v611_v55  ;;  %v813_v18 = vadd.f32 %v812_v15, %v710_v60 }
  0xfe   : > { %v992_v28 = vpop.f32.mrf.mxu1  ;;  %v890_v33 = vpop.f32.mrf.mxu0 }
  0xff   : > { %v891_v37 = vadd.f32 %v890_v33, %v786_v30  ;;  %v815_v21 = vadd.f32 %v814_v17, %v712_v10 }
 0x100   : > { %v994_v34 = vpop.f32.mrf.mxu1  ;;  %v892_v41 = vpop.f32.mrf.mxu0 }
 0x101   : > { %v986_v43 = vadd.f32 %v985_v20, %v891_v37  ;;  %v893_v44 = vadd.f32 %v892_v41, %v788_v35 }
 0x102   : > { %v897_v49 = vpop.f32.mrf.mxu0  ;;  %v999_v50 = vpop.f32.mrf.mxu1 }
 0x103   : > { %v17324_v52 = vadd.f32 %v14404_v40, %v986_v43  ;;  %v988_v53 = vadd.f32 %v987_v24, %v893_v44  ;;  %v898_v54 = vadd.f32 %v897_v49, %v795_v42 }
 0x104   : > { %v899_v58 = vpop.f32.mrf.mxu0  ;;  %v1001_v7 = vpop.f32.mrf.mxu1 }
 0x105   : > { %23735 = vst [vmem:[#allocation10_spill] sm:$0xff] %v17324_v52  ;;  %v1023_v61 = vadd.f32 %v14405_v48, %v988_v53  ;;  %v993_v63 = vadd.f32 %v992_v28, %v898_v54  ;;  %v900_v6 = vadd.f32 %v899_v58, %v797_v51 }
 0x106   : > { %v904_v62 = vpop.f32.mrf.mxu0  ;;  %v1006_v11 = vpop.f32.mrf.mxu1 }
 0x107   : > { %1027 = vst [vmem:[#allocation3] sm:$0xff] %v1023_v61  ;;  %v17326_v12 = vadd.f32 %v14404_v40, %v993_v63  ;;  %v995_v14 = vadd.f32 %v994_v34, %v900_v6  ;;  %v905_v9 = vadd.f32 %v904_v62, %v804_v56 }
 0x108   : > { %v906_v16 = vpop.f32.mrf.mxu0  ;;  %v1008_v28 = vpop.f32.mrf.mxu1 }
 0x109   : > { %23736 = vst [vmem:[#allocation11_spill] sm:$0xff] %v17326_v12  ;;  %v1024_v19 = vadd.f32 %v14405_v48, %v995_v14  ;;  %v1000_v20 = vadd.f32 %v999_v50, %v905_v9  ;;  %v907_v59 = vadd.f32 %v906_v16, %v806_v57 }
 0x10a   : > { %v911_v5 = vpop.f32.mrf.mxu0 }
 0x10b   : > { %1028 = vst [vmem:[#allocation3 + $0x8] sm:$0xff] %v1024_v19  ;;  %v17328_v22 = vadd.f32 %v14404_v40, %v1000_v20  ;;  %v1002_v13 = vadd.f32 %v1001_v7, %v907_v59  ;;  %v912_v23 = vadd.f32 %v911_v5, %v813_v18 }
 0x10c   : > { %v913_v24 = vpop.f32.mrf.mxu0 }
 0x10d   : > { %23737 = vst [vmem:[#allocation12_spill] sm:$0xff] %v17328_v22  ;;  %v1025_v25 = vadd.f32 %v14405_v48, %v1002_v13  ;;  %v1007_v26 = vadd.f32 %v1006_v11, %v912_v23  ;;  %v914_v27 = vadd.f32 %v913_v24, %v815_v21 }
 0x10f   : > { %1029 = vst [vmem:[#allocation3 + $0x10] sm:$0xff] %v1025_v25  ;;  %v17330_v29 = vadd.f32 %v14404_v40, %v1007_v26  ;;  %v1009_v15 = vadd.f32 %v1008_v28, %v914_v27 }
 0x111   : > { %23738 = vst [vmem:[#allocation13_spill] sm:$0xff] %v17330_v29  ;;  %v1026_v30 = vadd.f32 %v14405_v48, %v1009_v15 }
 0x113   : > { %1030 = vst [vmem:[#allocation3 + $0x18] sm:$0xff] %v1026_v30 }
 0x114 LB: >> { %v23739_v46 = vld [vmem:[#allocation9_spill] sm:$0xff]  ;;  %s14407_s26 = sshll.u32 %s17127_s25, 8  ;;  %s18040_s28 = sshll.u32 %s17127_s25, 3  ;;  %s17127_s25 = sphi %s17332_s25, %s1037_s25  }
 0x115   : >> { %v17338_v17 = vand.u32 4294901760, %v23739_v46  ;;  %s17348_s27 = scalar_lea.vmem %s17248_s16, %s14407_s26  ;;  %s2948_s29 = scalar_lea.vmem [#allocation3], %s18040_s28 }
 0x116   : >> { %v1041_v33 = vld [vmem:[%s17348_s27] sm:$0xff]  ;;  %v1042_v34 = vld [vmem:[%s17348_s27 + $0x8] sm:$0xff]  ;;  %v1043_v35 = vld [vmem:[%s17348_s27 + $0x10] sm:$0xff]  ;;  %s3300_s11 = scalar_lea.vmem %s17243_s13, %s18040_s28  ;;  %s3525_s12 = scalar_lea.vmem [#allocation2], %s18040_s28 }
 0x117   : >> { %15444 = vmatprep.subr.mxu0 %v17338_v17  ;;  %v17343_v31 = vsub.f32 %v23739_v46, %v17338_v17  ;;  %v1074_v36 = vsel %vm386_vm0, %v1041_v33, 0  ;;  %v1077_v37 = vsel %vm386_vm0, %v1042_v34, 0  ;;  %v1080_v38 = vsel %vm386_vm0, %v1043_v35, 0  ;;  %v1044_v39 = vld [vmem:[%s17348_s27 + $0x18] sm:$0xff]  ;;  %v1045_v40 = vld [vmem:[%s17348_s27 + $0x20] sm:$0xff]  ;;  %v1046_v41 = vld [vmem:[%s17348_s27 + $0x28] sm:$0xff] }
 0x118   : >> { %15445 = vmatpush3.msra.mxu0 %v17338_v17  ;;  %v17365_v43 = vand.u32 4294901760, %v1074_v36  ;;  %v17367_v44 = vand.u32 4294901760, %v1077_v37  ;;  %v17369_v45 = vand.u32 4294901760, %v1080_v38  ;;  %v1047_v47 = vld [vmem:[%s17348_s27 + $0x30] sm:$0xff]  ;;  %v1083_v48 = vsel %vm386_vm0, %v1044_v39, 0  ;;  %v1048_v53 = vld [vmem:[%s17348_s27 + $0x38] sm:$0xff] }
 0x119   : >> { %v17351_v32 = vand.u32 4294901760, %v17343_v31  ;;  %15544 = vmatprep.subr.mxu0 %v17343_v31  ;;  %v1086_v49 = vsel %vm386_vm0, %v1045_v40, 0  ;;  %v1089_v50 = vsel %vm386_vm0, %v1046_v41, 0  ;;  %v1092_v51 = vsel %vm386_vm0, %v1047_v47, 0  ;;  %v1049_v11 = vld [vmem:[%s17348_s27 + $0x40] sm:$0xff]  ;;  %v1050_v25 = vld [vmem:[%s17348_s27 + $0x48] sm:$0xff] }
 0x11a   : >> { %v17378_v55 = vsub.f32 %v1074_v36, %v17365_v43  ;;  %15496 = vmatprep.mubr.f32.mxu1 %v17365_v43  ;;  %v17382_v56 = vsub.f32 %v1077_v37, %v17367_v44  ;;  %v17385_v58 = vsub.f32 %v1080_v38, %v17369_v45  ;;  %v17387_v60 = vand.u32 4294901760, %v1083_v48  ;;  %v1051_v26 = vld [vmem:[%s17348_s27 + $0x50] sm:$0xff]  ;;  %v1052_v37 = vld [vmem:[%s17348_s27 + $0x58] sm:$0xff]  ;;  %v1053_v38 = vld [vmem:[%s17348_s27 + $0x60] sm:$0xff]  ;;  %s1037_s25 = sadd.s32 1, %s17127_s25  }
 0x11b   : >> { %v1589_v42 = vsub.f32 %v17343_v31, %v17351_v32  ;;  %v17389_v61 = vand.u32 4294901760, %v1086_v49  ;;  %v17391_v63 = vand.u32 4294901760, %v1089_v50  ;;  %v17393_v6 = vand.u32 4294901760, %v1092_v51  ;;  %v1054_v47 = vld [vmem:[%s17348_s27 + $0x68] sm:$0xff]  ;;  %v1065_v0 = vld [vmem:[%s17348_s27 + $0xc0] sm:$0xff]  ;;  %p1034_p4 = scmp.ge.s32.totalorder %s1037_s25, 4  }
 0x11c   : >> { %v23251_v57 = vand.u32 4294901760, %v17378_v55  ;;  %v23250_v62 = vand.u32 4294901760, %v17382_v56  ;;  %v23249_v7 = vand.u32 4294901760, %v17385_v58  ;;  %v1095_v10 = vsel %vm386_vm0, %v1048_v53, 0 }
 0x11d   : >> { %v1590_v54 = vand.u32 4294901760, %v1589_v42  ;;  %v17400_v14 = vsub.f32 %v1083_v48, %v17387_v60  ;;  %v17403_v9 = vsub.f32 %v1086_v49, %v17389_v61  ;;  %v17406_v16 = vsub.f32 %v1089_v50, %v17391_v63  ;;  %v1055_v48 = vld [vmem:[%s17348_s27 + $0x70] sm:$0xff] }
 0x11e   : >> { %v17409_v18 = vsub.f32 %v1092_v51, %v17393_v6  ;;  %v1238_v19 = vsub.f32 %v17378_v55, %v23251_v57  ;;  %v1248_v20 = vsub.f32 %v17382_v56, %v23250_v62  ;;  %v1258_v59 = vsub.f32 %v17385_v58, %v23249_v7  ;;  %v1062_v57 = vld [vmem:[%s17348_s27 + $0xa8] sm:$0xff] }
 0x11f   : >> { %15494 = vmatprep.subr.mxu1 %v1590_v54  ;;  %v17422_v5 = vand.u32 4294901760, %v1095_v10  ;;  %v23248_v21 = vand.u32 4294901760, %v17400_v14  ;;  %v23247_v13 = vand.u32 4294901760, %v17403_v9  ;;  %v23245_v23 = vand.u32 4294901760, %v17406_v16 }
 0x120   : >> { %15495 = vmatpush3.msra.mxu1 %v1590_v54  ;;  %v23243_v24 = vand.u32 4294901760, %v17409_v18  ;;  %v1239_v27 = vand.u32 4294901760, %v1238_v19  ;;  %v1249_v28 = vand.u32 4294901760, %v1248_v20  ;;  %v1259_v15 = vand.u32 4294901760, %v1258_v59 }
 0x121   : >> { %15497 = vmatmul.mubr.f32.vlgmr.msra.gmra.mxu1 %v17367_v44  ;;  %15594 = vmatprep.subr.mxu1 %v17338_v17  ;;  %v17434_v30 = vsub.f32 %v1095_v10, %v17422_v5  ;;  %v1268_v33 = vsub.f32 %v17400_v14, %v23248_v21  ;;  %v1278_v34 = vsub.f32 %v17403_v9, %v23247_v13  ;;  %v1098_v40 = vsel %vm386_vm0, %v1049_v11, 0  ;;  %v1060_v13 = vld [vmem:[%s17348_s27 + $0x98] sm:$0xff]  ;;  %v1061_v21 = vld [vmem:[%s17348_s27 + $0xa0] sm:$0xff] }
 0x122   : >> { %15595 = vmatpush3.msra.mxu1 %v17338_v17  ;;  %15499 = vmatprep.mubr.f32.mxu1 %v17369_v45  ;;  %v1288_v35 = vsub.f32 %v17406_v16, %v23245_v23  ;;  %v1298_v36 = vsub.f32 %v17409_v18, %v23243_v24  ;;  %v1101_v41 = vsel %vm386_vm0, %v1050_v25, 0  ;;  %v1104_v42 = vsel %vm386_vm0, %v1051_v26, 0  ;;  %v1056_v26 = vld [vmem:[%s17348_s27 + $0x78] sm:$0xff] }
 0x123   : >> { %15694 = vmatprep.subr.mxu1 %v17338_v17  ;;  %15446 = vmatprep.mubr.f32.mxu0 %v1239_v27  ;;  %v23242_v39 = vand.u32 4294901760, %v17434_v30  ;;  %v1269_v49 = vand.u32 4294901760, %v1268_v33  ;;  %v1279_v50 = vand.u32 4294901760, %v1278_v34  ;;  %v17460_v54 = vand.u32 4294901760, %v1098_v40 }
 0x124   : >> { %15447 = vmatmul.mubr.f32.vlgmr.msra.gmra.mxu0 %v1249_v28  ;;  %v1289_v51 = vand.u32 4294901760, %v1288_v35  ;;  %v1299_v53 = vand.u32 4294901760, %v1298_v36  ;;  %v17462_v10 = vand.u32 4294901760, %v1101_v41  ;;  %v17464_v19 = vand.u32 4294901760, %v1104_v42 }
 0x125   : >> { %15500 = vmatmul.mubr.f32.gmra.mxu1 %v17387_v60  ;;  %15545 = vmatpush3.msra.mxu0 %v17343_v31  ;;  %v1107_v20 = vsel %vm386_vm0, %v1052_v37, 0  ;;  %v1110_v59 = vsel %vm386_vm0, %v1053_v38, 0  ;;  %v1113_v11 = vsel %vm386_vm0, %v1054_v47, 0  ;;  %v1116_v25 = vsel %vm386_vm0, %v1055_v48, 0 }
 0x126   : >> { %15502 = vmatprep.mubr.f32.mxu1 %v17389_v61  ;;  %15449 = vmatprep.mubr.f32.mxu0 %v1259_v15  ;;  %23740 = vst [vmem:[#allocation14_spill] sm:$0xff] %v17462_v10  ;;  %23741 = vst [vmem:[#allocation15_spill] sm:$0xff] %v17464_v19  ;;  %v1308_v31 = vsub.f32 %v17434_v30, %v23242_v39  ;;  %v17477_v27 = vsub.f32 %v1098_v40, %v17460_v54  ;;  %v17486_v33 = vand.u32 4294901760, %v1107_v20 }
 0x127   : >> { %15644 = vmatprep.subr.mxu0 %v17351_v32  ;;  %v17480_v28 = vsub.f32 %v1101_v41, %v17462_v10  ;;  %v17483_v15 = vsub.f32 %v1104_v42, %v17464_v19  ;;  %v17488_v34 = vand.u32 4294901760, %v1110_v59  ;;  %v17490_v35 = vand.u32 4294901760, %v1113_v11 }
 0x128   : >> { %15450 = vmatmul.mubr.f32.gmra.mxu0 %v1269_v49  ;;  %23742 = vst [vmem:[#allocation16_spill] sm:$0xff] %v17486_v33  ;;  %v17492_v36 = vand.u32 4294901760, %v1116_v25  ;;  %v23241_v37 = vand.u32 4294901760, %v17477_v27  ;;  %v1119_v41 = vsel %vm386_vm0, %v1056_v26, 0  ;;  %v17499_v42 = vsub.f32 %v1107_v20, %v17486_v33 }
 0x129   : >> { %15503 = vmatmul.mubr.f32.gmra.mxu1 %v17391_v63  ;;  %23743 = vst [vmem:[#allocation17_spill] sm:$0xff] %v17488_v34  ;;  %23744 = vst [vmem:[#allocation18_spill] sm:$0xff] %v17490_v35  ;;  %15452 = vmatprep.mubr.f32.mxu0 %v1279_v50  ;;  %v23244_v38 = vand.u32 4294901760, %v17480_v28  ;;  %v23246_v40 = vand.u32 4294901760, %v17483_v15  ;;  %v17502_v47 = vsub.f32 %v1110_v59, %v17488_v34  ;;  %v1309_v49 = vand.u32 4294901760, %v1308_v31  ;;  %v1057_v31 = vld [vmem:[%s17348_s27 + $0x80] sm:$0xff] }
 0x12a   : >> { %15505 = vmatprep.mubr.f32.mxu1 %v17393_v6  ;;  %23745 = vst [vmem:[#allocation19_spill] sm:$0xff] %v17492_v36  ;;  %v17505_v48 = vsub.f32 %v1113_v11, %v17490_v35  ;;  %v1318_v50 = vsub.f32 %v17477_v27, %v23241_v37  ;;  %v17511_v8 = vand.u32 4294901760, %v1119_v41  ;;  %v23252_v11 = vand.u32 4294901760, %v17499_v42  ;;  %v1058_v37 = vld [vmem:[%s17348_s27 + $0x88] sm:$0xff] }
 0x12b   : >> { %v1328_v20 = vsub.f32 %v17480_v28, %v23244_v38  ;;  %v1338_v59 = vsub.f32 %v17483_v15, %v23246_v40  ;;  %v17522_v26 = vsub.f32 %v1116_v25, %v17492_v36  ;;  %v23253_v24 = vand.u32 4294901760, %v17502_v47  ;;  %v1063_v38 = vld [vmem:[%s17348_s27 + $0xb0] sm:$0xff] }
 0x12c   : >> { %23746 = vst [vmem:[#allocation20_spill] sm:$0xff] %v17511_v8  ;;  %15453 = vmatmul.mubr.f32.gmra.mxu0 %v1289_v51  ;;  %v1059_v51 = vld [vmem:[%s17348_s27 + $0x90] sm:$0xff]  ;;  %v1319_v39 = vand.u32 4294901760, %v1318_v50  ;;  %v17530_v23 = vsub.f32 %v1119_v41, %v17511_v8  ;;  %v1348_v25 = vsub.f32 %v17499_v42, %v23252_v11  ;;  %v1122_v40 = vsel %vm386_vm0, %v1057_v31, 0 }
 0x12d   : >> { %15506 = vmatmul.mubr.f32.gmra.mxu1 %v17422_v5  ;;  %15455 = vmatprep.mubr.f32.mxu0 %v1299_v53  ;;  %v1125_v53 = vsel %vm386_vm0, %v1058_v37, 0  ;;  %v1128_v50 = vsel %vm386_vm0, %v1059_v51, 0  ;;  %v1329_v7 = vand.u32 4294901760, %v1328_v20  ;;  %v1339_v62 = vand.u32 4294901760, %v1338_v59 }
 0x12e   : >> { %15508 = vmatprep.mubr.f32.mxu1 %v17460_v54  ;;  %v1358_v31 = vsub.f32 %v17502_v47, %v23253_v24  ;;  %v17547_v11 = vand.u32 4294901760, %v1122_v40  ;;  %v17549_v37 = vand.u32 4294901760, %v1125_v53  ;;  %v17551_v51 = vand.u32 4294901760, %v1128_v50 }
 0x12f   : >> { %v1131_v59 = vsel %vm386_vm0, %v1060_v13, 0  ;;  %v1134_v41 = vsel %vm386_vm0, %v1061_v21, 0  ;;  %v1137_v3 = vsel %vm386_vm0, %v1062_v57, 0  ;;  %v23753_v24 = vand.u32 4294901760, %v17522_v26 }
 0x130   : >> { %15456 = vmatmul.mubr.f32.gmra.mxu0 %v1309_v49  ;;  %23747 = vst [vmem:[#allocation21_spill] sm:$0xff] %v17547_v11  ;;  %23748 = vst [vmem:[#allocation22_spill] sm:$0xff] %v17549_v37  ;;  %v23750_v49 = vand.u32 4294901760, %v17505_v48  ;;  %v17562_v46 = vsub.f32 %v1122_v40, %v17547_v11  ;;  %v17569_v13 = vand.u32 4294901760, %v1131_v59  ;;  %v17571_v21 = vand.u32 4294901760, %v1134_v41 }
 0x131   : >> { %15509 = vmatmul.mubr.f32.gmra.mxu1 %v17462_v10  ;;  %15458 = vmatprep.mubr.f32.mxu0 %v1319_v39  ;;  %23749 = vst [vmem:[#allocation23_spill] sm:$0xff] %v17551_v51  ;;  %v1349_v39 = vand.u32 4294901760, %v1348_v25  ;;  %v1140_v25 = vsel %vm386_vm0, %v1063_v38, 0  ;;  %v1359_v2 = vand.u32 4294901760, %v1358_v31  ;;  %v1378_v40 = vsub.f32 %v17522_v26, %v23753_v24  ;;  %v1067_v31 = vld [vmem:[%s17348_s27 + $0xd0] sm:$0xff] }
 0x132   : >> { %15511 = vmatprep.mubr.f32.mxu1 %v17464_v19  ;;  %v1368_v20 = vsub.f32 %v17505_v48, %v23750_v49  ;;  %v17567_v49 = vsub.f32 %v1125_v53, %v17549_v37  ;;  %23751 = vst [vmem:[#allocation24_spill] sm:$0xff] %v17569_v13  ;;  %23752 = vst [vmem:[#allocation25_spill] sm:$0xff] %v17571_v21  ;;  %v1064_v53 = vld [vmem:[%s17348_s27 + $0xb8] sm:$0xff]  ;;  %v17582_v4 = vand.u32 4294901760, %v1137_v3  ;;  %v17588_v38 = vand.u32 4294901760, %v1140_v25 }
 0x133   : >> { %v23755_v24 = vand.u32 4294901760, %v17530_v23  ;;  %v1143_v57 = vsel %vm386_vm0, %v1064_v53, 0  ;;  %v23756_v22 = vand.u32 4294901760, %v17562_v46 }
 0x134   : >> { %15459 = vmatmul.mubr.f32.gmra.mxu0 %v1329_v7  ;;  %v17579_v7 = vsub.f32 %v1128_v50, %v17551_v51  ;;  %v1369_v1 = vand.u32 4294901760, %v1368_v20  ;;  %23754 = vst [vmem:[#allocation26_spill] sm:$0xff] %v17588_v38  ;;  %v17596_v20 = vsub.f32 %v1134_v41, %v17571_v21  ;;  %v17605_v52 = vsub.f32 %v1137_v3, %v17582_v4  ;;  %v1069_v41 = vld [vmem:[%s17348_s27 + $0xe0] sm:$0xff] }
 0x135   : >> { %15512 = vmatmul.mubr.f32.gmra.mxu1 %v17486_v33  ;;  %15461 = vmatprep.mubr.f32.mxu0 %v1339_v62  ;;  %v17586_v62 = vsub.f32 %v1131_v59, %v17569_v13  ;;  %v1388_v50 = vsub.f32 %v17530_v23, %v23755_v24  ;;  %v1379_v59 = vand.u32 4294901760, %v1378_v40  ;;  %v1066_v24 = vld [vmem:[%s17348_s27 + $0xc8] sm:$0xff]  ;;  %v17611_v53 = vsub.f32 %v1140_v25, %v17588_v38 }
 0x136   : >> { %15514 = vmatprep.mubr.f32.mxu1 %v17488_v34  ;;  %v1146_v40 = vsel %vm386_vm0, %v1065_v0, 0  ;;  %v23757_v3 = vand.u32 4294901760, %v17567_v49  ;;  %v23758_v25 = vand.u32 4294901760, %v17579_v7  ;;  %v1149_v0 = vsel %vm386_vm0, %v1066_v24, 0  ;;  %v1070_v34 = vld [vmem:[%s17348_s27 + $0xe8] sm:$0xff] }
 0x138   : >> { %15462 = vmatmul.mubr.f32.gmra.mxu0 %v1349_v39  ;;  %v1398_v39 = vsub.f32 %v17562_v46, %v23756_v22  ;;  %v1389_v22 = vand.u32 4294901760, %v1388_v50  ;;  %v1408_v29 = vsub.f32 %v17567_v49, %v23757_v3  ;;  %v1068_v50 = vld [vmem:[%s17348_s27 + $0xd8] sm:$0xff] }
 0x139   : >> { %15515 = vmatmul.mubr.f32.gmra.mxu1 %v17490_v35  ;;  %15464 = vmatprep.mubr.f32.mxu0 %v1359_v2  ;;  %v17613_v2 = vand.u32 4294901760, %v1143_v57  ;;  %v17644_v35 = vand.u32 4294901760, %v1149_v0 }
 0x13a   : >> { %15517 = vmatprep.mubr.f32.mxu1 %v17492_v36  ;;  %v1399_v12 = vand.u32 4294901760, %v1398_v39  ;;  %v17625_v36 = vand.u32 4294901760, %v1146_v40  ;;  %v1409_v24 = vand.u32 4294901760, %v1408_v29  ;;  %v1158_v29 = vsel %vm386_vm0, %v1069_v41, 0 }
 0x13b   : >> { %v17665_v41 = vsub.f32 %v1149_v0, %v17644_v35 }
 0x13c   : >> { %15465 = vmatmul.mubr.f32.gmra.mxu0 %v1369_v1  ;;  %23759 = vst [vmem:[#allocation27_spill] sm:$0xff] %v17625_v36  ;;  %v1152_v1 = vsel %vm386_vm0, %v1067_v31, 0  ;;  %v23761_v31 = vand.u32 4294901760, %v17596_v20 }
 0x13d   : >> { %15518 = vmatmul.mubr.f32.gmra.mxu1 %v17511_v8  ;;  %15467 = vmatprep.mubr.f32.mxu0 %v1379_v59  ;;  %v1418_v8 = vsub.f32 %v17579_v7, %v23758_v25  ;;  %v17637_v25 = vsub.f32 %v1143_v57, %v17613_v2  ;;  %v17647_v59 = vsub.f32 %v1146_v40, %v17625_v36  ;;  %v17649_v39 = vand.u32 4294901760, %v1152_v1 }
 0x13e   : >> { %15520 = vmatprep.mubr.f32.mxu1 %v17547_v11  ;;  %v23760_v11 = vand.u32 4294901760, %v17586_v62  ;;  %v1155_v57 = vsel %vm386_vm0, %v1068_v50, 0 }
 0x13f   : >> { %v17672_v19 = vsub.f32 %v1152_v1, %v17649_v39 }
 0x140   : >> { %v1428_v3 = vsub.f32 %v17586_v62, %v23760_v11  ;;  %15468 = vmatmul.mubr.f32.gmra.mxu0 %v1389_v22  ;;  %v1419_v11 = vand.u32 4294901760, %v1418_v8  ;;  %v1071_v22 = vld [vmem:[%s17348_s27 + $0xf0] sm:$0xff]  ;;  %v23763_v8 = vand.u32 4294901760, %v17611_v53 }
 0x141   : >> { %15521 = vmatmul.mubr.f32.gmra.mxu1 %v17549_v37  ;;  %v1438_v37 = vsub.f32 %v17596_v20, %v23761_v31  ;;  %15470 = vmatprep.mubr.f32.mxu0 %v1399_v12  ;;  %v23762_v31 = vand.u32 4294901760, %v17605_v52 }
 0x142   : >> { %15523 = vmatprep.mubr.f32.mxu1 %v17551_v51  ;;  %v1429_v51 = vand.u32 4294901760, %v1428_v3  ;;  %v1458_v40 = vsub.f32 %v17611_v53, %v23763_v8  ;;  %v17667_v3 = vand.u32 4294901760, %v1155_v57  ;;  %v17674_v8 = vand.u32 4294901760, %v1158_v29 }
 0x143   : >> { %v1448_v12 = vsub.f32 %v17605_v52, %v23762_v31  ;;  %v1439_v50 = vand.u32 4294901760, %v1438_v37  ;;  %v23293_v31 = vand.u32 4294901760, %v17647_v59  ;;  %v1072_v37 = vld [vmem:[%s17348_s27 + $0xf8] sm:$0xff]  ;;  %s19285_s27 = smov (%p1034_p4), 0  }
 0x144   : >> { %15471 = vmatmul.mubr.f32.gmra.mxu0 %v1409_v24  ;;  %v1164_v24 = vsel %vm386_vm0, %v1071_v22, 0  ;;  %v1459_v0 = vand.u32 4294901760, %v1458_v40  ;;  %v17685_v1 = vsub.f32 %v1155_v57, %v17667_v3  ;;  %v23765_v57 = vand.u32 4294901760, %v17665_v41 }
 0x145   : >> { %15524 = vmatmul.mubr.f32.gmra.mxu1 %v17569_v13  ;;  %v1161_v13 = vsel %vm386_vm0, %v1070_v34, 0  ;;  %15473 = vmatprep.mubr.f32.mxu0 %v1419_v11  ;;  %v1449_v33 = vand.u32 4294901760, %v1448_v12  ;;  %v17689_v22 = vand.u32 4294901760, %v1164_v24  ;;  %v1478_v12 = vsub.f32 %v17647_v59, %v23293_v31 }
 0x146   : >> { %15526 = vmatprep.mubr.f32.mxu1 %v17571_v21  ;;  %v23764_v21 = vand.u32 4294901760, %v17637_v25  ;;  %v17687_v11 = vand.u32 4294901760, %v1161_v13 }
 0x148   : >> { %v1468_v10 = vsub.f32 %v17637_v25, %v23764_v21  ;;  %15474 = vmatmul.mubr.f32.gmra.mxu0 %v1429_v51  ;;  %v17696_v51 = vsub.f32 %v1158_v29, %v17674_v8  ;;  %v1167_v21 = vsel %vm386_vm0, %v1072_v37, 0  ;;  %v17706_v31 = vsub.f32 %v1161_v13, %v17687_v11 }
 0x149   : >> { %15527 = vmatmul.mubr.f32.gmra.mxu1 %v17582_v4  ;;  %15476 = vmatprep.mubr.f32.mxu0 %v1439_v50  ;;  %v1488_v50 = vsub.f32 %v17665_v41, %v23765_v57  ;;  %v17708_v40 = vand.u32 4294901760, %v1167_v21  ;;  %v1479_v29 = vand.u32 4294901760, %v1478_v12 }
 0x14a   : >> { %15529 = vmatprep.mubr.f32.mxu1 %v17588_v38  ;;  %v1469_v34 = vand.u32 4294901760, %v1468_v10  ;;  %v23296_v38 = vand.u32 4294901760, %v17685_v1  ;;  %v23766_v10 = vand.u32 4294901760, %v17672_v19 }
 0x14b   : >> { %v1489_v57 = vand.u32 4294901760, %v1488_v50  ;;  %v17724_v12 = vsub.f32 %v1167_v21, %v17708_v40 }
 0x14c   : >> { %15477 = vmatmul.mubr.f32.gmra.mxu0 %v1449_v33  ;;  %v1498_v37 = vsub.f32 %v17672_v19, %v23766_v10  ;;  %v23297_v33 = vand.u32 4294901760, %v17696_v51  ;;  %v1508_v13 = vsub.f32 %v17685_v1, %v23296_v38 }
 0x14d   : >> { %15530 = vmatmul.mubr.f32.gmra.mxu1 %v17613_v2  ;;  %15479 = vmatprep.mubr.f32.mxu0 %v1459_v0  ;;  %v1527_v0 = vand.u32 4294901760, %v17706_v31  ;;  %v1547_v21 = vand.u32 4294901760, %v17724_v12 }
 0x14e   : >> { %15532 = vmatprep.mubr.f32.mxu1 %v17625_v36  ;;  %v17715_v36 = vsub.f32 %v1164_v24, %v17689_v22  ;;  %v1499_v10 = vand.u32 4294901760, %v1498_v37  ;;  %v1518_v24 = vsub.f32 %v17696_v51, %v23297_v33  ;;  %v1509_v50 = vand.u32 4294901760, %v1508_v13 }
 0x14f   : >> { %v1528_v38 = vsub.f32 %v17706_v31, %v1527_v0 }
 0x150   : >> { %15480 = vmatmul.mubr.f32.gmra.mxu0 %v1469_v34  ;;  %v23298_v34 = vand.u32 4294901760, %v17715_v36 }
 0x151   : >> { %15533 = vmatmul.mubr.f32.gmra.mxu1 %v17644_v35  ;;  %15482 = vmatprep.mubr.f32.mxu0 %v1479_v29  ;;  %v1519_v29 = vand.u32 4294901760, %v1518_v24  ;;  %v1529_v33 = vand.u32 4294901760, %v1528_v38  ;;  %v23767_v24 = vand.u32 4294901760, %v17378_v55  ;;  %v23769_v38 = vand.u32 4294901760, %v17385_v58 }
 0x152   : >> { %15535 = vmatprep.mubr.f32.mxu1 %v17649_v39  ;;  %v1538_v37 = vsub.f32 %v17715_v36, %v23298_v34  ;;  %v23768_v34 = vand.u32 4294901760, %v17382_v56 }
 0x154   : >> { %15483 = vmatmul.mubr.f32.gmra.mxu0 %v1489_v57  ;;  %v1548_v57 = vsub.f32 %v17724_v12, %v1547_v21  ;;  %v1539_v13 = vand.u32 4294901760, %v1538_v37 }
 0x155   : >> { %15536 = vmatmul.mubr.f32.gmra.mxu1 %v17667_v3  ;;  %15485 = vmatprep.mubr.f32.mxu0 %v1499_v10 }
 0x156   : >> { %15538 = vmatprep.mubr.f32.mxu1 %v17674_v8  ;;  %v1549_v10 = vand.u32 4294901760, %v1548_v57 }
 0x158   : >> { %15486 = vmatmul.mubr.f32.gmra.mxu0 %v1509_v50  ;;  %v23770_v50 = vand.u32 4294901760, %v17400_v14 }
 0x159   : >> { %15539 = vmatmul.mubr.f32.gmra.mxu1 %v17687_v11  ;;  %15488 = vmatprep.mubr.f32.mxu0 %v1519_v29 }
 0x15a   : >> { %15541 = vmatprep.mubr.f32.mxu1 %v17689_v22 }
 0x15c   : >> { %15489 = vmatmul.mubr.f32.gmra.mxu0 %v1529_v33  ;;  %v23771_v33 = vand.u32 4294901760, %v17403_v9 }
 0x15d   : >> { %15542 = vmatmul.mubr.f32.gmra.mxu1 %v17708_v40  ;;  %15491 = vmatprep.mubr.f32.mxu0 %v1539_v13 }
 0x15e   : >> { %15596 = vmatprep.mubr.f32.mxu1 %v23767_v24 }
 0x160   : >> { %15492 = vmatmul.mubr.f32.gmra.mxu0 %v1549_v10 }
 0x161   : >> { %15597 = vmatmul.mubr.f32.vlgmr.msra.gmra.mxu1 %v23768_v34  ;;  %15546 = vmatprep.mubr.f32.mxu0 %v17378_v55  ;;  %v23772_v34 = vand.u32 4294901760, %v17406_v16  ;;  %v23774_v55 = vand.u32 4294901760, %v17434_v30 }
 0x162   : >> { %15695 = vmatpush3.msra.mxu1 %v17338_v17  ;;  %15599 = vmatprep.mubr.f32.mxu1 %v23769_v38  ;;  %v23773_v17 = vand.u32 4294901760, %v17409_v18 }
 0x164   : >> { %15547 = vmatmul.mubr.f32.vlgmr.msra.gmra.mxu0 %v17382_v56  ;;  %v23775_v56 = vand.u32 4294901760, %v17477_v27 }
 0x165   : >> { %15600 = vmatmul.mubr.f32.gmra.mxu1 %v23770_v50  ;;  %15645 = vmatpush3.msra.mxu0 %v17351_v32  ;;  %v23776_v32 = vand.u32 4294901760, %v17480_v28 }
 0x166   : >> { %15602 = vmatprep.mubr.f32.mxu1 %v23771_v33  ;;  %15549 = vmatprep.mubr.f32.mxu0 %v17385_v58  ;;  %v23777_v58 = vand.u32 4294901760, %v17483_v15 }
 0x168   : >> { %15550 = vmatmul.mubr.f32.gmra.mxu0 %v17400_v14  ;;  %v23778_v14 = vand.u32 4294901760, %v17499_v42 }
 0x169   : >> { %15603 = vmatmul.mubr.f32.gmra.mxu1 %v23772_v34  ;;  %15552 = vmatprep.mubr.f32.mxu0 %v17403_v9  ;;  %v23779_v9 = vand.u32 4294901760, %v17502_v47 }
 0x16a   : >> { %15605 = vmatprep.mubr.f32.mxu1 %v23773_v17 }
 0x16c   : >> { %15553 = vmatmul.mubr.f32.gmra.mxu0 %v17406_v16  ;;  %v23780_v16 = vand.u32 4294901760, %v17505_v48 }
 0x16d   : >> { %15606 = vmatmul.mubr.f32.gmra.mxu1 %v23774_v55  ;;  %15555 = vmatprep.mubr.f32.mxu0 %v17409_v18  ;;  %v23781_v18 = vand.u32 4294901760, %v17522_v26 }
 0x16e   : >> { %15608 = vmatprep.mubr.f32.mxu1 %v23775_v56 }
 0x170   : >> { %15556 = vmatmul.mubr.f32.gmra.mxu0 %v17434_v30  ;;  %v23782_v30 = vand.u32 4294901760, %v17530_v23 }
 0x171   : >> { %15609 = vmatmul.mubr.f32.gmra.mxu1 %v23776_v32  ;;  %15558 = vmatprep.mubr.f32.mxu0 %v17477_v27  ;;  %v23783_v27 = vand.u32 4294901760, %v17562_v46 }
 0x172   : >> { %15611 = vmatprep.mubr.f32.mxu1 %v23777_v58 }
 0x174   : >> { %15559 = vmatmul.mubr.f32.gmra.mxu0 %v17480_v28  ;;  %v23784_v28 = vand.u32 4294901760, %v17567_v49 }
 0x175   : >> { %15612 = vmatmul.mubr.f32.gmra.mxu1 %v23778_v14  ;;  %15561 = vmatprep.mubr.f32.mxu0 %v17483_v15  ;;  %v23785_v15 = vand.u32 4294901760, %v17579_v7 }
 0x176   : >> { %15614 = vmatprep.mubr.f32.mxu1 %v23779_v9 }
 0x178   : >> { %15562 = vmatmul.mubr.f32.gmra.mxu0 %v17499_v42  ;;  %v23786_v42 = vand.u32 4294901760, %v17586_v62 }
 0x179   : >> { %15615 = vmatmul.mubr.f32.gmra.mxu1 %v23780_v16  ;;  %15564 = vmatprep.mubr.f32.mxu0 %v17502_v47  ;;  %v23787_v47 = vand.u32 4294901760, %v17596_v20 }
 0x17a   : >> { %15617 = vmatprep.mubr.f32.mxu1 %v23781_v18 }
 0x17c   : >> { %15565 = vmatmul.mubr.f32.gmra.mxu0 %v17505_v48  ;;  %v23788_v48 = vand.u32 4294901760, %v17605_v52 }
 0x17d   : >> { %15618 = vmatmul.mubr.f32.gmra.mxu1 %v23782_v30  ;;  %15567 = vmatprep.mubr.f32.mxu0 %v17522_v26  ;;  %v23791_v26 = vand.u32 4294901760, %v17647_v59 }
 0x17e   : >> { %15620 = vmatprep.mubr.f32.mxu1 %v23783_v27 }
 0x180   : >> { %15568 = vmatmul.mubr.f32.gmra.mxu0 %v17530_v23  ;;  %v23789_v23 = vand.u32 4294901760, %v17611_v53 }
 0x181   : >> { %15621 = vmatmul.mubr.f32.gmra.mxu1 %v23784_v28  ;;  %15570 = vmatprep.mubr.f32.mxu0 %v17562_v46  ;;  %v23790_v46 = vand.u32 4294901760, %v17637_v25 }
 0x182   : >> { %15623 = vmatprep.mubr.f32.mxu1 %v23785_v15 }
 0x184   : >> { %15571 = vmatmul.mubr.f32.gmra.mxu0 %v17567_v49  ;;  %v23792_v49 = vand.u32 4294901760, %v17665_v41 }
 0x185   : >> { %15624 = vmatmul.mubr.f32.gmra.mxu1 %v23786_v42  ;;  %15573 = vmatprep.mubr.f32.mxu0 %v17579_v7  ;;  %v23793_v7 = vand.u32 4294901760, %v17672_v19 }
 0x186   : >> { %15626 = vmatprep.mubr.f32.mxu1 %v23787_v47 }
 0x188   : >> { %15574 = vmatmul.mubr.f32.gmra.mxu0 %v17586_v62  ;;  %v23794_v62 = vand.u32 4294901760, %v17685_v1 }
 0x189   : >> { %15627 = vmatmul.mubr.f32.gmra.mxu1 %v23788_v48  ;;  %15576 = vmatprep.mubr.f32.mxu0 %v17596_v20  ;;  %v23796_v20 = vand.u32 4294901760, %v17715_v36 }
 0x18a   : >> { %15629 = vmatprep.mubr.f32.mxu1 %v23789_v23 }
 0x18c   : >> { %15577 = vmatmul.mubr.f32.gmra.mxu0 %v17605_v52  ;;  %v23795_v52 = vand.u32 4294901760, %v17696_v51 }
 0x18d   : >> { %15630 = vmatmul.mubr.f32.gmra.mxu1 %v23790_v46  ;;  %15579 = vmatprep.mubr.f32.mxu0 %v17611_v53  ;;  %v23808_v53 = vld [vmem:[#allocation25_spill] sm:$0xff] }
 0x18e   : >> { %15632 = vmatprep.mubr.f32.mxu1 %v23791_v26 }
 0x190   : >> { %15580 = vmatmul.mubr.f32.gmra.mxu0 %v17637_v25  ;;  %v23810_v25 = vld [vmem:[#allocation27_spill] sm:$0xff] }
 0x191   : >> { %15633 = vmatmul.mubr.f32.gmra.mxu1 %v23792_v49  ;;  %15582 = vmatprep.mubr.f32.mxu0 %v17647_v59  ;;  %v23809_v59 = vld [vmem:[#allocation26_spill] sm:$0xff] }
 0x192   : >> { %15635 = vmatprep.mubr.f32.mxu1 %v23793_v7 }
 0x194   : >> { %15583 = vmatmul.mubr.f32.gmra.mxu0 %v17665_v41 }
 0x195   : >> { %15636 = vmatmul.mubr.f32.gmra.mxu1 %v23794_v62  ;;  %15585 = vmatprep.mubr.f32.mxu0 %v17672_v19  ;;  %v23806_v19 = vld [vmem:[#allocation23_spill] sm:$0xff] }
 0x196   : >> { %15638 = vmatprep.mubr.f32.mxu1 %v23795_v52 }
 0x198   : >> { %15586 = vmatmul.mubr.f32.gmra.mxu0 %v17685_v1 }
 0x199   : >> { %15639 = vmatmul.mubr.f32.gmra.mxu1 %v1527_v0  ;;  %15588 = vmatprep.mubr.f32.mxu0 %v17696_v51 }
 0x19a   : >> { %15641 = vmatprep.mubr.f32.mxu1 %v23796_v20 }
 0x19c   : >> { %15589 = vmatmul.mubr.f32.gmra.mxu0 %v17706_v31 }
 0x19d   : >> { %15642 = vmatmul.mubr.f32.gmra.mxu1 %v1547_v21  ;;  %15591 = vmatprep.mubr.f32.mxu0 %v17715_v36  ;;  %v23807_v36 = vld [vmem:[#allocation24_spill] sm:$0xff] }
 0x19e   : >> { %15696 = vmatprep.mubr.f32.mxu1 %v17365_v43 }
 0x1a0   : >> { %15592 = vmatmul.mubr.f32.gmra.mxu0 %v17724_v12 }
 0x1a1   : >> { %15697 = vmatmul.mubr.f32.vlgmr.msra.gmra.mxu1 %v17367_v44  ;;  %15646 = vmatprep.mubr.f32.mxu0 %v17365_v43  ;;  %v23797_v43 = vld [vmem:[#allocation14_spill] sm:$0xff] }
 0x1a2   : >> { %15699 = vmatprep.mubr.f32.mxu1 %v17369_v45 }
 0x1a4   : >> { %15647 = vmatmul.mubr.f32.vlgmr.msra.gmra.mxu0 %v17367_v44  ;;  %v23798_v44 = vld [vmem:[#allocation15_spill] sm:$0xff] }
 0x1a5   : >> { %15700 = vmatmul.mubr.f32.gmra.mxu1 %v17387_v60  ;;  %15649 = vmatprep.mubr.f32.mxu0 %v17369_v45  ;;  %v23799_v45 = vld [vmem:[#allocation16_spill] sm:$0xff] }
 0x1a6   : >> { %15702 = vmatprep.mubr.f32.mxu1 %v17389_v61 }
 0x1a8   : >> { %15650 = vmatmul.mubr.f32.gmra.mxu0 %v17387_v60  ;;  %v23800_v60 = vld [vmem:[#allocation17_spill] sm:$0xff] }
 0x1a9   : >> { %15703 = vmatmul.mubr.f32.gmra.mxu1 %v17391_v63  ;;  %15652 = vmatprep.mubr.f32.mxu0 %v17389_v61  ;;  %v23801_v61 = vld [vmem:[#allocation18_spill] sm:$0xff] }
 0x1aa   : >> { %15705 = vmatprep.mubr.f32.mxu1 %v17393_v6 }
 0x1ac   : >> { %15653 = vmatmul.mubr.f32.gmra.mxu0 %v17391_v63  ;;  %v23802_v63 = vld [vmem:[#allocation19_spill] sm:$0xff] }
 0x1ad   : >> { %15706 = vmatmul.mubr.f32.gmra.mxu1 %v17422_v5  ;;  %15655 = vmatprep.mubr.f32.mxu0 %v17393_v6  ;;  %v23803_v6 = vld [vmem:[#allocation20_spill] sm:$0xff] }
 0x1ae   : >> { %15708 = vmatprep.mubr.f32.mxu1 %v17460_v54 }
 0x1b0   : >> { %15656 = vmatmul.mubr.f32.gmra.mxu0 %v17422_v5  ;;  %v23804_v5 = vld [vmem:[#allocation21_spill] sm:$0xff] }
 0x1b1   : >> { %15709 = vmatmul.mubr.f32.gmra.mxu1 %v23797_v43  ;;  %15658 = vmatprep.mubr.f32.mxu0 %v17460_v54  ;;  %v23805_v54 = vld [vmem:[#allocation22_spill] sm:$0xff] }
 0x1b2   : >> { %15711 = vmatprep.mubr.f32.mxu1 %v23798_v44 }
 0x1b4   : >> { %15659 = vmatmul.mubr.f32.gmra.mxu0 %v23797_v43 }
 0x1b5   : >> { %15712 = vmatmul.mubr.f32.gmra.mxu1 %v23799_v45  ;;  %15661 = vmatprep.mubr.f32.mxu0 %v23798_v44 }
 0x1b6   : >> { %15714 = vmatprep.mubr.f32.mxu1 %v23800_v60 }
 0x1b8   : >> { %15662 = vmatmul.mubr.f32.gmra.mxu0 %v23799_v45 }
 0x1b9   : >> { %15715 = vmatmul.mubr.f32.gmra.mxu1 %v23801_v61  ;;  %15664 = vmatprep.mubr.f32.mxu0 %v23800_v60 }
 0x1ba   : >> { %15717 = vmatprep.mubr.f32.mxu1 %v23802_v63 }
 0x1bc   : >> { %15665 = vmatmul.mubr.f32.gmra.mxu0 %v23801_v61 }
 0x1bd   : >> { %15718 = vmatmul.mubr.f32.gmra.mxu1 %v23803_v6  ;;  %15667 = vmatprep.mubr.f32.mxu0 %v23802_v63 }
 0x1be   : >> { %15720 = vmatprep.mubr.f32.mxu1 %v23804_v5 }
 0x1c0   : >> { %15668 = vmatmul.mubr.f32.gmra.mxu0 %v23803_v6 }
 0x1c1   : >> { %15721 = vmatmul.mubr.f32.gmra.mxu1 %v23805_v54  ;;  %15670 = vmatprep.mubr.f32.mxu0 %v23804_v5 }
 0x1c2   : >> { %15723 = vmatprep.mubr.f32.mxu1 %v23806_v19 }
 0x1c4   : >> { %15671 = vmatmul.mubr.f32.gmra.mxu0 %v23805_v54 }
 0x1c5   : >> { %15724 = vmatmul.mubr.f32.gmra.mxu1 %v23807_v36  ;;  %15673 = vmatprep.mubr.f32.mxu0 %v23806_v19 }
 0x1c6   : >> { %15726 = vmatprep.mubr.f32.mxu1 %v23808_v53 }
 0x1c8   : >> { %15674 = vmatmul.mubr.f32.gmra.mxu0 %v23807_v36 }
 0x1c9   : >> { %15727 = vmatmul.mubr.f32.gmra.mxu1 %v17582_v4  ;;  %15676 = vmatprep.mubr.f32.mxu0 %v23808_v53 }
 0x1ca   : >> { %15729 = vmatprep.mubr.f32.mxu1 %v23809_v59 }
 0x1cc   : >> { %15677 = vmatmul.mubr.f32.gmra.mxu0 %v17582_v4 }
 0x1cd   : >> { %15730 = vmatmul.mubr.f32.gmra.mxu1 %v17613_v2  ;;  %15679 = vmatprep.mubr.f32.mxu0 %v23809_v59 }
 0x1ce   : >> { %15732 = vmatprep.mubr.f32.mxu1 %v23810_v25 }
 0x1d0   : >> { %15680 = vmatmul.mubr.f32.gmra.mxu0 %v17613_v2 }
 0x1d1   : >> { %15733 = vmatmul.mubr.f32.gmra.mxu1 %v17644_v35  ;;  %15682 = vmatprep.mubr.f32.mxu0 %v23810_v25 }
 0x1d2   : >> { %15735 = vmatprep.mubr.f32.mxu1 %v17649_v39 }
 0x1d4   : >> { %15683 = vmatmul.mubr.f32.gmra.mxu0 %v17644_v35 }
 0x1d5   : >> { %15736 = vmatmul.mubr.f32.gmra.mxu1 %v17667_v3  ;;  %15685 = vmatprep.mubr.f32.mxu0 %v17649_v39 }
 0x1d6   : >> { %15738 = vmatprep.mubr.f32.mxu1 %v17674_v8 }
 0x1d8   : >> { %15686 = vmatmul.mubr.f32.gmra.mxu0 %v17667_v3 }
 0x1d9   : >> { %15739 = vmatmul.mubr.f32.gmra.mxu1 %v17687_v11  ;;  %15688 = vmatprep.mubr.f32.mxu0 %v17674_v8 }
 0x1da   : >> { %15741 = vmatprep.mubr.f32.mxu1 %v17689_v22 }
 0x1dc   : >> { %15689 = vmatmul.mubr.f32.gmra.mxu0 %v17687_v11 }
 0x1dd   : >> { %15742 = vmatmul.mubr.f32.gmra.mxu1 %v17708_v40  ;;  %15691 = vmatprep.mubr.f32.mxu0 %v17689_v22 }
 0x1e0   : >> { %15692 = vmatmul.mubr.f32.gmra.mxu0 %v17708_v40 }
 0x1e1   : >> { %v15498_v4 = vpop.f32.mrf.mxu1 }
 0x1e3   : >> { %v1627_v35 = vpop.f32.mrf.mxu1 }
 0x1e4   : >> { %v15448_v39 = vpop.f32.mrf.mxu0 }
 0x1e5   : >> { %v15501_v2 = vpop.f32.mrf.mxu1  ;;  %v17907_v41 = vadd.f32 %v15498_v4, %v15448_v39 }
 0x1e6   : >> { %v1241_v3 = vpop.f32.mrf.mxu0 }
 0x1e7   : >> { %v1639_v31 = vpop.f32.mrf.mxu1  ;;  %v17909_v1 = vadd.f32 %v1627_v35, %v1241_v3 }
 0x1e8   : >> { %v15451_v8 = vpop.f32.mrf.mxu0 }
 0x1e9   : >> { %v15504_v51 = vpop.f32.mrf.mxu1  ;;  %v17911_v0 = vadd.f32 %v15501_v2, %v15451_v8 }
 0x1ea   : >> { %v1261_v11 = vpop.f32.mrf.mxu0 }
 0x1eb   : >> { %v1651_v12 = vpop.f32.mrf.mxu1  ;;  %v17913_v21 = vadd.f32 %v1639_v31, %v1261_v11 }
 0x1ec   : >> { %v15454_v29 = vpop.f32.mrf.mxu0 }
 0x1ed   : >> { %v15507_v22 = vpop.f32.mrf.mxu1  ;;  %v17915_v40 = vadd.f32 %v15504_v51, %v15454_v29 }
 0x1ee   : >> { %v1281_v57 = vpop.f32.mrf.mxu0 }
 0x1ef   : >> { %v1663_v37 = vpop.f32.mrf.mxu1  ;;  %v17917_v13 = vadd.f32 %v1651_v12, %v1281_v57 }
 0x1f0   : >> { %v15457_v24 = vpop.f32.mrf.mxu0 }
 0x1f1   : >> { %v15510_v10 = vpop.f32.mrf.mxu1  ;;  %v17919_v38 = vadd.f32 %v15507_v22, %v15457_v24 }
 0x1f2   : >> { %v1301_v33 = vpop.f32.mrf.mxu0 }
 0x1f3   : >> { %v1675_v50 = vpop.f32.mrf.mxu1  ;;  %v17921_v34 = vadd.f32 %v1663_v37, %v1301_v33 }
 0x1f4   : >> { %v15460_v55 = vpop.f32.mrf.mxu0 }
 0x1f5   : >> { %v15513_v17 = vpop.f32.mrf.mxu1  ;;  %v17923_v56 = vadd.f32 %v15510_v10, %v15460_v55 }
 0x1f6   : >> { %v1321_v58 = vpop.f32.mrf.mxu0 }
 0x1f7   : >> { %v1687_v32 = vpop.f32.mrf.mxu1  ;;  %v17925_v14 = vadd.f32 %v1675_v50, %v1321_v58 }
 0x1f8   : >> { %v15463_v16 = vpop.f32.mrf.mxu0 }
 0x1f9   : >> { %v15516_v9 = vpop.f32.mrf.mxu1  ;;  %v17927_v18 = vadd.f32 %v15513_v17, %v15463_v16 }
 0x1fa   : >> { %v1341_v27 = vpop.f32.mrf.mxu0 }
 0x1fb   : >> { %v1699_v30 = vpop.f32.mrf.mxu1  ;;  %v17929_v28 = vadd.f32 %v1687_v32, %v1341_v27 }
 0x1fc   : >> { %v15466_v42 = vpop.f32.mrf.mxu0 }
 0x1fd   : >> { %v15519_v15 = vpop.f32.mrf.mxu1  ;;  %v17931_v47 = vadd.f32 %v15516_v9, %v15466_v42 }
 0x1fe   : >> { %v1361_v23 = vpop.f32.mrf.mxu0 }
 0x1ff   : >> { %v1711_v48 = vpop.f32.mrf.mxu1  ;;  %v17933_v46 = vadd.f32 %v1699_v30, %v1361_v23 }
 0x200   : >> { %v15469_v49 = vpop.f32.mrf.mxu0 }
 0x201   : >> { %v15522_v26 = vpop.f32.mrf.mxu1  ;;  %v17935_v7 = vadd.f32 %v15519_v15, %v15469_v49 }
 0x202   : >> { %v1381_v52 = vpop.f32.mrf.mxu0 }
 0x203   : >> { %v1723_v62 = vpop.f32.mrf.mxu1  ;;  %v17937_v20 = vadd.f32 %v1711_v48, %v1381_v52 }
 0x204   : >> { %v15472_v44 = vpop.f32.mrf.mxu0 }
 0x205   : >> { %v15525_v43 = vpop.f32.mrf.mxu1  ;;  %v17939_v45 = vadd.f32 %v15522_v26, %v15472_v44 }
 0x206   : >> { %v1401_v61 = vpop.f32.mrf.mxu0 }
 0x207   : >> { %v1735_v60 = vpop.f32.mrf.mxu1  ;;  %v17941_v63 = vadd.f32 %v1723_v62, %v1401_v61 }
 0x208   : >> { %v15475_v5 = vpop.f32.mrf.mxu0 }
 0x209   : >> { %v15528_v6 = vpop.f32.mrf.mxu1  ;;  %v17943_v54 = vadd.f32 %v15525_v43, %v15475_v5 }
 0x20a   : >> { %v1421_v36 = vpop.f32.mrf.mxu0 }
 0x20b   : >> { %v1747_v19 = vpop.f32.mrf.mxu1  ;;  %v17945_v53 = vadd.f32 %v1735_v60, %v1421_v36 }
 0x20c   : >> { %v15478_v25 = vpop.f32.mrf.mxu0 }
 0x20d   : >> { %23811 = vst [vmem:[#allocation14_spill] sm:$0xff] %v17945_v53  ;;  %v15531_v59 = vpop.f32.mrf.mxu1  ;;  %v17947_v4 = vadd.f32 %v15528_v6, %v15478_v25 }
 0x20e   : >> { %v1441_v2 = vpop.f32.mrf.mxu0 }
 0x20f   : >> { %23812 = vst [vmem:[#allocation15_spill] sm:$0xff] %v17947_v4  ;;  %v1759_v35 = vpop.f32.mrf.mxu1  ;;  %v17949_v39 = vadd.f32 %v1747_v19, %v1441_v2  ;;  %v23846_v4 = vld [vmem:[#allocation12_spill] sm:$0xff] }
 0x210   : >> { %v15481_v3 = vpop.f32.mrf.mxu0 }
 0x211   : >> { %v15534_v31 = vpop.f32.mrf.mxu1  ;;  %v17951_v51 = vadd.f32 %v15531_v59, %v15481_v3 }
 0x212   : >> { %v1461_v12 = vpop.f32.mrf.mxu0 }
 0x213   : >> { %v1771_v8 = vpop.f32.mrf.mxu1  ;;  %v17953_v11 = vadd.f32 %v1759_v35, %v1461_v12 }
 0x214   : >> { %v15484_v29 = vpop.f32.mrf.mxu0 }
 0x215   : >> { %23813 = vst [vmem:[#allocation16_spill] sm:$0xff] %v17953_v11  ;;  %v15537_v22 = vpop.f32.mrf.mxu1  ;;  %v17955_v37 = vadd.f32 %v15534_v31, %v15484_v29 }
 0x216   : >> { %v1481_v10 = vpop.f32.mrf.mxu0 }
 0x217   : >> { %23814 = vst [vmem:[#allocation17_spill] sm:$0xff] %v17955_v37  ;;  %v1783_v57 = vpop.f32.mrf.mxu1  ;;  %v17957_v24 = vadd.f32 %v1771_v8, %v1481_v10 }
 0x218   : >> { %v15487_v33 = vpop.f32.mrf.mxu0 }
 0x219   : >> { %v15540_v50 = vpop.f32.mrf.mxu1  ;;  %v17959_v17 = vadd.f32 %v15537_v22, %v15487_v33 }
 0x21a   : >> { %v1501_v32 = vpop.f32.mrf.mxu0 }
 0x21b   : >> { %v1795_v55 = vpop.f32.mrf.mxu1  ;;  %v17961_v58 = vadd.f32 %v1783_v57, %v1501_v32 }
 0x21c   : >> { %v15490_v16 = vpop.f32.mrf.mxu0 }
 0x21d   : >> { %23815 = vst [vmem:[#allocation18_spill] sm:$0xff] %v17961_v58  ;;  %v15543_v9 = vpop.f32.mrf.mxu1  ;;  %v17963_v30 = vadd.f32 %v15540_v50, %v15490_v16 }
 0x21e   : >> { %v1521_v15 = vpop.f32.mrf.mxu0 }
 0x21f   : >> { %23816 = vst [vmem:[#allocation19_spill] sm:$0xff] %v17963_v30  ;;  %v1807_v27 = vpop.f32.mrf.mxu1  ;;  %v17965_v42 = vadd.f32 %v1795_v55, %v1521_v15 }
 0x220   : >> { %v15493_v23 = vpop.f32.mrf.mxu0 }
 0x221   : >> { %v17967_v48 = vpop.f32.mrf.mxu1  ;;  %v17969_v26 = vadd.f32 %v15543_v9, %v15493_v23 }
 0x222   : >> { %v1541_v62 = vpop.f32.mrf.mxu0 }
 0x223   : >> { %v17971_v49 = vpop.f32.mrf.mxu1  ;;  %v17973_v52 = vadd.f32 %v1807_v27, %v1541_v62 }
 0x224   : >> { %v17975_v44 = vpop.f32.mrf.mxu0 }
 0x225   : >> { %23817 = vst [vmem:[#allocation20_spill] sm:$0xff] %v17973_v52  ;;  %v15601_v43 = vpop.f32.mrf.mxu1 }
 0x226   : >> { %v17977_v61 = vpop.f32.mrf.mxu0 }
 0x227   : >> { %v2194_v60 = vpop.f32.mrf.mxu1 }
 0x228   : >> { %v15551_v5 = vpop.f32.mrf.mxu0 }
 0x229   : >> { %v17979_v6 = vpop.f32.mrf.mxu1  ;;  %v1909_v19 = vadd.f32 %v15551_v5, %v17911_v0 }
 0x22a   : >> { %v1901_v59 = vpop.f32.mrf.mxu0 }
 0x22b   : >> { %v17982_v36 = vpop.f32.mrf.mxu1  ;;  %v17984_v25 = vadd.f32 %v15601_v43, %v1909_v19  ;;  %v1902_v35 = vadd.f32 %v1901_v59, %v17913_v21 }
 0x22c   : >> { %v17987_v31 = vpop.f32.mrf.mxu0 }
 0x22d   : >> { %v15607_v2 = vpop.f32.mrf.mxu1  ;;  %v17989_v3 = vadd.f32 %v2194_v60, %v1902_v35 }
 0x22e   : >> { %v17991_v12 = vpop.f32.mrf.mxu0 }
 0x22f   : >> { %v2226_v8 = vpop.f32.mrf.mxu1 }
 0x230   : >> { %v15557_v29 = vpop.f32.mrf.mxu0 }
 0x231   : >> { %v15610_v22 = vpop.f32.mrf.mxu1  ;;  %v1937_v57 = vadd.f32 %v15557_v29, %v17919_v38 }
 0x232   : >> { %v1929_v10 = vpop.f32.mrf.mxu0 }
 0x233   : >> { %v17994_v0 = vpop.f32.mrf.mxu1  ;;  %v17996_v50 = vadd.f32 %v15607_v2, %v1937_v57  ;;  %v1930_v33 = vadd.f32 %v1929_v10, %v17921_v34 }
 0x234   : >> { %v15560_v55 = vpop.f32.mrf.mxu0 }
 0x235   : >> { %v15613_v21 = vpop.f32.mrf.mxu1  ;;  %v17999_v32 = vadd.f32 %v2226_v8, %v1930_v33  ;;  %v1951_v9 = vadd.f32 %v15560_v55, %v17923_v56 }
 0x236   : >> { %v18004_v27 = vpop.f32.mrf.mxu0 }
 0x237   : >> { %v18002_v16 = vpop.f32.mrf.mxu1  ;;  %v18006_v15 = vadd.f32 %v15610_v22, %v1951_v9 }
 0x238   : >> { %v15563_v23 = vpop.f32.mrf.mxu0 }
 0x239   : >> { %v18008_v38 = vpop.f32.mrf.mxu1  ;;  %v1965_v62 = vadd.f32 %v15563_v23, %v17927_v18 }
 0x23a   : >> { %v18011_v60 = vpop.f32.mrf.mxu0 }
 0x23b   : >> { %v2274_v43 = vpop.f32.mrf.mxu1  ;;  %v18013_v34 = vadd.f32 %v15613_v21, %v1965_v62  ;;  %v23299_v62 = vlaneseq }
 0x23c   : >> { %v18015_v19 = vpop.f32.mrf.mxu0 }
 0x23d   : >> { %v15619_v5 = vpop.f32.mrf.mxu1  ;;  %v18045_v30 = vshrl.u32 %v23299_v62, 7 }
 0x23e   : >> { %v1971_v59 = vpop.f32.mrf.mxu0 }
 0x23f   : >> { %v18017_v56 = vpop.f32.mrf.mxu1  ;;  %v1972_v35 = vadd.f32 %v1971_v59, %v17933_v46  ;;  %v17138_v46 = vmov 1966171168   ;;  %23825 = vst [vmem:[#allocation28_spill] sm:$0xff] %v18045_v30 }
 0x240   : >> { %v15569_v8 = vpop.f32.mrf.mxu0  ;;  %v2953_v23 = vunpack.c.l.s4 %v17138_v46 }
 0x241   : >> { %v18020_v2 = vpop.f32.mrf.mxu1  ;;  %v18022_v22 = vadd.f32 %v2274_v43, %v1972_v35  ;;  %v1993_v18 = vadd.f32 %v15569_v8, %v17935_v7 }
 0x242   : >> { %23818 = vst [vmem:[#allocation21_spill] sm:$0xff] %v18020_v2  ;;  %v18025_v57 = vpop.f32.mrf.mxu0  ;;  %v2954_v52 = vunpack.c.0.s8 %v2953_v23  ;;  %v2949_v23 = vld [vmem:[%s2948_s29] sm:$0xff] }
 0x243   : >> { %23819 = vst [vmem:[#allocation22_spill] sm:$0xff] %v18022_v22  ;;  %v2306_v29 = vpop.f32.mrf.mxu1  ;;  %v18027_v10 = vadd.f32 %v15619_v5, %v1993_v18 }
 0x244   : >> { %v18029_v21 = vpop.f32.mrf.mxu0 }
 0x245   : >> { %23820 = vst [vmem:[#allocation23_spill] sm:$0xff] %v18027_v10  ;;  %v15625_v33 = vpop.f32.mrf.mxu1  ;;  %v1923_v10 = vadd.f32 %v17987_v31, %v17915_v40  ;;  %v1916_v40 = vadd.f32 %v17991_v12, %v17917_v13 }
 0x246   : >> { %v1999_v9 = vpop.f32.mrf.mxu0 }
 0x247   : >> { %v18031_v55 = vpop.f32.mrf.mxu1  ;;  %v2000_v43 = vadd.f32 %v1999_v9, %v17941_v63  ;;  %v2219_v13 = vadd.f32 %v17979_v6, %v1923_v10 }
 0x248   : >> { %23821 = vst [vmem:[#allocation24_spill] sm:$0xff] %v18031_v55  ;;  %v15575_v7 = vpop.f32.mrf.mxu0 }
 0x249   : >> { %v18034_v59 = vpop.f32.mrf.mxu1  ;;  %v18036_v35 = vadd.f32 %v2306_v29, %v2000_v43  ;;  %v2021_v8 = vadd.f32 %v15575_v7, %v17943_v54  ;;  %v18054_v54 = vsub.s32 %v2954_v52, %v18045_v30 }
 0x24a   : >> { %23822 = vst [vmem:[#allocation25_spill] sm:$0xff] %v18034_v59  ;;  %v18042_v18 = vpop.f32.mrf.mxu0 }
 0x24b   : >> { %23823 = vst [vmem:[#allocation26_spill] sm:$0xff] %v18036_v35  ;;  %v2338_v5 = vpop.f32.mrf.mxu1  ;;  %23824 = vst [vmem:[#allocation27_spill] sm:$0xff] %v18042_v18  ;;  %v18047_v46 = vadd.f32 %v15625_v33, %v2021_v8 }
 0x24c   : >> { %v18049_v9 = vpop.f32.mrf.mxu0  ;;  %23829 = vst [vmem:[#allocation32_spill] sm:$0xff] %v18054_v54 }
 0x24d   : >> { %23826 = vst [vmem:[#allocation29_spill] sm:$0xff] %v18047_v46  ;;  %v15631_v63 = vpop.f32.mrf.mxu1  ;;  %23827 = vst [vmem:[#allocation30_spill] sm:$0xff] %v18049_v9 }
 0x24e   : >> { %v2027_v29 = vpop.f32.mrf.mxu0 }
 0x24f   : >> { %v18051_v58 = vpop.f32.mrf.mxu1  ;;  %v2028_v43 = vadd.f32 %v2027_v29, %v17949_v39 }
 0x250   : >> { %23828 = vst [vmem:[#allocation31_spill] sm:$0xff] %v18051_v58  ;;  %v15581_v37 = vpop.f32.mrf.mxu0  ;;  %v2958_v58 = vrot.slane %v2949_v23, %v18054_v54 }
 0x251   : >> { %v18057_v7 = vpop.f32.mrf.mxu1  ;;  %v18060_v62 = vadd.f32 %v2338_v5, %v2028_v43  ;;  %v2049_v33 = vadd.f32 %v15581_v37, %v17951_v51  ;;  %v18074_v5 = vsub.s32 0, %v18045_v30 }
 0x252   : >> { %23830 = vst [vmem:[#allocation33_spill] sm:$0xff] %v18057_v7  ;;  %v18063_v11 = vpop.f32.mrf.mxu0  ;;  %v2974_v7 = vrot.slane %v2958_v58, %v18054_v54  ;;  %v2966_v43 = vcombine.high %v2958_v58, %v2958_v58 }
 0x253   : >> { %23831 = vst [vmem:[#allocation34_spill] sm:$0xff] %v18060_v62  ;;  %v2370_v8 = vpop.f32.mrf.mxu1  ;;  %23832 = vst [vmem:[#allocation35_spill] sm:$0xff] %v18063_v11  ;;  %v18066_v46 = vadd.f32 %v15631_v63, %v2049_v33  ;;  %v2951_v62 = vcombine.high %v2949_v23, %v2949_v23 }
 0x254   : >> { %v18068_v59 = vpop.f32.mrf.mxu0  ;;  %23836 = vst [vmem:[#allocation39_spill] sm:$0xff] %v18074_v5  ;;  %v2988_v55 = vrot.slane %v2966_v43, %v18054_v54  ;;  %v2996_v35 = vcombine.high %v2974_v7, %v2974_v7  ;;  %v1895_v43 = vadd.f32 %v17975_v44, %v17907_v41  ;;  %v1888_v41 = vadd.f32 %v17977_v61, %v17909_v1 }
 0x255   : >> { %23833 = vst [vmem:[#allocation36_spill] sm:$0xff] %v18066_v46  ;;  %v15637_v52 = vpop.f32.mrf.mxu1  ;;  %23834 = vst [vmem:[#allocation37_spill] sm:$0xff] %v18068_v59 }
 0x256   : >> { %v2055_v29 = vpop.f32.mrf.mxu0  ;;  %v2998_v23 = vcombine.high %v2988_v55, %v2988_v55 }
 0x257   : >> { %v18070_v39 = vpop.f32.mrf.mxu1  ;;  %v2056_v51 = vadd.f32 %v2055_v29, %v17957_v24  ;;  %v2965_v24 = vrot.slane %v2951_v62, %v18054_v54 }
 0x258   : >> { %23835 = vst [vmem:[#allocation38_spill] sm:$0xff] %v18070_v39  ;;  %v15587_v11 = vpop.f32.mrf.mxu0  ;;  %v3003_v39 = vrot.slane %v2974_v7, %v18074_v5  ;;  %v3011_v7 = vrot.slane %v2996_v35, %v18074_v5 }
 0x259   : >> { %v18077_v37 = vpop.f32.mrf.mxu1  ;;  %v18079_v63 = vadd.f32 %v2370_v8, %v2056_v51  ;;  %v2077_v33 = vadd.f32 %v15587_v11, %v17959_v17  ;;  %v2967_v51 = vcombine.high %v2965_v24, %v2965_v24  ;;  %v23843_v17 = vld [vmem:[#allocation11_spill] sm:$0xff]  ;;  %v2981_v62 = vrot.slane %v2965_v24, %v18054_v54 }
 0x25a   : >> { %23837 = vst [vmem:[#allocation40_spill] sm:$0xff] %v18077_v37  ;;  %v18082_v59 = vpop.f32.mrf.mxu0  ;;  %v3041_v37 = vadd.f32 %v3003_v39, %v23843_v17  ;;  %v18105_v18 = vadd.f32 %v3003_v39, %v23846_v4 }
 0x25b   : >> { %23838 = vst [vmem:[#allocation41_spill] sm:$0xff] %v18079_v63  ;;  %v2402_v46 = vpop.f32.mrf.mxu1  ;;  %23839 = vst [vmem:[#allocation42_spill] sm:$0xff] %v18082_v59  ;;  %v18086_v30 = vadd.f32 %v15637_v52, %v2077_v33  ;;  %v3007_v63 = vrot.slane %v2988_v55, %v18074_v5  ;;  %v3015_v55 = vrot.slane %v2998_v23, %v18074_v5 }
 0x25c   : >> { %v18089_v29 = vpop.f32.mrf.mxu0  ;;  %v18114_v24 = vrot.slane %v2967_v51, %v18054_v54  ;;  %v3019_v51 = vrot.slane %v2981_v62, %v18074_v5 }
 0x25d   : >> { %23840 = vst [vmem:[#allocation43_spill] sm:$0xff] %v18086_v30  ;;  %v15643_v58 = vpop.f32.mrf.mxu1  ;;  %23841 = vst [vmem:[#allocation44_spill] sm:$0xff] %v18089_v29  ;;  %v23844_v29 = vld [vmem:[#allocation10_spill] sm:$0xff]  ;;  %v18119_v53 = vadd.f32 %v3007_v63, %v23843_v17  ;;  %v18128_v1 = vadd.f32 %v3007_v63, %v23846_v4 }
 0x25e   : >> { %v2083_v11 = vpop.f32.mrf.mxu0  ;;  %v3040_v59 = vadd.f32 %v3003_v39, %v23844_v29  ;;  %v18138_v54 = vadd.f32 %v3011_v7, %v23844_v29  ;;  %v18155_v22 = vadd.f32 %v3015_v55, %v23844_v29 }
 0x25f   : >> { %v18091_v8 = vpop.f32.mrf.mxu1  ;;  %v2084_v52 = vadd.f32 %v2083_v11, %v17965_v42 }
 0x260   : >> { %23842 = vst [vmem:[#allocation45_spill] sm:$0xff] %v18091_v8  ;;  %v15593_v30 = vpop.f32.mrf.mxu0  ;;  %v23845_v8 = vld [vmem:[#allocation13_spill] sm:$0xff]  ;;  %23851 = vst [vmem:[#allocation50_spill] sm:$0xff] %v18155_v22 }
 0x261   : >> { %v15698_v33 = vpop.f32.mrf.mxu1  ;;  %v18102_v9 = vadd.f32 %v3003_v39, %v23845_v8  ;;  %v18110_v42 = vadd.f32 %v2402_v46, %v2084_v52  ;;  %v2105_v44 = vadd.f32 %v15593_v30, %v17969_v26  ;;  %v18122_v39 = vadd.f32 %v3007_v63, %v23844_v29 }
 0x262   : >> { %v18116_v11 = vpop.f32.mrf.mxu0  ;;  %v18125_v23 = vadd.f32 %v3007_v63, %v23845_v8  ;;  %v2187_v30 = vadd.f32 %v17967_v48, %v1895_v43  ;;  %v18134_v46 = vadd.f32 %v3011_v7, %v23843_v17  ;;  %v18144_v63 = vadd.f32 %v3011_v7, %v23846_v4 }
 0x263   : >> { %23847 = vst [vmem:[#allocation46_spill] sm:$0xff] %v18110_v42  ;;  %v2758_v35 = vpop.f32.mrf.mxu1  ;;  %23848 = vst [vmem:[#allocation47_spill] sm:$0xff] %v18116_v11  ;;  %v18131_v26 = vadd.f32 %v15643_v58, %v2105_v44  ;;  %v18141_v42 = vadd.f32 %v3011_v7, %v23845_v8  ;;  %v2997_v11 = vcombine.high %v2981_v62, %v2981_v62 }
 0x264   : >> { %v15648_v52 = vpop.f32.mrf.mxu0  ;;  %v2179_v48 = vadd.f32 %v17971_v49, %v1888_v41  ;;  %v18148_v44 = vadd.f32 %v3015_v55, %v23843_v17  ;;  %v18158_v7 = vadd.f32 %v3015_v55, %v23845_v8  ;;  %v18161_v49 = vadd.f32 %v3015_v55, %v23846_v4 }
 0x265   : >> { %23849 = vst [vmem:[#allocation48_spill] sm:$0xff] %v18131_v26  ;;  %v15701_v61 = vpop.f32.mrf.mxu1  ;;  %v2507_v58 = vadd.f32 %v15648_v52, %v2187_v30  ;;  %v3023_v26 = vrot.slane %v18114_v24, %v18074_v5  ;;  %v18164_v52 = vadd.f32 %v3019_v51, %v23843_v17  ;;  %v18172_v22 = vadd.f32 %v3019_v51, %v23845_v8 }
 0x266   : >> { %23850 = vst [vmem:[#allocation49_spill] sm:$0xff] %v18148_v44  ;;  %v2500_v2 = vpop.f32.mrf.mxu0  ;;  %23852 = vst [vmem:[#allocation51_spill] sm:$0xff] %v18158_v7  ;;  %v18167_v44 = vadd.f32 %v3019_v51, %v23844_v29  ;;  %v18175_v7 = vadd.f32 %v3019_v51, %v23846_v4 }
 0x267   : >> { %v2770_v43 = vpop.f32.mrf.mxu1  ;;  %v2765_v62 = vadd.f32 %v15698_v33, %v2507_v58  ;;  %v2501_v41 = vadd.f32 %v2500_v2, %v2179_v48  ;;  %23853 = vst [vmem:[#allocation52_spill] sm:$0xff] %v18164_v52  ;;  %v18178_v33 = vrot.slane %v2997_v11, %v18074_v5  ;;  %v18186_v52 = vadd.f32 %v3023_v26, %v23844_v29 }
 0x268   : >> { %23854 = vst [vmem:[#allocation53_spill] sm:$0xff] %v18167_v44  ;;  %v15651_v31 = vpop.f32.mrf.mxu0  ;;  %v18182_v44 = vadd.f32 %v3023_v26, %v23843_v17  ;;  %v18189_v51 = vadd.f32 %v3023_v26, %v23845_v8  ;;  %v18192_v11 = vadd.f32 %v3023_v26, %v23846_v4 }
 0x269   : >> { %v15704_v30 = vpop.f32.mrf.mxu1  ;;  %v3073_v2 = vadd.f32 %v3041_v37, %v2765_v62  ;;  %v2759_v55 = vadd.f32 %v2758_v35, %v2501_v41  ;;  %v2519_v48 = vadd.f32 %v15651_v31, %v17984_v25  ;;  %v2211_v41 = vadd.f32 %v17982_v36, %v1916_v40 }
 0x26a   : >> { %v2512_v12 = vpop.f32.mrf.mxu0  ;;  %23855 = vst [vmem:[#allocation54_spill] sm:$0xff] %v18189_v51  ;;  %v18198_v10 = vadd.f32 %v18178_v33, %v23843_v17  ;;  %v18202_v51 = vadd.f32 %v18178_v33, %v23844_v29 }
 0x26b   : >> { %v2782_v58 = vpop.f32.mrf.mxu1  ;;  %v3072_v37 = vadd.f32 %v3040_v59, %v2759_v55  ;;  %v2777_v35 = vadd.f32 %v15701_v61, %v2519_v48  ;;  %v2513_v25 = vadd.f32 %v2512_v12, %v17989_v3  ;;  %vm3105_vm1 = vcmp.ge.f32.partialorder %v3073_v2, 0.0 }
 0x26c   : >> { %v15654_v31 = vpop.f32.mrf.mxu0  ;;  %v3137_v6 = vmul.f32 0.2, %v3073_v2  ;;  %23856 = vst [vmem:[#allocation55_spill] sm:$0xff] %v18198_v10  ;;  %23857 = vst [vmem:[#allocation56_spill] sm:$0xff] %v18202_v51  ;;  %v1944_v3 = vadd.f32 %v18004_v27, %v17925_v14  ;;  %v18209_v12 = vadd.f32 %v18178_v33, %v23845_v8  ;;  %v23858_v10 = vld [vmem:[#allocation4_spill] sm:$0xff] }
 0x26d   : >> { %v15707_v62 = vpop.f32.mrf.mxu1  ;;  %v3075_v26 = vadd.f32 %v18102_v9, %v2777_v35  ;;  %v2771_v59 = vadd.f32 %v2770_v43, %v2513_v25  ;;  %v2531_v61 = vadd.f32 %v15654_v31, %v2219_v13  ;;  %vm3104_vm2 = vcmp.ge.f32.partialorder %v3072_v37, 0.0 }
 0x26e   : >> { %v2524_v36 = vpop.f32.mrf.mxu0  ;;  %v3169_v40 = vsel %vm3105_vm1, %v3073_v2, %v3137_v6  ;;  %v3136_v48 = vmul.f32 0.2, %v3072_v37  ;;  %v1958_v13 = vadd.f32 %v18011_v60, %v17929_v28 }
 0x26f   : >> { %v2794_v55 = vpop.f32.mrf.mxu1  ;;  %v3074_v17 = vadd.f32 %v18105_v18, %v2771_v59  ;;  %v2789_v29 = vadd.f32 %v15704_v30, %v2531_v61  ;;  %v2525_v51 = vadd.f32 %v2524_v36, %v2211_v41  ;;  %v3205_v9 = vmul.f32 %v23858_v10, %v3169_v40 }
 0x270   : >> { %v15657_v35 = vpop.f32.mrf.mxu0  ;;  %v3168_v25 = vsel %vm3104_vm2, %v3072_v37, %v3136_v48  ;;  %vm3107_vm3 = vcmp.ge.f32.partialorder %v3075_v26, 0.0  ;;  %v3139_v14 = vmul.f32 0.2, %v3075_v26  ;;  %v2999_v18 = vcombine.high %v18114_v24, %v18114_v24 }
 0x271   : >> { %v15710_v43 = vpop.f32.mrf.mxu1  ;;  %v3077_v27 = vadd.f32 %v18119_v53, %v2789_v29  ;;  %v2783_v2 = vadd.f32 %v2782_v58, %v2525_v51  ;;  %v2543_v31 = vadd.f32 %v15657_v35, %v17996_v50  ;;  %3238 = vadd.xlane.f32.xlu0 %v3205_v9  ;;  %v2243_v30 = vadd.f32 %v17994_v0, %v1944_v3 }
 0x272   : >> { %v2536_v41 = vpop.f32.mrf.mxu0  ;;  %v3204_v59 = vmul.f32 %v23858_v10, %v3168_v25  ;;  %v3171_v28 = vsel %vm3107_vm3, %v3075_v26, %v3139_v14  ;;  %v3138_v60 = vmul.f32 0.2, %v3074_v17  ;;  %vm3106_vm4 = vcmp.ge.f32.partialorder %v3074_v17, 0.0 }
 0x273   : >> { %v2806_v6 = vpop.f32.mrf.mxu1  ;;  %v3076_v37 = vadd.f32 %v18122_v39, %v2783_v2  ;;  %v2537_v61 = vadd.f32 %v2536_v41, %v17999_v32  ;;  %v2801_v53 = vadd.f32 %v15707_v62, %v2543_v31  ;;  %v2259_v50 = vadd.f32 %v18002_v16, %v1958_v13 }
 0x274   : >> { %v1979_v58 = vadd.f32 %v18015_v19, %v17931_v47  ;;  %v15660_v24 = vpop.f32.mrf.mxu0  ;;  %vm3109_vm5 = vcmp.ge.f32.partialorder %v3077_v27, 0.0  ;;  %v3141_v0 = vmul.f32 0.2, %v3077_v27  ;;  %v3207_v39 = vmul.f32 %v23858_v10, %v3171_v28 }
 0x275   : >> { %v15713_v29 = vpop.f32.mrf.mxu1  ;;  %v3079_v51 = vadd.f32 %v18125_v23, %v2801_v53  ;;  %v2555_v26 = vadd.f32 %v15660_v24, %v18006_v15  ;;  %v2795_v3 = vadd.f32 %v2794_v55, %v2537_v61  ;;  %3236 = vadd.xlane.f32.xlu0 %v3204_v59  ;;  %v3170_v40 = vsel %vm3106_vm4, %v3074_v17, %v3138_v60  ;;  %v23859_v24 = vld [vmem:[#allocation22_spill] sm:$0xff] }
 0x276   : >> { %v2548_v62 = vpop.f32.mrf.mxu0  ;;  %v3173_v36 = vsel %vm3109_vm5, %v3077_v27, %v3141_v0  ;;  %vm3108_vm6 = vcmp.ge.f32.partialorder %v3076_v37, 0.0  ;;  %v3140_v16 = vmul.f32 0.2, %v3076_v37  ;;  %v2283_v23 = vadd.f32 %v18008_v38, %v1979_v58 }
 0x277   : >> { %v2818_v32 = vpop.f32.mrf.mxu1  ;;  %v3078_v48 = vadd.f32 %v18128_v1, %v2795_v3  ;;  %v2549_v47 = vadd.f32 %v2548_v62, %v2243_v30  ;;  %v2813_v19 = vadd.f32 %v15710_v43, %v2555_v26  ;;  %v3209_v9 = vmul.f32 %v23858_v10, %v3173_v36 }
 0x278   : >> { %v15663_v15 = vpop.f32.mrf.mxu0  ;;  %v3172_v55 = vsel %vm3108_vm6, %v3076_v37, %v3140_v16  ;;  %vm3111_vm7 = vcmp.ge.f32.partialorder %v3079_v51, 0.0  ;;  %v3143_v35 = vmul.f32 0.2, %v3079_v51  ;;  %v1986_v25 = vadd.f32 %v18025_v57, %v17937_v20 }
 0x279   : >> { %v15716_v13 = vpop.f32.mrf.mxu1  ;;  %v2567_v17 = vadd.f32 %v15663_v15, %v18013_v34  ;;  %v2807_v14 = vadd.f32 %v2806_v6, %v2549_v47  ;;  %3242 = vadd.xlane.f32.xlu0 %v3207_v39  ;;  %3246 = vadd.xlane.f32.xlu1 %v3209_v9  ;;  %vm3110_vm8 = vcmp.ge.f32.partialorder %v3078_v48, 0.0  ;;  %v3081_v43 = vadd.f32 %v18134_v46, %v2813_v19 }
 0x27a   : >> { %v2560_v27 = vpop.f32.mrf.mxu0  ;;  %v3206_v2 = vmul.f32 %v23858_v10, %v3170_v40  ;;  %v3208_v38 = vmul.f32 %v23858_v10, %v3172_v55  ;;  %v3142_v31 = vmul.f32 0.2, %v3078_v48  ;;  %v3175_v20 = vsel %vm3111_vm7, %v3079_v51, %v3143_v35  ;;  %v23862_v40 = vld [vmem:[#allocation23_spill] sm:$0xff] }
 0x27b   : >> { %v2830_v1 = vpop.f32.mrf.mxu1  ;;  %v3080_v30 = vadd.f32 %v18138_v54, %v2807_v14  ;;  %v2561_v41 = vadd.f32 %v2560_v27, %v2259_v50  ;;  %v2825_v59 = vadd.f32 %v15713_v29, %v2567_v17  ;;  %v2007_v57 = vadd.f32 %v18029_v21, %v17939_v45  ;;  %v23864_v17 = vld [vmem:[#allocation14_spill] sm:$0xff]  ;;  %v23865_v14 = vld [vmem:[#allocation27_spill] sm:$0xff] }
 0x27c   : >> { %v15666_v6 = vpop.f32.mrf.mxu0  ;;  %v3174_v28 = vsel %vm3110_vm8, %v3078_v48, %v3142_v31  ;;  %v18244_v46 = vadd.f32 %v18178_v33, %v23846_v4  ;;  %v18247_v60 = vrot.slane %v2999_v18, %v18074_v5  ;;  %v2291_v29 = vadd.f32 %v18017_v56, %v1986_v25  ;;  %v23861_v56 = vld [vmem:[#allocation49_spill] sm:$0xff] }
 0x27d   : >> { %v15719_v34 = vpop.f32.mrf.mxu1  ;;  %v3083_v37 = vadd.f32 %v18141_v42, %v2825_v59  ;;  %v2579_v54 = vadd.f32 %v15666_v6, %v2283_v23  ;;  %v2819_v61 = vadd.f32 %v2818_v32, %v2561_v41  ;;  %3240 = vadd.xlane.f32.xlu0 %v3206_v2  ;;  %3244 = vadd.xlane.f32.xlu1 %v3208_v38  ;;  %vm3112_vm9 = vcmp.ge.f32.partialorder %v3080_v30, 0.0  ;;  %v23860_v42 = vld [vmem:[#allocation21_spill] sm:$0xff]  ;;  %v23863_v23 = vld [vmem:[#allocation50_spill] sm:$0xff]  ;;  %v23867_v2 = vld [vmem:[#allocation30_spill] sm:$0xff] }
 0x27e   : >> { %v2572_v45 = vpop.f32.mrf.mxu0  ;;  %v3211_v21 = vmul.f32 %v23858_v10, %v3175_v20  ;;  %v3144_v50 = vmul.f32 0.2, %v3080_v30  ;;  %v3145_v58 = vmul.f32 0.2, %v3081_v43  ;;  %vm3113_vm10 = vcmp.ge.f32.partialorder %v3081_v43, 0.0  ;;  %v23868_v6 = vld [vmem:[#allocation51_spill] sm:$0xff] }
 0x27f   : >> { %v2842_v53 = vpop.f32.mrf.mxu1  ;;  %v3082_v33 = vadd.f32 %v18144_v63, %v2819_v61  ;;  %v2573_v18 = vadd.f32 %v2572_v45, %v23859_v24  ;;  %v2837_v0 = vadd.f32 %v15716_v13, %v2579_v54  ;;  %v2315_v26 = vadd.f32 %v23860_v42, %v2007_v57  ;;  %v23870_v24 = vld [vmem:[#allocation24_spill] sm:$0xff] }
 0x280   : >> { %v15669_v3 = vpop.f32.mrf.mxu0  ;;  %v3176_v39 = vsel %vm3112_vm9, %v3080_v30, %v3144_v50  ;;  %v3210_v32 = vmul.f32 %v23858_v10, %v3174_v28  ;;  %v3147_v62 = vmul.f32 0.2, %v3083_v37  ;;  %v3177_v13 = vsel %vm3113_vm10, %v3081_v43, %v3145_v58  ;;  %v23869_v50 = vld [vmem:[#allocation26_spill] sm:$0xff] }
 0x281   : >> { %v15722_v51 = vpop.f32.mrf.mxu1  ;;  %v3085_v36 = vadd.f32 %v23861_v56, %v2837_v0  ;;  %v2591_v16 = vadd.f32 %v15669_v3, %v23862_v40  ;;  %v2831_v48 = vadd.f32 %v2830_v1, %v2573_v18  ;;  %3250 = vadd.xlane.f32.xlu1 %v3211_v21  ;;  %v3212_v63 = vmul.f32 %v23858_v10, %v3176_v39  ;;  %v23866_v1 = vld [vmem:[#allocation15_spill] sm:$0xff]  ;;  %v23871_v0 = vld [vmem:[#allocation25_spill] sm:$0xff]  ;;  %v23872_v39 = vld [vmem:[#allocation52_spill] sm:$0xff] }
 0x282   : >> { %v2584_v19 = vpop.f32.mrf.mxu0  ;;  %vm3114_vm11 = vcmp.ge.f32.partialorder %v3082_v33, 0.0  ;;  %v3146_v9 = vmul.f32 0.2, %v3082_v33  ;;  %vm3115_vm12 = vcmp.ge.f32.partialorder %v3083_v37, 0.0  ;;  %v2014_v27 = vadd.f32 %v23865_v14, %v23864_v17  ;;  %v23877_v14 = vld [vmem:[#allocation17_spill] sm:$0xff] }
 0x283   : >> { %v2854_v47 = vpop.f32.mrf.mxu1  ;;  %v3084_v15 = vadd.f32 %v23863_v23, %v2831_v48  ;;  %v2585_v55 = vadd.f32 %v2584_v19, %v2291_v29  ;;  %v2849_v35 = vadd.f32 %v15719_v34, %v2591_v16  ;;  %3252 = vadd.xlane.f32.xlu0 %v3212_v63  ;;  %vm3117_vm13 = vcmp.ge.f32.partialorder %v3085_v36, 0.0  ;;  %v23874_v63 = vld [vmem:[#allocation53_spill] sm:$0xff] }
 0x284   : >> { %v2035_v38 = vadd.f32 %v23867_v2, %v23866_v1  ;;  %v15672_v31 = vpop.f32.mrf.mxu0  ;;  %v3178_v30 = vsel %vm3114_vm11, %v3082_v33, %v3146_v9  ;;  %v3149_v41 = vmul.f32 0.2, %v3085_v36  ;;  %v3179_v34 = vsel %vm3115_vm12, %v3083_v37, %v3147_v62  ;;  %v23873_v62 = vld [vmem:[#allocation29_spill] sm:$0xff] }
 0x285   : >> { %v15725_v25 = vpop.f32.mrf.mxu1  ;;  %v2603_v59 = vadd.f32 %v15672_v31, %v2315_v26  ;;  %v2843_v20 = vadd.f32 %v2842_v53, %v2585_v55  ;;  %3248 = vadd.xlane.f32.xlu1 %v3210_v32  ;;  %v3214_v43 = vmul.f32 %v23858_v10, %v3178_v30  ;;  %v3087_v28 = vadd.f32 %v23868_v6, %v2849_v35  ;;  %v23875_v55 = vld [vmem:[#allocation16_spill] sm:$0xff]  ;;  %v23876_v35 = vld [vmem:[#allocation35_spill] sm:$0xff] }
 0x286   : >> { %v2596_v54 = vpop.f32.mrf.mxu0  ;;  %v3213_v61 = vmul.f32 %v23858_v10, %v3177_v13  ;;  %v3181_v29 = vsel %vm3117_vm13, %v3085_v36, %v3149_v41  ;;  %v3148_v45 = vmul.f32 0.2, %v3084_v15  ;;  %vm3116_vm14 = vcmp.ge.f32.partialorder %v3084_v15, 0.0 }
 0x287   : >> { %v2866_v57 = vpop.f32.mrf.mxu1  ;;  %v3086_v21 = vadd.f32 %v18161_v49, %v2843_v20  ;;  %v2597_v58 = vadd.f32 %v2596_v54, %v23869_v50  ;;  %v2861_v33 = vadd.f32 %v15722_v51, %v2603_v59  ;;  %3256 = vadd.xlane.f32.xlu0 %v3214_v43  ;;  %v2323_v18 = vadd.f32 %v23870_v24, %v2014_v27  ;;  %v23881_v50 = vld [vmem:[#allocation33_spill] sm:$0xff] }
 0x288   : >> { %v2347_v42 = vadd.f32 %v23871_v0, %v2035_v38  ;;  %v15675_v37 = vpop.f32.mrf.mxu0  ;;  %v3217_v26 = vmul.f32 %v23858_v10, %v3181_v29  ;;  %v3215_v3 = vmul.f32 %v23858_v10, %v3179_v34  ;;  %v3180_v16 = vsel %vm3116_vm14, %v3084_v15, %v3148_v45 }
 0x289   : >> { %v15728_v53 = vpop.f32.mrf.mxu1  ;;  %v3089_v32 = vadd.f32 %v23872_v39, %v2861_v33  ;;  %v2615_v56 = vadd.f32 %v15675_v37, %v23873_v62  ;;  %v2855_v49 = vadd.f32 %v2854_v47, %v2597_v58  ;;  %3254 = vadd.xlane.f32.xlu1 %v3213_v61  ;;  %vm3118_vm15 = vcmp.ge.f32.partialorder %v3086_v21, 0.0  ;;  %v23878_v47 = vld [vmem:[#allocation37_spill] sm:$0xff]  ;;  %v23879_v61 = vld [vmem:[#allocation34_spill] sm:$0xff] }
 0x28a   : >> { %v2608_v36 = vpop.f32.mrf.mxu0  ;;  %v3150_v40 = vmul.f32 0.2, %v3086_v21  ;;  %vm3119_vm1 = vcmp.ge.f32.partialorder %v3087_v28, 0.0  ;;  %v3151_v48 = vmul.f32 0.2, %v3087_v28  ;;  %v2042_v17 = vadd.f32 %v23876_v35, %v23875_v55 }
 0x28b   : >> { %v2878_v51 = vpop.f32.mrf.mxu1  ;;  %v3088_v19 = vadd.f32 %v23874_v63, %v2855_v49  ;;  %v2609_v9 = vadd.f32 %v2608_v36, %v2323_v18  ;;  %v2873_v13 = vadd.f32 %v15725_v25, %v2615_v56  ;;  %3262 = vadd.xlane.f32.xlu0 %v3217_v26  ;;  %vm3121_vm2 = vcmp.ge.f32.partialorder %v3089_v32, 0.0  ;;  %v23884_v36 = vld [vmem:[#allocation42_spill] sm:$0xff] }
 0x28c   : >> { %v2063_v27 = vadd.f32 %v23878_v47, %v23877_v14  ;;  %v15678_v1 = vpop.f32.mrf.mxu0  ;;  %v3182_v2 = vsel %vm3118_vm15, %v3086_v21, %v3150_v40  ;;  %v3153_v38 = vmul.f32 0.2, %v3089_v32  ;;  %v3216_v20 = vmul.f32 %v23858_v10, %v3180_v16  ;;  %v23886_v16 = vld [vmem:[#allocation44_spill] sm:$0xff] }
 0x28d   : >> { %v15731_v23 = vpop.f32.mrf.mxu1  ;;  %v3091_v15 = vadd.f32 %v18172_v22, %v2873_v13  ;;  %v2627_v31 = vadd.f32 %v15678_v1, %v2347_v42  ;;  %v2867_v30 = vadd.f32 %v2866_v57, %v2609_v9  ;;  %3258 = vadd.xlane.f32.xlu1 %v3215_v3  ;;  %v3218_v25 = vmul.f32 %v23858_v10, %v3182_v2  ;;  %v23880_v57 = vld [vmem:[#allocation31_spill] sm:$0xff] }
 0x28e   : >> { %v2620_v59 = vpop.f32.mrf.mxu0  ;;  %v3185_v43 = vsel %vm3121_vm2, %v3089_v32, %v3153_v38  ;;  %v3183_v34 = vsel %vm3119_vm1, %v3087_v28, %v3151_v48  ;;  %v3152_v6 = vmul.f32 0.2, %v3088_v19  ;;  %vm3120_vm3 = vcmp.ge.f32.partialorder %v3088_v19, 0.0  ;;  %v23882_v28 = vld [vmem:[#allocation36_spill] sm:$0xff] }
 0x28f   : >> { %v2890_v41 = vpop.f32.mrf.mxu1  ;;  %v3090_v54 = vadd.f32 %v18175_v7, %v2867_v30  ;;  %v2621_v29 = vadd.f32 %v2620_v59, %v23879_v61  ;;  %v2885_v45 = vadd.f32 %v15728_v53, %v2627_v31  ;;  %3264 = vadd.xlane.f32.xlu0 %v3218_v25  ;;  %v2355_v21 = vadd.f32 %v23880_v57, %v2042_v17  ;;  %v23887_v17 = vld [vmem:[#allocation54_spill] sm:$0xff]  ;;  %v23888_v31 = vld [vmem:[#allocation41_spill] sm:$0xff]  ;;  %v23889_v59 = vld [vmem:[#allocation38_spill] sm:$0xff] }
 0x290   : >> { %v2379_v58 = vadd.f32 %v23881_v50, %v2063_v27  ;;  %v15681_v33 = vpop.f32.mrf.mxu0  ;;  %v3221_v24 = vmul.f32 %v23858_v10, %v3185_v43  ;;  %v3155_v18 = vmul.f32 0.2, %v3091_v15  ;;  %v3219_v26 = vmul.f32 %v23858_v10, %v3183_v34  ;;  %v23890_v43 = vld [vmem:[#allocation40_spill] sm:$0xff]  ;;  %v23891_v61 = vld [vmem:[#allocation55_spill] sm:$0xff] }
 0x291   : >> { %v15734_v22 = vpop.f32.mrf.mxu1  ;;  %v3093_v0 = vadd.f32 %v18182_v44, %v2885_v45  ;;  %v2639_v42 = vadd.f32 %v15681_v33, %v23882_v28  ;;  %v2879_v37 = vadd.f32 %v2878_v51, %v2621_v29  ;;  %3260 = vadd.xlane.f32.xlu1 %v3216_v20  ;;  %vm3122_vm4 = vcmp.ge.f32.partialorder %v3090_v54, 0.0  ;;  %v23883_v44 = vld [vmem:[#allocation18_spill] sm:$0xff]  ;;  %v23885_v51 = vld [vmem:[#allocation19_spill] sm:$0xff]  ;;  %v23892_v45 = vld [vmem:[#allocation43_spill] sm:$0xff] }
 0x292   : >> { %v2632_v53 = vpop.f32.mrf.mxu0  ;;  %v3154_v3 = vmul.f32 0.2, %v3090_v54  ;;  %v3184_v39 = vsel %vm3120_vm3, %v3088_v19, %v3152_v6  ;;  %vm3123_vm5 = vcmp.ge.f32.partialorder %v3091_v15, 0.0  ;;  %v2070_v40 = vadd.f32 %v23884_v36, %v23883_v44 }
 0x293   : >> { %v2902_v7 = vpop.f32.mrf.mxu1  ;;  %v3092_v32 = vadd.f32 %v18186_v52, %v2879_v37  ;;  %v2633_v62 = vadd.f32 %v2632_v53, %v2355_v21  ;;  %v2897_v56 = vadd.f32 %v15731_v23, %v2639_v42  ;;  %3270 = vadd.xlane.f32.xlu0 %v3221_v24  ;;  %vm3125_vm6 = vcmp.ge.f32.partialorder %v3093_v0, 0.0  ;;  %v23893_v24 = vld [vmem:[#allocation56_spill] sm:$0xff]  ;;  %v23894_v42 = vld [vmem:[#allocation20_spill] sm:$0xff]  ;;  %v23895_v37 = vld [vmem:[#allocation47_spill] sm:$0xff] }
 0x294   : >> { %v2091_v48 = vadd.f32 %v23886_v16, %v23885_v51  ;;  %v15684_v63 = vpop.f32.mrf.mxu0  ;;  %v3186_v9 = vsel %vm3122_vm4, %v3090_v54, %v3154_v3  ;;  %v3157_v13 = vmul.f32 0.2, %v3093_v0  ;;  %v3187_v23 = vsel %vm3123_vm5, %v3091_v15, %v3155_v18 }
 0x295   : >> { %v15737_v49 = vpop.f32.mrf.mxu1  ;;  %v2651_v55 = vadd.f32 %v15684_v63, %v2379_v58  ;;  %v2891_v19 = vadd.f32 %v2890_v41, %v2633_v62  ;;  %3266 = vadd.xlane.f32.xlu1 %v3219_v26  ;;  %v3222_v52 = vmul.f32 %v23858_v10, %v3186_v9  ;;  %v3095_v14 = vadd.f32 %v23887_v17, %v2897_v56  ;;  %v23896_v56 = vld [vmem:[#allocation11_spill] sm:$0xff]  ;;  %v23897_v9 = vld [vmem:[#allocation46_spill] sm:$0xff]  ;;  %v23899_v17 = vld [vmem:[#allocation10_spill] sm:$0xff] }
 0x296   : >> { %v2644_v47 = vpop.f32.mrf.mxu0  ;;  %v3220_v27 = vmul.f32 %v23858_v10, %v3184_v39  ;;  %v3189_v1 = vsel %vm3125_vm6, %v3093_v0, %v3157_v13  ;;  %v3156_v2 = vmul.f32 0.2, %v3092_v32  ;;  %vm3124_vm7 = vcmp.ge.f32.partialorder %v3092_v32, 0.0 }
 0x297   : >> { %v2914_v35 = vpop.f32.mrf.mxu1  ;;  %v3094_v38 = vadd.f32 %v18192_v11, %v2891_v19  ;;  %v2645_v30 = vadd.f32 %v2644_v47, %v23888_v31  ;;  %v2909_v25 = vadd.f32 %v15734_v22, %v2651_v55  ;;  %3272 = vadd.xlane.f32.xlu0 %v3222_v52  ;;  %v2387_v20 = vadd.f32 %v23889_v59, %v2070_v40  ;;  %v23898_v52 = vld [vmem:[#allocation45_spill] sm:$0xff] }
 0x298   : >> { %v2411_v34 = vadd.f32 %v23890_v43, %v2091_v48  ;;  %v15687_v15 = vpop.f32.mrf.mxu0  ;;  %v3225_v6 = vmul.f32 %v23858_v10, %v3189_v1  ;;  %v3223_v54 = vmul.f32 %v23858_v10, %v3187_v23  ;;  %v3188_v58 = vsel %vm3124_vm7, %v3092_v32, %v3156_v2  ;;  %v23900_v1 = vld [vmem:[#allocation48_spill] sm:$0xff] }
 0x299   : >> { %v15740_v41 = vpop.f32.mrf.mxu1  ;;  %v3097_v29 = vadd.f32 %v23891_v61, %v2909_v25  ;;  %v2663_v57 = vadd.f32 %v15687_v15, %v23892_v45  ;;  %v2903_v11 = vadd.f32 %v2902_v7, %v2645_v30  ;;  %3268 = vadd.xlane.f32.xlu1 %v3220_v27  ;;  %vm3126_vm8 = vcmp.ge.f32.partialorder %v3094_v38, 0.0 }
 0x29a   : >> { %v2656_v22 = vpop.f32.mrf.mxu0  ;;  %v3158_v21 = vmul.f32 0.2, %v3094_v38  ;;  %vm3127_vm9 = vcmp.ge.f32.partialorder %v3095_v14, 0.0  ;;  %v3159_v33 = vmul.f32 0.2, %v3095_v14  ;;  %v2098_v53 = vadd.f32 %v23895_v37, %v23894_v42 }
 0x29b   : >> { %v2926_v50 = vpop.f32.mrf.mxu1  ;;  %v3096_v18 = vadd.f32 %v23893_v24, %v2903_v11  ;;  %v2657_v0 = vadd.f32 %v2656_v22, %v2387_v20  ;;  %v2921_v28 = vadd.f32 %v15737_v49, %v2663_v57  ;;  %3278 = vadd.xlane.f32.xlu0 %v3225_v6  ;;  %vm3129_vm10 = vcmp.ge.f32.partialorder %v3097_v29, 0.0 }
 0x29c   : >> { %v15690_v26 = vpop.f32.mrf.mxu0  ;;  %v3190_v3 = vsel %vm3126_vm8, %v3094_v38, %v3158_v21  ;;  %v3161_v7 = vmul.f32 0.2, %v3097_v29  ;;  %v3069_v32 = vadd.f32 %v18247_v60, %v23896_v56  ;;  %v3224_v49 = vmul.f32 %v23858_v10, %v3188_v58 }
 0x29d   : >> { %v2675_v39 = vadd.f32 %v15690_v26, %v2411_v34  ;;  %v2915_v62 = vadd.f32 %v2914_v35, %v2657_v0  ;;  %3274 = vadd.xlane.f32.xlu1 %v3223_v54  ;;  %v3226_v44 = vmul.f32 %v23858_v10, %v3190_v3  ;;  %v3099_v36 = vadd.f32 %v18209_v12, %v2921_v28  ;;  %v15743_v51 = vpop.f32.mrf.mxu1 }
 0x29e   : >> { %v2668_v40 = vpop.f32.mrf.mxu0  ;;  %v3193_v16 = vsel %vm3129_vm10, %v3097_v29, %v3161_v7  ;;  %v3191_v48 = vsel %vm3127_vm9, %v3095_v14, %v3159_v33  ;;  %v3160_v19 = vmul.f32 0.2, %v3096_v18  ;;  %v2419_v35 = vadd.f32 %v23898_v52, %v2098_v53 }
 0x29f   : >> { %v3098_v63 = vadd.f32 %v18244_v46, %v2915_v62  ;;  %v2669_v13 = vadd.f32 %v2668_v40, %v23897_v9  ;;  %v2933_v55 = vadd.f32 %v15740_v41, %v2675_v39  ;;  %3280 = vadd.xlane.f32.xlu0 %v3226_v44  ;;  %v3068_v12 = vadd.f32 %v18247_v60, %v23899_v17  ;;  %v2938_v31 = vpop.f32.mrf.mxu1 }
 0x2a0   : >> { %v15693_v23 = vpop.f32.mrf.mxu0  ;;  %v3229_v47 = vmul.f32 %v23858_v10, %v3193_v16  ;;  %vm3128_vm11 = vcmp.ge.f32.partialorder %v3096_v18, 0.0  ;;  %v3071_v38 = vadd.f32 %v18247_v60, %v23845_v8  ;;  %v3070_v30 = vadd.f32 %v18247_v60, %v23846_v4 }
 0x2a1   : >> { %v3101_v27 = vadd.f32 %v3069_v32, %v2933_v55  ;;  %v2687_v2 = vadd.f32 %v15693_v23, %v23900_v1  ;;  %v2927_v14 = vadd.f32 %v2926_v50, %v2669_v13  ;;  %3276 = vadd.xlane.f32.xlu1 %v3224_v49  ;;  %vm3130_vm12 = vcmp.ge.f32.partialorder %v3098_v63, 0.0 }
 0x2a2   : >> { %v2680_v46 = vpop.f32.mrf.mxu0  ;;  %v3227_v25 = vmul.f32 %v23858_v10, %v3191_v48  ;;  %v3162_v41 = vmul.f32 0.2, %v3098_v63  ;;  %v3192_v20 = vsel %vm3128_vm11, %v3096_v18, %v3160_v19  ;;  %v3163_v43 = vmul.f32 0.2, %v3099_v36 }
 0x2a3   : >> { %v2681_v59 = vadd.f32 %v2680_v46, %v2419_v35  ;;  %3286 = vadd.xlane.f32.xlu0 %v3229_v47  ;;  %vm3133_vm13 = vcmp.ge.f32.partialorder %v3101_v27, 0.0  ;;  %v3100_v34 = vadd.f32 %v3068_v12, %v2927_v14  ;;  %v2945_v15 = vadd.f32 %v15743_v51, %v2687_v2  ;;  %v23902_v47 = vld [vmem:[#allocation28_spill] sm:$0xff] }
 0x2a4   : >> { %v3194_v6 = vsel %vm3130_vm12, %v3098_v63, %v3162_v41  ;;  %v3165_v54 = vmul.f32 0.2, %v3101_v27  ;;  %vm3131_vm14 = vcmp.ge.f32.partialorder %v3099_v36, 0.0  ;;  %v3228_v4 = vmul.f32 %v23858_v10, %v3192_v20 }
 0x2a5   : >> { %v2939_v61 = vadd.f32 %v2938_v31, %v2681_v59  ;;  %3282 = vadd.xlane.f32.xlu1 %v3227_v25  ;;  %v3230_v8 = vmul.f32 %v23858_v10, %v3194_v6  ;;  %v3103_v60 = vadd.f32 %v3071_v38, %v2945_v15  ;;  %v3195_v57 = vsel %vm3131_vm14, %v3099_v36, %v3163_v43 }
 0x2a6   : >> { %v3197_v29 = vsel %vm3133_vm13, %v3101_v27, %v3165_v54  ;;  %v3164_v11 = vmul.f32 0.2, %v3100_v34  ;;  %vm3132_vm1 = vcmp.ge.f32.partialorder %v3100_v34, 0.0  ;;  %v3231_v50 = vmul.f32 %v23858_v10, %v3195_v57 }
 0x2a7   : >> { %v3102_v45 = vadd.f32 %v3070_v30, %v2939_v61  ;;  %3288 = vadd.xlane.f32.xlu0 %v3230_v8  ;;  %v3233_v22 = vmul.f32 %v23858_v10, %v3197_v29  ;;  %v3167_v18 = vmul.f32 0.2, %v3103_v60  ;;  %vm3135_vm2 = vcmp.ge.f32.partialorder %v3103_v60, 0.0 }
 0x2a8   : >> { %v3196_v24 = vsel %vm3132_vm1, %v3100_v34, %v3164_v11  ;;  %v23901_v55 = vlaneseq  ;;  %vm3346_vm3 = vcmask 130112   ;;  %vm3353_vm4 = vcmask 195712  }
 0x2a9   : >> { %3284 = vadd.xlane.f32.xlu1 %v3228_v4  ;;  %vm3134_vm15 = vcmp.ge.f32.partialorder %v3102_v45, 0.0  ;;  %v3166_v21 = vmul.f32 0.2, %v3102_v45  ;;  %v3232_v0 = vmul.f32 %v23858_v10, %v3196_v24  ;;  %v3199_v28 = vsel %vm3135_vm2, %v3103_v60, %v3167_v18 }
 0x2aa   : >> { %v3235_v42 = vmul.f32 %v23858_v10, %v3199_v28  ;;  %v3336_v19 = vand.u32 127, %v23901_v55  ;;  %vm3360_vm5 = vcmask 261312   ;;  %vm3495_vm6 = vcmask 1041409  }
 0x2ab   : >> { %3294 = vadd.xlane.f32.xlu0 %v3233_v22  ;;  %v3198_v58 = vsel %vm3134_vm15, %v3102_v45, %v3166_v21  ;;  %vm3497_vm7 = vcmask 1042434   ;;  %vm3499_vm8 = vcmask 1043459   ;;  %vm3501_vm9 = vcmask 1044484  }
 0x2ac   : >> { %v3234_v33 = vmul.f32 %v23858_v10, %v3198_v58  ;;  %v3348_v35 = vadd.s32 4294967280, %v3336_v19  ;;  %v3341_v17 = vadd.s32 4294967288, %v3336_v19  ;;  %v18358_v27 = vsub.s32 %v3336_v19, %v23902_v47 }
 0x2ad   : >> { %3290 = vadd.xlane.f32.xlu1 %v3231_v50  ;;  %v3355_v46 = vadd.s32 4294967272, %v3336_v19  ;;  %vm3503_vm10 = vcmask 1045509   ;;  %vm3505_vm11 = vcmask 1046534   ;;  %vm3507_vm12 = vcmask 1047559  }
 0x2ae   : >> { %23903 = vst [vmem:[#allocation57_spill] sm:$0xff] %v18358_v27  ;;  %v18361_v1 = vsub.s32 %v3348_v35, %v23902_v47  ;;  %v18364_v14 = vsub.s32 %v3341_v17, %v23902_v47  ;;  %vm3511_vm14 = vcmask 261120  }
 0x2af   : >> { %3296 = vadd.xlane.f32.xlu0 %v3234_v33  ;;  %v18373_v20 = vsub.s32 %v3355_v46, %v23902_v47 }
 0x2b0   : >> { %23904 = vst [vmem:[#allocation58_spill] sm:$0xff] %v18361_v1  ;;  %23905 = vst [vmem:[#allocation59_spill] sm:$0xff] %v18364_v14 }
 0x2b1   : >> { %3292 = vadd.xlane.f32.xlu1 %v3232_v0  ;;  %23906 = vst [vmem:[#allocation60_spill] sm:$0xff] %v18373_v20 }
 0x2b5   : >> { %3298 = vadd.xlane.f32.xlu1 %v3235_v42 }
 0x2fa   : >> { %v3239_v37 = vpop.xlane.xlu0 %3238 }
 0x2fb   : >> { %v3345_v59 = vrot.slane %v3239_v37, %v18364_v14 }
 0x2fe   : >> { %v3237_v53 = vpop.xlane.xlu0 %3236 }
 0x2ff   : >> { %v3340_v31 = vrot.slane %v3237_v53, %v18358_v27 }
 0x301   : >> { %v3347_v54 = vsel %vm3346_vm3, %v3345_v59, %v3340_v31 }
 0x302   : >> { %v3243_v26 = vpop.xlane.xlu0 %3242  ;;  %v3247_v3 = vpop.xlane.xlu1 %3246 }
 0x303   : >> { %v3369_v34 = vrot.slane %v3247_v3, %v18364_v14  ;;  %v3359_v60 = vrot.slane %v3243_v26, %v18373_v20 }
 0x306   : >> { %v3245_v7 = vpop.xlane.xlu1 %3244  ;;  %v3241_v39 = vpop.xlane.xlu0 %3240 }
 0x307   : >> { %v3352_v30 = vrot.slane %v3241_v39, %v18361_v1  ;;  %v3365_v25 = vrot.slane %v3245_v7, %v18358_v27 }
 0x309   : >> { %v3354_v61 = vsel %vm3353_vm4, %v3352_v30, %v3347_v54  ;;  %v3370_v8 = vsel %vm3346_vm3, %v3369_v34, %v3365_v25  ;;  %v3301_v25 = vld [vmem:[%s3300_s11] sm:$0xff] }
 0x30a   : >> { %v18340_v62 = vpop.xlane.xlu1 %3250  ;;  %v3361_v58 = vsel %vm3360_vm5, %v3359_v60, %v3354_v61  ;;  %vm3302_vm13 = vcmp.gt.f32.partialorder %v3301_v25, 0.0 }
 0x30b   : >> { %v3379_v33 = vrot.slane %v18340_v62, %v18373_v20 }
 0x30c   : >> { %v3253_v56 = vpop.xlane.xlu0 %3252 }
 0x30d   : >> { %v3384_v29 = vrot.slane %v3253_v56, %v18358_v27 }
 0x30e   : >> { %v3249_v32 = vpop.xlane.xlu1 %3248 }
 0x30f   : >> { %v3374_v43 = vrot.slane %v3249_v32, %v18361_v1 }
 0x310   : >> { %v18342_v44 = vpop.xlane.xlu0 %3256 }
 0x311   : >> { %v3375_v57 = vsel %vm3353_vm4, %v3374_v43, %v3370_v8  ;;  %v3393_v24 = vrot.slane %v18342_v44, %v18361_v1 }
 0x312   : >> { %v3255_v36 = vpop.xlane.xlu1 %3254  ;;  %v3380_v3 = vsel %vm3360_vm5, %v3379_v33, %v3375_v57 }
 0x313   : >> { %v3388_v15 = vrot.slane %v3255_v36, %v18364_v14  ;;  %v3496_v47 = vsel %vm3495_vm6, %v3380_v3, %v3361_v58 }
 0x314   : >> { %v3263_v40 = vpop.xlane.xlu0 %3262 }
 0x315   : >> { %v3389_v11 = vsel %vm3346_vm3, %v3388_v15, %v3384_v29  ;;  %v3407_v22 = vrot.slane %v3263_v40, %v18364_v14 }
 0x316   : >> { %v18344_v49 = vpop.xlane.xlu1 %3258  ;;  %v3394_v7 = vsel %vm3353_vm4, %v3393_v24, %v3389_v11 }
 0x317   : >> { %v3398_v21 = vrot.slane %v18344_v49, %v18373_v20 }
 0x318   : >> { %v18346_v51 = vpop.xlane.xlu0 %3264 }
 0x319   : >> { %v3412_v39 = vrot.slane %v18346_v51, %v18361_v1  ;;  %v3399_v56 = vsel %vm3360_vm5, %v3398_v21, %v3394_v7  ;;  %v23910_v7 = vld [vmem:[#allocation10_spill] sm:$0xff] (%p1034_p4) }
 0x31a   : >> { %v3261_v16 = vpop.xlane.xlu1 %3260  ;;  %v3498_v46 = vsel %vm3497_vm7, %v3399_v56, %v3496_v47 }
 0x31b   : >> { %v3403_v45 = vrot.slane %v3261_v16, %v18358_v27 }
 0x31c   : >> { %v3271_v48 = vpop.xlane.xlu0 %3270 }
 0x31d   : >> { %v3408_v28 = vsel %vm3346_vm3, %v3407_v22, %v3403_v45  ;;  %v3426_v42 = vrot.slane %v3271_v48, %v18364_v14 }
 0x31e   : >> { %v18348_v63 = vpop.xlane.xlu1 %3266  ;;  %v3413_v40 = vsel %vm3353_vm4, %v3412_v39, %v3408_v28  ;;  %v23907_v28 = vld [vmem:[#allocation13_spill] sm:$0xff] (%p1034_p4)  ;;  %v18462_v39 = vand.u32 (%p1034_p4), 4294901760, %v23910_v7 }
 0x31f   : >> { %v3417_v37 = vrot.slane %v18348_v63, %v18373_v20 }
 0x320   : >> { %v18350_v9 = vpop.xlane.xlu0 %3272 }
 0x321   : >> { %v3431_v49 = vrot.slane %v18350_v9, %v18361_v1  ;;  %v3418_v48 = vsel %vm3360_vm5, %v3417_v37, %v3413_v40  ;;  %v23908_v37 = vld [vmem:[#allocation12_spill] sm:$0xff] (%p1034_p4) }
 0x322   : >> { %v3269_v13 = vpop.xlane.xlu1 %3268 }
 0x323   : >> { %v3422_v50 = vrot.slane %v3269_v13, %v18358_v27 }
 0x324   : >> { %v3279_v52 = vpop.xlane.xlu0 %3278 }
 0x325   : >> { %v3445_v62 = vrot.slane %v3279_v52, %v18364_v14  ;;  %v3427_v32 = vsel %vm3346_vm3, %v3426_v42, %v3422_v50  ;;  %v18453_v42 = vand.u32 (%p1034_p4), 4294901760, %v23907_v28 }
 0x326   : >> { %v18353_v23 = vpop.xlane.xlu1 %3274  ;;  %v3432_v52 = vsel %vm3353_vm4, %v3431_v49, %v3427_v32 }
 0x327   : >> { %v3436_v44 = vrot.slane %v18353_v23, %v18373_v20  ;;  %15744 = vmatprep.subr.mxu0 (%p1034_p4), %v18453_v42  ;;  %v3683_v10 = vsub.f32 (%p1034_p4), %v23907_v28, %v18453_v42 }
 0x328   : >> { %v18355_v12 = vpop.xlane.xlu0 %3280  ;;  %15745 = vmatpush3.msra.mxu0 (%p1034_p4), %v18453_v42 }
 0x329   : >> { %v3450_v63 = vrot.slane %v18355_v12, %v18361_v1 }
 0x32a   : >> { %v3277_v2 = vpop.xlane.xlu1 %3276 }
 0x32b   : >> { %v3441_v18 = vrot.slane %v3277_v2, %v18358_v27  ;;  %v3437_v2 = vsel %vm3360_vm5, %v3436_v44, %v3432_v52 }
 0x32c   : >> { %v3287_v38 = vpop.xlane.xlu0 %3286 }
 0x32d   : >> { %v3464_v36 = vrot.slane %v3287_v38, %v18364_v14  ;;  %v3446_v16 = vsel %vm3346_vm3, %v3445_v62, %v3441_v18 }
 0x32e   : >> { %v18369_v41 = vpop.xlane.xlu1 %3282  ;;  %v3451_v12 = vsel %vm3353_vm4, %v3450_v63, %v3446_v16 }
 0x32f   : >> { %v3455_v51 = vrot.slane %v18369_v41, %v18373_v20  ;;  %v3500_v41 = vsel %vm3499_vm8, %v3418_v48, %v3498_v46 }
 0x330   : >> { %v3289_v6 = vpop.xlane.xlu0 %3288  ;;  %v3502_v15 = vsel %vm3501_vm9, %v3437_v2, %v3500_v41 }
 0x331   : >> { %v3469_v9 = vrot.slane %v3289_v6, %v18361_v1  ;;  %v3456_v38 = vsel %vm3360_vm5, %v3455_v51, %v3451_v12 }
 0x332   : >> { %v3285_v4 = vpop.xlane.xlu1 %3284  ;;  %v3504_v61 = vsel %vm3503_vm10, %v3456_v38, %v3502_v15 }
 0x333   : >> { %v3460_v53 = vrot.slane %v3285_v4, %v18358_v27 }
 0x334   : >> { %v3295_v0 = vpop.xlane.xlu0 %3294 }
 0x335   : >> { %v3465_v13 = vsel %vm3346_vm3, %v3464_v36, %v3460_v53  ;;  %v3483_v35 = vrot.slane %v3295_v0, %v18364_v14  ;;  %v18456_v53 = vand.u32 (%p1034_p4), 4294901760, %v23908_v37 }
 0x336   : >> { %v3291_v26 = vpop.xlane.xlu1 %3290  ;;  %v3470_v31 = vsel %vm3353_vm4, %v3469_v9, %v3465_v13  ;;  %v3704_v13 = vsub.f32 (%p1034_p4), %v23910_v7, %v18462_v39 }
 0x337   : >> { %v3474_v55 = vrot.slane %v3291_v26, %v18373_v20  ;;  %v23909_v26 = vld [vmem:[#allocation11_spill] sm:$0xff] (%p1034_p4)  ;;  %v3690_v16 = vsub.f32 (%p1034_p4), %v23908_v37, %v18456_v53  ;;  %15746 = vmatprep.subr.mxu0 (%p1034_p4), %v18456_v53 }
 0x338   : >> { %v3297_v23 = vpop.xlane.xlu0 %3296  ;;  %v18459_v3 = vand.u32 (%p1034_p4), 4294901760, %v23909_v26  ;;  %15747 = vmatpush3.msra.mxu0 (%p1034_p4), %v18456_v53  ;;  %v18499_v47 = vand.u32 (%p1034_p4), 4294901760, %v3704_v13 }
 0x339   : >> { %v3475_v59 = vsel %vm3360_vm5, %v3474_v55, %v3470_v31  ;;  %v3488_v43 = vrot.slane %v3297_v23, %v18361_v1  ;;  %v18488_v9 = vand.u32 (%p1034_p4), 4294901760, %v3690_v16 }
 0x33a   : >> { %v3293_v19 = vpop.xlane.xlu1 %3292  ;;  %v3506_v29 = vsel %vm3505_vm11, %v3475_v59, %v3504_v61  ;;  %v3697_v48 = vsub.f32 (%p1034_p4), %v23909_v26, %v18459_v3  ;;  %15748 = vmatprep.subr.mxu0 (%p1034_p4), %v18459_v3  ;;  %v3706_v41 = vsub.f32 (%p1034_p4), %v3704_v13, %v18499_v47  ;;  %v4264_v26 = vld [vmem:[%s23232_s4 + $0xd8] sm:$0xff] (%p1034_p4) }
 0x33b   : >> { %v3479_v17 = vrot.slane %v3293_v19, %v18358_v27  ;;  %v18483_v19 = vand.u32 (%p1034_p4), 4294901760, %v3683_v10  ;;  %v3692_v38 = vsub.f32 (%p1034_p4), %v3690_v16, %v18488_v9  ;;  %15749 = vmatpush3.msra.mxu0 (%p1034_p4), %v18459_v3 }
 0x33c   : > { %v18495_v23 = vand.u32 (%p1034_p4), 4294901760, %v3697_v48  ;;  %15750 = vmatprep.subr.mxu0 (%p1034_p4), %v18462_v39 }
 0x33d   : >> { %v3484_v30 = vsel %vm3346_vm3, %v3483_v35, %v3479_v17  ;;  %v3685_v12 = vsub.f32 (%p1034_p4), %v3683_v10, %v18483_v19  ;;  %v3693_v15 = vand.u32 (%p1034_p4), 4294901760, %v3692_v38  ;;  %15751 = vmatpush3.msra.mxu0 (%p1034_p4), %v18462_v39  ;;  %v4258_v38 = vld [vmem:[%s23232_s4 + $0xa8] sm:$0xff] (%p1034_p4) }
 0x33e   : >> { %v3299_v34 = vpop.xlane.xlu1 %3298  ;;  %v3489_v54 = vsel %vm3353_vm4, %v3488_v43, %v3484_v30  ;;  %v3699_v30 = vsub.f32 (%p1034_p4), %v3697_v48, %v18495_v23  ;;  %15772 = vmatprep.subr.mxu0 (%p1034_p4), %v3683_v10 }
 0x33f   : >> { %v3493_v6 = vrot.slane %v3299_v34, %v18373_v20  ;;  %v3686_v43 = vand.u32 (%p1034_p4), 4294901760, %v3685_v12 }
 0x341   : >> { %v3494_v8 = vsel %vm3360_vm5, %v3493_v6, %v3489_v54  ;;  %15758 = vmatprep.subr.mxu1 (%p1034_p4), %v3686_v43 }
 0x342   : >> { %v3508_v45 = vsel %vm3507_vm12, %v3494_v8, %v3506_v29  ;;  %15759 = vmatpush3.msra.mxu1 (%p1034_p4), %v3686_v43 }
 0x343   : >> { %v3510_v4 = vsel %vm3302_vm13, %v3508_v45, -1e+30  ;;  %v3700_v45 = vand.u32 (%p1034_p4), 4294901760, %v3699_v30  ;;  %15760 = vmatprep.subr.mxu1 (%p1034_p4), %v3693_v15 }
 0x344   : >> { %v3512_v60 = vsel %vm3511_vm14, %v3510_v4, -inf  ;;  %15761 = vmatpush3.msra.mxu1 (%p1034_p4), %v3693_v15 }
 0x345   : >> { %3513 = vmax.xlane.f32.xlu0 %v3512_v60  ;;  %15762 = vmatprep.subr.mxu1 (%p1034_p4), %v3700_v45 }
 0x346   : > { %15763 = vmatpush3.msra.mxu1 (%p1034_p4), %v3700_v45  ;;  %v18689_v45 = vand.u32 (%p1034_p4), 4294901760, %v4258_v38 }
 0x3ce   : >> { %v3514_v57 = vpop.xlane.xlu0 %3513 }
 0x3cf   : >> { %v3515_v11 = vsub.f32 %v3510_v4, %v3514_v57  ;;  %v3707_v57 = vand.u32 (%p1034_p4), 4294901760, %v3706_v41 }
 0x3d1   : >> { %v3516_v22 = vmul.f32 1.442695, %v3515_v11  ;;  %15764 = vmatprep.subr.mxu1 (%p1034_p4), %v3707_v57 }
 0x3d2   : > { %15765 = vmatpush3.msra.mxu1 (%p1034_p4), %v3707_v57 }
 0x3d3   : >> { %17087 = vpow2.f32 %v3516_v22  ;;  %15786 = vmatprep.subr.mxu1 (%p1034_p4), %v18453_v42 }
 0x3e0   : >> { %v17088_v21 = vpop.eup %17087 }
 0x3e1   : >> { %v3518_v50 = vmul.f32 %v17088_v21, %v3301_v25  ;;  %v23911_v21 = vmov (%p1034_p4), 0.0  }
 0x3e3   : >> { %v3519_v58 = vsel %vm3511_vm14, %v3518_v50, 0.0 }
 0x3e4   : >> { %3520 = vadd.xlane.f32.xlu1 %v3519_v58 }
 0x46d   : >> { %v3521_v33 = vpop.xlane.xlu1 %3520 }
 0x46e   : >> { %v3522_v24 = vadd.f32 1e-16, %v3521_v33  ;;  %v4267_v33 = vld [vmem:[%s23232_s4 + $0xf0] sm:$0xff] (%p1034_p4) }
 0x470   : >> { %17089 = vrcp.f32 %v3522_v24  ;;  %v18574_v24 = vand.u32 (%p1034_p4), 4294901760, %v4267_v33 }
 0x472   : > { %v18589_v37 = vsub.f32 (%p1034_p4), %v4267_v33, %v18574_v24 }
 0x47c   : > { %1036 = sbr.rel (!%p1034_p4) target bundleno = 276 (0x114), region = 126 }
 0x47d   : >> { %v17090_v18 = vpop.eup %17089 }
 0x47e   : >> { %v3524_v0 = vmul.f32 %v17090_v18, %v3518_v50  ;;  %v4268_v50 = vld [vmem:[%s23232_s4 + $0xf8] sm:$0xff] (%p1034_p4)  ;;  %v4266_v18 = vld [vmem:[%s23232_s4 + $0xe8] sm:$0xff] (%p1034_p4) }
 0x47f   : > { %v18569_v58 = vand.u32 (%p1034_p4), 4294901760, %v4268_v50  ;;  %v18582_v28 = vand.u32 (%p1034_p4), 4294901760, %v4266_v18 }
 0x480   : >> { %3526 = vst.msk [vmem:[%s3525_s12] sm:$0xff] %vm3511_vm14, %v3524_v0 }
 0x481   : > { %23912 = vst [vmem:[#allocation4_spill] sm:$0xff] %v18569_v58  ;;  %v18580_v0 = vsub.f32 %v4268_v50, %v18569_v58  ;;  %v18599_v7 = vsub.f32 %v4266_v18, %v18582_v28  ;;  %v4254_v50 = vld [vmem:[%s23232_s4 + $0x88] sm:$0xff] }
 0x483   : > { %23913 = vst [vmem:[#allocation9_spill] sm:$0xff] %v18580_v0 }
 0x487   : > { %v3527_v62 = vld [vmem:[#allocation2] sm:$0xff]  ;;  %v3528_v56 = vld [vmem:[#allocation2 + $0x8] sm:$0xff]  ;;  %v3529_v36 = vld [vmem:[#allocation2 + $0x10] sm:$0xff] }
 0x488   : > { %v3537_v32 = vsel %vm3511_vm14, %v3527_v62, 0  ;;  %v3540_v44 = vsel %vm3511_vm14, %v3528_v56, 0  ;;  %v3530_v40 = vld [vmem:[#allocation2 + $0x18] sm:$0xff]  ;;  %v3543_v63 = vsel %vm3511_vm14, %v3529_v36, 0  ;;  %v4263_v62 = vld [vmem:[%s23232_s4 + $0xd0] sm:$0xff]  ;;  %v23322_v56 = vand.u32 4294901760, %v18589_v37 }
 0x489   : > { %v18469_v49 = vand.u32 4294901760, %v3537_v32  ;;  %v18473_v51 = vand.u32 4294901760, %v3540_v44  ;;  %v3546_v55 = vsel %vm3511_vm14, %v3530_v40, 0  ;;  %v18497_v17 = vand.u32 4294901760, %v3543_v63  ;;  %v4262_v36 = vld [vmem:[%s23232_s4 + $0xc8] sm:$0xff] }
 0x48a   : > { %v18501_v2 = vand.u32 4294901760, %v3546_v55 }
 0x48b   : > { %v18486_v52 = vsub.f32 %v3537_v32, %v18469_v49  ;;  %v18491_v35 = vsub.f32 %v3540_v44, %v18473_v51  ;;  %15766 = vmatprep.mubr.f32.mxu1 %v18469_v49  ;;  %v18511_v25 = vsub.f32 %v3543_v63, %v18497_v17  ;;  %v18611_v44 = vand.u32 4294901760, %v4263_v62 }
 0x48c   : > { %v18515_v59 = vsub.f32 %v3546_v55, %v18501_v2  ;;  %15767 = vmatmul.mubr.f32.vlgmr.msra.gmra.mxu1 %v18473_v51 }
 0x48d   : > { %v3619_v46 = vand.u32 4294901760, %v18486_v52  ;;  %v3629_v31 = vand.u32 4294901760, %v18491_v35  ;;  %v3639_v54 = vand.u32 4294901760, %v18511_v25  ;;  %15787 = vmatpush3.msra.mxu1 %v18453_v42  ;;  %15769 = vmatprep.mubr.f32.mxu1 %v18497_v17 }
 0x48e   : > { %v3649_v61 = vand.u32 4294901760, %v18515_v59  ;;  %15788 = vmatprep.subr.mxu1 %v18456_v53 }
 0x48f   : > { %v3620_v34 = vsub.f32 %v18486_v52, %v3619_v46  ;;  %v3630_v6 = vsub.f32 %v18491_v35, %v3629_v31  ;;  %v3640_v4 = vsub.f32 %v18511_v25, %v3639_v54  ;;  %15789 = vmatpush3.msra.mxu1 %v18456_v53 }
 0x490   : > { %v3650_v60 = vsub.f32 %v18515_v59, %v3649_v61  ;;  %15770 = vmatmul.mubr.f32.gmra.mxu1 %v18501_v2  ;;  %15790 = vmatprep.subr.mxu1 %v18459_v3 }
 0x491   : > { %v3621_v8 = vand.u32 4294901760, %v3620_v34  ;;  %v3631_v29 = vand.u32 4294901760, %v3630_v6  ;;  %v3641_v11 = vand.u32 4294901760, %v3640_v4  ;;  %15791 = vmatpush3.msra.mxu1 %v18459_v3  ;;  %15794 = vmatprep.mubr.f32.mxu1 %v3619_v46  ;;  %v4255_v4 = vld [vmem:[%s23232_s4 + $0x90] sm:$0xff] }
 0x492   : > { %v3651_v22 = vand.u32 4294901760, %v3650_v60  ;;  %15792 = vmatprep.subr.mxu1 %v18462_v39 }
 0x493   : > { %15752 = vmatprep.mubr.f32.mxu0 %v3621_v8  ;;  %15793 = vmatpush3.msra.mxu1 %v18462_v39 }
 0x494   : > { %15753 = vmatmul.mubr.f32.vlgmr.msra.gmra.mxu0 %v3631_v29  ;;  %15795 = vmatmul.mubr.f32.vlgmr.msra.gmra.mxu1 %v3629_v31 }
 0x495   : > { %15773 = vmatpush3.msra.mxu0 %v3683_v10  ;;  %15755 = vmatprep.mubr.f32.mxu0 %v3641_v11  ;;  %v23320_v10 = vand.u32 4294901760, %v18599_v7 }
 0x496   : > { %15774 = vmatprep.subr.mxu0 %v3690_v16  ;;  %15814 = vmatprep.subr.mxu1 %v18453_v42 }
 0x497   : > { %15775 = vmatpush3.msra.mxu0 %v3690_v16  ;;  %15815 = vmatpush3.msra.mxu1 %v18453_v42  ;;  %v4265_v42 = vld [vmem:[%s23232_s4 + $0xe0] sm:$0xff]  ;;  %v18624_v16 = vand.u32 4294901760, %v4262_v36 }
 0x498   : > { %15756 = vmatmul.mubr.f32.gmra.mxu0 %v3651_v22  ;;  %15776 = vmatprep.subr.mxu0 %v3697_v48 }
 0x499   : > { %15777 = vmatpush3.msra.mxu0 %v3697_v48  ;;  %15780 = vmatprep.mubr.f32.mxu0 %v18486_v52  ;;  %v4419_v48 = vsub.f32 %v18589_v37, %v23322_v56 }
 0x49a   : > { %15778 = vmatprep.subr.mxu0 %v3704_v13  ;;  %15816 = vmatprep.subr.mxu1 %v18456_v53 }
 0x49b   : > { %15779 = vmatpush3.msra.mxu0 %v3704_v13  ;;  %15797 = vmatprep.mubr.f32.mxu1 %v3639_v54  ;;  %v18635_v13 = vsub.f32 %v4263_v62, %v18611_v44  ;;  %v4256_v54 = vld [vmem:[%s23232_s4 + $0x98] sm:$0xff]  ;;  %v4253_v62 = vld [vmem:[%s23232_s4 + $0x80] sm:$0xff] }
 0x49c   : > { %15781 = vmatmul.mubr.f32.vlgmr.msra.gmra.mxu0 %v18491_v35  ;;  %15800 = vmatprep.subr.mxu0 %v18483_v19 }
 0x49d   : > { %15801 = vmatpush3.msra.mxu0 %v18483_v19  ;;  %15783 = vmatprep.mubr.f32.mxu0 %v18511_v25  ;;  %v4260_v19 = vld [vmem:[%s23232_s4 + $0xb8] sm:$0xff]  ;;  %v23316_v12 = vand.u32 4294901760, %v18635_v13 }
 0x49e   : > { %15802 = vmatprep.subr.mxu0 %v18488_v9  ;;  %15817 = vmatpush3.msra.mxu1 %v18456_v53  ;;  %v18591_v53 = vand.u32 4294901760, %v4265_v42  ;;  %v18669_v41 = vand.u32 4294901760, %v4260_v19 }
 0x49f   : > { %15803 = vmatpush3.msra.mxu0 %v18488_v9  ;;  %15798 = vmatmul.mubr.f32.gmra.mxu1 %v3649_v61  ;;  %v4425_v9 = vsub.f32 %v18599_v7, %v23320_v10  ;;  %v4443_v34 = vsub.f32 %v18635_v13, %v23316_v12 }
 0x4a0   : > { %15784 = vmatmul.mubr.f32.gmra.mxu0 %v18515_v59  ;;  %15804 = vmatprep.subr.mxu0 %v18495_v23  ;;  %v18609_v32 = vsub.f32 %v4265_v42, %v18591_v53  ;;  %v4257_v59 = vld [vmem:[%s23232_s4 + $0xa0] sm:$0xff]  ;;  %v18687_v29 = vsub.f32 %v4260_v19, %v18669_v41  ;;  %v18709_v42 = vsub.f32 %v4258_v38, %v18689_v45 }
 0x4a1   : > { %15805 = vmatpush3.msra.mxu0 %v18495_v23  ;;  %15808 = vmatprep.mubr.f32.mxu0 %v18469_v49  ;;  %v18648_v23 = vsub.f32 %v4262_v36, %v18624_v16  ;;  %v4426_v31 = vand.u32 4294901760, %v4425_v9  ;;  %v4444_v60 = vand.u32 4294901760, %v4443_v34  ;;  %v18701_v22 = vand.u32 4294901760, %v4257_v59 }
 0x4a2   : > { %15806 = vmatprep.subr.mxu0 %v18499_v47  ;;  %15818 = vmatprep.subr.mxu1 %v18459_v3  ;;  %v23319_v63 = vand.u32 4294901760, %v18609_v32  ;;  %v23311_v18 = vand.u32 4294901760, %v18687_v29 }
 0x4a3   : > { %15807 = vmatpush3.msra.mxu0 %v18499_v47  ;;  %15819 = vmatpush3.msra.mxu1 %v18459_v3  ;;  %v23324_v3 = vand.u32 4294901760, %v18580_v0  ;;  %v4420_v47 = vand.u32 4294901760, %v4419_v48  ;;  %v23315_v25 = vand.u32 4294901760, %v18648_v23  ;;  %v18721_v48 = vand.u32 4294901760, %v4255_v4 }
 0x4a4   : > { %15809 = vmatmul.mubr.f32.vlgmr.msra.gmra.mxu0 %v18473_v51  ;;  %15822 = vmatprep.mubr.f32.mxu1 %v18469_v49  ;;  %v4461_v19 = vsub.f32 %v18687_v29, %v23311_v18 }
 0x4a5   : > { %15811 = vmatprep.mubr.f32.mxu0 %v18497_v17  ;;  %15820 = vmatprep.subr.mxu1 %v18462_v39  ;;  %v4413_v40 = vsub.f32 %v18580_v0, %v23324_v3  ;;  %v4449_v8 = vsub.f32 %v18648_v23, %v23315_v25  ;;  %v18739_v38 = vsub.f32 %v4255_v4, %v18721_v48 }
 0x4a6   : > { %15821 = vmatpush3.msra.mxu1 %v18462_v39  ;;  %4270 = vmatprep.subr.mxu0 %v18569_v58  ;;  %v18601_v39 = vand.u32 4294901760, %v4264_v26 }
 0x4a7   : > { %15823 = vmatmul.mubr.f32.vlgmr.msra.gmra.mxu1 %v18473_v51  ;;  %4272 = vmatpush1.msra.mxu0 %v18574_v24  ;;  %v4261_v51 = vld [vmem:[%s23232_s4 + $0xc0] sm:$0xff]  ;;  %v4414_v52 = vand.u32 4294901760, %v4413_v40  ;;  %v4450_v33 = vand.u32 4294901760, %v4449_v8  ;;  %23916 = vst [vmem:[#allocation11_spill] sm:$0xff] %v18739_v38 }
 0x4a8   : > { %15812 = vmatmul.mubr.f32.gmra.mxu0 %v18501_v2  ;;  %15825 = vmatprep.mubr.f32.mxu1 %v18497_v17  ;;  %v18622_v49 = vsub.f32 %v4264_v26, %v18601_v39  ;;  %v18637_v55 = vand.u32 4294901760, %v4261_v51  ;;  %v4259_v17 = vld [vmem:[%s23232_s4 + $0xb0] sm:$0xff]  ;;  %v18711_v26 = vand.u32 4294901760, %v4256_v54 }
 0x4a9   : > { %4365 = vmatprep.mubr.f32.mxu0 %v23911_v21  ;;  %4274 = vmatprep.subr.mxu0 %v18582_v28  ;;  %v18678_v6 = vand.u32 4294901760, %v4259_v17 }
 0x4aa   : > { %4276 = vmatpush1.msra.mxu0 %v18591_v53  ;;  %v23318_v35 = vand.u32 4294901760, %v18622_v49  ;;  %v18659_v46 = vsub.f32 %v4261_v51, %v18637_v55  ;;  %4415 = vmatprep.subr.mxu1 %v4414_v52  ;;  %v18719_v51 = vsub.f32 %v4257_v59, %v18701_v22  ;;  %v23308_v52 = vand.u32 4294901760, %v18709_v42 }
 0x4ab   : > { %15826 = vmatmul.mubr.f32.gmra.mxu1 %v18501_v2  ;;  %4278 = vmatprep.subr.mxu0 %v18601_v39  ;;  %v4431_v2 = vsub.f32 %v18609_v32, %v23319_v63  ;;  %v18699_v11 = vsub.f32 %v4259_v17, %v18678_v6  ;;  %v18729_v9 = vsub.f32 %v4256_v54, %v18711_v26  ;;  %v18731_v17 = vand.u32 4294901760, %v4254_v50 }
 0x4ac   : > { %4634 = vmatprep.mubr.f32.mxu1 %v23911_v21  ;;  %4280 = vmatpush1.msra.mxu0 %v18611_v44  ;;  %v4437_v30 = vsub.f32 %v18622_v49, %v23318_v35  ;;  %v23313_v15 = vand.u32 4294901760, %v18659_v46  ;;  %23914 = vst [vmem:[#allocation13_spill] sm:$0xff] %v18719_v51  ;;  %v4462_v59 = vand.u32 4294901760, %v4461_v19 }
 0x4ad   : > { %4282 = vmatprep.subr.mxu0 %v18624_v16  ;;  %4421 = vmatpush1.msra.mxu1 %v4420_v47  ;;  %v4432_v43 = vand.u32 4294901760, %v4431_v2  ;;  %v23310_v40 = vand.u32 4294901760, %v18699_v11  ;;  %23915 = vst [vmem:[#allocation12_spill] sm:$0xff] %v18729_v9  ;;  %v23307_v2 = vand.u32 4294901760, %v18719_v51  ;;  %v23309_v34 = vand.u32 4294901760, %v18729_v9 }
 0x4ae   : > { %4284 = vmatpush1.msra.mxu0 %v18637_v55  ;;  %4427 = vmatprep.subr.mxu1 %v4426_v31  ;;  %v4438_v61 = vand.u32 4294901760, %v4437_v30  ;;  %v4455_v57 = vsub.f32 %v18659_v46, %v23313_v15  ;;  %v18741_v31 = vand.u32 4294901760, %v4253_v62  ;;  %v4252_v30 = vld [vmem:[%s23232_s4 + $0x78] sm:$0xff]  ;;  %v18752_v54 = vsub.f32 %v4254_v50, %v18731_v17  ;;  %v4250_v50 = vld [vmem:[%s23232_s4 + $0x68] sm:$0xff] }
 0x4af   : > { %4286 = vmatprep.subr.mxu0 %v18669_v41  ;;  %4433 = vmatpush1.msra.mxu1 %v4432_v43  ;;  %v4467_v47 = vsub.f32 %v18699_v11, %v23310_v40  ;;  %v4473_v43 = vsub.f32 %v18709_v42, %v23308_v52  ;;  %v4479_v4 = vsub.f32 %v18719_v51, %v23307_v2 }
 0x4b0   : > { %4288 = vmatpush1.msra.mxu0 %v18678_v6  ;;  %4439 = vmatprep.subr.mxu1 %v4438_v61  ;;  %v4456_v36 = vand.u32 4294901760, %v4455_v57  ;;  %23917 = vst [vmem:[#allocation10_spill] sm:$0xff] %v18752_v54  ;;  %v4251_v61 = vld [vmem:[%s23232_s4 + $0x70] sm:$0xff]  ;;  %v18763_v57 = vsub.f32 %v4253_v62, %v18741_v31  ;;  %v23314_v19 = vand.u32 4294901760, %v18752_v54  ;;  %v4249_v62 = vld [vmem:[%s23232_s4 + $0x60] sm:$0xff] }
 0x4b1   : > { %4290 = vmatprep.subr.mxu0 %v18689_v45  ;;  %4445 = vmatpush1.msra.mxu1 %v4444_v60  ;;  %v4468_v8 = vand.u32 4294901760, %v4467_v47  ;;  %v23312_v60 = vand.u32 4294901760, %v18739_v38  ;;  %v18773_v47 = vand.u32 4294901760, %v4252_v30  ;;  %v4480_v2 = vand.u32 4294901760, %v4479_v4 }
 0x4b2   : > { %4292 = vmatpush1.msra.mxu0 %v18701_v22  ;;  %4451 = vmatprep.subr.mxu1 %v4450_v33  ;;  %23918 = vst [vmem:[#allocation61_spill] sm:$0xff] %v18763_v57  ;;  %v4474_v33 = vand.u32 4294901760, %v4473_v43  ;;  %v18782_v43 = vand.u32 4294901760, %v4251_v61  ;;  %v4497_v18 = vsub.f32 %v18752_v54, %v23314_v19  ;;  %v18793_v4 = vand.u32 4294901760, %v4250_v50 }
 0x4b3   : > { %4294 = vmatprep.subr.mxu0 %v18711_v26  ;;  %4457 = vmatpush1.msra.mxu1 %v4456_v36  ;;  %v4485_v36 = vsub.f32 %v18729_v9, %v23309_v34  ;;  %v4491_v52 = vsub.f32 %v18739_v38, %v23312_v60  ;;  %v4248_v34 = vld [vmem:[%s23232_s4 + $0x58] sm:$0xff]  ;;  %v4247_v60 = vld [vmem:[%s23232_s4 + $0x50] sm:$0xff]  ;;  %v18805_v19 = vand.u32 4294901760, %v4249_v62 }
 0x4b4   : > { %4296 = vmatpush1.msra.mxu0 %v18721_v48  ;;  %4463 = vmatprep.subr.mxu1 %v4462_v59  ;;  %v23317_v59 = vand.u32 4294901760, %v18763_v57  ;;  %v4498_v25 = vand.u32 4294901760, %v4497_v18  ;;  %v18815_v12 = vand.u32 4294901760, %v4248_v34  ;;  %v18825_v18 = vand.u32 4294901760, %v4247_v60 }
 0x4b5   : > { %4298 = vmatprep.subr.mxu0 %v18731_v17  ;;  %4469 = vmatpush1.msra.mxu1 %v4468_v8  ;;  %v4486_v40 = vand.u32 4294901760, %v4485_v36  ;;  %v18791_v8 = vsub.f32 %v4252_v30, %v18773_v47  ;;  %v4492_v15 = vand.u32 4294901760, %v4491_v52  ;;  %v18803_v36 = vsub.f32 %v4251_v61, %v18782_v43  ;;  %v4246_v30 = vld [vmem:[%s23232_s4 + $0x48] sm:$0xff]  ;;  %v4245_v61 = vld [vmem:[%s23232_s4 + $0x40] sm:$0xff] }
 0x4b6   : > { %4300 = vmatpush1.msra.mxu0 %v18741_v31  ;;  %4475 = vmatprep.subr.mxu1 %v4474_v33  ;;  %v4503_v33 = vsub.f32 %v18763_v57, %v23317_v59  ;;  %v18813_v52 = vsub.f32 %v4250_v50, %v18793_v4  ;;  %23922 = vst [vmem:[#allocation65_spill] sm:$0xff] %v18815_v12  ;;  %23924 = vst [vmem:[#allocation67_spill] sm:$0xff] %v18825_v18 }
 0x4b7   : > { %23919 = vst [vmem:[#allocation62_spill] sm:$0xff] %v18791_v8  ;;  %4302 = vmatprep.subr.mxu0 %v18773_v47  ;;  %4481 = vmatpush1.msra.mxu1 %v4480_v2  ;;  %23920 = vst [vmem:[#allocation63_spill] sm:$0xff] %v18803_v36  ;;  %v23321_v2 = vand.u32 4294901760, %v18791_v8  ;;  %v23323_v35 = vand.u32 4294901760, %v18803_v36  ;;  %v18833_v10 = vsub.f32 %v4248_v34, %v18815_v12  ;;  %v4244_v34 = vld [vmem:[%s23232_s4 + $0x38] sm:$0xff] }
 0x4b8   : > { %4304 = vmatpush1.msra.mxu0 %v18782_v43  ;;  %4487 = vmatprep.subr.mxu1 %v4486_v40  ;;  %23921 = vst [vmem:[#allocation64_spill] sm:$0xff] %v18813_v52  ;;  %v4504_v59 = vand.u32 4294901760, %v4503_v33  ;;  %v18823_v40 = vsub.f32 %v4249_v62, %v18805_v19  ;;  %v23331_v63 = vand.u32 4294901760, %v18813_v52  ;;  %v18843_v33 = vsub.f32 %v4247_v60, %v18825_v18  ;;  %v4243_v60 = vld [vmem:[%s23232_s4 + $0x30] sm:$0xff] }
 0x4b9   : > { %4306 = vmatprep.subr.mxu0 %v18793_v4  ;;  %4493 = vmatpush1.msra.mxu1 %v4492_v15  ;;  %v4509_v50 = vsub.f32 %v18791_v8, %v23321_v2  ;;  %23925 = vst [vmem:[#allocation68_spill] sm:$0xff] %v18833_v10  ;;  %v18835_v15 = vand.u32 4294901760, %v4246_v30  ;;  %v4515_v62 = vsub.f32 %v18803_v36, %v23323_v35  ;;  %v18845_v2 = vand.u32 4294901760, %v4245_v61 }
 0x4ba   : > { %23923 = vst [vmem:[#allocation66_spill] sm:$0xff] %v18823_v40  ;;  %4308 = vmatpush1.msra.mxu0 %v18805_v19  ;;  %4499 = vmatprep.subr.mxu1 %v4498_v25  ;;  %23927 = vst [vmem:[#allocation70_spill] sm:$0xff] %v18843_v33  ;;  %v23930_v20 = vand.u32 4294901760, %v18823_v40  ;;  %v23932_v1 = vand.u32 4294901760, %v18833_v10 }
 0x4bb   : > { %23926 = vst [vmem:[#allocation69_spill] sm:$0xff] %v18835_v15  ;;  %4310 = vmatprep.subr.mxu0 %v18815_v12  ;;  %4505 = vmatpush1.msra.mxu1 %v4504_v59  ;;  %23928 = vst [vmem:[#allocation71_spill] sm:$0xff] %v18845_v2  ;;  %v4510_v56 = vand.u32 4294901760, %v4509_v50  ;;  %v4521_v59 = vsub.f32 %v18813_v52, %v23331_v63  ;;  %v18856_v3 = vsub.f32 %v4246_v30, %v18835_v15  ;;  %v4242_v30 = vld [vmem:[%s23232_s4 + $0x28] sm:$0xff] }
 0x4bc   : > { %4312 = vmatpush1.msra.mxu0 %v18825_v18  ;;  %v4516_v25 = vand.u32 4294901760, %v4515_v62  ;;  %v4527_v50 = vsub.f32 %v18823_v40, %v23930_v20  ;;  %v18867_v63 = vsub.f32 %v4245_v61, %v18845_v2  ;;  %v4533_v62 = vsub.f32 %v18833_v10, %v23932_v1  ;;  %v4241_v61 = vld [vmem:[%s23232_s4 + $0x20] sm:$0xff]  ;;  %v4240_v1 = vld [vmem:[%s23232_s4 + $0x18] sm:$0xff] }
 0x4bd   : > { %23929 = vst [vmem:[#allocation72_spill] sm:$0xff] %v18856_v3  ;;  %4314 = vmatprep.subr.mxu0 %v18835_v15  ;;  %4511 = vmatprep.subr.mxu1 %v4510_v56  ;;  %v4522_v35 = vand.u32 4294901760, %v4521_v59  ;;  %v18877_v20 = vand.u32 4294901760, %v4244_v34  ;;  %v23934_v40 = vand.u32 4294901760, %v18843_v33  ;;  %v18886_v59 = vand.u32 4294901760, %v4243_v60 }
 0x4be   : > { %23931 = vst [vmem:[#allocation73_spill] sm:$0xff] %v18867_v63  ;;  %4316 = vmatpush1.msra.mxu0 %v18845_v2  ;;  %4517 = vmatpush1.msra.mxu1 %v4516_v25  ;;  %v4528_v14 = vand.u32 4294901760, %v4527_v50  ;;  %v4534_v27 = vand.u32 4294901760, %v4533_v62  ;;  %v23936_v10 = vand.u32 4294901760, %v18856_v3  ;;  %v18897_v50 = vand.u32 4294901760, %v4242_v30 }
 0x4bf   : > { %23933 = vst [vmem:[#allocation74_spill] sm:$0xff] %v18877_v20  ;;  %v4539_v52 = vsub.f32 %v18843_v33, %v23934_v40  ;;  %23935 = vst [vmem:[#allocation75_spill] sm:$0xff] %v18886_v59  ;;  %4523 = vmatprep.subr.mxu1 %v4522_v35  ;;  %v18895_v25 = vsub.f32 %v4244_v34, %v18877_v20  ;;  %v4239_v40 = vld [vmem:[%s23232_s4 + $0x10] sm:$0xff]  ;;  %4318 = vmatprep.subr.mxu0 %v18877_v20  ;;  %v23939_v35 = vand.u32 4294901760, %v18867_v63  ;;  %v4238_v34 = vld [vmem:[%s23232_s4 + $0x8] sm:$0xff] }
 0x4c0   : > { %v4545_v36 = vsub.f32 %v18856_v3, %v23936_v10  ;;  %23938 = vst [vmem:[#allocation77_spill] sm:$0xff] %v18897_v50  ;;  %4529 = vmatpush1.msra.mxu1 %v4528_v14  ;;  %v18907_v33 = vsub.f32 %v4243_v60, %v18886_v59  ;;  %v18909_v10 = vand.u32 4294901760, %v4241_v61  ;;  %4320 = vmatpush1.msra.mxu0 %v18886_v59  ;;  %v18919_v8 = vand.u32 4294901760, %v4240_v1 }
 0x4c1   : > { %23937 = vst [vmem:[#allocation76_spill] sm:$0xff] %v18895_v25  ;;  %v4540_v56 = vand.u32 4294901760, %v4539_v52  ;;  %v4551_v62 = vsub.f32 %v18867_v63, %v23939_v35  ;;  %4535 = vmatprep.subr.mxu1 %v4534_v27  ;;  %v23356_v14 = vand.u32 4294901760, %v18895_v25  ;;  %v18917_v52 = vsub.f32 %v4242_v30, %v18897_v50  ;;  %4322 = vmatprep.subr.mxu0 %v18897_v50 }
 0x4c2   : > { %23940 = vst [vmem:[#allocation78_spill] sm:$0xff] %v18907_v33  ;;  %23941 = vst [vmem:[#allocation79_spill] sm:$0xff] %v18909_v10  ;;  %v4546_v3 = vand.u32 4294901760, %v4545_v36  ;;  %v23360_v35 = vand.u32 4294901760, %v18907_v33  ;;  %v18924_v63 = vsub.f32 %v4241_v61, %v18909_v10  ;;  %v18926_v20 = vand.u32 4294901760, %v4239_v40  ;;  %4324 = vmatpush1.msra.mxu0 %v18909_v10  ;;  %v4237_v61 = vld [vmem:[%s23232_s4] sm:$0xff] }
 0x4c3   : > { %23942 = vst [vmem:[#allocation80_spill] sm:$0xff] %v18917_v52  ;;  %23943 = vst [vmem:[#allocation81_spill] sm:$0xff] %v18919_v8  ;;  %4541 = vmatpush1.msra.mxu1 %v4540_v56  ;;  %v4552_v60 = vand.u32 4294901760, %v4551_v62  ;;  %v4557_v27 = vsub.f32 %v18895_v25, %v23356_v14  ;;  %v18934_v30 = vsub.f32 %v4240_v1, %v18919_v8  ;;  %v18936_v56 = vand.u32 4294901760, %v4238_v34  ;;  %v18950_v62 = vld [vmem:[%s23234_s6 + $0xb] ss:$0 sm:$0xff] }
 0x4c4   : > { %23944 = vst [vmem:[#allocation82_spill] sm:$0xff] %v18924_v63  ;;  %23945 = vst [vmem:[#allocation83_spill] sm:$0xff] %v18926_v20  ;;  %4547 = vmatprep.subr.mxu1 %v4546_v3  ;;  %4326 = vmatprep.subr.mxu0 %v18919_v8  ;;  %v18945_v3 = vld [vmem:[%s23234_s6 + $0xa] ss:$0 sm:$0xff]  ;;  %v18955_v1 = vld [vmem:[%s23234_s6 + $0xc] ss:$0 sm:$0xff]  ;;  %v4563_v14 = vsub.f32 %v18907_v33, %v23360_v35  ;;  %v18961_v36 = vsub.f32 %v4239_v40, %v18926_v20 }
 0x4c5   : > { %23946 = vst [vmem:[#allocation84_spill] sm:$0xff] %v18934_v30  ;;  %23947 = vst [vmem:[#allocation85_spill] sm:$0xff] %v18936_v56  ;;  %4553 = vmatpush1.msra.mxu1 %v4552_v60  ;;  %4328 = vmatpush1.msra.mxu0 %v18926_v20  ;;  %v4558_v60 = vand.u32 4294901760, %v4557_v27  ;;  %v23372_v40 = vand.u32 4294901760, %v18924_v63  ;;  %v18979_v33 = vsub.f32 %v4238_v34, %v18936_v56  ;;  %v18984_v8 = vand.u32 4294901760, %v4237_v61 }
 0x4c6   : > { %23948 = vst [vmem:[#allocation86_spill] sm:$0xff] %v18945_v3  ;;  %23949 = vst [vmem:[#allocation87_spill] sm:$0xff] %v18950_v62  ;;  %v18967_v3 = vld [vmem:[%s23234_s6 + $0xd] ss:$0 sm:$0xff]  ;;  %v18972_v62 = vld [vmem:[%s23234_s6 + $0xe] sm:$0x1]  ;;  %4330 = vmatprep.subr.mxu0 %v18936_v56 }
 0x4c7   : > { %23950 = vst [vmem:[#allocation88_spill] sm:$0xff] %v18955_v1  ;;  %23951 = vst [vmem:[#allocation89_spill] sm:$0xff] %v18961_v36  ;;  %v23954_v1 = vand.u32 4294901760, %v18917_v52  ;;  %v4564_v25 = vand.u32 4294901760, %v4563_v14  ;;  %v23377_v20 = vand.u32 4294901760, %v18961_v36  ;;  %4559 = vmatprep.subr.mxu1 %v4558_v60  ;;  %4332 = vmatpush1.msra.mxu0 %v18984_v8 }
 0x4c8   : > { %23952 = vst [vmem:[#allocation90_spill] sm:$0xff] %v18967_v3  ;;  %23953 = vst [vmem:[#allocation91_spill] sm:$0xff] %v18972_v62  ;;  %v23373_v3 = vand.u32 4294901760, %v18934_v30  ;;  %v23376_v62 = vand.u32 4294901760, %v18979_v33  ;;  %4665 = vmatprep.subr.mxu0 %v18580_v0 }
 0x4c9   : > { %v4569_v35 = vsub.f32 %v18917_v52, %v23954_v1  ;;  %23955 = vst [vmem:[#allocation92_spill] sm:$0xff] %v18979_v33  ;;  %23956 = vst [vmem:[#allocation93_spill] sm:$0xff] %v18984_v8  ;;  %v4575_v1 = vsub.f32 %v18924_v63, %v23372_v40  ;;  %4565 = vmatpush1.msra.mxu1 %v4564_v25  ;;  %v4587_v14 = vsub.f32 %v18961_v36, %v23377_v20  ;;  %v23958_v63 = vld [vmem:[#allocation5_spill] sm:$0xff] }
 0x4ca   : > { %v4581_v34 = vsub.f32 %v18934_v30, %v23373_v3  ;;  %v18997_v52 = vsub.f32 %v4237_v61, %v18984_v8  ;;  %v4593_v60 = vsub.f32 %v18979_v33, %v23376_v62 }
 0x4cb   : > { %v4570_v27 = vand.u32 4294901760, %v4569_v35  ;;  %v4576_v35 = vand.u32 4294901760, %v4575_v1  ;;  %v4588_v40 = vand.u32 4294901760, %v4587_v14 }
 0x4cc   : > { %23957 = vst [vmem:[#allocation94_spill] sm:$0xff] %v18997_v52  ;;  %v4582_v25 = vand.u32 4294901760, %v4581_v34  ;;  %v23387_v3 = vand.u32 4294901760, %v18997_v52  ;;  %v4594_v30 = vand.u32 4294901760, %v4593_v60 }
 0x4cd   : > { %4571 = vmatprep.subr.mxu1 %v4570_v27 }
 0x4ce   : > { %4577 = vmatpush1.msra.mxu1 %v4576_v35  ;;  %v4599_v61 = vsub.f32 %v18997_v52, %v23387_v3 }
 0x4cf   : > { %4583 = vmatprep.subr.mxu1 %v4582_v25 }
 0x4d0   : > { %4589 = vmatpush1.msra.mxu1 %v4588_v40  ;;  %v4600_v27 = vand.u32 4294901760, %v4599_v61 }
 0x4d1   : > { %4595 = vmatprep.subr.mxu1 %v4594_v30 }
 0x4d2   : > { %4601 = vmatpush1.msra.mxu1 %v4600_v27 }
 0x4d3   : > { %4825 = vmatprep.subr.mxu1 %v18569_v58 }
 0x54c   : > { %v15768_v34 = vpop.f32.mrf.mxu1 }
 0x54e   : > { %v3744_v0 = vpop.f32.mrf.mxu1 }
 0x550   : > { %v15771_v35 = vpop.f32.mrf.mxu1 }
 0x552   : > { %v3756_v25 = vpop.f32.mrf.mxu1 }
 0x554   : > { %v15754_v1 = vpop.f32.mrf.mxu0  ;;  %v15796_v30 = vpop.f32.mrf.mxu1 }
 0x555   : > { %v3634_v8 = vadd.f32 %v15754_v1, %v23958_v63 }
 0x556   : > { %v3623_v62 = vpop.f32.mrf.mxu0  ;;  %v3940_v3 = vpop.f32.mrf.mxu1 }
 0x557   : > { %v3624_v40 = vadd.f32 %v23958_v63, %v3623_v62  ;;  %v3751_v58 = vadd.f32 %v15768_v34, %v3634_v8 }
 0x558   : > { %v15757_v20 = vpop.f32.mrf.mxu0 }
 0x559   : > { %v3745_v27 = vadd.f32 %v3744_v0, %v3624_v40  ;;  %v3654_v52 = vadd.f32 %v15757_v20, %v23958_v63 }
 0x55a   : > { %v3643_v14 = vpop.f32.mrf.mxu0 }
 0x55b   : > { %v3644_v56 = vadd.f32 %v23958_v63, %v3643_v14  ;;  %v3763_v15 = vadd.f32 %v15771_v35, %v3654_v52 }
 0x55c   : > { %v15782_v33 = vpop.f32.mrf.mxu0 }
 0x55d   : > { %v3757_v59 = vadd.f32 %v3756_v25, %v3644_v56  ;;  %v3850_v54 = vadd.f32 %v15782_v33, %v3751_v58 }
 0x55e   : > { %v3842_v60 = vpop.f32.mrf.mxu0 }
 0x55f   : > { %v3843_v50 = vadd.f32 %v3842_v60, %v3745_v27  ;;  %v15799_v57 = vpop.f32.mrf.mxu1  ;;  %v3949_v62 = vadd.f32 %v15796_v30, %v3850_v54 }
 0x560   : > { %v15785_v36 = vpop.f32.mrf.mxu0 }
 0x561   : > { %v3941_v38 = vadd.f32 %v3940_v3, %v3843_v50  ;;  %v3956_v1 = vpop.f32.mrf.mxu1  ;;  %v3864_v0 = vadd.f32 %v15785_v36, %v3763_v15 }
 0x562   : > { %v3856_v61 = vpop.f32.mrf.mxu0 }
 0x563   : > { %v3857_v12 = vadd.f32 %v3856_v61, %v3757_v59  ;;  %v3965_v63 = vadd.f32 %v15799_v57, %v3864_v0 }
 0x564   : > { %v15810_v10 = vpop.f32.mrf.mxu0 }
 0x565   : > { %v3957_v51 = vadd.f32 %v3956_v1, %v3857_v12  ;;  %v4054_v34 = vadd.f32 %v15810_v10, %v3949_v62  ;;  %v23959_v10 = vld [vmem:[#allocation8_spill] sm:$0xff] }
 0x566   : > { %v4047_v2 = vpop.f32.mrf.mxu0 }
 0x567   : > { %v15824_v9 = vpop.f32.mrf.mxu1  ;;  %v4048_v40 = vadd.f32 %v4047_v2, %v3941_v38 }
 0x568   : > { %v15813_v18 = vpop.f32.mrf.mxu0  ;;  %v4147_v56 = vadd.f32 %v15824_v9, %v4054_v34 }
 0x569   : > { %v4140_v8 = vpop.f32.mrf.mxu1  ;;  %v4066_v58 = vadd.f32 %v15813_v18, %v3965_v63 }
 0x56a   : > { %v4059_v20 = vpop.f32.mrf.mxu0  ;;  %v4141_v14 = vadd.f32 %v4140_v8, %v4048_v40 }
 0x56b   : > { %v15827_v60 = vpop.f32.mrf.mxu1  ;;  %v4060_v25 = vadd.f32 %v4059_v20, %v3957_v51 }
 0x56c   : > { %v4162_v33 = vadd.f32 %v4147_v56, %v4141_v14  ;;  %v4159_v52 = vadd.f32 %v15827_v60, %v4066_v58 }
 0x56d   : > { %v4152_v27 = vpop.f32.mrf.mxu1 }
 0x56e   : > { %v4153_v50 = vadd.f32 %v4152_v27, %v4060_v25 }
 0x570   : > { %v4163_v3 = vadd.f32 %v4162_v33, %v4153_v50 }
 0x572   : > { %v4164_v54 = vadd.f32 %v4163_v3, %v4159_v52 }
 0x574   : > { %v4165_v59 = vrot.slane %v4164_v54, 4 }
 0x576   : > { %v4166_v35 = vadd.f32 %v4165_v59, %v4164_v54 }
 0x578   : > { %v4167_v15 = vrot.slane %v4166_v35, 2 }
 0x57a   : > { %v4168_v38 = vadd.f32 %v4167_v15, %v4166_v35 }
 0x57c   : > { %v4169_v12 = vrot.slane %v4168_v38, 1 }
 0x57e   : > { %v4170_v2 = vadd.f32 %v4169_v12, %v4168_v38 }
 0x580   : > { %v4172_v36 = vmul.f32 0.03125, %v4170_v2 }
 0x582   : > { %v4173_v57 = vmul.f32 %v4172_v36, %v23959_v10  ;;  %v23961_v36 = vld [vmem:[#allocation7_spill] sm:$0xff] }
 0x584   : > { %v4177_v30 = vrot.slane %v4173_v57, %v18074_v5  ;;  %v23991_v5 = vld [vmem:[#allocation76_spill] sm:$0xff] }
 0x586   : > { %v4178_v9 = vsub.f32 %v4141_v14, %v4177_v30  ;;  %v4179_v51 = vsub.f32 %v4147_v56, %v4177_v30  ;;  %v4180_v61 = vsub.f32 %v4153_v50, %v4177_v30  ;;  %v4181_v18 = vsub.f32 %v4159_v52, %v4177_v30  ;;  %v23960_v14 = vld [vmem:[#allocation6_spill] sm:$0xff] }
 0x588   : > { %v4182_v1 = vmul.f32 %v4178_v9, %v4178_v9  ;;  %v4183_v62 = vmul.f32 %v4179_v51, %v4179_v51  ;;  %v4184_v0 = vmul.f32 %v4180_v61, %v4180_v61  ;;  %v4185_v20 = vmul.f32 %v4181_v18, %v4181_v18 }
 0x589   : > { %v4200_v56 = vmul.f32 %v23960_v14, %v4178_v9  ;;  %v4201_v50 = vmul.f32 %v23960_v14, %v4179_v51  ;;  %v4202_v52 = vmul.f32 %v23960_v14, %v4180_v61  ;;  %v4203_v35 = vmul.f32 %v23960_v14, %v4181_v18 }
 0x58a   : > { %v4186_v40 = vadd.f32 %v4183_v62, %v4182_v1 }
 0x58c   : > { %v4187_v8 = vadd.f32 %v4186_v40, %v4184_v0 }
 0x58e   : > { %v4188_v34 = vadd.f32 %v4187_v8, %v4185_v20 }
 0x590   : > { %v4189_v63 = vrot.slane %v4188_v34, 4 }
 0x592   : > { %v4190_v60 = vadd.f32 %v4189_v63, %v4188_v34 }
 0x594   : > { %v4191_v25 = vrot.slane %v4190_v60, 2 }
 0x596   : > { %v4192_v27 = vadd.f32 %v4191_v25, %v4190_v60 }
 0x598   : > { %v4193_v58 = vrot.slane %v4192_v27, 1 }
 0x59a   : > { %v4194_v33 = vadd.f32 %v4193_v58, %v4192_v27 }
 0x59c   : > { %v4195_v3 = vmul.f32 0.03125, %v4194_v33 }
 0x59e   : > { %v4204_v54 = vadd.f32 1e-05, %v4195_v3 }
 0x5a0   : > { %17091 = vrsqrt.f32 %v4204_v54 }
 0x5ad   : > { %v17092_v59 = vpop.eup %17091 }
 0x5ae   : > { %v4206_v15 = vmul.f32 %v17092_v59, %v4200_v56  ;;  %v4208_v38 = vmul.f32 %v17092_v59, %v4202_v52  ;;  %v4207_v12 = vmul.f32 %v17092_v59, %v4201_v50  ;;  %v4209_v2 = vmul.f32 %v17092_v59, %v4203_v35 }
 0x5b0   : > { %v4214_v10 = vadd.f32 %v23961_v36, %v4206_v15  ;;  %v4216_v57 = vadd.f32 %v23961_v36, %v4208_v38  ;;  %v4215_v30 = vadd.f32 %v23961_v36, %v4207_v12  ;;  %v4217_v61 = vadd.f32 %v23961_v36, %v4209_v2  ;;  %v23966_v2 = vld [vmem:[#allocation13_spill] sm:$0xff] }
 0x5b2   : > { %v4224_v1 = vmul.f32 0.01, %v4216_v57  ;;  %vm4218_vm15 = vcmp.ge.f32.partialorder %v4214_v10, 0.0  ;;  %v4222_v9 = vmul.f32 0.01, %v4214_v10  ;;  %vm4219_vm1 = vcmp.ge.f32.partialorder %v4215_v30, 0.0 }
 0x5b3   : > { %v4223_v51 = vmul.f32 0.01, %v4215_v30  ;;  %vm4220_vm2 = vcmp.ge.f32.partialorder %v4216_v57, 0.0  ;;  %v4225_v34 = vmul.f32 0.01, %v4217_v61  ;;  %vm4221_vm13 = vcmp.ge.f32.partialorder %v4217_v61, 0.0 }
 0x5b4   : > { %v4226_v62 = vsel %vm4218_vm15, %v4214_v10, %v4222_v9  ;;  %v4228_v20 = vsel %vm4220_vm2, %v4216_v57, %v4224_v1  ;;  %v23967_v10 = vld [vmem:[#allocation12_spill] sm:$0xff]  ;;  %v23970_v1 = vld [vmem:[#allocation11_spill] sm:$0xff] }
 0x5b5   : > { %v19023_v18 = vand.u32 4294901760, %v4226_v62  ;;  %v4227_v0 = vsel %vm4219_vm1, %v4215_v30, %v4223_v51  ;;  %v19038_v25 = vand.u32 4294901760, %v4228_v20  ;;  %v4229_v33 = vsel %vm4221_vm13, %v4217_v61, %v4225_v34  ;;  %v23968_v57 = vld [vmem:[#allocation65_spill] sm:$0xff]  ;;  %v23969_v30 = vld [vmem:[#allocation67_spill] sm:$0xff] }
 0x5b6   : > { %v19025_v40 = vand.u32 4294901760, %v4227_v0  ;;  %v19054_v14 = vand.u32 4294901760, %v4229_v33  ;;  %v23971_v9 = vld [vmem:[#allocation69_spill] sm:$0xff]  ;;  %v23972_v51 = vld [vmem:[#allocation10_spill] sm:$0xff] }
 0x5b7   : > { %23962 = vst [vmem:[#allocation5_spill] sm:$0xff] %v19023_v18  ;;  %v19028_v8 = vsub.f32 %v4226_v62, %v19023_v18  ;;  %4636 = vmatmul.mubr.f32.vlgmr.msra.gmra.mxu1 %v19023_v18  ;;  %23964 = vst [vmem:[#allocation6_spill] sm:$0xff] %v19038_v25  ;;  %v19051_v54 = vsub.f32 %v4228_v20, %v19038_v25  ;;  %v23973_v61 = vld [vmem:[#allocation71_spill] sm:$0xff]  ;;  %v23974_v62 = vld [vmem:[#allocation61_spill] sm:$0xff] }
 0x5b8   : > { %23963 = vst [vmem:[#allocation8_spill] sm:$0xff] %v19025_v40  ;;  %4827 = vmatpush1.msra.mxu1 %v18574_v24  ;;  %4641 = vmatprep.mubr.f32.mxu1 %v23911_v21  ;;  %v19034_v63 = vsub.f32 %v4227_v0, %v19025_v40  ;;  %23965 = vst [vmem:[#allocation7_spill] sm:$0xff] %v19054_v14  ;;  %v19068_v52 = vsub.f32 %v4229_v33, %v19054_v14  ;;  %v23975_v0 = vld [vmem:[#allocation74_spill] sm:$0xff]  ;;  %v23977_v34 = vld [vmem:[#allocation75_spill] sm:$0xff] }
 0x5b9   : > { %4829 = vmatprep.subr.mxu1 %v18582_v28  ;;  %v23420_v60 = vand.u32 4294901760, %v19028_v8  ;;  %v23418_v50 = vand.u32 4294901760, %v19051_v54  ;;  %v23976_v20 = vld [vmem:[#allocation62_spill] sm:$0xff]  ;;  %v23979_v33 = vld [vmem:[#allocation77_spill] sm:$0xff]  ;;  %v23995_v18 = vld [vmem:[#allocation80_spill] sm:$0xff] }
 0x5ba   : > { %4831 = vmatpush1.msra.mxu1 %v18591_v53  ;;  %v23419_v58 = vand.u32 4294901760, %v19034_v63  ;;  %v23417_v15 = vand.u32 4294901760, %v19068_v52 }
 0x5bb   : > { %4833 = vmatprep.subr.mxu1 %v18601_v39  ;;  %4643 = vmatmul.mubr.f32.gmra.mxu1 %v19025_v40  ;;  %v4369_v27 = vsub.f32 %v19028_v8, %v23420_v60  ;;  %v4391_v35 = vsub.f32 %v19051_v54, %v23418_v50  ;;  %v23988_v50 = vld [vmem:[#allocation72_spill] sm:$0xff]  ;;  %v23990_v60 = vld [vmem:[#allocation73_spill] sm:$0xff]  ;;  %v23994_v40 = vld [vmem:[#allocation78_spill] sm:$0xff] }
 0x5bc   : > { %4835 = vmatpush1.msra.mxu1 %v18611_v44  ;;  %4648 = vmatprep.mubr.f32.mxu1 %v23911_v21  ;;  %v4380_v56 = vsub.f32 %v19034_v63, %v23419_v58  ;;  %v4402_v12 = vsub.f32 %v19068_v52, %v23417_v15  ;;  %v23987_v15 = vld [vmem:[#allocation85_spill] sm:$0xff] }
 0x5bd   : > { %4837 = vmatprep.subr.mxu1 %v18624_v16  ;;  %v4370_v3 = vand.u32 4294901760, %v4369_v27  ;;  %v4392_v38 = vand.u32 4294901760, %v4391_v35  ;;  %v23978_v27 = vld [vmem:[#allocation63_spill] sm:$0xff]  ;;  %v23983_v35 = vld [vmem:[#allocation81_spill] sm:$0xff] }
 0x5be   : > { %4839 = vmatpush1.msra.mxu1 %v18637_v55  ;;  %v4381_v59 = vand.u32 4294901760, %v4380_v56  ;;  %v4403_v36 = vand.u32 4294901760, %v4402_v12  ;;  %v23981_v56 = vld [vmem:[#allocation79_spill] sm:$0xff]  ;;  %v23989_v58 = vld [vmem:[#allocation93_spill] sm:$0xff] }
 0x5bf   : > { %4841 = vmatprep.subr.mxu1 %v18669_v41  ;;  %4371 = vmatmul.mubr.f32.vlgmr.msra.gmra.mxu0 %v4370_v3  ;;  %v23980_v3 = vld [vmem:[#allocation64_spill] sm:$0xff]  ;;  %v23985_v12 = vld [vmem:[#allocation83_spill] sm:$0xff] }
 0x5c0   : > { %4650 = vmatmul.mubr.f32.gmra.mxu1 %v19038_v25  ;;  %4668 = vmatpush1.msra.mxu0 %v18589_v37  ;;  %v23993_v25 = vld [vmem:[#allocation4_spill] sm:$0xff] }
 0x5c1   : > { %4843 = vmatpush1.msra.mxu1 %v18678_v6  ;;  %4671 = vmatprep.subr.mxu0 %v18599_v7 }
 0x5c2   : > { %4845 = vmatprep.subr.mxu1 %v18689_v45  ;;  %4674 = vmatpush1.msra.mxu0 %v18609_v32 }
 0x5c3   : > { %4847 = vmatpush1.msra.mxu1 %v18701_v22  ;;  %4376 = vmatprep.mubr.f32.mxu0 %v23911_v21 }
 0x5c4   : > { %4655 = vmatprep.mubr.f32.mxu1 %v23911_v21  ;;  %4677 = vmatprep.subr.mxu0 %v18622_v49 }
 0x5c5   : > { %4849 = vmatprep.subr.mxu1 %v18711_v26  ;;  %4382 = vmatmul.mubr.f32.gmra.mxu0 %v4381_v59  ;;  %v23982_v59 = vld [vmem:[#allocation66_spill] sm:$0xff] }
 0x5c6   : > { %4657 = vmatmul.mubr.f32.gmra.mxu1 %v19054_v14  ;;  %4680 = vmatpush1.msra.mxu0 %v18635_v13  ;;  %v23992_v14 = vand.u32 4294901760, %v19028_v8 }
 0x5c7   : > { %4851 = vmatpush1.msra.mxu1 %v18721_v48  ;;  %4683 = vmatprep.subr.mxu0 %v18648_v23 }
 0x5c8   : > { %4853 = vmatprep.subr.mxu1 %v18731_v17  ;;  %4686 = vmatpush1.msra.mxu0 %v18659_v46 }
 0x5c9   : > { %4855 = vmatpush1.msra.mxu1 %v18741_v31  ;;  %4387 = vmatprep.mubr.f32.mxu0 %v23911_v21 }
 0x5ca   : > { %4689 = vmatprep.subr.mxu0 %v18687_v29  ;;  %4857 = vmatprep.subr.mxu1 %v18773_v47 }
 0x5cb   : > { %4393 = vmatmul.mubr.f32.gmra.mxu0 %v4392_v38  ;;  %4859 = vmatpush1.msra.mxu1 %v18782_v43  ;;  %v23984_v38 = vld [vmem:[#allocation68_spill] sm:$0xff] }
 0x5cc   : > { %4692 = vmatpush1.msra.mxu0 %v18699_v11  ;;  %4861 = vmatprep.subr.mxu1 %v18793_v4 }
 0x5cd   : > { %4695 = vmatprep.subr.mxu0 %v18709_v42  ;;  %4863 = vmatpush1.msra.mxu1 %v18805_v19 }
 0x5ce   : > { %4698 = vmatpush1.msra.mxu0 %v23966_v2  ;;  %4398 = vmatprep.mubr.f32.mxu0 %v23911_v21 }
 0x5cf   : > { %4701 = vmatprep.subr.mxu0 %v23967_v10  ;;  %4865 = vmatprep.subr.mxu1 %v23968_v57 }
 0x5d0   : > { %4404 = vmatmul.mubr.f32.gmra.mxu0 %v4403_v36  ;;  %4867 = vmatpush1.msra.mxu1 %v23969_v30  ;;  %v23986_v36 = vld [vmem:[#allocation70_spill] sm:$0xff] }
 0x5d1   : > { %4704 = vmatpush1.msra.mxu0 %v23970_v1  ;;  %4869 = vmatprep.subr.mxu1 %v23971_v9 }
 0x5d2   : > { %4707 = vmatprep.subr.mxu0 %v23972_v51  ;;  %4871 = vmatpush1.msra.mxu1 %v23973_v61 }
 0x5d3   : > { %4710 = vmatpush1.msra.mxu0 %v23974_v62  ;;  %4873 = vmatprep.subr.mxu1 %v23975_v0 }
 0x5d4   : > { %4713 = vmatprep.subr.mxu0 %v23976_v20  ;;  %4875 = vmatpush1.msra.mxu1 %v23977_v34 }
 0x5d5   : > { %4716 = vmatpush1.msra.mxu0 %v23978_v27  ;;  %4877 = vmatprep.subr.mxu1 %v23979_v33 }
 0x5d6   : > { %4719 = vmatprep.subr.mxu0 %v23980_v3  ;;  %4879 = vmatpush1.msra.mxu1 %v23981_v56 }
 0x5d7   : > { %4722 = vmatpush1.msra.mxu0 %v23982_v59  ;;  %4881 = vmatprep.subr.mxu1 %v23983_v35 }
 0x5d8   : > { %4725 = vmatprep.subr.mxu0 %v23984_v38  ;;  %4883 = vmatpush1.msra.mxu1 %v23985_v12 }
 0x5d9   : > { %4728 = vmatpush1.msra.mxu0 %v23986_v36  ;;  %4885 = vmatprep.subr.mxu1 %v23987_v15 }
 0x5da   : > { %4731 = vmatprep.subr.mxu0 %v23988_v50  ;;  %4887 = vmatpush1.msra.mxu1 %v23989_v58  ;;  %v23996_v58 = vld [vmem:[#allocation82_spill] sm:$0xff] }
 0x5db   : > { %4734 = vmatpush1.msra.mxu0 %v23990_v60  ;;  %4920 = vmatprep.mubr.f32.mxu1 %v23911_v21 }
 0x5dc   : > { %4737 = vmatprep.subr.mxu0 %v23991_v5  ;;  %4924 = vmatmul.mubr.f32.vlgmr.msra.gmra.mxu1 %v23992_v14  ;;  %v23997_v5 = vld [vmem:[#allocation84_spill] sm:$0xff]  ;;  %v23998_v14 = vand.u32 4294901760, %v19034_v63 }
 0x5dd   : > { %5147 = vmatprep.subr.mxu1 %v23993_v25  ;;  %4740 = vmatpush1.msra.mxu0 %v23994_v40  ;;  %v23999_v25 = vld [vmem:[#allocation89_spill] sm:$0xff] }
 0x5de   : > { %5149 = vmatpush1.msra.mxu1 %v18574_v24  ;;  %4743 = vmatprep.subr.mxu0 %v23995_v18  ;;  %v24000_v24 = vld [vmem:[#allocation92_spill] sm:$0xff] }
 0x5df   : > { %5151 = vmatprep.subr.mxu1 %v18582_v28  ;;  %4746 = vmatpush1.msra.mxu0 %v23996_v58  ;;  %v24001_v28 = vld [vmem:[#allocation94_spill] sm:$0xff] }
 0x5e0   : > { %4929 = vmatprep.mubr.f32.mxu1 %v23911_v21  ;;  %5153 = vmatpush1.msra.mxu1 %v18591_v53  ;;  %v24002_v53 = vand.u32 4294901760, %v19051_v54 }
 0x5e1   : > { %4749 = vmatprep.subr.mxu0 %v23997_v5  ;;  %4933 = vmatmul.mubr.f32.gmra.mxu1 %v23998_v14 }
 0x5e2   : > { %5155 = vmatprep.subr.mxu1 %v18601_v39  ;;  %4752 = vmatpush1.msra.mxu0 %v23999_v25  ;;  %v24003_v39 = vld [vmem:[#allocation9_spill] sm:$0xff] }
 0x5e3   : > { %5157 = vmatpush1.msra.mxu1 %v18611_v44  ;;  %4755 = vmatprep.subr.mxu0 %v24000_v24  ;;  %v24004_v14 = vand.u32 4294901760, %v24003_v39  ;;  %v24005_v44 = vand.u32 4294901760, %v18589_v37  ;;  %v24008_v37 = vand.u32 4294901760, %v19068_v52 }
 0x5e4   : > { %5159 = vmatprep.subr.mxu1 %v18624_v16  ;;  %4758 = vmatpush1.msra.mxu0 %v24001_v28  ;;  %v24006_v16 = vand.u32 4294901760, %v18599_v7  ;;  %v24010_v7 = vand.u32 4294901760, %v18635_v13  ;;  %v24014_v13 = vand.u32 4294901760, %v18699_v11  ;;  %v24019_v11 = vand.u32 4294901760, %v23972_v51 }
 0x5e5   : > { %4791 = vmatprep.mubr.f32.mxu0 %v23911_v21  ;;  %4938 = vmatprep.mubr.f32.mxu1 %v23911_v21 }
 0x5e6   : > { %5161 = vmatpush1.msra.mxu1 %v18637_v55  ;;  %4794 = vmatmul.mubr.f32.vlgmr.msra.gmra.mxu0 %v19028_v8  ;;  %v24007_v55 = vand.u32 4294901760, %v18609_v32  ;;  %v24011_v32 = vand.u32 4294901760, %v18648_v23  ;;  %v24015_v23 = vand.u32 4294901760, %v18709_v42  ;;  %v24021_v42 = vand.u32 4294901760, %v23976_v20  ;;  %v24030_v8 = vld [vmem:[#allocation76_spill] sm:$0xff] }
 0x5e7   : > { %4942 = vmatmul.mubr.f32.gmra.mxu1 %v24002_v53  ;;  %4960 = vmatprep.subr.mxu0 %v24004_v14 }
 0x5e8   : > { %5163 = vmatprep.subr.mxu1 %v18669_v41  ;;  %4964 = vmatpush1.msra.mxu0 %v24005_v44  ;;  %v24009_v41 = vand.u32 4294901760, %v18622_v49  ;;  %v24013_v49 = vand.u32 4294901760, %v18687_v29  ;;  %v24017_v29 = vand.u32 4294901760, %v23967_v10  ;;  %v24038_v10 = vand.u32 4294901760, %v23999_v25 }
 0x5e9   : > { %5165 = vmatpush1.msra.mxu1 %v18678_v6  ;;  %4968 = vmatprep.subr.mxu0 %v24006_v16  ;;  %v24012_v6 = vand.u32 4294901760, %v18659_v46  ;;  %v24016_v46 = vand.u32 4294901760, %v23966_v2  ;;  %v24037_v2 = vld [vmem:[#allocation8_spill] sm:$0xff] }
 0x5ea   : > { %5167 = vmatprep.subr.mxu1 %v18689_v45  ;;  %4799 = vmatprep.mubr.f32.mxu0 %v23911_v21  ;;  %v24018_v45 = vand.u32 4294901760, %v23970_v1 }
 0x5eb   : > { %4947 = vmatprep.mubr.f32.mxu1 %v23911_v21  ;;  %4972 = vmatpush1.msra.mxu0 %v24007_v55 }
 0x5ec   : > { %5169 = vmatpush1.msra.mxu1 %v18701_v22  ;;  %4802 = vmatmul.mubr.f32.gmra.mxu0 %v19034_v63  ;;  %v24020_v22 = vand.u32 4294901760, %v23974_v62  ;;  %v24031_v63 = vand.u32 4294901760, %v24030_v8 }
 0x5ed   : > { %4951 = vmatmul.mubr.f32.gmra.mxu1 %v24008_v37  ;;  %4976 = vmatprep.subr.mxu0 %v24009_v41 }
 0x5ee   : > { %5171 = vmatprep.subr.mxu1 %v18711_v26  ;;  %4980 = vmatpush1.msra.mxu0 %v24010_v7  ;;  %v24022_v26 = vand.u32 4294901760, %v23978_v27 }
 0x5ef   : > { %5173 = vmatpush1.msra.mxu1 %v18721_v48  ;;  %4984 = vmatprep.subr.mxu0 %v24011_v32  ;;  %v24023_v48 = vand.u32 4294901760, %v23980_v3 }
 0x5f0   : > { %5175 = vmatprep.subr.mxu1 %v18731_v17  ;;  %4807 = vmatprep.mubr.f32.mxu0 %v23911_v21  ;;  %v24024_v17 = vand.u32 4294901760, %v23982_v59 }
 0x5f1   : > { %4988 = vmatpush1.msra.mxu0 %v24012_v6  ;;  %5177 = vmatpush1.msra.mxu1 %v18741_v31  ;;  %v24025_v31 = vand.u32 4294901760, %v23984_v38 }
 0x5f2   : > { %4810 = vmatmul.mubr.f32.gmra.mxu0 %v19051_v54  ;;  %4992 = vmatprep.subr.mxu0 %v24013_v49  ;;  %v24032_v54 = vld [vmem:[#allocation5_spill] sm:$0xff] }
 0x5f3   : > { %5179 = vmatprep.subr.mxu1 %v18773_v47  ;;  %4996 = vmatpush1.msra.mxu0 %v24014_v13  ;;  %v24027_v47 = vand.u32 4294901760, %v23988_v50  ;;  %v24034_v50 = vand.u32 4294901760, %v23995_v18  ;;  %v24040_v18 = vand.u32 4294901760, %v24001_v28 }
 0x5f4   : > { %5181 = vmatpush1.msra.mxu1 %v18782_v43  ;;  %5000 = vmatprep.subr.mxu0 %v24015_v23  ;;  %v24028_v43 = vand.u32 4294901760, %v23990_v60  ;;  %v24035_v60 = vand.u32 4294901760, %v23996_v58  ;;  %v24041_v58 = vld [vmem:[#allocation6_spill] sm:$0xff] }
 0x5f5   : > { %5183 = vmatprep.subr.mxu1 %v18793_v4  ;;  %4815 = vmatprep.mubr.f32.mxu0 %v23911_v21  ;;  %v24029_v4 = vld [vmem:[#allocation93_spill] sm:$0xff] }
 0x5f6   : > { %5004 = vmatpush1.msra.mxu0 %v24016_v46  ;;  %5185 = vmatpush1.msra.mxu1 %v18805_v19  ;;  %v24026_v19 = vand.u32 4294901760, %v23986_v36 }
 0x5f7   : > { %4818 = vmatmul.mubr.f32.gmra.mxu0 %v19068_v52  ;;  %5008 = vmatprep.subr.mxu0 %v24017_v29  ;;  %v24033_v52 = vand.u32 4294901760, %v23994_v40  ;;  %v24039_v40 = vand.u32 4294901760, %v24000_v24 }
 0x5f8   : > { %5187 = vmatprep.subr.mxu1 %v23968_v57  ;;  %5012 = vmatpush1.msra.mxu0 %v24018_v45  ;;  %v19266_v57 = vld [vmem:[%s23233_s5 + $0x8] sm:$0xff] }
 0x5f9   : > { %5189 = vmatpush1.msra.mxu1 %v23969_v30  ;;  %5016 = vmatprep.subr.mxu0 %v24019_v11  ;;  %24043 = vst [vmem:[#allocation13_spill] sm:$0xff] %v19266_v57 }
 0x5fa   : > { %5191 = vmatprep.subr.mxu1 %v23971_v9  ;;  %5020 = vmatpush1.msra.mxu0 %v24020_v22 }
 0x5fb   : > { %5193 = vmatpush1.msra.mxu1 %v23973_v61  ;;  %5024 = vmatprep.subr.mxu0 %v24021_v42 }
 0x5fc   : > { %5195 = vmatprep.subr.mxu1 %v23975_v0  ;;  %5028 = vmatpush1.msra.mxu0 %v24022_v26 }
 0x5fd   : > { %5197 = vmatpush1.msra.mxu1 %v23977_v34  ;;  %5032 = vmatprep.subr.mxu0 %v24023_v48 }
 0x5fe   : > { %5199 = vmatprep.subr.mxu1 %v23979_v33  ;;  %5036 = vmatpush1.msra.mxu0 %v24024_v17 }
 0x5ff   : > { %5201 = vmatpush1.msra.mxu1 %v23981_v56  ;;  %5040 = vmatprep.subr.mxu0 %v24025_v31 }
 0x600   : > { %5203 = vmatprep.subr.mxu1 %v23983_v35  ;;  %5044 = vmatpush1.msra.mxu0 %v24026_v19 }
 0x601   : > { %5205 = vmatpush1.msra.mxu1 %v23985_v12  ;;  %5048 = vmatprep.subr.mxu0 %v24027_v47 }
 0x602   : > { %5207 = vmatprep.subr.mxu1 %v23987_v15  ;;  %5052 = vmatpush1.msra.mxu0 %v24028_v43  ;;  %v24036_v15 = vand.u32 4294901760, %v23997_v5  ;;  %v24042_v5 = vld [vmem:[#allocation7_spill] sm:$0xff] }
 0x603   : > { %5209 = vmatpush1.msra.mxu1 %v24029_v4  ;;  %5242 = vmatprep.mubr.f32.mxu1 %v23911_v21 }
 0x604   : > { %5056 = vmatprep.subr.mxu0 %v24031_v63  ;;  %5244 = vmatmul.mubr.f32.vlgmr.msra.gmra.mxu1 %v24032_v54  ;;  %v14412_v63 = vld [vmem:[%s23234_s6 + $0x8] ss:$0 sm:$0xff] }
 0x605   : > { %5060 = vmatpush1.msra.mxu0 %v24033_v52  ;;  %5249 = vmatprep.mubr.f32.mxu1 %v23911_v21 }
 0x606   : > { %5064 = vmatprep.subr.mxu0 %v24034_v50  ;;  %5117 = vmatprep.mubr.f32.mxu0 %v23911_v21 }
 0x607   : > { %5068 = vmatpush1.msra.mxu0 %v24035_v60 }
 0x608   : > { %5072 = vmatprep.subr.mxu0 %v24036_v15  ;;  %5251 = vmatmul.mubr.f32.gmra.mxu1 %v24037_v2 }
 0x609   : > { %5076 = vmatpush1.msra.mxu0 %v24038_v10  ;;  %5256 = vmatprep.mubr.f32.mxu1 %v23911_v21 }
 0x60a   : > { %5080 = vmatprep.subr.mxu0 %v24039_v40  ;;  %v14413_v40 = vld [vmem:[%s23234_s6 + $0x9] ss:$0 sm:$0xff] }
 0x60b   : > { %5084 = vmatpush1.msra.mxu0 %v24040_v18 }
 0x60c   : > { %5119 = vmatmul.mubr.f32.vlgmr.msra.gmra.mxu0 %v24032_v54  ;;  %5258 = vmatmul.mubr.f32.gmra.mxu1 %v24041_v58 }
 0x60d   : > { %5124 = vmatprep.mubr.f32.mxu0 %v23911_v21  ;;  %5263 = vmatprep.mubr.f32.mxu1 %v23911_v21 }
 0x610   : > { %5126 = vmatmul.mubr.f32.gmra.mxu0 %v24037_v2  ;;  %5265 = vmatmul.mubr.f32.gmra.mxu1 %v24042_v5 }
 0x611   : > { %5131 = vmatprep.mubr.f32.mxu0 %v23911_v21 }
 0x614   : > { %5133 = vmatmul.mubr.f32.gmra.mxu0 %v24041_v58 }
 0x615   : > { %5138 = vmatprep.mubr.f32.mxu0 %v23911_v21 }
 0x618   : > { %5140 = vmatmul.mubr.f32.gmra.mxu0 %v24042_v5 }
 0x677   : > { %v4637_v30 = vpop.f32.mrf.mxu1 }
 0x679   : > { %v4639_v1 = vpop.f32.mrf.mxu1 }
 0x67b   : > { %v4644_v9 = vpop.f32.mrf.mxu1 }
 0x67d   : > { %v4646_v61 = vpop.f32.mrf.mxu1 }
 0x67f   : > { %v4372_v51 = vpop.f32.mrf.mxu0 }
 0x680   : > { %v4651_v0 = vpop.f32.mrf.mxu1  ;;  %v4638_v32 = vadd.f32 %v4637_v30, %v4372_v51 }
 0x681   : > { %v4374_v62 = vpop.f32.mrf.mxu0 }
 0x682   : > { %v4653_v34 = vpop.f32.mrf.mxu1  ;;  %v4640_v13 = vadd.f32 %v4639_v1, %v4374_v62 }
 0x685   : > { %v4383_v20 = vpop.f32.mrf.mxu0 }
 0x686   : > { %v4658_v33 = vpop.f32.mrf.mxu1  ;;  %v4645_v29 = vadd.f32 %v4644_v9, %v4383_v20 }
 0x687   : > { %v4385_v27 = vpop.f32.mrf.mxu0 }
 0x688   : > { %v4660_v21 = vpop.f32.mrf.mxu1  ;;  %v4647_v22 = vadd.f32 %v4646_v61, %v4385_v27 }
 0x68b   : > { %v4394_v3 = vpop.f32.mrf.mxu0 }
 0x68c   : > { %v4652_v48 = vadd.f32 %v4651_v0, %v4394_v3 }
 0x68d   : > { %v4396_v56 = vpop.f32.mrf.mxu0 }
 0x68e   : > { %v4654_v4 = vadd.f32 %v4653_v34, %v4396_v56 }
 0x690   : > { %v4405_v35 = vpop.f32.mrf.mxu0 }
 0x691   : > { %v4659_v15 = vadd.f32 %v4658_v33, %v4405_v35 }
 0x692   : > { %v4407_v12 = vpop.f32.mrf.mxu0 }
 0x693   : > { %v4661_v9 = vadd.f32 %v4660_v21, %v4407_v12 }
 0x69c   : > { %v4925_v59 = vpop.f32.mrf.mxu1 }
 0x69e   : > { %v4927_v38 = vpop.f32.mrf.mxu1 }
 0x6a1   : > { %v4934_v36 = vpop.f32.mrf.mxu1 }
 0x6a3   : > { %v4936_v24 = vpop.f32.mrf.mxu1 }
 0x6a6   : > { %v4795_v25 = vpop.f32.mrf.mxu0 }
 0x6a7   : > { %v4943_v53 = vpop.f32.mrf.mxu1  ;;  %v4796_v23 = vadd.f32 %v4795_v25, %v4638_v32 }
 0x6a8   : > { %v4797_v28 = vpop.f32.mrf.mxu0 }
 0x6a9   : > { %v4945_v14 = vpop.f32.mrf.mxu1  ;;  %v4798_v45 = vadd.f32 %v4797_v28, %v4640_v13  ;;  %v4926_v26 = vadd.f32 %v4925_v59, %v4796_v23 }
 0x6ab   : > { %v4928_v43 = vadd.f32 %v4927_v38, %v4798_v45 }
 0x6ac   : > { %v4803_v39 = vpop.f32.mrf.mxu0 }
 0x6ad   : > { %v4952_v16 = vpop.f32.mrf.mxu1  ;;  %v4804_v42 = vadd.f32 %v4803_v39, %v4645_v29 }
 0x6ae   : > { %v4805_v44 = vpop.f32.mrf.mxu0 }
 0x6af   : > { %v19268_v37 = vpop.f32.mrf.mxu1  ;;  %v4806_v19 = vadd.f32 %v4805_v44, %v4647_v22  ;;  %v4935_v60 = vadd.f32 %v4934_v36, %v4804_v42 }
 0x6b1   : > { %v4937_v1 = vadd.f32 %v4936_v24, %v4806_v19 }
 0x6b2   : > { %v4811_v55 = vpop.f32.mrf.mxu0 }
 0x6b3   : > { %v4812_v8 = vadd.f32 %v4811_v55, %v4652_v48 }
 0x6b4   : > { %v4813_v41 = vpop.f32.mrf.mxu0 }
 0x6b5   : > { %v4814_v2 = vadd.f32 %v4813_v41, %v4654_v4  ;;  %v4944_v61 = vadd.f32 %v4943_v53, %v4812_v8 }
 0x6b7   : > { %v4819_v6 = vpop.f32.mrf.mxu0  ;;  %v4946_v3 = vadd.f32 %v4945_v14, %v4814_v2 }
 0x6b8   : > { %v4820_v62 = vadd.f32 %v4819_v6, %v4659_v15 }
 0x6b9   : > { %v4821_v11 = vpop.f32.mrf.mxu0 }
 0x6ba   : > { %v4822_v56 = vadd.f32 %v4821_v11, %v4661_v9  ;;  %v4953_v21 = vadd.f32 %v4952_v16, %v4820_v62 }
 0x6bc   : > { %v4955_v14 = vadd.f32 %v19268_v37, %v4822_v56 }
 0x6c4   : > { %v5245_v7 = vpop.f32.mrf.mxu1 }
 0x6c6   : > { %v5247_v49 = vpop.f32.mrf.mxu1 }
 0x6c8   : > { %v5252_v46 = vpop.f32.mrf.mxu1 }
 0x6ca   : > { %v5254_v17 = vpop.f32.mrf.mxu1 }
 0x6cc   : > { %v5120_v31 = vpop.f32.mrf.mxu0  ;;  %v5259_v10 = vpop.f32.mrf.mxu1 }
 0x6cd   : > { %v5121_v47 = vadd.f32 %v5120_v31, %v4926_v26 }
 0x6ce   : > { %v5122_v54 = vpop.f32.mrf.mxu0  ;;  %v5261_v27 = vpop.f32.mrf.mxu1 }
 0x6cf   : > { %v5246_v52 = vadd.f32 %v5245_v7, %v5121_v47  ;;  %v5123_v50 = vadd.f32 %v5122_v54, %v4928_v43 }
 0x6d0   : > { %v5127_v18 = vpop.f32.mrf.mxu0  ;;  %v5266_v12 = vpop.f32.mrf.mxu1 }
 0x6d1   : > { %v19276_v58 = vadd.f32 %v14412_v63, %v5246_v52  ;;  %v5248_v5 = vadd.f32 %v5247_v49, %v5123_v50  ;;  %v5128_v30 = vadd.f32 %v5127_v18, %v4935_v60 }
 0x6d2   : > { %v5129_v51 = vpop.f32.mrf.mxu0  ;;  %v5268_v49 = vpop.f32.mrf.mxu1 }
 0x6d3   : > { %24044 = vst [vmem:[#allocation12_spill] sm:$0xff] %v19276_v58  ;;  %v5283_v0 = vadd.f32 %v14413_v40, %v5248_v5  ;;  %v5253_v20 = vadd.f32 %v5252_v46, %v5128_v30  ;;  %v5130_v34 = vadd.f32 %v5129_v51, %v4937_v1 }
 0x6d4   : > { %v5134_v33 = vpop.f32.mrf.mxu0 }
 0x6d5   : > { %5287 = vst [vmem:[#allocation3] sm:$0xff] %v5283_v0  ;;  %v19278_v59 = vadd.f32 %v14412_v63, %v5253_v20  ;;  %v5255_v35 = vadd.f32 %v5254_v17, %v5130_v34  ;;  %v5135_v38 = vadd.f32 %v5134_v33, %v4944_v61 }
 0x6d6   : > { %v5136_v36 = vpop.f32.mrf.mxu0 }
 0x6d7   : > { %24045 = vst [vmem:[#allocation65_spill] sm:$0xff] %v19278_v59  ;;  %v5284_v25 = vadd.f32 %v14413_v40, %v5255_v35  ;;  %v5260_v28 = vadd.f32 %v5259_v10, %v5135_v38  ;;  %v5137_v24 = vadd.f32 %v5136_v36, %v4946_v3 }
 0x6d8   : > { %v5141_v53 = vpop.f32.mrf.mxu0 }
 0x6d9   : > { %5288 = vst [vmem:[#allocation3 + $0x8] sm:$0xff] %v5284_v25  ;;  %v19280_v39 = vadd.f32 %v14412_v63, %v5260_v28  ;;  %v5262_v44 = vadd.f32 %v5261_v27, %v5137_v24  ;;  %v5142_v55 = vadd.f32 %v5141_v53, %v4953_v21 }
 0x6da   : > { %v5143_v41 = vpop.f32.mrf.mxu0 }
 0x6db   : > { %24046 = vst [vmem:[#allocation67_spill] sm:$0xff] %v19280_v39  ;;  %v5285_v7 = vadd.f32 %v14413_v40, %v5262_v44  ;;  %v5267_v32 = vadd.f32 %v5266_v12, %v5142_v55  ;;  %v5144_v6 = vadd.f32 %v5143_v41, %v4955_v14 }
 0x6dd   : > { %5289 = vst [vmem:[#allocation3 + $0x10] sm:$0xff] %v5285_v7  ;;  %v19283_v13 = vadd.f32 %v14412_v63, %v5267_v32  ;;  %v5269_v23 = vadd.f32 %v5268_v49, %v5144_v6 }
 0x6df   : > { %24047 = vst [vmem:[#allocation11_spill] sm:$0xff] %v19283_v13  ;;  %v5286_v46 = vadd.f32 %v14413_v40, %v5269_v23 }
 0x6e1   : > { %5290 = vst [vmem:[#allocation3 + $0x18] sm:$0xff] %v5286_v46 }
 0x6e2 LB: >> { %v24048_v57 = vld [vmem:[#allocation13_spill] sm:$0xff]  ;;  %s14415_s28 = sshll.u32 %s17131_s27, 8  ;;  %s19993_s11 = sshll.u32 %s17131_s27, 3  ;;  %s17131_s27 = sphi %s19285_s27, %s5297_s27  }
 0x6e3   : >> { %v19291_v16 = vand.u32 4294901760, %v24048_v57  ;;  %s19301_s29 = scalar_lea.vmem %s17248_s16, %s14415_s28  ;;  %s7208_s12 = scalar_lea.vmem [#allocation3], %s19993_s11 }
 0x6e4   : >> { %v5301_v45 = vld [vmem:[%s19301_s29] sm:$0xff]  ;;  %v5302_v11 = vld [vmem:[%s19301_s29 + $0x8] sm:$0xff]  ;;  %v5303_v22 = vld [vmem:[%s19301_s29 + $0x10] sm:$0xff]  ;;  %s7560_s14 = scalar_lea.vmem %s17243_s13, %s19993_s11  ;;  %s7784_s15 = scalar_lea.vmem [#allocation2], %s19993_s11 }
 0x6e5   : >> { %15828 = vmatprep.subr.mxu0 %v19291_v16  ;;  %v19296_v37 = vsub.f32 %v24048_v57, %v19291_v16  ;;  %v5334_v42 = vsel %vm386_vm0, %v5301_v45, 0  ;;  %v5337_v26 = vsel %vm386_vm0, %v5302_v11, 0  ;;  %v5340_v48 = vsel %vm386_vm0, %v5303_v22, 0  ;;  %v5304_v17 = vld [vmem:[%s19301_s29 + $0x18] sm:$0xff]  ;;  %v5305_v31 = vld [vmem:[%s19301_s29 + $0x20] sm:$0xff]  ;;  %v5306_v19 = vld [vmem:[%s19301_s29 + $0x28] sm:$0xff] }
 0x6e6   : >> { %15829 = vmatpush3.msra.mxu0 %v19291_v16  ;;  %v19318_v43 = vand.u32 4294901760, %v5334_v42  ;;  %v19320_v4 = vand.u32 4294901760, %v5337_v26  ;;  %v19322_v8 = vand.u32 4294901760, %v5340_v48  ;;  %v5307_v63 = vld [vmem:[%s19301_s29 + $0x30] sm:$0xff]  ;;  %v5343_v54 = vsel %vm386_vm0, %v5304_v17, 0  ;;  %v5308_v15 = vld [vmem:[%s19301_s29 + $0x38] sm:$0xff] }
 0x6e7   : >> { %v19304_v29 = vand.u32 4294901760, %v19296_v37  ;;  %15928 = vmatprep.subr.mxu0 %v19296_v37  ;;  %v5346_v52 = vsel %vm386_vm0, %v5305_v31, 0  ;;  %v5349_v50 = vsel %vm386_vm0, %v5306_v19, 0  ;;  %v5352_v60 = vsel %vm386_vm0, %v5307_v63, 0  ;;  %v5309_v36 = vld [vmem:[%s19301_s29 + $0x40] sm:$0xff]  ;;  %v5310_v12 = vld [vmem:[%s19301_s29 + $0x48] sm:$0xff] }
 0x6e8   : >> { %v19331_v10 = vsub.f32 %v5334_v42, %v19318_v43  ;;  %15880 = vmatprep.mubr.f32.mxu1 %v19318_v43  ;;  %v19335_v40 = vsub.f32 %v5337_v26, %v19320_v4  ;;  %v19338_v18 = vsub.f32 %v5340_v48, %v19322_v8  ;;  %v19340_v5 = vand.u32 4294901760, %v5343_v54  ;;  %v5311_v53 = vld [vmem:[%s19301_s29 + $0x50] sm:$0xff]  ;;  %v5312_v23 = vld [vmem:[%s19301_s29 + $0x58] sm:$0xff]  ;;  %v5313_v46 = vld [vmem:[%s19301_s29 + $0x60] sm:$0xff]  ;;  %s5297_s27 = sadd.s32 1, %s17131_s27  }
 0x6e9   : >> { %v5849_v47 = vsub.f32 %v19296_v37, %v19304_v29  ;;  %v19342_v30 = vand.u32 4294901760, %v5346_v52  ;;  %v19344_v1 = vand.u32 4294901760, %v5349_v50  ;;  %v19346_v9 = vand.u32 4294901760, %v5352_v60  ;;  %v5314_v26 = vld [vmem:[%s19301_s29 + $0x68] sm:$0xff]  ;;  %v5315_v48 = vld [vmem:[%s19301_s29 + $0x70] sm:$0xff]  ;;  %v5325_v57 = vld [vmem:[%s19301_s29 + $0xc0] sm:$0xff] }
 0x6ea   : >> { %v23445_v51 = vand.u32 4294901760, %v19331_v10  ;;  %v23444_v61 = vand.u32 4294901760, %v19335_v40  ;;  %v23442_v62 = vand.u32 4294901760, %v19338_v18  ;;  %v5355_v0 = vsel %vm386_vm0, %v5308_v15, 0  ;;  %p5294_p5 = scmp.ge.s32.totalorder %s5297_s27, 4  }
 0x6eb   : >> { %v5850_v2 = vand.u32 4294901760, %v5849_v47  ;;  %v19353_v20 = vsub.f32 %v5343_v54, %v19340_v5  ;;  %v19356_v34 = vsub.f32 %v5346_v52, %v19342_v30  ;;  %v19359_v27 = vsub.f32 %v5349_v50, %v19344_v1  ;;  %s21174_s23 = smov (%p5294_p5), 0  }
 0x6ec   : >> { %v19362_v33 = vsub.f32 %v5352_v60, %v19346_v9  ;;  %v5498_v3 = vsub.f32 %v19331_v10, %v23445_v51  ;;  %v5508_v56 = vsub.f32 %v19335_v40, %v23444_v61  ;;  %v5518_v35 = vsub.f32 %v19338_v18, %v23442_v62 }
 0x6ed   : >> { %15878 = vmatprep.subr.mxu1 %v5850_v2  ;;  %v19375_v38 = vand.u32 4294901760, %v5355_v0  ;;  %v23441_v25 = vand.u32 4294901760, %v19353_v20  ;;  %v23439_v28 = vand.u32 4294901760, %v19356_v34  ;;  %v23437_v24 = vand.u32 4294901760, %v19359_v27 }
 0x6ee   : >> { %15879 = vmatpush3.msra.mxu1 %v5850_v2  ;;  %v23436_v21 = vand.u32 4294901760, %v19362_v33  ;;  %v5499_v44 = vand.u32 4294901760, %v5498_v3  ;;  %v5509_v55 = vand.u32 4294901760, %v5508_v56  ;;  %v5519_v14 = vand.u32 4294901760, %v5518_v35 }
 0x6ef   : >> { %15881 = vmatmul.mubr.f32.vlgmr.msra.gmra.mxu1 %v19320_v4  ;;  %15978 = vmatprep.subr.mxu1 %v19291_v16  ;;  %v19387_v41 = vsub.f32 %v5355_v0, %v19375_v38  ;;  %v5528_v7 = vsub.f32 %v19353_v20, %v23441_v25  ;;  %v5538_v32 = vsub.f32 %v19356_v34, %v23439_v28  ;;  %v5358_v11 = vsel %vm386_vm0, %v5309_v36, 0  ;;  %v5316_v0 = vld [vmem:[%s19301_s29 + $0x78] sm:$0xff]  ;;  %v5323_v28 = vld [vmem:[%s19301_s29 + $0xb0] sm:$0xff] }
 0x6f0   : >> { %15979 = vmatpush3.msra.mxu1 %v19291_v16  ;;  %15883 = vmatprep.mubr.f32.mxu1 %v19322_v8  ;;  %v5548_v6 = vsub.f32 %v19359_v27, %v23437_v24  ;;  %v5558_v49 = vsub.f32 %v19362_v33, %v23436_v21  ;;  %v5361_v22 = vsel %vm386_vm0, %v5310_v12, 0  ;;  %v5364_v42 = vsel %vm386_vm0, %v5311_v53, 0  ;;  %v5322_v24 = vld [vmem:[%s19301_s29 + $0xa8] sm:$0xff] }
 0x6f1   : >> { %16078 = vmatprep.subr.mxu1 %v19291_v16  ;;  %15830 = vmatprep.mubr.f32.mxu0 %v5499_v44  ;;  %v23435_v45 = vand.u32 4294901760, %v19387_v41  ;;  %v5529_v17 = vand.u32 4294901760, %v5528_v7  ;;  %v5539_v31 = vand.u32 4294901760, %v5538_v32  ;;  %v19413_v63 = vand.u32 4294901760, %v5358_v11 }
 0x6f2   : >> { %15831 = vmatmul.mubr.f32.vlgmr.msra.gmra.mxu0 %v5509_v55  ;;  %v5549_v19 = vand.u32 4294901760, %v5548_v6  ;;  %v5559_v47 = vand.u32 4294901760, %v5558_v49  ;;  %v19415_v54 = vand.u32 4294901760, %v5361_v22  ;;  %v19417_v52 = vand.u32 4294901760, %v5364_v42 }
 0x6f3   : >> { %15884 = vmatmul.mubr.f32.gmra.mxu1 %v19340_v5  ;;  %15929 = vmatpush3.msra.mxu0 %v19296_v37  ;;  %v5367_v50 = vsel %vm386_vm0, %v5312_v23, 0  ;;  %v5370_v60 = vsel %vm386_vm0, %v5313_v46, 0  ;;  %v5373_v15 = vsel %vm386_vm0, %v5314_v26, 0  ;;  %v5376_v2 = vsel %vm386_vm0, %v5315_v48, 0 }
 0x6f4   : >> { %15886 = vmatprep.mubr.f32.mxu1 %v19342_v30  ;;  %15833 = vmatprep.mubr.f32.mxu0 %v5519_v14  ;;  %24049 = vst [vmem:[#allocation95_spill] sm:$0xff] %v19415_v54  ;;  %24050 = vst [vmem:[#allocation96_spill] sm:$0xff] %v19417_v52  ;;  %v5568_v37 = vsub.f32 %v19387_v41, %v23435_v45  ;;  %v19430_v3 = vsub.f32 %v5358_v11, %v19413_v63  ;;  %v19439_v36 = vand.u32 4294901760, %v5367_v50 }
 0x6f5   : >> { %16028 = vmatprep.subr.mxu0 %v19304_v29  ;;  %v19433_v56 = vsub.f32 %v5361_v22, %v19415_v54  ;;  %v19436_v35 = vsub.f32 %v5364_v42, %v19417_v52  ;;  %v19441_v12 = vand.u32 4294901760, %v5370_v60  ;;  %v19443_v53 = vand.u32 4294901760, %v5373_v15 }
 0x6f6   : >> { %15834 = vmatmul.mubr.f32.gmra.mxu0 %v5529_v17  ;;  %24051 = vst [vmem:[#allocation97_spill] sm:$0xff] %v19439_v36  ;;  %v19445_v44 = vand.u32 4294901760, %v5376_v2  ;;  %v23434_v55 = vand.u32 4294901760, %v19430_v3  ;;  %v5379_v32 = vsel %vm386_vm0, %v5316_v0, 0  ;;  %v19452_v6 = vsub.f32 %v5367_v50, %v19439_v36  ;;  %v5318_v50 = vld [vmem:[%s19301_s29 + $0x88] sm:$0xff] }
 0x6f7   : >> { %15887 = vmatmul.mubr.f32.gmra.mxu1 %v19344_v1  ;;  %24052 = vst [vmem:[#allocation98_spill] sm:$0xff] %v19441_v12  ;;  %24053 = vst [vmem:[#allocation99_spill] sm:$0xff] %v19443_v53  ;;  %15836 = vmatprep.mubr.f32.mxu0 %v5539_v31  ;;  %v23433_v14 = vand.u32 4294901760, %v19433_v56  ;;  %v23432_v7 = vand.u32 4294901760, %v19436_v35  ;;  %v19455_v49 = vsub.f32 %v5370_v60, %v19441_v12  ;;  %v5569_v46 = vand.u32 4294901760, %v5568_v37  ;;  %v5317_v31 = vld [vmem:[%s19301_s29 + $0x80] sm:$0xff] }
 0x6f8   : >> { %15889 = vmatprep.mubr.f32.mxu1 %v19346_v9  ;;  %24054 = vst [vmem:[#allocation100_spill] sm:$0xff] %v19445_v44  ;;  %v19458_v23 = vsub.f32 %v5373_v15, %v19443_v53  ;;  %v5578_v11 = vsub.f32 %v19430_v3, %v23434_v55  ;;  %v19464_v22 = vand.u32 4294901760, %v5379_v32  ;;  %v23438_v48 = vand.u32 4294901760, %v19452_v6  ;;  %v5321_v55 = vld [vmem:[%s19301_s29 + $0xa0] sm:$0xff] }
 0x6f9   : >> { %v5588_v42 = vsub.f32 %v19433_v56, %v23433_v14  ;;  %v5598_v26 = vsub.f32 %v19436_v35, %v23432_v7  ;;  %v19475_v17 = vsub.f32 %v5376_v2, %v19445_v44  ;;  %v23440_v15 = vand.u32 4294901760, %v19455_v49  ;;  %v5320_v14 = vld [vmem:[%s19301_s29 + $0x98] sm:$0xff] }
 0x6fa   : >> { %24055 = vst [vmem:[#allocation101_spill] sm:$0xff] %v19464_v22  ;;  %15837 = vmatmul.mubr.f32.gmra.mxu0 %v5549_v19  ;;  %v5319_v19 = vld [vmem:[%s19301_s29 + $0x90] sm:$0xff]  ;;  %v5579_v60 = vand.u32 4294901760, %v5578_v11  ;;  %v23443_v0 = vand.u32 4294901760, %v19458_v23  ;;  %v19483_v37 = vsub.f32 %v5379_v32, %v19464_v22  ;;  %v5608_v2 = vsub.f32 %v19452_v6, %v23438_v48 }
 0x6fb   : >> { %15890 = vmatmul.mubr.f32.gmra.mxu1 %v19375_v38  ;;  %15839 = vmatprep.mubr.f32.mxu0 %v5559_v47  ;;  %v5382_v7 = vsel %vm386_vm0, %v5317_v31, 0  ;;  %v5385_v47 = vsel %vm386_vm0, %v5318_v50, 0  ;;  %v5388_v11 = vsel %vm386_vm0, %v5319_v19, 0  ;;  %v5589_v45 = vand.u32 4294901760, %v5588_v42 }
 0x6fc   : >> { %15892 = vmatprep.mubr.f32.mxu1 %v19413_v63  ;;  %v5599_v21 = vand.u32 4294901760, %v5598_v26  ;;  %v23446_v32 = vand.u32 4294901760, %v19475_v17  ;;  %v5618_v31 = vsub.f32 %v19455_v49, %v23440_v15  ;;  %v19500_v48 = vand.u32 4294901760, %v5382_v7 }
 0x6fd   : >> { %v19502_v50 = vand.u32 4294901760, %v5385_v47  ;;  %v19504_v19 = vand.u32 4294901760, %v5388_v11  ;;  %v5391_v42 = vsel %vm386_vm0, %v5320_v14, 0  ;;  %v5394_v26 = vsel %vm386_vm0, %v5321_v55, 0 }
 0x6fe   : >> { %15840 = vmatmul.mubr.f32.gmra.mxu0 %v5569_v46  ;;  %24056 = vst [vmem:[#allocation102_spill] sm:$0xff] %v19500_v48  ;;  %v5628_v46 = vsub.f32 %v19458_v23, %v23443_v0  ;;  %v19515_v25 = vsub.f32 %v5382_v7, %v19500_v48  ;;  %v5397_v62 = vsel %vm386_vm0, %v5322_v24, 0  ;;  %v19522_v14 = vand.u32 4294901760, %v5391_v42 }
 0x6ff   : >> { %15893 = vmatmul.mubr.f32.gmra.mxu1 %v19415_v54  ;;  %15842 = vmatprep.mubr.f32.mxu0 %v5579_v60  ;;  %24057 = vst [vmem:[#allocation103_spill] sm:$0xff] %v19502_v50  ;;  %24058 = vst [vmem:[#allocation104_spill] sm:$0xff] %v19504_v19  ;;  %v5609_v60 = vand.u32 4294901760, %v5608_v2  ;;  %v19520_v0 = vsub.f32 %v5385_v47, %v19502_v50  ;;  %v19524_v55 = vand.u32 4294901760, %v5394_v26  ;;  %v5400_v2 = vsel %vm386_vm0, %v5323_v28, 0  ;;  %v5324_v47 = vld [vmem:[%s19301_s29 + $0xb8] sm:$0xff] }
 0x700   : >> { %15895 = vmatprep.mubr.f32.mxu1 %v19417_v52  ;;  %24059 = vst [vmem:[#allocation105_spill] sm:$0xff] %v19522_v14  ;;  %v5619_v61 = vand.u32 4294901760, %v5618_v31  ;;  %v5638_v7 = vsub.f32 %v19475_v17, %v23446_v32  ;;  %v19535_v51 = vand.u32 4294901760, %v5397_v62  ;;  %v5629_v15 = vand.u32 4294901760, %v5628_v46  ;;  %v5327_v32 = vld [vmem:[%s19301_s29 + $0xd0] sm:$0xff] }
 0x701   : >> { %24060 = vst [vmem:[#allocation106_spill] sm:$0xff] %v19524_v55  ;;  %v19539_v28 = vsub.f32 %v5391_v42, %v19522_v14  ;;  %v24062_v31 = vand.u32 4294901760, %v19483_v37  ;;  %v19549_v46 = vsub.f32 %v5394_v26, %v19524_v55  ;;  %v5403_v24 = vsel %vm386_vm0, %v5324_v47, 0  ;;  %v5329_v26 = vld [vmem:[%s19301_s29 + $0xe0] sm:$0xff] }
 0x702   : >> { %15843 = vmatmul.mubr.f32.gmra.mxu0 %v5589_v45  ;;  %v19532_v45 = vsub.f32 %v5388_v11, %v19504_v19  ;;  %v5639_v42 = vand.u32 4294901760, %v5638_v7  ;;  %v24063_v39 = vand.u32 4294901760, %v19515_v25  ;;  %v19558_v58 = vsub.f32 %v5397_v62, %v19535_v51 }
 0x703   : >> { %15896 = vmatmul.mubr.f32.gmra.mxu1 %v19439_v36  ;;  %15845 = vmatprep.mubr.f32.mxu0 %v5599_v21  ;;  %v19541_v21 = vand.u32 4294901760, %v5400_v2  ;;  %v5648_v11 = vsub.f32 %v19483_v37, %v24062_v31  ;;  %v5326_v31 = vld [vmem:[%s19301_s29 + $0xc8] sm:$0xff]  ;;  %v5406_v7 = vsel %vm386_vm0, %v5325_v57, 0  ;;  %v24064_v62 = vand.u32 4294901760, %v19520_v0 }
 0x704   : >> { %15898 = vmatprep.mubr.f32.mxu1 %v19441_v12  ;;  %v5409_v57 = vsel %vm386_vm0, %v5326_v31, 0  ;;  %v5330_v12 = vld [vmem:[%s19301_s29 + $0xe8] sm:$0xff] }
 0x705   : >> { %24061 = vst [vmem:[#allocation107_spill] sm:$0xff] %v19541_v21  ;;  %v19564_v47 = vsub.f32 %v5400_v2, %v19541_v21  ;;  %v5668_v13 = vsub.f32 %v19520_v0, %v24064_v62  ;;  %v24065_v2 = vand.u32 4294901760, %v19532_v45 }
 0x706   : >> { %15846 = vmatmul.mubr.f32.gmra.mxu0 %v5609_v60  ;;  %v5658_v60 = vsub.f32 %v19515_v25, %v24063_v39  ;;  %v5649_v39 = vand.u32 4294901760, %v5648_v11  ;;  %v5328_v11 = vld [vmem:[%s19301_s29 + $0xd8] sm:$0xff] }
 0x707   : >> { %15899 = vmatmul.mubr.f32.gmra.mxu1 %v19443_v53  ;;  %15848 = vmatprep.mubr.f32.mxu0 %v5619_v61  ;;  %v19566_v61 = vand.u32 4294901760, %v5403_v24  ;;  %v5669_v31 = vand.u32 4294901760, %v5668_v13  ;;  %v19597_v53 = vand.u32 4294901760, %v5409_v57  ;;  %v5418_v13 = vsel %vm386_vm0, %v5329_v26, 0 }
 0x708   : >> { %15901 = vmatprep.mubr.f32.mxu1 %v19445_v44  ;;  %v5659_v59 = vand.u32 4294901760, %v5658_v60  ;;  %v19578_v44 = vand.u32 4294901760, %v5406_v7 }
 0x709   : >> { %v19618_v26 = vsub.f32 %v5409_v57, %v19597_v53 }
 0x70a   : >> { %15849 = vmatmul.mubr.f32.gmra.mxu0 %v5629_v15  ;;  %24066 = vst [vmem:[#allocation108_spill] sm:$0xff] %v19578_v44  ;;  %v5412_v15 = vsel %vm386_vm0, %v5327_v32, 0  ;;  %v24068_v32 = vand.u32 4294901760, %v19549_v46 }
 0x70b   : >> { %15902 = vmatmul.mubr.f32.gmra.mxu1 %v19464_v22  ;;  %15851 = vmatprep.mubr.f32.mxu0 %v5639_v42  ;;  %v5678_v22 = vsub.f32 %v19532_v45, %v24065_v2  ;;  %v19590_v2 = vsub.f32 %v5403_v24, %v19566_v61  ;;  %v19600_v42 = vsub.f32 %v5406_v7, %v19578_v44  ;;  %v19602_v60 = vand.u32 4294901760, %v5412_v15 }
 0x70c   : >> { %15904 = vmatprep.mubr.f32.mxu1 %v19500_v48  ;;  %v24067_v48 = vand.u32 4294901760, %v19539_v28  ;;  %v5415_v24 = vsel %vm386_vm0, %v5328_v11, 0 }
 0x70d   : >> { %v19625_v52 = vsub.f32 %v5412_v15, %v19602_v60 }
 0x70e   : >> { %v5688_v62 = vsub.f32 %v19539_v28, %v24067_v48  ;;  %15852 = vmatmul.mubr.f32.gmra.mxu0 %v5649_v39  ;;  %v5679_v48 = vand.u32 4294901760, %v5678_v22  ;;  %v5331_v39 = vld [vmem:[%s19301_s29 + $0xf0] sm:$0xff]  ;;  %v24070_v22 = vand.u32 4294901760, %v19564_v47 }
 0x70f   : >> { %15905 = vmatmul.mubr.f32.gmra.mxu1 %v19502_v50  ;;  %v5698_v50 = vsub.f32 %v19549_v46, %v24068_v32  ;;  %15854 = vmatprep.mubr.f32.mxu0 %v5659_v59  ;;  %v24069_v32 = vand.u32 4294901760, %v19558_v58 }
 0x710   : >> { %15907 = vmatprep.mubr.f32.mxu1 %v19504_v19  ;;  %v5689_v19 = vand.u32 4294901760, %v5688_v62  ;;  %v5718_v7 = vsub.f32 %v19564_v47, %v24070_v22  ;;  %v19620_v62 = vand.u32 4294901760, %v5415_v24  ;;  %v19627_v22 = vand.u32 4294901760, %v5418_v13 }
 0x711   : >> { %v5708_v59 = vsub.f32 %v19558_v58, %v24069_v32  ;;  %v5699_v11 = vand.u32 4294901760, %v5698_v50  ;;  %v23482_v32 = vand.u32 4294901760, %v19600_v42  ;;  %v5332_v50 = vld [vmem:[%s19301_s29 + $0xf8] sm:$0xff] }
 0x712   : >> { %15855 = vmatmul.mubr.f32.gmra.mxu0 %v5669_v31  ;;  %v5424_v31 = vsel %vm386_vm0, %v5331_v39, 0  ;;  %v5719_v57 = vand.u32 4294901760, %v5718_v7  ;;  %v19638_v15 = vsub.f32 %v5415_v24, %v19620_v62  ;;  %v24072_v24 = vand.u32 4294901760, %v19618_v26 }
 0x713   : >> { %15908 = vmatmul.mubr.f32.gmra.mxu1 %v19522_v14  ;;  %v5421_v14 = vsel %vm386_vm0, %v5330_v12, 0  ;;  %15857 = vmatprep.mubr.f32.mxu0 %v5679_v48  ;;  %v5709_v36 = vand.u32 4294901760, %v5708_v59  ;;  %v19642_v39 = vand.u32 4294901760, %v5424_v31  ;;  %v5738_v59 = vsub.f32 %v19600_v42, %v23482_v32 }
 0x714   : >> { %15910 = vmatprep.mubr.f32.mxu1 %v19524_v55  ;;  %v24071_v55 = vand.u32 4294901760, %v19590_v2  ;;  %v19640_v48 = vand.u32 4294901760, %v5421_v14 }
 0x716   : >> { %v5728_v54 = vsub.f32 %v19590_v2, %v24071_v55  ;;  %15858 = vmatmul.mubr.f32.gmra.mxu0 %v5689_v19  ;;  %v19649_v19 = vsub.f32 %v5418_v13, %v19627_v22  ;;  %v5427_v55 = vsel %vm386_vm0, %v5332_v50, 0  ;;  %v19659_v32 = vsub.f32 %v5421_v14, %v19640_v48 }
 0x717   : >> { %15911 = vmatmul.mubr.f32.gmra.mxu1 %v19535_v51  ;;  %15860 = vmatprep.mubr.f32.mxu0 %v5699_v11  ;;  %v5748_v11 = vsub.f32 %v19618_v26, %v24072_v24  ;;  %v19661_v7 = vand.u32 4294901760, %v5427_v55  ;;  %v5739_v13 = vand.u32 4294901760, %v5738_v59 }
 0x718   : >> { %15913 = vmatprep.mubr.f32.mxu1 %v19541_v21  ;;  %v5729_v12 = vand.u32 4294901760, %v5728_v54  ;;  %v23485_v21 = vand.u32 4294901760, %v19638_v15  ;;  %v24073_v54 = vand.u32 4294901760, %v19625_v52 }
 0x719   : >> { %v5749_v24 = vand.u32 4294901760, %v5748_v11  ;;  %v19677_v59 = vsub.f32 %v5427_v55, %v19661_v7 }
 0x71a   : >> { %15861 = vmatmul.mubr.f32.gmra.mxu0 %v5709_v36  ;;  %v5758_v50 = vsub.f32 %v19625_v52, %v24073_v54  ;;  %v23486_v36 = vand.u32 4294901760, %v19649_v19  ;;  %v5768_v14 = vsub.f32 %v19638_v15, %v23485_v21 }
 0x71b   : >> { %15914 = vmatmul.mubr.f32.gmra.mxu1 %v19566_v61  ;;  %15863 = vmatprep.mubr.f32.mxu0 %v5719_v57  ;;  %v5787_v57 = vand.u32 4294901760, %v19659_v32  ;;  %v5807_v55 = vand.u32 4294901760, %v19677_v59 }
 0x71c   : >> { %15916 = vmatprep.mubr.f32.mxu1 %v19578_v44  ;;  %v19668_v44 = vsub.f32 %v5424_v31, %v19642_v39  ;;  %v5759_v54 = vand.u32 4294901760, %v5758_v50  ;;  %v5778_v31 = vsub.f32 %v19649_v19, %v23486_v36  ;;  %v5769_v11 = vand.u32 4294901760, %v5768_v14 }
 0x71d   : >> { %v5788_v21 = vsub.f32 %v19659_v32, %v5787_v57 }
 0x71e   : >> { %15864 = vmatmul.mubr.f32.gmra.mxu0 %v5729_v12  ;;  %v23487_v12 = vand.u32 4294901760, %v19668_v44 }
 0x71f   : >> { %15917 = vmatmul.mubr.f32.gmra.mxu1 %v19597_v53  ;;  %15866 = vmatprep.mubr.f32.mxu0 %v5739_v13  ;;  %v5779_v13 = vand.u32 4294901760, %v5778_v31  ;;  %v5789_v36 = vand.u32 4294901760, %v5788_v21  ;;  %v24074_v31 = vand.u32 4294901760, %v19331_v10  ;;  %v24076_v21 = vand.u32 4294901760, %v19338_v18 }
 0x720   : >> { %15919 = vmatprep.mubr.f32.mxu1 %v19602_v60  ;;  %v5798_v50 = vsub.f32 %v19668_v44, %v23487_v12  ;;  %v24075_v12 = vand.u32 4294901760, %v19335_v40 }
 0x722   : >> { %15867 = vmatmul.mubr.f32.gmra.mxu0 %v5749_v24  ;;  %v5808_v24 = vsub.f32 %v19677_v59, %v5807_v55  ;;  %v5799_v14 = vand.u32 4294901760, %v5798_v50 }
 0x723   : >> { %15920 = vmatmul.mubr.f32.gmra.mxu1 %v19620_v62  ;;  %15869 = vmatprep.mubr.f32.mxu0 %v5759_v54 }
 0x724   : >> { %15922 = vmatprep.mubr.f32.mxu1 %v19627_v22  ;;  %v5809_v54 = vand.u32 4294901760, %v5808_v24 }
 0x726   : >> { %15870 = vmatmul.mubr.f32.gmra.mxu0 %v5769_v11  ;;  %v24077_v11 = vand.u32 4294901760, %v19353_v20 }
 0x727   : >> { %15923 = vmatmul.mubr.f32.gmra.mxu1 %v19640_v48  ;;  %15872 = vmatprep.mubr.f32.mxu0 %v5779_v13 }
 0x728   : >> { %15925 = vmatprep.mubr.f32.mxu1 %v19642_v39 }
 0x72a   : >> { %15873 = vmatmul.mubr.f32.gmra.mxu0 %v5789_v36  ;;  %v24078_v36 = vand.u32 4294901760, %v19356_v34 }
 0x72b   : >> { %15926 = vmatmul.mubr.f32.gmra.mxu1 %v19661_v7  ;;  %15875 = vmatprep.mubr.f32.mxu0 %v5799_v14 }
 0x72c   : >> { %15980 = vmatprep.mubr.f32.mxu1 %v24074_v31 }
 0x72e   : >> { %15876 = vmatmul.mubr.f32.gmra.mxu0 %v5809_v54 }
 0x72f   : >> { %15981 = vmatmul.mubr.f32.vlgmr.msra.gmra.mxu1 %v24075_v12  ;;  %15930 = vmatprep.mubr.f32.mxu0 %v19331_v10  ;;  %v24079_v12 = vand.u32 4294901760, %v19359_v27  ;;  %v24081_v10 = vand.u32 4294901760, %v19387_v41 }
 0x730   : >> { %16079 = vmatpush3.msra.mxu1 %v19291_v16  ;;  %15983 = vmatprep.mubr.f32.mxu1 %v24076_v21  ;;  %v24080_v16 = vand.u32 4294901760, %v19362_v33 }
 0x732   : >> { %15931 = vmatmul.mubr.f32.vlgmr.msra.gmra.mxu0 %v19335_v40  ;;  %v24082_v40 = vand.u32 4294901760, %v19430_v3 }
 0x733   : >> { %15984 = vmatmul.mubr.f32.gmra.mxu1 %v24077_v11  ;;  %16029 = vmatpush3.msra.mxu0 %v19304_v29  ;;  %v24083_v29 = vand.u32 4294901760, %v19433_v56 }
 0x734   : >> { %15986 = vmatprep.mubr.f32.mxu1 %v24078_v36  ;;  %15933 = vmatprep.mubr.f32.mxu0 %v19338_v18  ;;  %v24084_v18 = vand.u32 4294901760, %v19436_v35 }
 0x736   : >> { %15934 = vmatmul.mubr.f32.gmra.mxu0 %v19353_v20  ;;  %v24085_v20 = vand.u32 4294901760, %v19452_v6 }
 0x737   : >> { %15987 = vmatmul.mubr.f32.gmra.mxu1 %v24079_v12  ;;  %15936 = vmatprep.mubr.f32.mxu0 %v19356_v34  ;;  %v24086_v34 = vand.u32 4294901760, %v19455_v49 }
 0x738   : >> { %15989 = vmatprep.mubr.f32.mxu1 %v24080_v16 }
 0x73a   : >> { %15937 = vmatmul.mubr.f32.gmra.mxu0 %v19359_v27  ;;  %v24087_v27 = vand.u32 4294901760, %v19458_v23 }
 0x73b   : >> { %15990 = vmatmul.mubr.f32.gmra.mxu1 %v24081_v10  ;;  %15939 = vmatprep.mubr.f32.mxu0 %v19362_v33  ;;  %v24088_v33 = vand.u32 4294901760, %v19475_v17 }
 0x73c   : >> { %15992 = vmatprep.mubr.f32.mxu1 %v24082_v40 }
 0x73e   : >> { %15940 = vmatmul.mubr.f32.gmra.mxu0 %v19387_v41  ;;  %v24089_v41 = vand.u32 4294901760, %v19483_v37 }
 0x73f   : >> { %15993 = vmatmul.mubr.f32.gmra.mxu1 %v24083_v29  ;;  %15942 = vmatprep.mubr.f32.mxu0 %v19430_v3  ;;  %v24090_v3 = vand.u32 4294901760, %v19515_v25 }
 0x740   : >> { %15995 = vmatprep.mubr.f32.mxu1 %v24084_v18 }
 0x742   : >> { %15943 = vmatmul.mubr.f32.gmra.mxu0 %v19433_v56  ;;  %v24091_v56 = vand.u32 4294901760, %v19520_v0 }
 0x743   : >> { %15996 = vmatmul.mubr.f32.gmra.mxu1 %v24085_v20  ;;  %15945 = vmatprep.mubr.f32.mxu0 %v19436_v35  ;;  %v24092_v35 = vand.u32 4294901760, %v19532_v45 }
 0x744   : >> { %15998 = vmatprep.mubr.f32.mxu1 %v24086_v34 }
 0x746   : >> { %15946 = vmatmul.mubr.f32.gmra.mxu0 %v19452_v6  ;;  %v24093_v6 = vand.u32 4294901760, %v19539_v28 }
 0x747   : >> { %15999 = vmatmul.mubr.f32.gmra.mxu1 %v24087_v27  ;;  %15948 = vmatprep.mubr.f32.mxu0 %v19455_v49  ;;  %v24094_v49 = vand.u32 4294901760, %v19549_v46 }
 0x748   : >> { %16001 = vmatprep.mubr.f32.mxu1 %v24088_v33 }
 0x74a   : >> { %15949 = vmatmul.mubr.f32.gmra.mxu0 %v19458_v23  ;;  %v24095_v23 = vand.u32 4294901760, %v19558_v58 }
 0x74b   : >> { %16002 = vmatmul.mubr.f32.gmra.mxu1 %v24089_v41  ;;  %15951 = vmatprep.mubr.f32.mxu0 %v19475_v17  ;;  %v24096_v17 = vand.u32 4294901760, %v19564_v47 }
 0x74c   : >> { %16004 = vmatprep.mubr.f32.mxu1 %v24090_v3 }
 0x74e   : >> { %15952 = vmatmul.mubr.f32.gmra.mxu0 %v19483_v37  ;;  %v24099_v37 = vand.u32 4294901760, %v19618_v26 }
 0x74f   : >> { %16005 = vmatmul.mubr.f32.gmra.mxu1 %v24091_v56  ;;  %15954 = vmatprep.mubr.f32.mxu0 %v19515_v25  ;;  %v24097_v25 = vand.u32 4294901760, %v19590_v2 }
 0x750   : >> { %16007 = vmatprep.mubr.f32.mxu1 %v24092_v35 }
 0x752   : >> { %15955 = vmatmul.mubr.f32.gmra.mxu0 %v19520_v0  ;;  %v24098_v0 = vand.u32 4294901760, %v19600_v42 }
 0x753   : >> { %16008 = vmatmul.mubr.f32.gmra.mxu1 %v24093_v6  ;;  %15957 = vmatprep.mubr.f32.mxu0 %v19532_v45  ;;  %v24100_v45 = vand.u32 4294901760, %v19625_v52 }
 0x754   : >> { %16010 = vmatprep.mubr.f32.mxu1 %v24094_v49 }
 0x756   : >> { %15958 = vmatmul.mubr.f32.gmra.mxu0 %v19539_v28  ;;  %v24101_v28 = vand.u32 4294901760, %v19638_v15 }
 0x757   : >> { %16011 = vmatmul.mubr.f32.gmra.mxu1 %v24095_v23  ;;  %15960 = vmatprep.mubr.f32.mxu0 %v19549_v46  ;;  %v24103_v46 = vand.u32 4294901760, %v19668_v44 }
 0x758   : >> { %16013 = vmatprep.mubr.f32.mxu1 %v24096_v17 }
 0x75a   : >> { %15961 = vmatmul.mubr.f32.gmra.mxu0 %v19558_v58  ;;  %v24102_v58 = vand.u32 4294901760, %v19649_v19 }
 0x75b   : >> { %16014 = vmatmul.mubr.f32.gmra.mxu1 %v24097_v25  ;;  %15963 = vmatprep.mubr.f32.mxu0 %v19564_v47  ;;  %v24115_v47 = vld [vmem:[#allocation106_spill] sm:$0xff] }
 0x75c   : >> { %16016 = vmatprep.mubr.f32.mxu1 %v24098_v0 }
 0x75e   : >> { %15964 = vmatmul.mubr.f32.gmra.mxu0 %v19590_v2  ;;  %v24117_v2 = vld [vmem:[#allocation108_spill] sm:$0xff] }
 0x75f   : >> { %16017 = vmatmul.mubr.f32.gmra.mxu1 %v24099_v37  ;;  %15966 = vmatprep.mubr.f32.mxu0 %v19600_v42  ;;  %v24116_v42 = vld [vmem:[#allocation107_spill] sm:$0xff] }
 0x760   : >> { %16019 = vmatprep.mubr.f32.mxu1 %v24100_v45 }
 0x762   : >> { %15967 = vmatmul.mubr.f32.gmra.mxu0 %v19618_v26 }
 0x763   : >> { %16020 = vmatmul.mubr.f32.gmra.mxu1 %v24101_v28  ;;  %15969 = vmatprep.mubr.f32.mxu0 %v19625_v52  ;;  %v24113_v52 = vld [vmem:[#allocation104_spill] sm:$0xff] }
 0x764   : >> { %16022 = vmatprep.mubr.f32.mxu1 %v24102_v58 }
 0x766   : >> { %15970 = vmatmul.mubr.f32.gmra.mxu0 %v19638_v15 }
 0x767   : >> { %16023 = vmatmul.mubr.f32.gmra.mxu1 %v5787_v57  ;;  %15972 = vmatprep.mubr.f32.mxu0 %v19649_v19 }
 0x768   : >> { %16025 = vmatprep.mubr.f32.mxu1 %v24103_v46 }
 0x76a   : >> { %15973 = vmatmul.mubr.f32.gmra.mxu0 %v19659_v32 }
 0x76b   : >> { %16026 = vmatmul.mubr.f32.gmra.mxu1 %v5807_v55  ;;  %15975 = vmatprep.mubr.f32.mxu0 %v19668_v44  ;;  %v24114_v44 = vld [vmem:[#allocation105_spill] sm:$0xff] }
 0x76c   : >> { %16080 = vmatprep.mubr.f32.mxu1 %v19318_v43 }
 0x76e   : >> { %15976 = vmatmul.mubr.f32.gmra.mxu0 %v19677_v59 }
 0x76f   : >> { %16081 = vmatmul.mubr.f32.vlgmr.msra.gmra.mxu1 %v19320_v4  ;;  %16030 = vmatprep.mubr.f32.mxu0 %v19318_v43  ;;  %v24104_v43 = vld [vmem:[#allocation95_spill] sm:$0xff] }
 0x770   : >> { %16083 = vmatprep.mubr.f32.mxu1 %v19322_v8 }
 0x772   : >> { %16031 = vmatmul.mubr.f32.vlgmr.msra.gmra.mxu0 %v19320_v4  ;;  %v24105_v4 = vld [vmem:[#allocation96_spill] sm:$0xff] }
 0x773   : >> { %16084 = vmatmul.mubr.f32.gmra.mxu1 %v19340_v5  ;;  %16033 = vmatprep.mubr.f32.mxu0 %v19322_v8  ;;  %v24106_v8 = vld [vmem:[#allocation97_spill] sm:$0xff] }
 0x774   : >> { %16086 = vmatprep.mubr.f32.mxu1 %v19342_v30 }
 0x776   : >> { %16034 = vmatmul.mubr.f32.gmra.mxu0 %v19340_v5  ;;  %v24107_v5 = vld [vmem:[#allocation98_spill] sm:$0xff] }
 0x777   : >> { %16087 = vmatmul.mubr.f32.gmra.mxu1 %v19344_v1  ;;  %16036 = vmatprep.mubr.f32.mxu0 %v19342_v30  ;;  %v24108_v30 = vld [vmem:[#allocation99_spill] sm:$0xff] }
 0x778   : >> { %16089 = vmatprep.mubr.f32.mxu1 %v19346_v9 }
 0x77a   : >> { %16037 = vmatmul.mubr.f32.gmra.mxu0 %v19344_v1  ;;  %v24109_v1 = vld [vmem:[#allocation100_spill] sm:$0xff] }
 0x77b   : >> { %16090 = vmatmul.mubr.f32.gmra.mxu1 %v19375_v38  ;;  %16039 = vmatprep.mubr.f32.mxu0 %v19346_v9  ;;  %v24110_v9 = vld [vmem:[#allocation101_spill] sm:$0xff] }
 0x77c   : >> { %16092 = vmatprep.mubr.f32.mxu1 %v19413_v63 }
 0x77e   : >> { %16040 = vmatmul.mubr.f32.gmra.mxu0 %v19375_v38  ;;  %v24111_v38 = vld [vmem:[#allocation102_spill] sm:$0xff] }
 0x77f   : >> { %16093 = vmatmul.mubr.f32.gmra.mxu1 %v24104_v43  ;;  %16042 = vmatprep.mubr.f32.mxu0 %v19413_v63  ;;  %v24112_v63 = vld [vmem:[#allocation103_spill] sm:$0xff] }
 0x780   : >> { %16095 = vmatprep.mubr.f32.mxu1 %v24105_v4 }
 0x782   : >> { %16043 = vmatmul.mubr.f32.gmra.mxu0 %v24104_v43 }
 0x783   : >> { %16096 = vmatmul.mubr.f32.gmra.mxu1 %v24106_v8  ;;  %16045 = vmatprep.mubr.f32.mxu0 %v24105_v4 }
 0x784   : >> { %16098 = vmatprep.mubr.f32.mxu1 %v24107_v5 }
 0x786   : >> { %16046 = vmatmul.mubr.f32.gmra.mxu0 %v24106_v8 }
 0x787   : >> { %16099 = vmatmul.mubr.f32.gmra.mxu1 %v24108_v30  ;;  %16048 = vmatprep.mubr.f32.mxu0 %v24107_v5 }
 0x788   : >> { %16101 = vmatprep.mubr.f32.mxu1 %v24109_v1 }
 0x78a   : >> { %16049 = vmatmul.mubr.f32.gmra.mxu0 %v24108_v30 }
 0x78b   : >> { %16102 = vmatmul.mubr.f32.gmra.mxu1 %v24110_v9  ;;  %16051 = vmatprep.mubr.f32.mxu0 %v24109_v1 }
 0x78c   : >> { %16104 = vmatprep.mubr.f32.mxu1 %v24111_v38 }
 0x78e   : >> { %16052 = vmatmul.mubr.f32.gmra.mxu0 %v24110_v9 }
 0x78f   : >> { %16105 = vmatmul.mubr.f32.gmra.mxu1 %v24112_v63  ;;  %16054 = vmatprep.mubr.f32.mxu0 %v24111_v38 }
 0x790   : >> { %16107 = vmatprep.mubr.f32.mxu1 %v24113_v52 }
 0x792   : >> { %16055 = vmatmul.mubr.f32.gmra.mxu0 %v24112_v63 }
 0x793   : >> { %16108 = vmatmul.mubr.f32.gmra.mxu1 %v24114_v44  ;;  %16057 = vmatprep.mubr.f32.mxu0 %v24113_v52 }
 0x794   : >> { %16110 = vmatprep.mubr.f32.mxu1 %v24115_v47 }
 0x796   : >> { %16058 = vmatmul.mubr.f32.gmra.mxu0 %v24114_v44 }
 0x797   : >> { %16111 = vmatmul.mubr.f32.gmra.mxu1 %v19535_v51  ;;  %16060 = vmatprep.mubr.f32.mxu0 %v24115_v47 }
 0x798   : >> { %16113 = vmatprep.mubr.f32.mxu1 %v24116_v42 }
 0x79a   : >> { %16061 = vmatmul.mubr.f32.gmra.mxu0 %v19535_v51 }
 0x79b   : >> { %16114 = vmatmul.mubr.f32.gmra.mxu1 %v19566_v61  ;;  %16063 = vmatprep.mubr.f32.mxu0 %v24116_v42 }
 0x79c   : >> { %16116 = vmatprep.mubr.f32.mxu1 %v24117_v2 }
 0x79e   : >> { %16064 = vmatmul.mubr.f32.gmra.mxu0 %v19566_v61 }
 0x79f   : >> { %16117 = vmatmul.mubr.f32.gmra.mxu1 %v19597_v53  ;;  %16066 = vmatprep.mubr.f32.mxu0 %v24117_v2 }
 0x7a0   : >> { %16119 = vmatprep.mubr.f32.mxu1 %v19602_v60 }
 0x7a2   : >> { %16067 = vmatmul.mubr.f32.gmra.mxu0 %v19597_v53 }
 0x7a3   : >> { %16120 = vmatmul.mubr.f32.gmra.mxu1 %v19620_v62  ;;  %16069 = vmatprep.mubr.f32.mxu0 %v19602_v60 }
 0x7a4   : >> { %16122 = vmatprep.mubr.f32.mxu1 %v19627_v22 }
 0x7a6   : >> { %16070 = vmatmul.mubr.f32.gmra.mxu0 %v19620_v62 }
 0x7a7   : >> { %16123 = vmatmul.mubr.f32.gmra.mxu1 %v19640_v48  ;;  %16072 = vmatprep.mubr.f32.mxu0 %v19627_v22 }
 0x7a8   : >> { %16125 = vmatprep.mubr.f32.mxu1 %v19642_v39 }
 0x7aa   : >> { %16073 = vmatmul.mubr.f32.gmra.mxu0 %v19640_v48 }
 0x7ab   : >> { %16126 = vmatmul.mubr.f32.gmra.mxu1 %v19661_v7  ;;  %16075 = vmatprep.mubr.f32.mxu0 %v19642_v39 }
 0x7ae   : >> { %16076 = vmatmul.mubr.f32.gmra.mxu0 %v19661_v7 }
 0x7af   : >> { %v15882_v51 = vpop.f32.mrf.mxu1 }
 0x7b1   : >> { %v5887_v53 = vpop.f32.mrf.mxu1 }
 0x7b2   : >> { %v15832_v60 = vpop.f32.mrf.mxu0 }
 0x7b3   : >> { %v15885_v61 = vpop.f32.mrf.mxu1  ;;  %v19860_v26 = vadd.f32 %v15882_v51, %v15832_v60 }
 0x7b4   : >> { %v5501_v62 = vpop.f32.mrf.mxu0 }
 0x7b5   : >> { %v5899_v32 = vpop.f32.mrf.mxu1  ;;  %v19862_v15 = vadd.f32 %v5887_v53, %v5501_v62 }
 0x7b6   : >> { %v15835_v22 = vpop.f32.mrf.mxu0 }
 0x7b7   : >> { %v15888_v19 = vpop.f32.mrf.mxu1  ;;  %v19864_v57 = vadd.f32 %v15885_v61, %v15835_v22 }
 0x7b8   : >> { %v5521_v48 = vpop.f32.mrf.mxu0 }
 0x7b9   : >> { %v5911_v59 = vpop.f32.mrf.mxu1  ;;  %v19866_v55 = vadd.f32 %v5899_v32, %v5521_v48 }
 0x7ba   : >> { %v15838_v13 = vpop.f32.mrf.mxu0 }
 0x7bb   : >> { %v15891_v39 = vpop.f32.mrf.mxu1  ;;  %v19868_v7 = vadd.f32 %v15888_v19, %v15838_v13 }
 0x7bc   : >> { %v5541_v24 = vpop.f32.mrf.mxu0 }
 0x7bd   : >> { %v5923_v50 = vpop.f32.mrf.mxu1  ;;  %v19870_v14 = vadd.f32 %v5911_v59, %v5541_v24 }
 0x7be   : >> { %v15841_v31 = vpop.f32.mrf.mxu0 }
 0x7bf   : >> { %v15894_v54 = vpop.f32.mrf.mxu1  ;;  %v19872_v21 = vadd.f32 %v15891_v39, %v15841_v31 }
 0x7c0   : >> { %v5561_v36 = vpop.f32.mrf.mxu0 }
 0x7c1   : >> { %v5935_v11 = vpop.f32.mrf.mxu1  ;;  %v19874_v12 = vadd.f32 %v5923_v50, %v5561_v36 }
 0x7c2   : >> { %v15844_v10 = vpop.f32.mrf.mxu0 }
 0x7c3   : >> { %v15897_v16 = vpop.f32.mrf.mxu1  ;;  %v19876_v40 = vadd.f32 %v15894_v54, %v15844_v10 }
 0x7c4   : >> { %v5581_v18 = vpop.f32.mrf.mxu0 }
 0x7c5   : >> { %v5947_v29 = vpop.f32.mrf.mxu1  ;;  %v19878_v20 = vadd.f32 %v5935_v11, %v5581_v18 }
 0x7c6   : >> { %v15847_v27 = vpop.f32.mrf.mxu0 }
 0x7c7   : >> { %v15900_v34 = vpop.f32.mrf.mxu1  ;;  %v19880_v33 = vadd.f32 %v15897_v16, %v15847_v27 }
 0x7c8   : >> { %v5601_v3 = vpop.f32.mrf.mxu0 }
 0x7c9   : >> { %v5959_v41 = vpop.f32.mrf.mxu1  ;;  %v19882_v56 = vadd.f32 %v5947_v29, %v5601_v3 }
 0x7ca   : >> { %v15850_v6 = vpop.f32.mrf.mxu0 }
 0x7cb   : >> { %v15903_v35 = vpop.f32.mrf.mxu1  ;;  %v19884_v49 = vadd.f32 %v15900_v34, %v15850_v6 }
 0x7cc   : >> { %v5621_v17 = vpop.f32.mrf.mxu0 }
 0x7cd   : >> { %v5971_v23 = vpop.f32.mrf.mxu1  ;;  %v19886_v25 = vadd.f32 %v5959_v41, %v5621_v17 }
 0x7ce   : >> { %v15853_v37 = vpop.f32.mrf.mxu0 }
 0x7cf   : >> { %v15906_v0 = vpop.f32.mrf.mxu1  ;;  %v19888_v45 = vadd.f32 %v15903_v35, %v15853_v37 }
 0x7d0   : >> { %v5641_v58 = vpop.f32.mrf.mxu0 }
 0x7d1   : >> { %v5983_v28 = vpop.f32.mrf.mxu1  ;;  %v19890_v46 = vadd.f32 %v5971_v23, %v5641_v58 }
 0x7d2   : >> { %v15856_v4 = vpop.f32.mrf.mxu0 }
 0x7d3   : >> { %v15909_v43 = vpop.f32.mrf.mxu1  ;;  %v19892_v8 = vadd.f32 %v15906_v0, %v15856_v4 }
 0x7d4   : >> { %v5661_v30 = vpop.f32.mrf.mxu0 }
 0x7d5   : >> { %v5995_v5 = vpop.f32.mrf.mxu1  ;;  %v19894_v1 = vadd.f32 %v5983_v28, %v5661_v30 }
 0x7d6   : >> { %v15859_v38 = vpop.f32.mrf.mxu0 }
 0x7d7   : >> { %v15912_v9 = vpop.f32.mrf.mxu1  ;;  %v19896_v63 = vadd.f32 %v15909_v43, %v15859_v38 }
 0x7d8   : >> { %v5681_v44 = vpop.f32.mrf.mxu0 }
 0x7d9   : >> { %v6007_v52 = vpop.f32.mrf.mxu1  ;;  %v19898_v47 = vadd.f32 %v5995_v5, %v5681_v44 }
 0x7da   : >> { %v15862_v2 = vpop.f32.mrf.mxu0 }
 0x7db   : >> { %24118 = vst [vmem:[#allocation95_spill] sm:$0xff] %v19898_v47  ;;  %v15915_v42 = vpop.f32.mrf.mxu1  ;;  %v19900_v51 = vadd.f32 %v15912_v9, %v15862_v2 }
 0x7dc   : >> { %v5701_v61 = vpop.f32.mrf.mxu0 }
 0x7dd   : >> { %24119 = vst [vmem:[#allocation96_spill] sm:$0xff] %v19900_v51  ;;  %v6019_v53 = vpop.f32.mrf.mxu1  ;;  %v19902_v60 = vadd.f32 %v6007_v52, %v5701_v61  ;;  %v24152_v51 = vld [vmem:[#allocation67_spill] sm:$0xff] }
 0x7de   : >> { %v15865_v62 = vpop.f32.mrf.mxu0 }
 0x7df   : >> { %v15918_v32 = vpop.f32.mrf.mxu1  ;;  %v19904_v19 = vadd.f32 %v15915_v42, %v15865_v62 }
 0x7e0   : >> { %v5721_v59 = vpop.f32.mrf.mxu0 }
 0x7e1   : >> { %v6031_v22 = vpop.f32.mrf.mxu1  ;;  %v19906_v48 = vadd.f32 %v6019_v53, %v5721_v59 }
 0x7e2   : >> { %v15868_v13 = vpop.f32.mrf.mxu0 }
 0x7e3   : >> { %24120 = vst [vmem:[#allocation97_spill] sm:$0xff] %v19906_v48  ;;  %v15921_v39 = vpop.f32.mrf.mxu1  ;;  %v19908_v50 = vadd.f32 %v15918_v32, %v15868_v13 }
 0x7e4   : >> { %v5741_v54 = vpop.f32.mrf.mxu0 }
 0x7e5   : >> { %24121 = vst [vmem:[#allocation98_spill] sm:$0xff] %v19908_v50  ;;  %v6043_v24 = vpop.f32.mrf.mxu1  ;;  %v19910_v31 = vadd.f32 %v6031_v22, %v5741_v54 }
 0x7e6   : >> { %v15871_v36 = vpop.f32.mrf.mxu0 }
 0x7e7   : >> { %v15924_v11 = vpop.f32.mrf.mxu1  ;;  %v19912_v16 = vadd.f32 %v15921_v39, %v15871_v36 }
 0x7e8   : >> { %v5761_v29 = vpop.f32.mrf.mxu0 }
 0x7e9   : >> { %v6055_v10 = vpop.f32.mrf.mxu1  ;;  %v19914_v18 = vadd.f32 %v6043_v24, %v5761_v29 }
 0x7ea   : >> { %v15874_v27 = vpop.f32.mrf.mxu0 }
 0x7eb   : >> { %24122 = vst [vmem:[#allocation99_spill] sm:$0xff] %v19914_v18  ;;  %v15927_v34 = vpop.f32.mrf.mxu1  ;;  %v19916_v41 = vadd.f32 %v15924_v11, %v15874_v27 }
 0x7ec   : >> { %v5781_v35 = vpop.f32.mrf.mxu0 }
 0x7ed   : >> { %24123 = vst [vmem:[#allocation100_spill] sm:$0xff] %v19916_v41  ;;  %v6067_v3 = vpop.f32.mrf.mxu1  ;;  %v19918_v6 = vadd.f32 %v6055_v10, %v5781_v35 }
 0x7ee   : >> { %v15877_v17 = vpop.f32.mrf.mxu0 }
 0x7ef   : >> { %v19920_v23 = vpop.f32.mrf.mxu1  ;;  %v19922_v0 = vadd.f32 %v15927_v34, %v15877_v17 }
 0x7f0   : >> { %v5801_v28 = vpop.f32.mrf.mxu0 }
 0x7f1   : >> { %v19924_v37 = vpop.f32.mrf.mxu1  ;;  %v19926_v58 = vadd.f32 %v6067_v3, %v5801_v28 }
 0x7f2   : >> { %v19928_v4 = vpop.f32.mrf.mxu0 }
 0x7f3   : >> { %24124 = vst [vmem:[#allocation101_spill] sm:$0xff] %v19926_v58  ;;  %v15985_v43 = vpop.f32.mrf.mxu1 }
 0x7f4   : >> { %v19930_v30 = vpop.f32.mrf.mxu0 }
 0x7f5   : >> { %v6454_v5 = vpop.f32.mrf.mxu1 }
 0x7f6   : >> { %v15935_v38 = vpop.f32.mrf.mxu0 }
 0x7f7   : >> { %v19932_v9 = vpop.f32.mrf.mxu1  ;;  %v6169_v52 = vadd.f32 %v15935_v38, %v19864_v57 }
 0x7f8   : >> { %v6161_v42 = vpop.f32.mrf.mxu0 }
 0x7f9   : >> { %v19935_v44 = vpop.f32.mrf.mxu1  ;;  %v19937_v2 = vadd.f32 %v15985_v43, %v6169_v52  ;;  %v6162_v53 = vadd.f32 %v6161_v42, %v19866_v55 }
 0x7fa   : >> { %v19940_v32 = vpop.f32.mrf.mxu0 }
 0x7fb   : >> { %v15991_v61 = vpop.f32.mrf.mxu1  ;;  %v19942_v62 = vadd.f32 %v6454_v5, %v6162_v53 }
 0x7fc   : >> { %v19944_v59 = vpop.f32.mrf.mxu0 }
 0x7fd   : >> { %v6486_v22 = vpop.f32.mrf.mxu1 }
 0x7fe   : >> { %v15941_v13 = vpop.f32.mrf.mxu0 }
 0x7ff   : >> { %v15994_v39 = vpop.f32.mrf.mxu1  ;;  %v6197_v24 = vadd.f32 %v15941_v13, %v19872_v21 }
 0x800   : >> { %v6189_v54 = vpop.f32.mrf.mxu0 }
 0x801   : >> { %v19947_v57 = vpop.f32.mrf.mxu1  ;;  %v19949_v11 = vadd.f32 %v15991_v61, %v6197_v24  ;;  %v6190_v36 = vadd.f32 %v6189_v54, %v19874_v12 }
 0x802   : >> { %v15944_v10 = vpop.f32.mrf.mxu0 }
 0x803   : >> { %v15997_v55 = vpop.f32.mrf.mxu1  ;;  %v19952_v29 = vadd.f32 %v6486_v22, %v6190_v36  ;;  %v6211_v34 = vadd.f32 %v15944_v10, %v19876_v40 }
 0x804   : >> { %v19957_v3 = vpop.f32.mrf.mxu0 }
 0x805   : >> { %v19955_v27 = vpop.f32.mrf.mxu1  ;;  %v19959_v35 = vadd.f32 %v15994_v39, %v6211_v34 }
 0x806   : >> { %v15947_v17 = vpop.f32.mrf.mxu0 }
 0x807   : >> { %v19961_v21 = vpop.f32.mrf.mxu1  ;;  %v6225_v28 = vadd.f32 %v15947_v17, %v19880_v33 }
 0x808   : >> { %v19964_v5 = vpop.f32.mrf.mxu0 }
 0x809   : >> { %v6534_v43 = vpop.f32.mrf.mxu1  ;;  %v19966_v12 = vadd.f32 %v15997_v55, %v6225_v28 }
 0x80a   : >> { %v19968_v52 = vpop.f32.mrf.mxu0 }
 0x80b   : >> { %v16003_v38 = vpop.f32.mrf.mxu1 }
 0x80c   : >> { %v6231_v42 = vpop.f32.mrf.mxu0 }
 0x80d   : >> { %v19970_v40 = vpop.f32.mrf.mxu1  ;;  %v6232_v53 = vadd.f32 %v6231_v42, %v19886_v25 }
 0x80e   : >> { %v15953_v22 = vpop.f32.mrf.mxu0 }
 0x80f   : >> { %v19973_v61 = vpop.f32.mrf.mxu1  ;;  %v19975_v39 = vadd.f32 %v6534_v43, %v6232_v53  ;;  %v6253_v33 = vadd.f32 %v15953_v22, %v19888_v45 }
 0x810   : >> { %24125 = vst [vmem:[#allocation102_spill] sm:$0xff] %v19973_v61  ;;  %v19978_v24 = vpop.f32.mrf.mxu0 }
 0x811   : >> { %24126 = vst [vmem:[#allocation103_spill] sm:$0xff] %v19975_v39  ;;  %v6566_v13 = vpop.f32.mrf.mxu1  ;;  %v19980_v54 = vadd.f32 %v16003_v38, %v6253_v33 }
 0x812   : >> { %v19982_v55 = vpop.f32.mrf.mxu0 }
 0x813   : >> { %24127 = vst [vmem:[#allocation104_spill] sm:$0xff] %v19980_v54  ;;  %v16009_v36 = vpop.f32.mrf.mxu1  ;;  %v6183_v54 = vadd.f32 %v19940_v32, %v19868_v7  ;;  %v6176_v7 = vadd.f32 %v19944_v59, %v19870_v14 }
 0x814   : >> { %v6259_v34 = vpop.f32.mrf.mxu0 }
 0x815   : >> { %v19984_v10 = vpop.f32.mrf.mxu1  ;;  %v6260_v25 = vadd.f32 %v6259_v34, %v19894_v1  ;;  %v6479_v14 = vadd.f32 %v19932_v9, %v6183_v54 }
 0x816   : >> { %24128 = vst [vmem:[#allocation105_spill] sm:$0xff] %v19984_v10  ;;  %v15959_v28 = vpop.f32.mrf.mxu0 }
 0x817   : >> { %v19987_v17 = vpop.f32.mrf.mxu1  ;;  %v19989_v43 = vadd.f32 %v6566_v13, %v6260_v25  ;;  %v6281_v45 = vadd.f32 %v15959_v28, %v19896_v63  ;;  %v7209_v63 = vld [vmem:[%s7208_s12] sm:$0xff] }
 0x818   : >> { %24129 = vst [vmem:[#allocation106_spill] sm:$0xff] %v19987_v17  ;;  %v19995_v38 = vpop.f32.mrf.mxu0 }
 0x819   : >> { %24130 = vst [vmem:[#allocation107_spill] sm:$0xff] %v19989_v43  ;;  %v6598_v42 = vpop.f32.mrf.mxu1  ;;  %24131 = vst [vmem:[#allocation108_spill] sm:$0xff] %v19995_v38  ;;  %v19997_v53 = vadd.f32 %v16009_v36, %v6281_v45  ;;  %v24138_v45 = vld [vmem:[#allocation32_spill] sm:$0xff] }
 0x81a   : >> { %v19999_v33 = vpop.f32.mrf.mxu0  ;;  %v7218_v50 = vrot.slane %v7209_v63, %v24138_v45 }
 0x81b   : >> { %24132 = vst [vmem:[#allocation109_spill] sm:$0xff] %v19997_v53  ;;  %v16015_v22 = vpop.f32.mrf.mxu1  ;;  %24133 = vst [vmem:[#allocation110_spill] sm:$0xff] %v19999_v33 }
 0x81c   : >> { %v6287_v1 = vpop.f32.mrf.mxu0  ;;  %v7226_v17 = vcombine.high %v7218_v50, %v7218_v50 }
 0x81d   : >> { %v20001_v58 = vpop.f32.mrf.mxu1  ;;  %v6288_v34 = vadd.f32 %v6287_v1, %v19902_v60 }
 0x81e   : >> { %24134 = vst [vmem:[#allocation111_spill] sm:$0xff] %v20001_v58  ;;  %v15965_v25 = vpop.f32.mrf.mxu0 }
 0x81f   : >> { %v20004_v13 = vpop.f32.mrf.mxu1  ;;  %v20007_v28 = vadd.f32 %v6598_v42, %v6288_v34  ;;  %v6309_v41 = vadd.f32 %v15965_v25, %v19904_v19  ;;  %v7211_v19 = vcombine.high %v7209_v63, %v7209_v63 }
 0x820   : >> { %24135 = vst [vmem:[#allocation112_spill] sm:$0xff] %v20004_v13  ;;  %v20010_v36 = vpop.f32.mrf.mxu0  ;;  %v7234_v13 = vrot.slane %v7218_v50, %v24138_v45 }
 0x821   : >> { %24136 = vst [vmem:[#allocation113_spill] sm:$0xff] %v20007_v28  ;;  %v6630_v18 = vpop.f32.mrf.mxu1  ;;  %24137 = vst [vmem:[#allocation114_spill] sm:$0xff] %v20010_v36  ;;  %v20013_v48 = vadd.f32 %v16015_v22, %v6309_v41 }
 0x822   : >> { %v20015_v53 = vpop.f32.mrf.mxu0  ;;  %v7256_v43 = vcombine.high %v7234_v13, %v7234_v13 }
 0x823   : >> { %24139 = vst [vmem:[#allocation115_spill] sm:$0xff] %v20013_v48  ;;  %v16021_v58 = vpop.f32.mrf.mxu1  ;;  %24140 = vst [vmem:[#allocation116_spill] sm:$0xff] %v20015_v53  ;;  %v24145_v53 = vld [vmem:[#allocation39_spill] sm:$0xff] }
 0x824   : >> { %v6315_v1 = vpop.f32.mrf.mxu0  ;;  %v7263_v36 = vrot.slane %v7234_v13, %v24145_v53  ;;  %v7271_v13 = vrot.slane %v7256_v43, %v24145_v53 }
 0x825   : >> { %v20017_v60 = vpop.f32.mrf.mxu1  ;;  %v6316_v42 = vadd.f32 %v6315_v1, %v19910_v31  ;;  %v7225_v31 = vrot.slane %v7211_v19, %v24138_v45 }
 0x826   : >> { %24141 = vst [vmem:[#allocation117_spill] sm:$0xff] %v20017_v60  ;;  %v15971_v25 = vpop.f32.mrf.mxu0  ;;  %v7248_v60 = vrot.slane %v7226_v17, %v24138_v45  ;;  %v6155_v17 = vadd.f32 %v19928_v4, %v19860_v26  ;;  %v20049_v38 = vadd.f32 %v7263_v36, %v24152_v51  ;;  %v6148_v26 = vadd.f32 %v19930_v30, %v19862_v15 }
 0x827   : >> { %v20021_v34 = vpop.f32.mrf.mxu1  ;;  %v20023_v28 = vadd.f32 %v6630_v18, %v6316_v42  ;;  %v6337_v41 = vadd.f32 %v15971_v25, %v19912_v16  ;;  %v7227_v42 = vcombine.high %v7225_v31, %v7225_v31  ;;  %v24149_v25 = vld [vmem:[#allocation65_spill] sm:$0xff]  ;;  %v7241_v19 = vrot.slane %v7225_v31, %v24138_v45 }
 0x828   : >> { %24142 = vst [vmem:[#allocation118_spill] sm:$0xff] %v20021_v34  ;;  %v20026_v48 = vpop.f32.mrf.mxu0  ;;  %v7258_v63 = vcombine.high %v7248_v60, %v7248_v60  ;;  %v7301_v34 = vadd.f32 %v7263_v36, %v24149_v25 }
 0x829   : >> { %24143 = vst [vmem:[#allocation119_spill] sm:$0xff] %v20023_v28  ;;  %v6662_v22 = vpop.f32.mrf.mxu1  ;;  %24144 = vst [vmem:[#allocation120_spill] sm:$0xff] %v20026_v48  ;;  %v20030_v10 = vadd.f32 %v16021_v58, %v6337_v41  ;;  %v7267_v28 = vrot.slane %v7248_v60, %v24145_v53  ;;  %v20058_v31 = vrot.slane %v7227_v42, %v24138_v45 }
 0x82a   : >> { %v20033_v1 = vpop.f32.mrf.mxu0  ;;  %v7275_v60 = vrot.slane %v7258_v63, %v24145_v53  ;;  %v20078_v45 = vadd.f32 %v7271_v13, %v24149_v25 }
 0x82b   : >> { %24146 = vst [vmem:[#allocation121_spill] sm:$0xff] %v20030_v10  ;;  %v16027_v50 = vpop.f32.mrf.mxu1  ;;  %24147 = vst [vmem:[#allocation122_spill] sm:$0xff] %v20033_v1  ;;  %v24150_v1 = vld [vmem:[#allocation12_spill] sm:$0xff]  ;;  %v20063_v47 = vadd.f32 %v7267_v28, %v24149_v25  ;;  %v20072_v15 = vadd.f32 %v7267_v28, %v24152_v51 }
 0x82c   : >> { %v6343_v16 = vpop.f32.mrf.mxu0  ;;  %v7300_v48 = vadd.f32 %v7263_v36, %v24150_v1  ;;  %v20099_v39 = vadd.f32 %v7275_v60, %v24150_v1 }
 0x82d   : >> { %v20035_v18 = vpop.f32.mrf.mxu1  ;;  %v6344_v58 = vadd.f32 %v6343_v16, %v19918_v6 }
 0x82e   : >> { %24148 = vst [vmem:[#allocation123_spill] sm:$0xff] %v20035_v18  ;;  %v15977_v10 = vpop.f32.mrf.mxu0  ;;  %v24151_v18 = vld [vmem:[#allocation11_spill] sm:$0xff]  ;;  %24157 = vst [vmem:[#allocation128_spill] sm:$0xff] %v20099_v39 }
 0x82f   : >> { %v16082_v41 = vpop.f32.mrf.mxu1  ;;  %v20046_v33 = vadd.f32 %v7263_v36, %v24151_v18  ;;  %v20054_v6 = vadd.f32 %v6662_v22, %v6344_v58  ;;  %v6365_v4 = vadd.f32 %v15977_v10, %v19922_v0  ;;  %v20066_v36 = vadd.f32 %v7267_v28, %v24150_v1 }
 0x830   : >> { %v20060_v16 = vpop.f32.mrf.mxu0  ;;  %v20069_v63 = vadd.f32 %v7267_v28, %v24151_v18  ;;  %v6447_v0 = vadd.f32 %v19920_v23, %v6155_v17  ;;  %v7279_v22 = vrot.slane %v7241_v19, %v24145_v53  ;;  %v20082_v58 = vadd.f32 %v7271_v13, %v24150_v1 }
 0x831   : >> { %24153 = vst [vmem:[#allocation124_spill] sm:$0xff] %v20054_v6  ;;  %v7018_v43 = vpop.f32.mrf.mxu1  ;;  %24154 = vst [vmem:[#allocation125_spill] sm:$0xff] %v20060_v16  ;;  %v20075_v30 = vadd.f32 %v16027_v50, %v6365_v4  ;;  %v20085_v6 = vadd.f32 %v7271_v13, %v24151_v18  ;;  %v20088_v28 = vadd.f32 %v7271_v13, %v24152_v51 }
 0x832   : >> { %v16032_v42 = vpop.f32.mrf.mxu0  ;;  %v7257_v16 = vcombine.high %v7241_v19, %v7241_v19  ;;  %v6439_v23 = vadd.f32 %v19924_v37, %v6148_v26  ;;  %v20092_v4 = vadd.f32 %v7275_v60, %v24149_v25  ;;  %v20102_v13 = vadd.f32 %v7275_v60, %v24151_v18 }
 0x833   : >> { %24155 = vst [vmem:[#allocation126_spill] sm:$0xff] %v20075_v30  ;;  %v16085_v10 = vpop.f32.mrf.mxu1  ;;  %v6767_v50 = vadd.f32 %v16032_v42, %v6447_v0  ;;  %v7283_v30 = vrot.slane %v20058_v31, %v24145_v53  ;;  %v20105_v37 = vadd.f32 %v7275_v60, %v24152_v51  ;;  %v20108_v42 = vadd.f32 %v7279_v22, %v24149_v25 }
 0x834   : >> { %24156 = vst [vmem:[#allocation127_spill] sm:$0xff] %v20092_v4  ;;  %v6760_v61 = vpop.f32.mrf.mxu0  ;;  %24158 = vst [vmem:[#allocation129_spill] sm:$0xff] %v20102_v13  ;;  %v20111_v4 = vadd.f32 %v7279_v22, %v24150_v1  ;;  %v20116_v39 = vadd.f32 %v7279_v22, %v24151_v18  ;;  %v20119_v13 = vadd.f32 %v7279_v22, %v24152_v51 }
 0x835   : >> { %v7030_v17 = vpop.f32.mrf.mxu1  ;;  %v7025_v19 = vadd.f32 %v16082_v41, %v6767_v50  ;;  %v6761_v26 = vadd.f32 %v6760_v61, %v6439_v23  ;;  %24159 = vst [vmem:[#allocation130_spill] sm:$0xff] %v20108_v42  ;;  %v20122_v41 = vrot.slane %v7257_v16, %v24145_v53  ;;  %v20130_v42 = vadd.f32 %v7283_v30, %v24150_v1 }
 0x836   : >> { %24160 = vst [vmem:[#allocation131_spill] sm:$0xff] %v20111_v4  ;;  %v16035_v32 = vpop.f32.mrf.mxu0  ;;  %v20126_v4 = vadd.f32 %v7283_v30, %v24149_v25  ;;  %v20133_v22 = vadd.f32 %v7283_v30, %v24151_v18  ;;  %v20136_v16 = vadd.f32 %v7283_v30, %v24152_v51 }
 0x837   : >> { %v16088_v0 = vpop.f32.mrf.mxu1  ;;  %v7333_v61 = vadd.f32 %v7301_v34, %v7025_v19  ;;  %v7019_v60 = vadd.f32 %v7018_v43, %v6761_v26  ;;  %v6779_v23 = vadd.f32 %v16035_v32, %v19937_v2  ;;  %v6471_v26 = vadd.f32 %v19935_v44, %v6176_v7 }
 0x838   : >> { %v6772_v59 = vpop.f32.mrf.mxu0  ;;  %24161 = vst [vmem:[#allocation132_spill] sm:$0xff] %v20133_v22  ;;  %v20142_v54 = vadd.f32 %v20122_v41, %v24149_v25  ;;  %v20146_v22 = vadd.f32 %v20122_v41, %v24150_v1 }
 0x839   : >> { %v7042_v50 = vpop.f32.mrf.mxu1  ;;  %v7332_v34 = vadd.f32 %v7300_v48, %v7019_v60  ;;  %v7037_v43 = vadd.f32 %v16085_v10, %v6779_v23  ;;  %v6773_v2 = vadd.f32 %v6772_v59, %v19942_v62  ;;  %vm7365_vm15 = vcmp.ge.f32.partialorder %v7333_v61, 0.0 }
 0x83a   : >> { %v16038_v32 = vpop.f32.mrf.mxu0  ;;  %v7397_v9 = vmul.f32 0.2, %v7333_v61  ;;  %24162 = vst [vmem:[#allocation133_spill] sm:$0xff] %v20142_v54  ;;  %24163 = vst [vmem:[#allocation134_spill] sm:$0xff] %v20146_v22  ;;  %v6204_v62 = vadd.f32 %v19957_v3, %v19878_v20  ;;  %v20153_v59 = vadd.f32 %v20122_v41, %v24151_v18  ;;  %v24164_v54 = vld [vmem:[#allocation86_spill] sm:$0xff] }
 0x83b   : >> { %v16091_v19 = vpop.f32.mrf.mxu1  ;;  %v7335_v30 = vadd.f32 %v20046_v33, %v7037_v43  ;;  %v7031_v48 = vadd.f32 %v7030_v17, %v6773_v2  ;;  %v6791_v10 = vadd.f32 %v16038_v32, %v6479_v14  ;;  %vm7364_vm1 = vcmp.ge.f32.partialorder %v7332_v34, 0.0 }
 0x83c   : >> { %v6784_v44 = vpop.f32.mrf.mxu0  ;;  %v7429_v7 = vsel %vm7365_vm15, %v7333_v61, %v7397_v9  ;;  %v7396_v23 = vmul.f32 0.2, %v7332_v34  ;;  %v6218_v14 = vadd.f32 %v19964_v5, %v19882_v56 }
 0x83d   : >> { %v7054_v60 = vpop.f32.mrf.mxu1  ;;  %v7334_v25 = vadd.f32 %v20049_v38, %v7031_v48  ;;  %v7049_v1 = vadd.f32 %v16088_v0, %v6791_v10  ;;  %v6785_v22 = vadd.f32 %v6784_v44, %v6471_v26  ;;  %v7465_v33 = vmul.f32 %v24164_v54, %v7429_v7 }
 0x83e   : >> { %v16041_v43 = vpop.f32.mrf.mxu0  ;;  %v7428_v2 = vsel %vm7364_vm1, %v7332_v34, %v7396_v23  ;;  %vm7367_vm2 = vcmp.ge.f32.partialorder %v7335_v30, 0.0  ;;  %v7399_v20 = vmul.f32 0.2, %v7335_v30  ;;  %v7259_v38 = vcombine.high %v20058_v31, %v20058_v31 }
 0x83f   : >> { %v16094_v17 = vpop.f32.mrf.mxu1  ;;  %v7337_v3 = vadd.f32 %v20063_v47, %v7049_v1  ;;  %v7043_v61 = vadd.f32 %v7042_v50, %v6785_v22  ;;  %v6803_v32 = vadd.f32 %v16041_v43, %v19949_v11  ;;  %7498 = vadd.xlane.f32.xlu0 %v7465_v33  ;;  %v6503_v0 = vadd.f32 %v19947_v57, %v6204_v62 }
 0x840   : >> { %v6796_v26 = vpop.f32.mrf.mxu0  ;;  %v7464_v48 = vmul.f32 %v24164_v54, %v7428_v2  ;;  %v7431_v56 = vsel %vm7367_vm2, %v7335_v30, %v7399_v20  ;;  %v7398_v5 = vmul.f32 0.2, %v7334_v25  ;;  %vm7366_vm13 = vcmp.ge.f32.partialorder %v7334_v25, 0.0 }
 0x841   : >> { %v7066_v9 = vpop.f32.mrf.mxu1  ;;  %v7336_v34 = vadd.f32 %v20066_v36, %v7043_v61  ;;  %v6797_v10 = vadd.f32 %v6796_v26, %v19952_v29  ;;  %v7061_v47 = vadd.f32 %v16091_v19, %v6803_v32  ;;  %v6519_v11 = vadd.f32 %v19955_v27, %v6218_v14 }
 0x842   : >> { %v6239_v50 = vadd.f32 %v19968_v52, %v19884_v49  ;;  %v16044_v31 = vpop.f32.mrf.mxu0  ;;  %vm7369_vm15 = vcmp.ge.f32.partialorder %v7337_v3, 0.0  ;;  %v7401_v57 = vmul.f32 0.2, %v7337_v3  ;;  %v7467_v36 = vmul.f32 %v24164_v54, %v7431_v56 }
 0x843   : >> { %v16097_v1 = vpop.f32.mrf.mxu1  ;;  %v7339_v22 = vadd.f32 %v20069_v63, %v7061_v47  ;;  %v6815_v30 = vadd.f32 %v16044_v31, %v19959_v35  ;;  %v7055_v62 = vadd.f32 %v7054_v60, %v6797_v10  ;;  %7496 = vadd.xlane.f32.xlu0 %v7464_v48  ;;  %v7430_v7 = vsel %vm7366_vm13, %v7334_v25, %v7398_v5  ;;  %v24165_v31 = vld [vmem:[#allocation103_spill] sm:$0xff] }
 0x844   : >> { %v6808_v19 = vpop.f32.mrf.mxu0  ;;  %v7433_v44 = vsel %vm7369_vm15, %v7337_v3, %v7401_v57  ;;  %vm7368_vm1 = vcmp.ge.f32.partialorder %v7336_v34, 0.0  ;;  %v7400_v27 = vmul.f32 0.2, %v7336_v34  ;;  %v6543_v63 = vadd.f32 %v19961_v21, %v6239_v50 }
 0x845   : >> { %v7078_v29 = vpop.f32.mrf.mxu1  ;;  %v7338_v23 = vadd.f32 %v20072_v15, %v7055_v62  ;;  %v6809_v49 = vadd.f32 %v6808_v19, %v6503_v0  ;;  %v7073_v52 = vadd.f32 %v16094_v17, %v6815_v30  ;;  %v7469_v33 = vmul.f32 %v24164_v54, %v7433_v44  ;;  %v24168_v44 = vld [vmem:[#allocation104_spill] sm:$0xff] }
 0x846   : >> { %v16047_v35 = vpop.f32.mrf.mxu0  ;;  %v7432_v60 = vsel %vm7368_vm1, %v7336_v34, %v7400_v27  ;;  %vm7371_vm2 = vcmp.ge.f32.partialorder %v7339_v22, 0.0  ;;  %v7403_v43 = vmul.f32 0.2, %v7339_v22  ;;  %v6246_v2 = vadd.f32 %v19978_v24, %v19890_v46 }
 0x847   : >> { %v16100_v14 = vpop.f32.mrf.mxu1  ;;  %v6827_v25 = vadd.f32 %v16047_v35, %v19966_v12  ;;  %v7067_v20 = vadd.f32 %v7066_v9, %v6809_v49  ;;  %7502 = vadd.xlane.f32.xlu0 %v7467_v36  ;;  %7506 = vadd.xlane.f32.xlu1 %v7469_v33  ;;  %vm7370_vm13 = vcmp.ge.f32.partialorder %v7338_v23, 0.0  ;;  %v7341_v17 = vadd.f32 %v20078_v45, %v7073_v52 }
 0x848   : >> { %v6820_v3 = vpop.f32.mrf.mxu0  ;;  %v7466_v61 = vmul.f32 %v24164_v54, %v7430_v7  ;;  %v7468_v21 = vmul.f32 %v24164_v54, %v7432_v60  ;;  %v7402_v32 = vmul.f32 0.2, %v7338_v23  ;;  %v7435_v46 = vsel %vm7371_vm2, %v7339_v22, %v7403_v43 }
 0x849   : >> { %v7090_v15 = vpop.f32.mrf.mxu1  ;;  %v7340_v0 = vadd.f32 %v20082_v58, %v7067_v20  ;;  %v6821_v26 = vadd.f32 %v6820_v3, %v6519_v11  ;;  %v7085_v48 = vadd.f32 %v16097_v1, %v6827_v25  ;;  %v6267_v24 = vadd.f32 %v19982_v55, %v19892_v8  ;;  %v24171_v25 = vld [vmem:[#allocation108_spill] sm:$0xff]  ;;  %v24173_v3 = vld [vmem:[#allocation110_spill] sm:$0xff] }
 0x84a   : >> { %v16050_v9 = vpop.f32.mrf.mxu0  ;;  %v7434_v56 = vsel %vm7370_vm13, %v7338_v23, %v7402_v32  ;;  %v20188_v45 = vadd.f32 %v20122_v41, %v24152_v51  ;;  %v20191_v5 = vrot.slane %v7259_v38, %v24145_v53  ;;  %v6551_v1 = vadd.f32 %v19970_v40, %v6246_v2  ;;  %v24167_v40 = vld [vmem:[#allocation127_spill] sm:$0xff] }
 0x84b   : >> { %v16103_v12 = vpop.f32.mrf.mxu1  ;;  %v7343_v34 = vadd.f32 %v20085_v6, %v7085_v48  ;;  %v6839_v58 = vadd.f32 %v16050_v9, %v6543_v63  ;;  %v7079_v10 = vadd.f32 %v7078_v29, %v6821_v26  ;;  %7500 = vadd.xlane.f32.xlu0 %v7466_v61  ;;  %7504 = vadd.xlane.f32.xlu1 %v7468_v21  ;;  %vm7372_vm15 = vcmp.ge.f32.partialorder %v7340_v0, 0.0  ;;  %v24166_v6 = vld [vmem:[#allocation102_spill] sm:$0xff]  ;;  %v24170_v2 = vld [vmem:[#allocation95_spill] sm:$0xff] }
 0x84c   : >> { %v6832_v8 = vpop.f32.mrf.mxu0  ;;  %v7471_v55 = vmul.f32 %v24164_v54, %v7435_v46  ;;  %v7404_v11 = vmul.f32 0.2, %v7340_v0  ;;  %v7405_v50 = vmul.f32 0.2, %v7341_v17  ;;  %vm7373_vm1 = vcmp.ge.f32.partialorder %v7341_v17, 0.0 }
 0x84d   : >> { %v7102_v47 = vpop.f32.mrf.mxu1  ;;  %v7342_v41 = vadd.f32 %v20088_v28, %v7079_v10  ;;  %v6833_v53 = vadd.f32 %v6832_v8, %v24165_v31  ;;  %v7097_v38 = vadd.f32 %v16100_v14, %v6839_v58  ;;  %v6575_v22 = vadd.f32 %v24166_v6, %v6267_v24  ;;  %v24169_v14 = vld [vmem:[#allocation128_spill] sm:$0xff]  ;;  %v24174_v24 = vld [vmem:[#allocation129_spill] sm:$0xff] }
 0x84e   : >> { %v16053_v30 = vpop.f32.mrf.mxu0  ;;  %v7436_v62 = vsel %vm7372_vm15, %v7340_v0, %v7404_v11  ;;  %v7470_v36 = vmul.f32 %v24164_v54, %v7434_v56  ;;  %v7407_v29 = vmul.f32 0.2, %v7343_v34  ;;  %v7437_v33 = vsel %vm7373_vm1, %v7341_v17, %v7405_v50 }
 0x84f   : >> { %v16106_v57 = vpop.f32.mrf.mxu1  ;;  %v7345_v19 = vadd.f32 %v24167_v40, %v7097_v38  ;;  %v6851_v7 = vadd.f32 %v16053_v30, %v24168_v44  ;;  %v7091_v27 = vadd.f32 %v7090_v15, %v6833_v53  ;;  %7510 = vadd.xlane.f32.xlu1 %v7471_v55  ;;  %v7472_v28 = vmul.f32 %v24164_v54, %v7436_v62  ;;  %v24172_v15 = vld [vmem:[#allocation96_spill] sm:$0xff]  ;;  %v24175_v55 = vld [vmem:[#allocation107_spill] sm:$0xff]  ;;  %v24177_v53 = vld [vmem:[#allocation106_spill] sm:$0xff] }
 0x850   : >> { %v6844_v49 = vpop.f32.mrf.mxu0  ;;  %vm7374_vm2 = vcmp.ge.f32.partialorder %v7342_v41, 0.0  ;;  %v7406_v52 = vmul.f32 0.2, %v7342_v41  ;;  %vm7375_vm13 = vcmp.ge.f32.partialorder %v7343_v34, 0.0  ;;  %v6274_v20 = vadd.f32 %v24171_v25, %v24170_v2  ;;  %v24178_v30 = vld [vmem:[#allocation130_spill] sm:$0xff] }
 0x851   : >> { %v7114_v23 = vpop.f32.mrf.mxu1  ;;  %v7344_v63 = vadd.f32 %v24169_v14, %v7091_v27  ;;  %v6845_v35 = vadd.f32 %v6844_v49, %v6551_v1  ;;  %v7109_v60 = vadd.f32 %v16103_v12, %v6851_v7  ;;  %7512 = vadd.xlane.f32.xlu0 %v7472_v28  ;;  %vm7377_vm15 = vcmp.ge.f32.partialorder %v7345_v19, 0.0  ;;  %v24180_v27 = vld [vmem:[#allocation131_spill] sm:$0xff]  ;;  %v24181_v14 = vld [vmem:[#allocation97_spill] sm:$0xff]  ;;  %v24183_v2 = vld [vmem:[#allocation98_spill] sm:$0xff] }
 0x852   : >> { %v6295_v61 = vadd.f32 %v24173_v3, %v24172_v15  ;;  %v16056_v21 = vpop.f32.mrf.mxu0  ;;  %v7438_v32 = vsel %vm7374_vm2, %v7342_v41, %v7406_v52  ;;  %v7409_v0 = vmul.f32 0.2, %v7345_v19  ;;  %v7439_v12 = vsel %vm7375_vm13, %v7343_v34, %v7407_v29  ;;  %v24176_v41 = vld [vmem:[#allocation105_spill] sm:$0xff] }
 0x853   : >> { %v16109_v43 = vpop.f32.mrf.mxu1  ;;  %v6863_v26 = vadd.f32 %v16056_v21, %v6575_v22  ;;  %v7103_v48 = vadd.f32 %v7102_v47, %v6845_v35  ;;  %7508 = vadd.xlane.f32.xlu1 %v7470_v36  ;;  %v7474_v17 = vmul.f32 %v24164_v54, %v7438_v32  ;;  %v7347_v9 = vadd.f32 %v24174_v24, %v7109_v60  ;;  %v24179_v36 = vld [vmem:[#allocation109_spill] sm:$0xff]  ;;  %v24182_v35 = vld [vmem:[#allocation114_spill] sm:$0xff] }
 0x854   : >> { %v6856_v56 = vpop.f32.mrf.mxu0  ;;  %v7473_v58 = vmul.f32 %v24164_v54, %v7437_v33  ;;  %v7441_v10 = vsel %vm7377_vm15, %v7345_v19, %v7409_v0  ;;  %v7408_v1 = vmul.f32 0.2, %v7344_v63  ;;  %vm7376_vm1 = vcmp.ge.f32.partialorder %v7344_v63, 0.0 }
 0x855   : >> { %v7126_v46 = vpop.f32.mrf.mxu1  ;;  %v7346_v8 = vadd.f32 %v20105_v37, %v7103_v48  ;;  %v6857_v11 = vadd.f32 %v6856_v56, %v24175_v55  ;;  %v7121_v50 = vadd.f32 %v16106_v57, %v6863_v26  ;;  %7516 = vadd.xlane.f32.xlu0 %v7474_v17  ;;  %v6583_v31 = vadd.f32 %v24176_v41, %v6274_v20  ;;  %v24185_v56 = vld [vmem:[#allocation113_spill] sm:$0xff] }
 0x856   : >> { %v6607_v38 = vadd.f32 %v24177_v53, %v6295_v61  ;;  %v16059_v34 = vpop.f32.mrf.mxu0  ;;  %v7477_v6 = vmul.f32 %v24164_v54, %v7441_v10  ;;  %v7475_v22 = vmul.f32 %v24164_v54, %v7439_v12  ;;  %v7440_v44 = vsel %vm7376_vm1, %v7344_v63, %v7408_v1 }
 0x857   : >> { %v16112_v47 = vpop.f32.mrf.mxu1  ;;  %v7349_v62 = vadd.f32 %v24178_v30, %v7121_v50  ;;  %v6875_v29 = vadd.f32 %v16059_v34, %v24179_v36  ;;  %v7115_v37 = vadd.f32 %v7114_v23, %v6857_v11  ;;  %7514 = vadd.xlane.f32.xlu1 %v7473_v58  ;;  %vm7378_vm2 = vcmp.ge.f32.partialorder %v7346_v8, 0.0  ;;  %v24184_v23 = vld [vmem:[#allocation116_spill] sm:$0xff] }
 0x858   : >> { %v6868_v40 = vpop.f32.mrf.mxu0  ;;  %v7410_v19 = vmul.f32 0.2, %v7346_v8  ;;  %vm7379_vm13 = vcmp.ge.f32.partialorder %v7347_v9, 0.0  ;;  %v7411_v7 = vmul.f32 0.2, %v7347_v9  ;;  %v6302_v60 = vadd.f32 %v24182_v35, %v24181_v14  ;;  %v24193_v35 = vld [vmem:[#allocation132_spill] sm:$0xff] }
 0x859   : >> { %v7138_v57 = vpop.f32.mrf.mxu1  ;;  %v7348_v28 = vadd.f32 %v24180_v27, %v7115_v37  ;;  %v6869_v49 = vadd.f32 %v6868_v40, %v6583_v31  ;;  %v7133_v52 = vadd.f32 %v16109_v43, %v6875_v29  ;;  %7522 = vadd.xlane.f32.xlu0 %v7477_v6  ;;  %vm7381_vm15 = vcmp.ge.f32.partialorder %v7349_v62, 0.0  ;;  %v24190_v37 = vld [vmem:[#allocation120_spill] sm:$0xff] }
 0x85a   : >> { %v6323_v25 = vadd.f32 %v24184_v23, %v24183_v2  ;;  %v16062_v20 = vpop.f32.mrf.mxu0  ;;  %v7442_v15 = vsel %vm7378_vm2, %v7346_v8, %v7410_v19  ;;  %v7413_v3 = vmul.f32 0.2, %v7349_v62  ;;  %v7476_v26 = vmul.f32 %v24164_v54, %v7440_v44  ;;  %v24187_v8 = vld [vmem:[#allocation112_spill] sm:$0xff]  ;;  %v24192_v19 = vld [vmem:[#allocation122_spill] sm:$0xff] }
 0x85b   : >> { %v16115_v33 = vpop.f32.mrf.mxu1  ;;  %v7351_v63 = vadd.f32 %v20116_v39, %v7133_v52  ;;  %v6887_v61 = vadd.f32 %v16062_v20, %v6607_v38  ;;  %v7127_v21 = vadd.f32 %v7126_v46, %v6869_v49  ;;  %7518 = vadd.xlane.f32.xlu1 %v7475_v22  ;;  %v7478_v43 = vmul.f32 %v24164_v54, %v7442_v15  ;;  %v24186_v46 = vld [vmem:[#allocation111_spill] sm:$0xff] }
 0x85c   : >> { %v6880_v0 = vpop.f32.mrf.mxu0  ;;  %v7445_v48 = vsel %vm7381_vm15, %v7349_v62, %v7413_v3  ;;  %v7443_v17 = vsel %vm7379_vm13, %v7347_v9, %v7411_v7  ;;  %v7412_v12 = vmul.f32 0.2, %v7348_v28  ;;  %vm7380_vm1 = vcmp.ge.f32.partialorder %v7348_v28, 0.0  ;;  %v24188_v9 = vld [vmem:[#allocation115_spill] sm:$0xff] }
 0x85d   : >> { %v7150_v32 = vpop.f32.mrf.mxu1  ;;  %v7350_v24 = vadd.f32 %v20119_v13, %v7127_v21  ;;  %v6881_v58 = vadd.f32 %v6880_v0, %v24185_v56  ;;  %v7145_v10 = vadd.f32 %v16112_v47, %v6887_v61  ;;  %7524 = vadd.xlane.f32.xlu0 %v7478_v43  ;;  %v6615_v1 = vadd.f32 %v24186_v46, %v6302_v60  ;;  %v24194_v3 = vld [vmem:[#allocation119_spill] sm:$0xff] }
 0x85e   : >> { %v6639_v55 = vadd.f32 %v24187_v8, %v6323_v25  ;;  %v16065_v11 = vpop.f32.mrf.mxu0  ;;  %v7481_v50 = vmul.f32 %v24164_v54, %v7445_v48  ;;  %v7415_v41 = vmul.f32 0.2, %v7351_v63  ;;  %v7479_v34 = vmul.f32 %v24164_v54, %v7443_v17 }
 0x85f   : >> { %v16118_v39 = vpop.f32.mrf.mxu1  ;;  %v7353_v31 = vadd.f32 %v20126_v4, %v7145_v10  ;;  %v6899_v53 = vadd.f32 %v16065_v11, %v24188_v9  ;;  %v7139_v38 = vadd.f32 %v7138_v57, %v6881_v58  ;;  %7520 = vadd.xlane.f32.xlu1 %v7476_v26  ;;  %vm7382_vm2 = vcmp.ge.f32.partialorder %v7350_v24, 0.0  ;;  %v24189_v4 = vld [vmem:[#allocation99_spill] sm:$0xff]  ;;  %v24191_v57 = vld [vmem:[#allocation100_spill] sm:$0xff]  ;;  %v24196_v26 = vld [vmem:[#allocation118_spill] sm:$0xff] }
 0x860   : >> { %v6892_v47 = vpop.f32.mrf.mxu0  ;;  %v7414_v6 = vmul.f32 0.2, %v7350_v24  ;;  %v7444_v22 = vsel %vm7380_vm1, %v7348_v28, %v7412_v12  ;;  %vm7383_vm13 = vcmp.ge.f32.partialorder %v7351_v63, 0.0  ;;  %v6330_v40 = vadd.f32 %v24190_v37, %v24189_v4  ;;  %v24198_v58 = vld [vmem:[#allocation121_spill] sm:$0xff]  ;;  %v24199_v11 = vld [vmem:[#allocation134_spill] sm:$0xff] }
 0x861   : >> { %v7162_v13 = vpop.f32.mrf.mxu1  ;;  %v7352_v30 = vadd.f32 %v20130_v42, %v7139_v38  ;;  %v6893_v62 = vadd.f32 %v6892_v47, %v6615_v1  ;;  %v7157_v36 = vadd.f32 %v16115_v33, %v6899_v53  ;;  %7530 = vadd.xlane.f32.xlu0 %v7481_v50  ;;  %vm7385_vm15 = vcmp.ge.f32.partialorder %v7353_v31, 0.0  ;;  %v24200_v9 = vld [vmem:[#allocation101_spill] sm:$0xff] }
 0x862   : >> { %v6351_v44 = vadd.f32 %v24192_v19, %v24191_v57  ;;  %v16068_v7 = vpop.f32.mrf.mxu0  ;;  %v7446_v27 = vsel %vm7382_vm2, %v7350_v24, %v7414_v6  ;;  %v7417_v49 = vmul.f32 0.2, %v7353_v31  ;;  %v7447_v33 = vsel %vm7383_vm13, %v7351_v63, %v7415_v41  ;;  %v24197_v24 = vld [vmem:[#allocation133_spill] sm:$0xff] }
 0x863   : >> { %v16121_v29 = vpop.f32.mrf.mxu1  ;;  %v6911_v52 = vadd.f32 %v16068_v7, %v6639_v55  ;;  %v7151_v28 = vadd.f32 %v7150_v32, %v6893_v62  ;;  %7526 = vadd.xlane.f32.xlu1 %v7479_v34  ;;  %v7482_v42 = vmul.f32 %v24164_v54, %v7446_v27  ;;  %v7355_v60 = vadd.f32 %v24193_v35, %v7157_v36  ;;  %v24195_v32 = vld [vmem:[#allocation117_spill] sm:$0xff]  ;;  %v24203_v7 = vld [vmem:[#allocation124_spill] sm:$0xff] }
 0x864   : >> { %v6904_v2 = vpop.f32.mrf.mxu0  ;;  %v7480_v23 = vmul.f32 %v24164_v54, %v7444_v22  ;;  %v7449_v25 = vsel %vm7385_vm15, %v7353_v31, %v7417_v49  ;;  %v7416_v20 = vmul.f32 0.2, %v7352_v30  ;;  %vm7384_vm1 = vcmp.ge.f32.partialorder %v7352_v30, 0.0  ;;  %v24201_v53 = vld [vmem:[#allocation125_spill] sm:$0xff] }
 0x865   : >> { %v7174_v14 = vpop.f32.mrf.mxu1  ;;  %v7354_v15 = vadd.f32 %v20136_v16, %v7151_v28  ;;  %v6905_v61 = vadd.f32 %v6904_v2, %v24194_v3  ;;  %v7169_v21 = vadd.f32 %v16118_v39, %v6911_v52  ;;  %7532 = vadd.xlane.f32.xlu0 %v7482_v42  ;;  %v6647_v0 = vadd.f32 %v24195_v32, %v6330_v40  ;;  %v24202_v62 = vld [vmem:[#allocation65_spill] sm:$0xff]  ;;  %v24204_v28 = vld [vmem:[#allocation123_spill] sm:$0xff] }
 0x866   : >> { %v6671_v48 = vadd.f32 %v24196_v26, %v6351_v44  ;;  %v16071_v63 = vpop.f32.mrf.mxu0  ;;  %v7485_v17 = vmul.f32 %v24164_v54, %v7449_v25  ;;  %v7483_v12 = vmul.f32 %v24164_v54, %v7447_v33  ;;  %v7448_v8 = vsel %vm7384_vm1, %v7352_v30, %v7416_v20  ;;  %v24205_v33 = vld [vmem:[#allocation12_spill] sm:$0xff] }
 0x867   : >> { %v16124_v43 = vpop.f32.mrf.mxu1  ;;  %v7357_v56 = vadd.f32 %v24197_v24, %v7169_v21  ;;  %v6923_v10 = vadd.f32 %v16071_v63, %v24198_v58  ;;  %v7163_v16 = vadd.f32 %v7162_v13, %v6905_v61  ;;  %7528 = vadd.xlane.f32.xlu1 %v7480_v23  ;;  %vm7386_vm2 = vcmp.ge.f32.partialorder %v7354_v15, 0.0  ;;  %v24206_v23 = vld [vmem:[#allocation126_spill] sm:$0xff] }
 0x868   : >> { %v6916_v39 = vpop.f32.mrf.mxu0  ;;  %v7418_v46 = vmul.f32 0.2, %v7354_v15  ;;  %vm7387_vm13 = vcmp.ge.f32.partialorder %v7355_v60, 0.0  ;;  %v7419_v55 = vmul.f32 0.2, %v7355_v60  ;;  %v6358_v38 = vadd.f32 %v24201_v53, %v24200_v9 }
 0x869   : >> { %v7186_v1 = vpop.f32.mrf.mxu1  ;;  %v7356_v50 = vadd.f32 %v24199_v11, %v7163_v16  ;;  %v6917_v41 = vadd.f32 %v6916_v39, %v6647_v0  ;;  %v7181_v31 = vadd.f32 %v16121_v29, %v6923_v10  ;;  %7538 = vadd.xlane.f32.xlu0 %v7485_v17  ;;  %vm7389_vm15 = vcmp.ge.f32.partialorder %v7357_v56, 0.0 }
 0x86a   : >> { %v16074_v47 = vpop.f32.mrf.mxu0  ;;  %v7450_v34 = vsel %vm7386_vm2, %v7354_v15, %v7418_v46  ;;  %v7421_v13 = vmul.f32 0.2, %v7357_v56  ;;  %v7329_v30 = vadd.f32 %v20191_v5, %v24202_v62  ;;  %v7484_v29 = vmul.f32 %v24164_v54, %v7448_v8 }
 0x86b   : >> { %v6935_v6 = vadd.f32 %v16074_v47, %v6671_v48  ;;  %v7175_v22 = vadd.f32 %v7174_v14, %v6917_v41  ;;  %7534 = vadd.xlane.f32.xlu1 %v7483_v12  ;;  %v7486_v36 = vmul.f32 %v24164_v54, %v7450_v34  ;;  %v7359_v4 = vadd.f32 %v20153_v59, %v7181_v31  ;;  %v16127_v40 = vpop.f32.mrf.mxu1 }
 0x86c   : >> { %v6928_v37 = vpop.f32.mrf.mxu0  ;;  %v7453_v57 = vsel %vm7389_vm15, %v7357_v56, %v7421_v13  ;;  %v7451_v19 = vsel %vm7387_vm13, %v7355_v60, %v7419_v55  ;;  %v7420_v52 = vmul.f32 0.2, %v7356_v50  ;;  %v6679_v42 = vadd.f32 %v24204_v28, %v6358_v38 }
 0x86d   : >> { %v7358_v44 = vadd.f32 %v20188_v45, %v7175_v22  ;;  %v6929_v27 = vadd.f32 %v6928_v37, %v24203_v7  ;;  %v7193_v49 = vadd.f32 %v16124_v43, %v6935_v6  ;;  %7540 = vadd.xlane.f32.xlu0 %v7486_v36  ;;  %v7328_v59 = vadd.f32 %v20191_v5, %v24205_v33  ;;  %v7198_v15 = vpop.f32.mrf.mxu1 }
 0x86e   : >> { %v16077_v14 = vpop.f32.mrf.mxu0  ;;  %v7489_v35 = vmul.f32 %v24164_v54, %v7453_v57  ;;  %vm7388_vm1 = vcmp.ge.f32.partialorder %v7356_v50, 0.0  ;;  %v7331_v20 = vadd.f32 %v20191_v5, %v24151_v18  ;;  %v7330_v3 = vadd.f32 %v20191_v5, %v24152_v51 }
 0x86f   : >> { %v7361_v2 = vadd.f32 %v7329_v30, %v7193_v49  ;;  %v6947_v25 = vadd.f32 %v16077_v14, %v24206_v23  ;;  %v7187_v60 = vadd.f32 %v7186_v1, %v6929_v27  ;;  %7536 = vadd.xlane.f32.xlu1 %v7484_v29  ;;  %vm7390_vm2 = vcmp.ge.f32.partialorder %v7358_v44, 0.0  ;;  %v24207_v14 = vld [vmem:[#allocation57_spill] sm:$0xff] }
 0x870   : >> { %v6940_v45 = vpop.f32.mrf.mxu0  ;;  %v7487_v61 = vmul.f32 %v24164_v54, %v7451_v19  ;;  %v7422_v21 = vmul.f32 0.2, %v7358_v44  ;;  %v7452_v32 = vsel %vm7388_vm1, %v7356_v50, %v7420_v52  ;;  %v7423_v0 = vmul.f32 0.2, %v7359_v4 }
 0x871   : >> { %v6941_v43 = vadd.f32 %v6940_v45, %v6679_v42  ;;  %7546 = vadd.xlane.f32.xlu0 %v7489_v35  ;;  %vm7393_vm13 = vcmp.ge.f32.partialorder %v7361_v2, 0.0  ;;  %v7360_v26 = vadd.f32 %v7328_v59, %v7187_v60  ;;  %v7205_v48 = vadd.f32 %v16127_v40, %v6947_v25  ;;  %v24208_v59 = vld [vmem:[#allocation58_spill] sm:$0xff]  ;;  %v24209_v25 = vld [vmem:[#allocation59_spill] sm:$0xff] }
 0x872   : >> { %v7454_v63 = vsel %vm7390_vm2, %v7358_v44, %v7422_v21  ;;  %v7425_v17 = vmul.f32 0.2, %v7361_v2  ;;  %vm7391_vm15 = vcmp.ge.f32.partialorder %v7359_v4, 0.0  ;;  %v7488_v51 = vmul.f32 %v24164_v54, %v7452_v32 }
 0x873   : >> { %v7199_v12 = vadd.f32 %v7198_v15, %v6941_v43  ;;  %7542 = vadd.xlane.f32.xlu1 %v7487_v61  ;;  %v7490_v18 = vmul.f32 %v24164_v54, %v7454_v63  ;;  %v7363_v5 = vadd.f32 %v7331_v20, %v7205_v48  ;;  %v7455_v58 = vsel %vm7391_vm15, %v7359_v4, %v7423_v0  ;;  %v24210_v48 = vld [vmem:[#allocation60_spill] sm:$0xff] }
 0x874   : >> { %v7457_v24 = vsel %vm7393_vm13, %v7361_v2, %v7425_v17  ;;  %v7424_v10 = vmul.f32 0.2, %v7360_v26  ;;  %vm7392_vm2 = vcmp.ge.f32.partialorder %v7360_v26, 0.0  ;;  %v7491_v46 = vmul.f32 %v24164_v54, %v7455_v58 }
 0x875   : >> { %v7362_v56 = vadd.f32 %v7330_v3, %v7199_v12  ;;  %7548 = vadd.xlane.f32.xlu0 %v7490_v18  ;;  %v7493_v16 = vmul.f32 %v24164_v54, %v7457_v24  ;;  %v7427_v11 = vmul.f32 0.2, %v7363_v5  ;;  %vm7395_vm13 = vcmp.ge.f32.partialorder %v7363_v5, 0.0 }
 0x876   : >> { %v7456_v55 = vsel %vm7392_vm2, %v7360_v26, %v7424_v10 }
 0x877   : >> { %7544 = vadd.xlane.f32.xlu1 %v7488_v51  ;;  %vm7394_vm1 = vcmp.ge.f32.partialorder %v7362_v56, 0.0  ;;  %v7426_v39 = vmul.f32 0.2, %v7362_v56  ;;  %v7492_v50 = vmul.f32 %v24164_v54, %v7456_v55  ;;  %v7459_v41 = vsel %vm7395_vm13, %v7363_v5, %v7427_v11 }
 0x878   : >> { %v7495_v31 = vmul.f32 %v24164_v54, %v7459_v41 }
 0x879   : >> { %7554 = vadd.xlane.f32.xlu0 %v7493_v16  ;;  %v7458_v1 = vsel %vm7394_vm1, %v7362_v56, %v7426_v39 }
 0x87a   : >> { %v7494_v8 = vmul.f32 %v24164_v54, %v7458_v1 }
 0x87b   : >> { %7550 = vadd.xlane.f32.xlu1 %v7491_v46 }
 0x87d   : >> { %7556 = vadd.xlane.f32.xlu0 %v7494_v8 }
 0x87f   : >> { %7552 = vadd.xlane.f32.xlu1 %v7492_v50 }
 0x883   : >> { %7558 = vadd.xlane.f32.xlu1 %v7495_v31 }
 0x8c8   : >> { %v7499_v9 = vpop.xlane.xlu0 %7498 }
 0x8c9   : >> { %v7605_v60 = vrot.slane %v7499_v9, %v24209_v25 }
 0x8cc   : >> { %v7497_v53 = vpop.xlane.xlu0 %7496 }
 0x8cd   : >> { %v7600_v33 = vrot.slane %v7497_v53, %v24207_v14 }
 0x8cf   : >> { %v7607_v61 = vsel %vm3346_vm3, %v7605_v60, %v7600_v33 }
 0x8d0   : >> { %v7503_v38 = vpop.xlane.xlu0 %7502  ;;  %v7507_v47 = vpop.xlane.xlu1 %7506 }
 0x8d1   : >> { %v7629_v20 = vrot.slane %v7507_v47, %v24209_v25  ;;  %v7619_v63 = vrot.slane %v7503_v38, %v24210_v48 }
 0x8d4   : >> { %v7505_v34 = vpop.xlane.xlu1 %7504  ;;  %v7501_v13 = vpop.xlane.xlu0 %7500 }
 0x8d5   : >> { %v7612_v35 = vrot.slane %v7501_v13, %v24208_v59  ;;  %v7625_v2 = vrot.slane %v7505_v34, %v24207_v14 }
 0x8d7   : >> { %v7614_v21 = vsel %vm3353_vm4, %v7612_v35, %v7607_v61  ;;  %v7630_v43 = vsel %vm3346_vm3, %v7629_v20, %v7625_v2  ;;  %v7561_v35 = vld [vmem:[%s7560_s14] sm:$0xff] }
 0x8d8   : >> { %v7511_v6 = vpop.xlane.xlu1 %7510  ;;  %v7621_v51 = vsel %vm3360_vm5, %v7619_v63, %v7614_v21  ;;  %vm7562_vm15 = vcmp.gt.f32.partialorder %v7561_v35, 0.0 }
 0x8d9   : >> { %v7639_v5 = vrot.slane %v7511_v6, %v24210_v48 }
 0x8da   : >> { %v7513_v22 = vpop.xlane.xlu0 %7512 }
 0x8db   : >> { %v7644_v32 = vrot.slane %v7513_v22, %v24207_v14 }
 0x8dc   : >> { %v7509_v62 = vpop.xlane.xlu1 %7508 }
 0x8dd   : >> { %v7634_v45 = vrot.slane %v7509_v62, %v24208_v59 }
 0x8de   : >> { %v7517_v30 = vpop.xlane.xlu0 %7516 }
 0x8df   : >> { %v7635_v17 = vsel %vm3353_vm4, %v7634_v45, %v7630_v43  ;;  %v7653_v58 = vrot.slane %v7517_v30, %v24208_v59 }
 0x8e0   : >> { %v7515_v36 = vpop.xlane.xlu1 %7514  ;;  %v7640_v11 = vsel %vm3360_vm5, %v7639_v5, %v7635_v17 }
 0x8e1   : >> { %v7648_v15 = vrot.slane %v7515_v36, %v24209_v25 }
 0x8e2   : >> { %v7523_v4 = vpop.xlane.xlu0 %7522 }
 0x8e3   : >> { %v7649_v12 = vsel %vm3346_vm3, %v7648_v15, %v7644_v32  ;;  %v7667_v18 = vrot.slane %v7523_v4, %v24209_v25 }
 0x8e4   : >> { %v7519_v37 = vpop.xlane.xlu1 %7518  ;;  %v7654_v50 = vsel %vm3353_vm4, %v7653_v58, %v7649_v12  ;;  %v24212_v58 = vld [vmem:[#allocation67_spill] sm:$0xff] (%p5294_p5) }
 0x8e5   : >> { %v7658_v24 = vrot.slane %v7519_v37, %v24210_v48 }
 0x8e6   : >> { %v7525_v29 = vpop.xlane.xlu0 %7524 }
 0x8e7   : >> { %v7672_v41 = vrot.slane %v7525_v29, %v24208_v59  ;;  %v7659_v9 = vsel %vm3360_vm5, %v7658_v24, %v7654_v50 }
 0x8e8   : >> { %v7521_v40 = vpop.xlane.xlu1 %7520 }
 0x8e9   : >> { %v7663_v0 = vrot.slane %v7521_v40, %v24207_v14 }
 0x8ea   : >> { %v7531_v57 = vpop.xlane.xlu0 %7530 }
 0x8eb   : >> { %v7668_v39 = vsel %vm3346_vm3, %v7667_v18, %v7663_v0  ;;  %v7686_v46 = vrot.slane %v7531_v57, %v24209_v25 }
 0x8ec   : >> { %v7527_v19 = vpop.xlane.xlu1 %7526  ;;  %v7673_v34 = vsel %vm3353_vm4, %v7672_v41, %v7668_v39 }
 0x8ed   : >> { %v7677_v1 = vrot.slane %v7527_v19, %v24210_v48 }
 0x8ee   : >> { %v7533_v44 = vpop.xlane.xlu0 %7532 }
 0x8ef   : >> { %v7691_v13 = vrot.slane %v7533_v44, %v24208_v59  ;;  %v7678_v62 = vsel %vm3360_vm5, %v7677_v1, %v7673_v34 }
 0x8f0   : >> { %v7529_v7 = vpop.xlane.xlu1 %7528 }
 0x8f1   : >> { %v7682_v56 = vrot.slane %v7529_v7, %v24207_v14  ;;  %v7756_v7 = vsel %vm3495_vm6, %v7640_v11, %v7621_v51  ;;  %v24211_v51 = vld [vmem:[#allocation11_spill] sm:$0xff] (%p5294_p5) }
 0x8f2   : >> { %v7539_v27 = vpop.xlane.xlu0 %7538  ;;  %v20357_v5 = vand.u32 (%p5294_p5), 4294901760, %v24211_v51 }
 0x8f3   : >> { %v7705_v31 = vrot.slane %v7539_v27, %v24209_v25  ;;  %v7687_v53 = vsel %vm3346_vm3, %v7686_v46, %v7682_v56  ;;  %v24214_v46 = vld [vmem:[#allocation12_spill] sm:$0xff] (%p5294_p5) }
 0x8f4   : >> { %v7535_v49 = vpop.xlane.xlu1 %7534  ;;  %v7692_v29 = vsel %vm3353_vm4, %v7691_v13, %v7687_v53  ;;  %v20366_v1 = vand.u32 (%p5294_p5), 4294901760, %v24214_v46  ;;  %16128 = vmatprep.subr.mxu0 (%p5294_p5), %v20357_v5  ;;  %v7941_v54 = vsub.f32 (%p5294_p5), %v24211_v51, %v20357_v5 }
 0x8f5   : >> { %v7696_v38 = vrot.slane %v7535_v49, %v24210_v48  ;;  %16129 = vmatpush3.msra.mxu0 (%p5294_p5), %v20357_v5 }
 0x8f6   : >> { %v7541_v52 = vpop.xlane.xlu0 %7540  ;;  %v7962_v13 = vsub.f32 (%p5294_p5), %v24214_v46, %v20366_v1 }
 0x8f7   : >> { %v7710_v30 = vrot.slane %v7541_v52, %v24208_v59  ;;  %v7697_v27 = vsel %vm3360_vm5, %v7696_v38, %v7692_v29  ;;  %v7758_v52 = vsel %vm3497_vm7, %v7659_v9, %v7756_v7 }
 0x8f8   : >> { %v7537_v28 = vpop.xlane.xlu1 %7536  ;;  %v7760_v2 = vsel %vm3499_vm8, %v7678_v62, %v7758_v52  ;;  %v20403_v29 = vand.u32 (%p5294_p5), 4294901760, %v7962_v13 }
 0x8f9   : >> { %v7701_v10 = vrot.slane %v7537_v28, %v24207_v14  ;;  %v7762_v60 = vsel %vm3501_vm9, %v7697_v27, %v7760_v2 }
 0x8fa   : >> { %v7547_v42 = vpop.xlane.xlu0 %7546  ;;  %v7964_v52 = vsub.f32 (%p5294_p5), %v7962_v13, %v20403_v29 }
 0x8fb   : >> { %v7724_v47 = vrot.slane %v7547_v42, %v24209_v25  ;;  %v7706_v6 = vsel %vm3346_vm3, %v7705_v31, %v7701_v10  ;;  %v20360_v10 = vand.u32 (%p5294_p5), 4294901760, %v24212_v58 }
 0x8fc   : >> { %v7543_v23 = vpop.xlane.xlu1 %7542  ;;  %v7711_v49 = vsel %vm3353_vm4, %v7710_v30, %v7706_v6 }
 0x8fd   : >> { %v7715_v22 = vrot.slane %v7543_v23, %v24210_v48  ;;  %v7948_v53 = vsub.f32 (%p5294_p5), %v24212_v58, %v20360_v10  ;;  %16130 = vmatprep.subr.mxu0 (%p5294_p5), %v20360_v10 }
 0x8fe   : >> { %v7549_v3 = vpop.xlane.xlu0 %7548  ;;  %16131 = vmatpush3.msra.mxu0 (%p5294_p5), %v20360_v10 }
 0x8ff   : >> { %v7729_v40 = vrot.slane %v7549_v3, %v24208_v59  ;;  %v7716_v28 = vsel %vm3360_vm5, %v7715_v22, %v7711_v49  ;;  %v20387_v22 = vand.u32 (%p5294_p5), 4294901760, %v7941_v54  ;;  %v20392_v30 = vand.u32 (%p5294_p5), 4294901760, %v7948_v53 }
 0x900   : >> { %v7545_v26 = vpop.xlane.xlu1 %7544  ;;  %v7764_v20 = vsel %vm3503_vm10, %v7716_v28, %v7762_v60 }
 0x901   : >> { %v7720_v8 = vrot.slane %v7545_v26, %v24207_v14 }
 0x902   : >> { %v7555_v16 = vpop.xlane.xlu0 %7554 }
 0x903   : >> { %v7725_v36 = vsel %vm3346_vm3, %v7724_v47, %v7720_v8  ;;  %v7743_v57 = vrot.slane %v7555_v16, %v24209_v25  ;;  %v24213_v16 = vld [vmem:[#allocation65_spill] sm:$0xff] (%p5294_p5) }
 0x904   : >> { %v7551_v55 = vpop.xlane.xlu1 %7550  ;;  %v7730_v42 = vsel %vm3353_vm4, %v7729_v40, %v7725_v36  ;;  %v20363_v39 = vand.u32 (%p5294_p5), 4294901760, %v24213_v16 }
 0x905   : >> { %v7734_v4 = vrot.slane %v7551_v55, %v24210_v48 }
 0x906   : >> { %v7557_v19 = vpop.xlane.xlu0 %7556  ;;  %v7955_v47 = vsub.f32 (%p5294_p5), %v24213_v16, %v20363_v39  ;;  %16132 = vmatprep.subr.mxu0 (%p5294_p5), %v20363_v39 }
 0x907   : >> { %v7735_v23 = vsel %vm3360_vm5, %v7734_v4, %v7730_v42  ;;  %16133 = vmatpush3.msra.mxu0 (%p5294_p5), %v20363_v39 }
 0x908   : >> { %v7553_v37 = vpop.xlane.xlu1 %7552  ;;  %v7766_v61 = vsel %vm3505_vm11, %v7735_v23, %v7764_v20  ;;  %v20399_v4 = vand.u32 (%p5294_p5), 4294901760, %v7955_v47  ;;  %16134 = vmatprep.subr.mxu0 (%p5294_p5), %v20366_v1 }
 0x909   : >> { %v7739_v44 = vrot.slane %v7553_v37, %v24207_v14  ;;  %v7748_v14 = vrot.slane %v7557_v19, %v24208_v59  ;;  %16135 = vmatpush3.msra.mxu0 (%p5294_p5), %v20366_v1 }
 0x90a   : > { %v7957_v27 = vsub.f32 (%p5294_p5), %v7955_v47, %v20399_v4  ;;  %16156 = vmatprep.subr.mxu0 (%p5294_p5), %v7941_v54 }
 0x90b   : >> { %v7744_v33 = vsel %vm3346_vm3, %v7743_v57, %v7739_v44  ;;  %v7943_v57 = vsub.f32 (%p5294_p5), %v7941_v54, %v20387_v22  ;;  %v7950_v44 = vsub.f32 (%p5294_p5), %v7948_v53, %v20392_v30 }
 0x90c   : >> { %v7559_v25 = vpop.xlane.xlu1 %7558  ;;  %v7749_v15 = vsel %vm3353_vm4, %v7748_v14, %v7744_v33 }
 0x90d   : >> { %v7753_v45 = vrot.slane %v7559_v25, %v24210_v48  ;;  %v7944_v42 = vand.u32 (%p5294_p5), 4294901760, %v7943_v57 }
 0x90f   : >> { %v7754_v3 = vsel %vm3360_vm5, %v7753_v45, %v7749_v15  ;;  %16142 = vmatprep.subr.mxu1 (%p5294_p5), %v7944_v42  ;;  %v7958_v45 = vand.u32 (%p5294_p5), 4294901760, %v7957_v27 }
 0x910   : >> { %v7768_v21 = vsel %vm3507_vm12, %v7754_v3, %v7766_v61  ;;  %16143 = vmatpush3.msra.mxu1 (%p5294_p5), %v7944_v42  ;;  %v7965_v3 = vand.u32 (%p5294_p5), 4294901760, %v7964_v52 }
 0x911   : >> { %v7770_v43 = vsel %vm7562_vm15, %v7768_v21, -1e+30 }
 0x912   : >> { %v7771_v59 = vsel %vm3511_vm14, %v7770_v43, -inf }
 0x913   : >> { %7772 = vmax.xlane.f32.xlu0 %v7771_v59  ;;  %v14451_v59 = vld [vmem:[%s23232_s4 + $0x1f8] sm:$0xff] (%p5294_p5) }
 0x99c   : >> { %v7773_v32 = vpop.xlane.xlu0 %7772 }
 0x99d   : >> { %v7774_v0 = vsub.f32 %v7770_v43, %v7773_v32  ;;  %v24215_v43 = vmov (%p5294_p5), 0.0   ;;  %v20473_v32 = vand.u32 (%p5294_p5), 4294901760, %v14451_v59 }
 0x99f   : >> { %v7775_v26 = vmul.f32 1.442695, %v7774_v0  ;;  %24216 = vst [vmem:[#allocation69_spill] sm:$0xff] (%p5294_p5), %v20473_v32  ;;  %v14450_v0 = vld [vmem:[%s23232_s4 + $0x1f0] sm:$0xff] (%p5294_p5) }
 0x9a1   : >> { %17094 = vpow2.f32 %v7775_v26  ;;  %v20478_v26 = vand.u32 (%p5294_p5), 4294901760, %v14450_v0 }
 0x9ae   : >> { %v17095_v48 = vpop.eup %17094 }
 0x9af   : >> { %v7777_v63 = vmul.f32 %v17095_v48, %v7561_v35  ;;  %v7951_v35 = vand.u32 (%p5294_p5), 4294901760, %v7950_v44  ;;  %v14449_v48 = vld [vmem:[%s23232_s4 + $0x1e8] sm:$0xff] (%p5294_p5)  ;;  %v14440_v44 = vld [vmem:[%s23232_s4 + $0x1a0] sm:$0xff] (%p5294_p5) }
 0x9b1   : >> { %v7778_v17 = vsel %vm3511_vm14, %v7777_v63, 0.0  ;;  %16144 = vmatprep.subr.mxu1 (%p5294_p5), %v7951_v35 }
 0x9b2   : >> { %7779 = vadd.xlane.f32.xlu1 %v7778_v17  ;;  %16145 = vmatpush3.msra.mxu1 (%p5294_p5), %v7951_v35  ;;  %v20486_v17 = vand.u32 (%p5294_p5), 4294901760, %v14449_v48 }
 0x9b3   : > { %16146 = vmatprep.subr.mxu1 (%p5294_p5), %v7958_v45 }
 0x9b4   : > { %16147 = vmatpush3.msra.mxu1 (%p5294_p5), %v7958_v45  ;;  %v20605_v45 = vand.u32 (%p5294_p5), 4294901760, %v14440_v44 }
 0x9b5   : > { %16148 = vmatprep.subr.mxu1 (%p5294_p5), %v7965_v3 }
 0x9b6   : > { %16149 = vmatpush3.msra.mxu1 (%p5294_p5), %v7965_v3 }
 0x9b7   : > { %16170 = vmatprep.subr.mxu1 (%p5294_p5), %v20357_v5 }
 0xa3b   : >> { %v7780_v12 = vpop.xlane.xlu1 %7779 }
 0xa3c   : >> { %v7781_v18 = vadd.f32 1e-16, %v7780_v12  ;;  %v14448_v12 = vld [vmem:[%s23232_s4 + $0x1e0] sm:$0xff] (%p5294_p5) }
 0xa3e   : >> { %17096 = vrcp.f32 %v7781_v18  ;;  %v20493_v18 = vsub.f32 (%p5294_p5), %v14450_v0, %v20478_v26 }
 0xa40   : > { %v23507_v16 = vand.u32 (%p5294_p5), 4294901760, %v20493_v18 }
 0xa4a   : > { %5296 = sbr.rel (!%p5294_p5) target bundleno = 1762 (0x6e2), region = 137 }
 0xa4b   : >> { %v17097_v24 = vpop.eup %17096 }
 0xa4c   : >> { %v7783_v56 = vmul.f32 %v17097_v24, %v7777_v63  ;;  %v20484_v63 = vsub.f32 (%p5294_p5), %v14451_v59, %v20473_v32  ;;  %v20495_v24 = vand.u32 (%p5294_p5), 4294901760, %v14448_v12  ;;  %v14436_v59 = vld [vmem:[%s23232_s4 + $0x180] sm:$0xff] (%p5294_p5) }
 0xa4e   : >> { %7785 = vst.msk [vmem:[%s7784_s15] sm:$0xff] %vm3511_vm14, %v7783_v56  ;;  %24217 = vst [vmem:[#allocation10_spill] sm:$0xff] (%p5294_p5), %v20484_v63  ;;  %v14447_v56 = vld [vmem:[%s23232_s4 + $0x1d8] sm:$0xff] (%p5294_p5)  ;;  %v23509_v51 = vand.u32 (%p5294_p5), 4294901760, %v20484_v63 }
 0xa4f   : > { %v20505_v58 = vand.u32 4294901760, %v14447_v56 }
 0xa55   : > { %v7786_v8 = vld [vmem:[#allocation2] sm:$0xff]  ;;  %v7787_v55 = vld [vmem:[#allocation2 + $0x8] sm:$0xff]  ;;  %v7788_v41 = vld [vmem:[#allocation2 + $0x10] sm:$0xff] }
 0xa56   : > { %v7795_v11 = vsel %vm3511_vm14, %v7786_v8, 0  ;;  %v7798_v50 = vsel %vm3511_vm14, %v7787_v55, 0  ;;  %v7789_v31 = vld [vmem:[#allocation2 + $0x18] sm:$0xff]  ;;  %v7801_v34 = vsel %vm3511_vm14, %v7788_v41, 0  ;;  %v8668_v8 = vsub.f32 %v20484_v63, %v23509_v51  ;;  %v14444_v41 = vld [vmem:[%s23232_s4 + $0x1c0] sm:$0xff] }
 0xa57   : > { %v20373_v9 = vand.u32 4294901760, %v7795_v11  ;;  %v20377_v38 = vand.u32 4294901760, %v7798_v50  ;;  %v7804_v6 = vsel %vm3511_vm14, %v7789_v31, 0  ;;  %v20401_v37 = vand.u32 4294901760, %v7801_v34 }
 0xa58   : > { %v20405_v40 = vand.u32 4294901760, %v7804_v6  ;;  %v8674_v31 = vsub.f32 %v20493_v18, %v23507_v16 }
 0xa59   : > { %v20390_v62 = vsub.f32 %v7795_v11, %v20373_v9  ;;  %v20395_v36 = vsub.f32 %v7798_v50, %v20377_v38  ;;  %16150 = vmatprep.mubr.f32.mxu1 %v20373_v9  ;;  %v20415_v49 = vsub.f32 %v7801_v34, %v20401_v37  ;;  %v20526_v11 = vsub.f32 %v14447_v56, %v20505_v58 }
 0xa5a   : > { %v20419_v28 = vsub.f32 %v7804_v6, %v20405_v40  ;;  %16151 = vmatmul.mubr.f32.vlgmr.msra.gmra.mxu1 %v20377_v38 }
 0xa5b   : > { %v7877_v19 = vand.u32 4294901760, %v20390_v62  ;;  %v7887_v7 = vand.u32 4294901760, %v20395_v36  ;;  %v7897_v23 = vand.u32 4294901760, %v20415_v49  ;;  %16171 = vmatpush3.msra.mxu1 %v20357_v5  ;;  %16153 = vmatprep.mubr.f32.mxu1 %v20401_v37 }
 0xa5c   : > { %v7907_v14 = vand.u32 4294901760, %v20419_v28  ;;  %16172 = vmatprep.subr.mxu1 %v20360_v10 }
 0xa5d   : > { %v7878_v33 = vsub.f32 %v20390_v62, %v7877_v19  ;;  %v7888_v2 = vsub.f32 %v20395_v36, %v7887_v7  ;;  %v7898_v20 = vsub.f32 %v20415_v49, %v7897_v23  ;;  %16173 = vmatpush3.msra.mxu1 %v20360_v10 }
 0xa5e   : > { %v7908_v15 = vsub.f32 %v20419_v28, %v7907_v14  ;;  %16154 = vmatmul.mubr.f32.gmra.mxu1 %v20405_v40  ;;  %16174 = vmatprep.subr.mxu1 %v20363_v39 }
 0xa5f   : > { %v7879_v25 = vand.u32 4294901760, %v7878_v33  ;;  %v7889_v60 = vand.u32 4294901760, %v7888_v2  ;;  %v7899_v61 = vand.u32 4294901760, %v7898_v20  ;;  %16175 = vmatpush3.msra.mxu1 %v20363_v39  ;;  %16178 = vmatprep.mubr.f32.mxu1 %v7877_v19  ;;  %v14437_v20 = vld [vmem:[%s23232_s4 + $0x188] sm:$0xff] }
 0xa60   : > { %v7909_v21 = vand.u32 4294901760, %v7908_v15  ;;  %16176 = vmatprep.subr.mxu1 %v20366_v1 }
 0xa61   : > { %16136 = vmatprep.mubr.f32.mxu0 %v7879_v25  ;;  %16177 = vmatpush3.msra.mxu1 %v20366_v1 }
 0xa62   : > { %16137 = vmatmul.mubr.f32.vlgmr.msra.gmra.mxu0 %v7889_v60  ;;  %16179 = vmatmul.mubr.f32.vlgmr.msra.gmra.mxu1 %v7887_v7 }
 0xa63   : > { %16157 = vmatpush3.msra.mxu0 %v7941_v54  ;;  %16139 = vmatprep.mubr.f32.mxu0 %v7899_v61 }
 0xa64   : > { %16158 = vmatprep.subr.mxu0 %v7948_v53  ;;  %16198 = vmatprep.subr.mxu1 %v20357_v5 }
 0xa65   : > { %16159 = vmatpush3.msra.mxu0 %v7948_v53  ;;  %16199 = vmatpush3.msra.mxu1 %v20357_v5  ;;  %v20503_v5 = vsub.f32 %v14449_v48, %v20486_v17  ;;  %v20541_v53 = vand.u32 4294901760, %v14444_v41 }
 0xa66   : > { %16140 = vmatmul.mubr.f32.gmra.mxu0 %v7909_v21  ;;  %16160 = vmatprep.subr.mxu0 %v7955_v47 }
 0xa67   : > { %16161 = vmatpush3.msra.mxu0 %v7955_v47  ;;  %16164 = vmatprep.mubr.f32.mxu0 %v20390_v62  ;;  %v23506_v55 = vand.u32 4294901760, %v20503_v5  ;;  %v8669_v47 = vand.u32 4294901760, %v8668_v8  ;;  %v8675_v62 = vand.u32 4294901760, %v8674_v31 }
 0xa68   : > { %16162 = vmatprep.subr.mxu0 %v7962_v13  ;;  %16200 = vmatprep.subr.mxu1 %v20360_v10 }
 0xa69   : > { %16163 = vmatpush3.msra.mxu0 %v7962_v13  ;;  %16181 = vmatprep.mubr.f32.mxu1 %v7897_v23  ;;  %v8680_v34 = vsub.f32 %v20503_v5, %v23506_v55  ;;  %v23503_v13 = vand.u32 4294901760, %v20526_v11  ;;  %v14438_v23 = vld [vmem:[%s23232_s4 + $0x190] sm:$0xff] }
 0xa6a   : > { %16165 = vmatmul.mubr.f32.vlgmr.msra.gmra.mxu0 %v20395_v36  ;;  %16184 = vmatprep.subr.mxu0 %v20387_v22  ;;  %v20625_v56 = vand.u32 4294901760, %v14438_v23 }
 0xa6b   : > { %16185 = vmatpush3.msra.mxu0 %v20387_v22  ;;  %16167 = vmatprep.mubr.f32.mxu0 %v20415_v49  ;;  %v14442_v22 = vld [vmem:[%s23232_s4 + $0x1b0] sm:$0xff] }
 0xa6c   : > { %16186 = vmatprep.subr.mxu0 %v20392_v30  ;;  %16201 = vmatpush3.msra.mxu1 %v20360_v10  ;;  %v14446_v10 = vld [vmem:[%s23232_s4 + $0x1d0] sm:$0xff]  ;;  %v20582_v52 = vand.u32 4294901760, %v14442_v22 }
 0xa6d   : > { %16187 = vmatpush3.msra.mxu0 %v20392_v30  ;;  %16182 = vmatmul.mubr.f32.gmra.mxu1 %v7907_v14  ;;  %v20515_v46 = vand.u32 4294901760, %v14446_v10 }
 0xa6e   : > { %16168 = vmatmul.mubr.f32.gmra.mxu0 %v20419_v28  ;;  %16188 = vmatprep.subr.mxu0 %v20399_v4  ;;  %v14439_v28 = vld [vmem:[%s23232_s4 + $0x198] sm:$0xff]  ;;  %v20603_v60 = vsub.f32 %v14442_v22, %v20582_v52 }
 0xa6f   : > { %16189 = vmatpush3.msra.mxu0 %v20399_v4  ;;  %16192 = vmatprep.mubr.f32.mxu0 %v20373_v9  ;;  %v20563_v4 = vsub.f32 %v14444_v41, %v20541_v53  ;;  %v20615_v21 = vand.u32 4294901760, %v14439_v28  ;;  %v20635_v41 = vand.u32 4294901760, %v14437_v20  ;;  %v14435_v22 = vld [vmem:[%s23232_s4 + $0x178] sm:$0xff] }
 0xa70   : > { %16190 = vmatprep.subr.mxu0 %v20403_v29  ;;  %16202 = vmatprep.subr.mxu1 %v20363_v39  ;;  %v23496_v48 = vand.u32 4294901760, %v20603_v60 }
 0xa71   : > { %16191 = vmatpush3.msra.mxu0 %v20403_v29  ;;  %16203 = vmatpush3.msra.mxu1 %v20363_v39  ;;  %v20513_v39 = vsub.f32 %v14448_v12, %v20495_v24  ;;  %v8681_v29 = vand.u32 4294901760, %v8680_v34  ;;  %v23498_v49 = vand.u32 4294901760, %v20563_v4  ;;  %v20623_v12 = vsub.f32 %v14440_v44, %v20605_v45 }
 0xa72   : > { %16193 = vmatmul.mubr.f32.vlgmr.msra.gmra.mxu0 %v20377_v38  ;;  %16206 = vmatprep.mubr.f32.mxu1 %v20373_v9  ;;  %v20539_v9 = vsub.f32 %v14446_v10, %v20515_v46  ;;  %v20633_v8 = vsub.f32 %v14439_v28, %v20615_v21  ;;  %v8722_v31 = vsub.f32 %v20603_v60, %v23496_v48  ;;  %v20645_v34 = vand.u32 4294901760, %v14436_v59 }
 0xa73   : > { %16195 = vmatprep.mubr.f32.mxu0 %v20401_v37  ;;  %16204 = vmatprep.subr.mxu1 %v20366_v1  ;;  %v23504_v54 = vand.u32 4294901760, %v20513_v39  ;;  %v8710_v25 = vsub.f32 %v20563_v4, %v23498_v49 }
 0xa74   : > { %16205 = vmatpush3.msra.mxu1 %v20366_v1  ;;  %8525 = vmatprep.subr.mxu0 %v20473_v32  ;;  %v14445_v1 = vld [vmem:[%s23232_s4 + $0x1c8] sm:$0xff]  ;;  %v23502_v36 = vand.u32 4294901760, %v20539_v9  ;;  %24218 = vst [vmem:[#allocation71_spill] sm:$0xff] %v20633_v8  ;;  %v8723_v44 = vand.u32 4294901760, %v8722_v31  ;;  %v20667_v28 = vsub.f32 %v14436_v59, %v20645_v34  ;;  %v14431_v31 = vld [vmem:[%s23232_s4 + $0x158] sm:$0xff] }
 0xa75   : > { %16207 = vmatmul.mubr.f32.vlgmr.msra.gmra.mxu1 %v20377_v38  ;;  %8527 = vmatpush1.msra.mxu0 %v20478_v26  ;;  %v20528_v50 = vand.u32 4294901760, %v14445_v1  ;;  %v14443_v38 = vld [vmem:[%s23232_s4 + $0x1b8] sm:$0xff]  ;;  %v8686_v30 = vsub.f32 %v20513_v39, %v23504_v54  ;;  %v8711_v0 = vand.u32 4294901760, %v8710_v25  ;;  %v20677_v25 = vand.u32 4294901760, %v14435_v22 }
 0xa76   : > { %16196 = vmatmul.mubr.f32.gmra.mxu0 %v20405_v40  ;;  %16209 = vmatprep.mubr.f32.mxu1 %v20401_v37  ;;  %v14441_v37 = vld [vmem:[%s23232_s4 + $0x1a8] sm:$0xff]  ;;  %v20573_v19 = vand.u32 4294901760, %v14443_v38  ;;  %v8698_v27 = vsub.f32 %v20539_v9, %v23502_v36  ;;  %24221 = vst [vmem:[#allocation62_spill] sm:$0xff] %v20667_v28 }
 0xa77   : > { %8620 = vmatprep.mubr.f32.mxu0 %v24215_v43  ;;  %8529 = vmatprep.subr.mxu0 %v20486_v17  ;;  %v20552_v6 = vsub.f32 %v14445_v1, %v20528_v50  ;;  %v8687_v7 = vand.u32 4294901760, %v8686_v30  ;;  %v20593_v2 = vand.u32 4294901760, %v14441_v37 }
 0xa78   : > { %8531 = vmatpush1.msra.mxu0 %v20495_v24  ;;  %8670 = vmatprep.subr.mxu1 %v8669_v47  ;;  %v20591_v35 = vsub.f32 %v14443_v38, %v20573_v19  ;;  %v8699_v14 = vand.u32 4294901760, %v8698_v27  ;;  %v23493_v38 = vand.u32 4294901760, %v20623_v12  ;;  %v20643_v47 = vsub.f32 %v14438_v23, %v20625_v56 }
 0xa79   : > { %16210 = vmatmul.mubr.f32.gmra.mxu1 %v20405_v40  ;;  %8533 = vmatprep.subr.mxu0 %v20505_v58  ;;  %v8692_v40 = vsub.f32 %v20526_v11, %v23503_v13  ;;  %v23500_v57 = vand.u32 4294901760, %v20552_v6  ;;  %v20613_v61 = vsub.f32 %v14441_v37, %v20593_v2  ;;  %v23491_v37 = vand.u32 4294901760, %v20633_v8 }
 0xa7a   : > { %8889 = vmatprep.mubr.f32.mxu1 %v24215_v43  ;;  %8535 = vmatpush1.msra.mxu0 %v20515_v46  ;;  %v23497_v3 = vand.u32 4294901760, %v20591_v35  ;;  %24219 = vst [vmem:[#allocation61_spill] sm:$0xff] %v20643_v47  ;;  %v23490_v27 = vand.u32 4294901760, %v20643_v47 }
 0xa7b   : > { %8537 = vmatprep.subr.mxu0 %v20528_v50  ;;  %8676 = vmatpush1.msra.mxu1 %v8675_v62  ;;  %v8693_v42 = vand.u32 4294901760, %v8692_v40  ;;  %v8704_v33 = vsub.f32 %v20552_v6, %v23500_v57  ;;  %v23494_v1 = vand.u32 4294901760, %v20613_v61  ;;  %v14434_v40 = vld [vmem:[%s23232_s4 + $0x170] sm:$0xff]  ;;  %v8740_v23 = vsub.f32 %v20633_v8, %v23491_v37 }
 0xa7c   : > { %8539 = vmatpush1.msra.mxu0 %v20541_v53  ;;  %8682 = vmatprep.subr.mxu1 %v8681_v29  ;;  %v8716_v10 = vsub.f32 %v20591_v35, %v23497_v3  ;;  %v20656_v29 = vsub.f32 %v14437_v20, %v20635_v41  ;;  %v14432_v20 = vld [vmem:[%s23232_s4 + $0x160] sm:$0xff]  ;;  %v8746_v59 = vsub.f32 %v20643_v47, %v23490_v27  ;;  %v14430_v27 = vld [vmem:[%s23232_s4 + $0x150] sm:$0xff] }
 0xa7d   : > { %8541 = vmatprep.subr.mxu0 %v20573_v19  ;;  %8688 = vmatpush1.msra.mxu1 %v8687_v7  ;;  %v8705_v15 = vand.u32 4294901760, %v8704_v33  ;;  %v8728_v30 = vsub.f32 %v20613_v61, %v23494_v1  ;;  %v8734_v7 = vsub.f32 %v20623_v12, %v23493_v38  ;;  %v20719_v1 = vand.u32 4294901760, %v14431_v31 }
 0xa7e   : > { %8543 = vmatpush1.msra.mxu0 %v20582_v52  ;;  %8694 = vmatprep.subr.mxu1 %v8693_v42  ;;  %v8717_v62 = vand.u32 4294901760, %v8716_v10  ;;  %24220 = vst [vmem:[#allocation74_spill] sm:$0xff] %v20656_v29  ;;  %v14433_v42 = vld [vmem:[%s23232_s4 + $0x168] sm:$0xff]  ;;  %v20686_v10 = vand.u32 4294901760, %v14434_v40  ;;  %v8747_v37 = vand.u32 4294901760, %v8746_v59 }
 0xa7f   : > { %8545 = vmatprep.subr.mxu0 %v20593_v2  ;;  %8700 = vmatpush1.msra.mxu1 %v8699_v14  ;;  %v8729_v33 = vand.u32 4294901760, %v8728_v30  ;;  %v23492_v14 = vand.u32 4294901760, %v20656_v29  ;;  %24225 = vst [vmem:[#allocation64_spill] sm:$0xff] %v20719_v1  ;;  %v20737_v49 = vsub.f32 %v14431_v31, %v20719_v1  ;;  %v14427_v31 = vld [vmem:[%s23232_s4 + $0x138] sm:$0xff] }
 0xa80   : > { %8547 = vmatpush1.msra.mxu0 %v20605_v45  ;;  %8706 = vmatprep.subr.mxu1 %v8705_v15  ;;  %v8735_v15 = vand.u32 4294901760, %v8734_v7  ;;  %v20697_v7 = vand.u32 4294901760, %v14433_v42 }
 0xa81   : > { %8549 = vmatprep.subr.mxu0 %v20615_v21  ;;  %8712 = vmatpush1.msra.mxu1 %v8711_v0  ;;  %v23495_v0 = vand.u32 4294901760, %v20667_v28  ;;  %v8752_v30 = vsub.f32 %v20656_v29, %v23492_v14  ;;  %v20709_v14 = vand.u32 4294901760, %v14432_v20  ;;  %24228 = vst [vmem:[#allocation81_spill] sm:$0xff] %v20737_v49 }
 0xa82   : > { %8551 = vmatpush1.msra.mxu0 %v20625_v56  ;;  %8718 = vmatprep.subr.mxu1 %v8717_v62  ;;  %v8741_v62 = vand.u32 4294901760, %v8740_v23  ;;  %v20707_v23 = vsub.f32 %v14434_v40, %v20686_v10  ;;  %v20717_v59 = vsub.f32 %v14433_v42, %v20697_v7  ;;  %v14428_v40 = vld [vmem:[%s23232_s4 + $0x140] sm:$0xff] }
 0xa83   : > { %8553 = vmatprep.subr.mxu0 %v20635_v41  ;;  %8724 = vmatpush1.msra.mxu1 %v8723_v44  ;;  %v20695_v44 = vsub.f32 %v14435_v22, %v20677_v25  ;;  %v14429_v22 = vld [vmem:[%s23232_s4 + $0x148] sm:$0xff]  ;;  %v8753_v38 = vand.u32 4294901760, %v8752_v30  ;;  %v20729_v30 = vand.u32 4294901760, %v14430_v27 }
 0xa84   : > { %8555 = vmatpush1.msra.mxu0 %v20645_v34  ;;  %8730 = vmatprep.subr.mxu1 %v8729_v33  ;;  %v8758_v33 = vsub.f32 %v20667_v28, %v23495_v0  ;;  %24223 = vst [vmem:[#allocation63_spill] sm:$0xff] %v20707_v23  ;;  %24224 = vst [vmem:[#allocation77_spill] sm:$0xff] %v20717_v59  ;;  %v23501_v48 = vand.u32 4294901760, %v20707_v23  ;;  %v23505_v3 = vand.u32 4294901760, %v20717_v59 }
 0xa85   : > { %24222 = vst [vmem:[#allocation75_spill] sm:$0xff] %v20695_v44  ;;  %8557 = vmatprep.subr.mxu0 %v20677_v25  ;;  %8736 = vmatpush1.msra.mxu1 %v8735_v15  ;;  %v23499_v15 = vand.u32 4294901760, %v20695_v44  ;;  %24227 = vst [vmem:[#allocation66_spill] sm:$0xff] %v20729_v30 }
 0xa86   : > { %8559 = vmatpush1.msra.mxu0 %v20686_v10  ;;  %8742 = vmatprep.subr.mxu1 %v8741_v62  ;;  %v8759_v0 = vand.u32 4294901760, %v8758_v33  ;;  %v20727_v62 = vsub.f32 %v14432_v20, %v20709_v14  ;;  %v8770_v20 = vsub.f32 %v20707_v23, %v23501_v48  ;;  %v20747_v33 = vsub.f32 %v14430_v27, %v20729_v30  ;;  %v14426_v27 = vld [vmem:[%s23232_s4 + $0x130] sm:$0xff] }
 0xa87   : > { %8561 = vmatprep.subr.mxu0 %v20697_v7  ;;  %8748 = vmatpush1.msra.mxu1 %v8747_v37  ;;  %v8764_v42 = vsub.f32 %v20695_v44, %v23499_v15  ;;  %v20739_v37 = vand.u32 4294901760, %v14429_v22  ;;  %v20749_v15 = vand.u32 4294901760, %v14428_v40  ;;  %v23512_v48 = vand.u32 4294901760, %v20737_v49 }
 0xa88   : > { %24226 = vst [vmem:[#allocation79_spill] sm:$0xff] %v20727_v62  ;;  %8563 = vmatpush1.msra.mxu0 %v20709_v14  ;;  %8754 = vmatprep.subr.mxu1 %v8753_v38  ;;  %v23508_v38 = vand.u32 4294901760, %v20727_v62  ;;  %24230 = vst [vmem:[#allocation83_spill] sm:$0xff] %v20747_v33  ;;  %v8771_v13 = vand.u32 4294901760, %v8770_v20  ;;  %v23517_v54 = vand.u32 4294901760, %v20747_v33 }
 0xa89   : > { %24229 = vst [vmem:[#allocation68_spill] sm:$0xff] %v20739_v37  ;;  %8565 = vmatprep.subr.mxu0 %v20719_v1  ;;  %8760 = vmatpush1.msra.mxu1 %v8759_v0  ;;  %24231 = vst [vmem:[#allocation70_spill] sm:$0xff] %v20749_v15  ;;  %v8765_v57 = vand.u32 4294901760, %v8764_v42  ;;  %v8776_v0 = vsub.f32 %v20717_v59, %v23505_v3  ;;  %v20760_v36 = vsub.f32 %v14429_v22, %v20739_v37  ;;  %v14425_v22 = vld [vmem:[%s23232_s4 + $0x128] sm:$0xff] }
 0xa8a   : > { %8567 = vmatpush1.msra.mxu0 %v20729_v30  ;;  %v8782_v42 = vsub.f32 %v20727_v62, %v23508_v38  ;;  %v20771_v3 = vsub.f32 %v14428_v40, %v20749_v15  ;;  %v8788_v20 = vsub.f32 %v20737_v49, %v23512_v48  ;;  %v20781_v38 = vand.u32 4294901760, %v14427_v31  ;;  %v14424_v40 = vld [vmem:[%s23232_s4 + $0x120] sm:$0xff]  ;;  %v14423_v48 = vld [vmem:[%s23232_s4 + $0x118] sm:$0xff] }
 0xa8b   : > { %24232 = vst [vmem:[#allocation85_spill] sm:$0xff] %v20760_v36  ;;  %8569 = vmatprep.subr.mxu0 %v20739_v37  ;;  %8766 = vmatprep.subr.mxu1 %v8765_v57  ;;  %v8777_v55 = vand.u32 4294901760, %v8776_v0  ;;  %v8794_v62 = vsub.f32 %v20747_v33, %v23517_v54  ;;  %v20790_v0 = vand.u32 4294901760, %v14426_v27  ;;  %v24236_v49 = vand.u32 4294901760, %v20760_v36  ;;  %v14422_v54 = vld [vmem:[%s23232_s4 + $0x110] sm:$0xff] }
 0xa8c   : > { %24233 = vst [vmem:[#allocation72_spill] sm:$0xff] %v20771_v3  ;;  %8571 = vmatpush1.msra.mxu0 %v20749_v15  ;;  %24234 = vst [vmem:[#allocation73_spill] sm:$0xff] %v20781_v38  ;;  %8772 = vmatpush1.msra.mxu1 %v8771_v13  ;;  %v8783_v51 = vand.u32 4294901760, %v8782_v42  ;;  %v8789_v16 = vand.u32 4294901760, %v8788_v20  ;;  %v20799_v13 = vsub.f32 %v14427_v31, %v20781_v38  ;;  %v20801_v42 = vand.u32 4294901760, %v14425_v22  ;;  %v14421_v31 = vld [vmem:[%s23232_s4 + $0x108] sm:$0xff] }
 0xa8d   : > { %24235 = vst [vmem:[#allocation4_spill] sm:$0xff] %v20790_v0  ;;  %8778 = vmatprep.subr.mxu1 %v8777_v55  ;;  %v8800_v59 = vsub.f32 %v20760_v36, %v24236_v49  ;;  %8573 = vmatprep.subr.mxu0 %v20781_v38  ;;  %v8795_v57 = vand.u32 4294901760, %v8794_v62  ;;  %v24239_v55 = vand.u32 4294901760, %v20771_v3  ;;  %v20811_v33 = vsub.f32 %v14426_v27, %v20790_v0  ;;  %v14420_v27 = vld [vmem:[%s23232_s4 + $0x100] sm:$0xff] }
 0xa8e   : > { %24237 = vst [vmem:[#allocation78_spill] sm:$0xff] %v20799_v13  ;;  %24238 = vst [vmem:[#allocation80_spill] sm:$0xff] %v20801_v42  ;;  %8784 = vmatpush1.msra.mxu1 %v8783_v51  ;;  %v20813_v49 = vand.u32 4294901760, %v14424_v40  ;;  %8575 = vmatpush1.msra.mxu0 %v20790_v0  ;;  %v23530_v51 = vand.u32 4294901760, %v20799_v13  ;;  %v20821_v62 = vsub.f32 %v14425_v22, %v20801_v42  ;;  %v20823_v23 = vand.u32 4294901760, %v14423_v48 }
 0xa8f   : > { %v8806_v20 = vsub.f32 %v20771_v3, %v24239_v55  ;;  %24240 = vst [vmem:[#allocation82_spill] sm:$0xff] %v20811_v33  ;;  %8790 = vmatprep.subr.mxu1 %v8789_v16  ;;  %v8801_v36 = vand.u32 4294901760, %v8800_v59  ;;  %8577 = vmatprep.subr.mxu0 %v20801_v42  ;;  %v23537_v3 = vand.u32 4294901760, %v20811_v33  ;;  %v20833_v59 = vand.u32 4294901760, %v14422_v54 }
 0xa90   : > { %24241 = vst [vmem:[#allocation84_spill] sm:$0xff] %v20813_v49  ;;  %24242 = vst [vmem:[#allocation89_spill] sm:$0xff] %v20821_v62  ;;  %8796 = vmatpush1.msra.mxu1 %v8795_v57  ;;  %v20831_v16 = vsub.f32 %v14424_v40, %v20813_v49  ;;  %8579 = vmatpush1.msra.mxu0 %v20813_v49  ;;  %v8812_v22 = vsub.f32 %v20799_v13, %v23530_v51  ;;  %v20843_v57 = vand.u32 4294901760, %v14421_v31  ;;  %v20849_v40 = vld [vmem:[%s23234_s6 + $0x12] ss:$0 sm:$0xff] }
 0xa91   : > { %24243 = vst [vmem:[#allocation92_spill] sm:$0xff] %v20823_v23  ;;  %v8807_v55 = vand.u32 4294901760, %v8806_v20  ;;  %24245 = vst [vmem:[#allocation9_spill] sm:$0xff] %v20833_v59  ;;  %8802 = vmatprep.subr.mxu1 %v8801_v36  ;;  %v20841_v42 = vsub.f32 %v14423_v48, %v20823_v23  ;;  %8581 = vmatprep.subr.mxu0 %v20823_v23  ;;  %v20854_v36 = vld [vmem:[%s23234_s6 + $0x13] ss:$0 sm:$0xff]  ;;  %v8818_v48 = vsub.f32 %v20811_v33, %v23537_v3 }
 0xa92   : > { %24244 = vst [vmem:[#allocation94_spill] sm:$0xff] %v20831_v16  ;;  %24247 = vst [vmem:[#allocation76_spill] sm:$0xff] %v20843_v57  ;;  %v23542_v20 = vand.u32 4294901760, %v20831_v16  ;;  %v20861_v51 = vsub.f32 %v14422_v54, %v20833_v59  ;;  %v20863_v0 = vand.u32 4294901760, %v14420_v27  ;;  %8583 = vmatpush1.msra.mxu0 %v20833_v59  ;;  %v24252_v13 = vand.u32 4294901760, %v20821_v62 }
 0xa93   : > { %24246 = vst [vmem:[#allocation93_spill] sm:$0xff] %v20841_v42  ;;  %24248 = vst [vmem:[#allocation5_spill] sm:$0xff] %v20849_v40  ;;  %8808 = vmatpush1.msra.mxu1 %v8807_v55  ;;  %v8813_v40 = vand.u32 4294901760, %v8812_v22  ;;  %v23545_v55 = vand.u32 4294901760, %v20841_v42  ;;  %8585 = vmatprep.subr.mxu0 %v20843_v57  ;;  %v8819_v3 = vand.u32 4294901760, %v8818_v48 }
 0xa94   : > { %24249 = vst [vmem:[#allocation8_spill] sm:$0xff] %v20854_v36  ;;  %24250 = vst [vmem:[#allocation6_spill] sm:$0xff] %v20861_v51  ;;  %v8824_v23 = vsub.f32 %v20821_v62, %v24252_v13  ;;  %v20871_v36 = vsub.f32 %v14421_v31, %v20843_v57  ;;  %v8830_v54 = vsub.f32 %v20831_v16, %v23542_v20  ;;  %v23546_v33 = vand.u32 4294901760, %v20861_v51 }
 0xa95   : > { %24251 = vst [vmem:[#allocation7_spill] sm:$0xff] %v20863_v0  ;;  %v20879_v22 = vsub.f32 %v14420_v27, %v20863_v0  ;;  %8587 = vmatpush1.msra.mxu0 %v20863_v0  ;;  %8814 = vmatprep.subr.mxu1 %v8813_v40  ;;  %v8836_v31 = vsub.f32 %v20841_v42, %v23545_v55 }
 0xa96   : > { %24253 = vst [vmem:[#allocation11_spill] sm:$0xff] %v20871_v36  ;;  %v8825_v13 = vand.u32 4294901760, %v8824_v23  ;;  %v23550_v62 = vand.u32 4294901760, %v20871_v36  ;;  %8920 = vmatprep.subr.mxu0 %v20484_v63  ;;  %8820 = vmatpush1.msra.mxu1 %v8819_v3  ;;  %v8831_v48 = vand.u32 4294901760, %v8830_v54  ;;  %v8842_v20 = vsub.f32 %v20861_v51, %v23546_v33 }
 0xa97   : > { %24254 = vst [vmem:[#allocation13_spill] sm:$0xff] %v20879_v22  ;;  %v23557_v27 = vand.u32 4294901760, %v20879_v22  ;;  %v8837_v16 = vand.u32 4294901760, %v8836_v31 }
 0xa98   : > { %8826 = vmatprep.subr.mxu1 %v8825_v13  ;;  %v8848_v23 = vsub.f32 %v20871_v36, %v23550_v62  ;;  %v8843_v40 = vand.u32 4294901760, %v8842_v20 }
 0xa99   : > { %8832 = vmatpush1.msra.mxu1 %v8831_v48  ;;  %v8854_v55 = vsub.f32 %v20879_v22, %v23557_v27  ;;  %v24255_v27 = vld [vmem:[#allocation87_spill] sm:$0xff] }
 0xa9a   : > { %8838 = vmatprep.subr.mxu1 %v8837_v16  ;;  %v8849_v3 = vand.u32 4294901760, %v8848_v23 }
 0xa9b   : > { %8844 = vmatpush1.msra.mxu1 %v8843_v40  ;;  %v8855_v54 = vand.u32 4294901760, %v8854_v55 }
 0xa9c   : > { %8850 = vmatprep.subr.mxu1 %v8849_v3 }
 0xa9d   : > { %8856 = vmatpush1.msra.mxu1 %v8855_v54 }
 0xa9e   : > { %9080 = vmatprep.subr.mxu1 %v20473_v32 }
 0xb1a   : > { %v16152_v63 = vpop.f32.mrf.mxu1 }
 0xb1c   : > { %v8002_v62 = vpop.f32.mrf.mxu1 }
 0xb1e   : > { %v16155_v20 = vpop.f32.mrf.mxu1 }
 0xb20   : > { %v8014_v42 = vpop.f32.mrf.mxu1 }
 0xb22   : > { %v16138_v13 = vpop.f32.mrf.mxu0  ;;  %v16180_v55 = vpop.f32.mrf.mxu1 }
 0xb23   : > { %v7892_v16 = vadd.f32 %v16138_v13, %v24255_v27 }
 0xb24   : > { %v7881_v31 = vpop.f32.mrf.mxu0  ;;  %v8198_v54 = vpop.f32.mrf.mxu1 }
 0xb25   : > { %v7882_v23 = vadd.f32 %v24255_v27, %v7881_v31  ;;  %v8009_v32 = vadd.f32 %v16152_v63, %v7892_v16 }
 0xb26   : > { %v16141_v33 = vpop.f32.mrf.mxu0 }
 0xb27   : > { %v8003_v3 = vadd.f32 %v8002_v62, %v7882_v23  ;;  %v7912_v22 = vadd.f32 %v16141_v33, %v24255_v27 }
 0xb28   : > { %v7901_v51 = vpop.f32.mrf.mxu0 }
 0xb29   : > { %v7902_v57 = vadd.f32 %v24255_v27, %v7901_v51  ;;  %v8021_v29 = vadd.f32 %v16155_v20, %v7912_v22 }
 0xb2a   : > { %v16166_v48 = vpop.f32.mrf.mxu0 }
 0xb2b   : > { %v8015_v44 = vadd.f32 %v8014_v42, %v7902_v57  ;;  %v8108_v15 = vadd.f32 %v16166_v48, %v8009_v32 }
 0xb2c   : > { %v8100_v36 = vpop.f32.mrf.mxu0 }
 0xb2d   : > { %v8101_v49 = vadd.f32 %v8100_v36, %v8003_v3  ;;  %v16183_v38 = vpop.f32.mrf.mxu1  ;;  %v8207_v31 = vadd.f32 %v16180_v55, %v8108_v15 }
 0xb2e   : > { %v16169_v0 = vpop.f32.mrf.mxu0 }
 0xb2f   : > { %v8199_v37 = vadd.f32 %v8198_v54, %v8101_v49  ;;  %v8214_v13 = vpop.f32.mrf.mxu1  ;;  %v8122_v62 = vadd.f32 %v16169_v0, %v8021_v29 }
 0xb30   : > { %v8114_v40 = vpop.f32.mrf.mxu0 }
 0xb31   : > { %v8115_v30 = vadd.f32 %v8114_v40, %v8015_v44  ;;  %v8223_v51 = vadd.f32 %v16183_v38, %v8122_v62  ;;  %v24257_v40 = vld [vmem:[#allocation39_spill] sm:$0xff] }
 0xb32   : > { %v16194_v59 = vpop.f32.mrf.mxu0 }
 0xb33   : > { %v8215_v8 = vadd.f32 %v8214_v13, %v8115_v30  ;;  %v8312_v16 = vadd.f32 %v16194_v59, %v8207_v31  ;;  %v24256_v59 = vld [vmem:[#allocation91_spill] sm:$0xff] }
 0xb34   : > { %v8305_v28 = vpop.f32.mrf.mxu0 }
 0xb35   : > { %v16208_v1 = vpop.f32.mrf.mxu1  ;;  %v8306_v23 = vadd.f32 %v8305_v28, %v8199_v37 }
 0xb36   : > { %v16197_v47 = vpop.f32.mrf.mxu0  ;;  %v8405_v42 = vadd.f32 %v16208_v1, %v8312_v16 }
 0xb37   : > { %v8398_v63 = vpop.f32.mrf.mxu1  ;;  %v8324_v32 = vadd.f32 %v16197_v47, %v8223_v51 }
 0xb38   : > { %v8317_v33 = vpop.f32.mrf.mxu0  ;;  %v8399_v27 = vadd.f32 %v8398_v63, %v8306_v23 }
 0xb39   : > { %v16211_v36 = vpop.f32.mrf.mxu1  ;;  %v8318_v57 = vadd.f32 %v8317_v33, %v8215_v8 }
 0xb3a   : > { %v8420_v22 = vadd.f32 %v8405_v42, %v8399_v27  ;;  %v8417_v48 = vadd.f32 %v16211_v36, %v8324_v32 }
 0xb3b   : > { %v8410_v3 = vpop.f32.mrf.mxu1 }
 0xb3c   : > { %v8411_v49 = vadd.f32 %v8410_v3, %v8318_v57 }
 0xb3e   : > { %v8421_v20 = vadd.f32 %v8420_v22, %v8411_v49 }
 0xb40   : > { %v8422_v15 = vadd.f32 %v8421_v20, %v8417_v48 }
 0xb42   : > { %v8423_v44 = vrot.slane %v8422_v15, 4 }
 0xb44   : > { %v8424_v55 = vadd.f32 %v8423_v44, %v8422_v15 }
 0xb46   : > { %v8425_v29 = vrot.slane %v8424_v55, 2 }
 0xb48   : > { %v8426_v28 = vadd.f32 %v8425_v29, %v8424_v55 }
 0xb4a   : > { %v8427_v30 = vrot.slane %v8426_v28, 1 }
 0xb4c   : > { %v8428_v37 = vadd.f32 %v8427_v30, %v8426_v28 }
 0xb4e   : > { %v8429_v0 = vmul.f32 0.03125, %v8428_v37 }
 0xb50   : > { %v8430_v38 = vmul.f32 %v8429_v0, %v24256_v59  ;;  %v24259_v59 = vld [vmem:[#allocation90_spill] sm:$0xff] }
 0xb52   : > { %v8434_v54 = vrot.slane %v8430_v38, %v24257_v40 }
 0xb54   : > { %v8435_v1 = vsub.f32 %v8399_v27, %v8434_v54  ;;  %v8436_v8 = vsub.f32 %v8405_v42, %v8434_v54  ;;  %v8437_v13 = vsub.f32 %v8411_v49, %v8434_v54  ;;  %v8438_v47 = vsub.f32 %v8417_v48, %v8434_v54  ;;  %v24258_v27 = vld [vmem:[#allocation88_spill] sm:$0xff] }
 0xb56   : > { %v8439_v31 = vmul.f32 %v8435_v1, %v8435_v1  ;;  %v8440_v62 = vmul.f32 %v8436_v8, %v8436_v8  ;;  %v8441_v23 = vmul.f32 %v8437_v13, %v8437_v13  ;;  %v8442_v63 = vmul.f32 %v8438_v47, %v8438_v47 }
 0xb57   : > { %v8457_v42 = vmul.f32 %v24258_v27, %v8435_v1  ;;  %v8458_v49 = vmul.f32 %v24258_v27, %v8436_v8  ;;  %v8459_v48 = vmul.f32 %v24258_v27, %v8437_v13  ;;  %v8460_v29 = vmul.f32 %v24258_v27, %v8438_v47 }
 0xb58   : > { %v8443_v33 = vadd.f32 %v8440_v62, %v8439_v31 }
 0xb5a   : > { %v8444_v16 = vadd.f32 %v8443_v33, %v8441_v23 }
 0xb5c   : > { %v8445_v51 = vadd.f32 %v8444_v16, %v8442_v63 }
 0xb5e   : > { %v8446_v36 = vrot.slane %v8445_v51, 4 }
 0xb60   : > { %v8447_v57 = vadd.f32 %v8446_v36, %v8445_v51 }
 0xb62   : > { %v8448_v3 = vrot.slane %v8447_v57, 2 }
 0xb64   : > { %v8449_v32 = vadd.f32 %v8448_v3, %v8447_v57 }
 0xb66   : > { %v8450_v22 = vrot.slane %v8449_v32, 1 }
 0xb68   : > { %v8451_v20 = vadd.f32 %v8450_v22, %v8449_v32 }
 0xb6a   : > { %v8452_v15 = vmul.f32 0.03125, %v8451_v20 }
 0xb6c   : > { %v8461_v44 = vadd.f32 1e-05, %v8452_v15 }
 0xb6e   : > { %17098 = vrsqrt.f32 %v8461_v44 }
 0xb7b   : > { %v17099_v55 = vpop.eup %17098 }
 0xb7c   : > { %v8463_v28 = vmul.f32 %v17099_v55, %v8457_v42  ;;  %v8465_v30 = vmul.f32 %v17099_v55, %v8459_v48  ;;  %v8464_v37 = vmul.f32 %v17099_v55, %v8458_v49  ;;  %v8466_v0 = vmul.f32 %v17099_v55, %v8460_v29 }
 0xb7e   : > { %v8471_v38 = vadd.f32 %v24259_v59, %v8463_v28  ;;  %v8473_v40 = vadd.f32 %v24259_v59, %v8465_v30  ;;  %v8472_v54 = vadd.f32 %v24259_v59, %v8464_v37  ;;  %v8474_v13 = vadd.f32 %v24259_v59, %v8466_v0  ;;  %v24264_v59 = vld [vmem:[#allocation71_spill] sm:$0xff] }
 0xb80   : > { %v8481_v31 = vmul.f32 0.01, %v8473_v40  ;;  %vm8475_vm1 = vcmp.ge.f32.partialorder %v8471_v38, 0.0  ;;  %v8479_v1 = vmul.f32 0.01, %v8471_v38  ;;  %vm8476_vm2 = vcmp.ge.f32.partialorder %v8472_v54, 0.0 }
 0xb81   : > { %v8480_v8 = vmul.f32 0.01, %v8472_v54  ;;  %vm8477_vm13 = vcmp.ge.f32.partialorder %v8473_v40, 0.0  ;;  %v8482_v51 = vmul.f32 0.01, %v8474_v13  ;;  %vm8478_vm15 = vcmp.ge.f32.partialorder %v8474_v13, 0.0 }
 0xb82   : > { %v8483_v62 = vsel %vm8475_vm1, %v8471_v38, %v8479_v1  ;;  %v8485_v63 = vsel %vm8477_vm13, %v8473_v40, %v8481_v31  ;;  %v24265_v38 = vld [vmem:[#allocation64_spill] sm:$0xff]  ;;  %v24266_v40 = vld [vmem:[#allocation66_spill] sm:$0xff] }
 0xb83   : > { %v20912_v47 = vand.u32 4294901760, %v8483_v62  ;;  %v8484_v23 = vsel %vm8476_vm2, %v8472_v54, %v8480_v8  ;;  %v20927_v3 = vand.u32 4294901760, %v8485_v63  ;;  %v8486_v20 = vsel %vm8478_vm15, %v8474_v13, %v8482_v51  ;;  %v24267_v54 = vld [vmem:[#allocation61_spill] sm:$0xff]  ;;  %v24268_v31 = vld [vmem:[#allocation68_spill] sm:$0xff]  ;;  %v24269_v1 = vld [vmem:[#allocation74_spill] sm:$0xff] }
 0xb84   : > { %v20914_v33 = vand.u32 4294901760, %v8484_v23  ;;  %v20943_v27 = vand.u32 4294901760, %v8486_v20  ;;  %v24270_v8 = vld [vmem:[#allocation70_spill] sm:$0xff]  ;;  %v24275_v51 = vld [vmem:[#allocation63_spill] sm:$0xff] }
 0xb85   : > { %24260 = vst [vmem:[#allocation86_spill] sm:$0xff] %v20912_v47  ;;  %v20917_v16 = vsub.f32 %v8483_v62, %v20912_v47  ;;  %8891 = vmatmul.mubr.f32.vlgmr.msra.gmra.mxu1 %v20912_v47  ;;  %24262 = vst [vmem:[#allocation65_spill] sm:$0xff] %v20927_v3  ;;  %v20940_v44 = vsub.f32 %v8485_v63, %v20927_v3  ;;  %v24271_v13 = vld [vmem:[#allocation62_spill] sm:$0xff]  ;;  %v24272_v62 = vld [vmem:[#allocation73_spill] sm:$0xff] }
 0xb86   : > { %24261 = vst [vmem:[#allocation67_spill] sm:$0xff] %v20914_v33  ;;  %9082 = vmatpush1.msra.mxu1 %v20478_v26  ;;  %8896 = vmatprep.mubr.f32.mxu1 %v24215_v43  ;;  %v20923_v36 = vsub.f32 %v8484_v23, %v20914_v33  ;;  %24263 = vst [vmem:[#allocation12_spill] sm:$0xff] %v20943_v27  ;;  %v20957_v48 = vsub.f32 %v8486_v20, %v20943_v27  ;;  %v24273_v23 = vld [vmem:[#allocation75_spill] sm:$0xff]  ;;  %v24274_v63 = vld [vmem:[#allocation4_spill] sm:$0xff] }
 0xb87   : > { %9084 = vmatprep.subr.mxu1 %v20486_v17  ;;  %v23590_v57 = vand.u32 4294901760, %v20917_v16  ;;  %v23588_v49 = vand.u32 4294901760, %v20940_v44  ;;  %v24277_v20 = vld [vmem:[#allocation77_spill] sm:$0xff] }
 0xb88   : > { %9086 = vmatpush1.msra.mxu1 %v20495_v24  ;;  %v23589_v22 = vand.u32 4294901760, %v20923_v36  ;;  %v23587_v28 = vand.u32 4294901760, %v20957_v48  ;;  %v24292_v47 = vld [vmem:[#allocation89_spill] sm:$0xff] }
 0xb89   : > { %9088 = vmatprep.subr.mxu1 %v20505_v58  ;;  %8898 = vmatmul.mubr.f32.gmra.mxu1 %v20914_v33  ;;  %v8624_v32 = vsub.f32 %v20917_v16, %v23590_v57  ;;  %v8646_v29 = vsub.f32 %v20940_v44, %v23588_v49  ;;  %v24286_v49 = vld [vmem:[#allocation7_spill] sm:$0xff]  ;;  %v24288_v57 = vld [vmem:[#allocation78_spill] sm:$0xff] }
 0xb8a   : > { %9090 = vmatpush1.msra.mxu1 %v20515_v46  ;;  %8903 = vmatprep.mubr.f32.mxu1 %v24215_v43  ;;  %v8635_v42 = vsub.f32 %v20923_v36, %v23589_v22  ;;  %v8657_v37 = vsub.f32 %v20957_v48, %v23587_v28  ;;  %v24285_v28 = vld [vmem:[#allocation85_spill] sm:$0xff]  ;;  %v24287_v22 = vld [vmem:[#allocation72_spill] sm:$0xff]  ;;  %v24291_v33 = vld [vmem:[#allocation82_spill] sm:$0xff] }
 0xb8b   : > { %9092 = vmatprep.subr.mxu1 %v20528_v50  ;;  %v8625_v15 = vand.u32 4294901760, %v8624_v32  ;;  %v8647_v30 = vand.u32 4294901760, %v8646_v29  ;;  %v24276_v32 = vld [vmem:[#allocation80_spill] sm:$0xff]  ;;  %v24281_v29 = vld [vmem:[#allocation81_spill] sm:$0xff] }
 0xb8c   : > { %9094 = vmatpush1.msra.mxu1 %v20541_v53  ;;  %v8636_v55 = vand.u32 4294901760, %v8635_v42  ;;  %v8658_v0 = vand.u32 4294901760, %v8657_v37  ;;  %v24279_v42 = vld [vmem:[#allocation79_spill] sm:$0xff] }
 0xb8d   : > { %9096 = vmatprep.subr.mxu1 %v20573_v19  ;;  %8626 = vmatmul.mubr.f32.vlgmr.msra.gmra.mxu0 %v8625_v15  ;;  %v24278_v15 = vld [vmem:[#allocation84_spill] sm:$0xff]  ;;  %v24283_v37 = vld [vmem:[#allocation83_spill] sm:$0xff] }
 0xb8e   : > { %8905 = vmatmul.mubr.f32.gmra.mxu1 %v20927_v3  ;;  %8923 = vmatpush1.msra.mxu0 %v20493_v18  ;;  %v24290_v3 = vld [vmem:[#allocation69_spill] sm:$0xff] }
 0xb8f   : > { %9098 = vmatpush1.msra.mxu1 %v20582_v52  ;;  %8926 = vmatprep.subr.mxu0 %v20503_v5 }
 0xb90   : > { %9100 = vmatprep.subr.mxu1 %v20593_v2  ;;  %8929 = vmatpush1.msra.mxu0 %v20513_v39 }
 0xb91   : > { %9102 = vmatpush1.msra.mxu1 %v20605_v45  ;;  %8631 = vmatprep.mubr.f32.mxu0 %v24215_v43 }
 0xb92   : > { %8910 = vmatprep.mubr.f32.mxu1 %v24215_v43  ;;  %8932 = vmatprep.subr.mxu0 %v20526_v11 }
 0xb93   : > { %9104 = vmatprep.subr.mxu1 %v20615_v21  ;;  %8637 = vmatmul.mubr.f32.gmra.mxu0 %v8636_v55  ;;  %v24280_v55 = vld [vmem:[#allocation92_spill] sm:$0xff] }
 0xb94   : > { %8912 = vmatmul.mubr.f32.gmra.mxu1 %v20943_v27  ;;  %8935 = vmatpush1.msra.mxu0 %v20539_v9  ;;  %v24289_v27 = vand.u32 4294901760, %v20917_v16 }
 0xb95   : > { %9106 = vmatpush1.msra.mxu1 %v20625_v56  ;;  %8938 = vmatprep.subr.mxu0 %v20552_v6 }
 0xb96   : > { %9108 = vmatprep.subr.mxu1 %v20635_v41  ;;  %8941 = vmatpush1.msra.mxu0 %v20563_v4 }
 0xb97   : > { %9110 = vmatpush1.msra.mxu1 %v20645_v34  ;;  %8642 = vmatprep.mubr.f32.mxu0 %v24215_v43 }
 0xb98   : > { %8944 = vmatprep.subr.mxu0 %v20591_v35  ;;  %9112 = vmatprep.subr.mxu1 %v20677_v25 }
 0xb99   : > { %8648 = vmatmul.mubr.f32.gmra.mxu0 %v8647_v30  ;;  %9114 = vmatpush1.msra.mxu1 %v20686_v10  ;;  %v24282_v30 = vld [vmem:[#allocation9_spill] sm:$0xff] }
 0xb9a   : > { %8947 = vmatpush1.msra.mxu0 %v20603_v60  ;;  %9116 = vmatprep.subr.mxu1 %v20697_v7 }
 0xb9b   : > { %8950 = vmatprep.subr.mxu0 %v20613_v61  ;;  %9118 = vmatpush1.msra.mxu1 %v20709_v14 }
 0xb9c   : > { %8953 = vmatpush1.msra.mxu0 %v20623_v12  ;;  %8653 = vmatprep.mubr.f32.mxu0 %v24215_v43 }
 0xb9d   : > { %8956 = vmatprep.subr.mxu0 %v24264_v59  ;;  %9120 = vmatprep.subr.mxu1 %v24265_v38 }
 0xb9e   : > { %8659 = vmatmul.mubr.f32.gmra.mxu0 %v8658_v0  ;;  %9122 = vmatpush1.msra.mxu1 %v24266_v40  ;;  %v24284_v0 = vld [vmem:[#allocation76_spill] sm:$0xff] }
 0xb9f   : > { %8959 = vmatpush1.msra.mxu0 %v24267_v54  ;;  %9124 = vmatprep.subr.mxu1 %v24268_v31 }
 0xba0   : > { %8962 = vmatprep.subr.mxu0 %v24269_v1  ;;  %9126 = vmatpush1.msra.mxu1 %v24270_v8 }
 0xba1   : > { %8965 = vmatpush1.msra.mxu0 %v24271_v13  ;;  %9128 = vmatprep.subr.mxu1 %v24272_v62 }
 0xba2   : > { %8968 = vmatprep.subr.mxu0 %v24273_v23  ;;  %9130 = vmatpush1.msra.mxu1 %v24274_v63 }
 0xba3   : > { %8971 = vmatpush1.msra.mxu0 %v24275_v51  ;;  %9132 = vmatprep.subr.mxu1 %v24276_v32 }
 0xba4   : > { %8974 = vmatprep.subr.mxu0 %v24277_v20  ;;  %9134 = vmatpush1.msra.mxu1 %v24278_v15 }
 0xba5   : > { %8977 = vmatpush1.msra.mxu0 %v24279_v42  ;;  %9136 = vmatprep.subr.mxu1 %v24280_v55 }
 0xba6   : > { %8980 = vmatprep.subr.mxu0 %v24281_v29  ;;  %9138 = vmatpush1.msra.mxu1 %v24282_v30 }
 0xba7   : > { %8983 = vmatpush1.msra.mxu0 %v24283_v37  ;;  %9140 = vmatprep.subr.mxu1 %v24284_v0 }
 0xba8   : > { %8986 = vmatprep.subr.mxu0 %v24285_v28  ;;  %9142 = vmatpush1.msra.mxu1 %v24286_v49  ;;  %v24293_v49 = vld [vmem:[#allocation94_spill] sm:$0xff] }
 0xba9   : > { %8989 = vmatpush1.msra.mxu0 %v24287_v22  ;;  %9175 = vmatprep.mubr.f32.mxu1 %v24215_v43 }
 0xbaa   : > { %8992 = vmatprep.subr.mxu0 %v24288_v57  ;;  %9179 = vmatmul.mubr.f32.vlgmr.msra.gmra.mxu1 %v24289_v27  ;;  %v24294_v57 = vld [vmem:[#allocation93_spill] sm:$0xff]  ;;  %v24295_v27 = vand.u32 4294901760, %v20923_v36 }
 0xbab   : > { %9402 = vmatprep.subr.mxu1 %v24290_v3  ;;  %8995 = vmatpush1.msra.mxu0 %v24291_v33  ;;  %v24296_v3 = vld [vmem:[#allocation6_spill] sm:$0xff] }
 0xbac   : > { %9404 = vmatpush1.msra.mxu1 %v20478_v26  ;;  %8998 = vmatprep.subr.mxu0 %v24292_v47  ;;  %v24297_v26 = vld [vmem:[#allocation11_spill] sm:$0xff] }
 0xbad   : > { %9406 = vmatprep.subr.mxu1 %v20486_v17  ;;  %9001 = vmatpush1.msra.mxu0 %v24293_v49  ;;  %v24298_v17 = vld [vmem:[#allocation13_spill] sm:$0xff] }
 0xbae   : > { %9184 = vmatprep.mubr.f32.mxu1 %v24215_v43  ;;  %9408 = vmatpush1.msra.mxu1 %v20495_v24  ;;  %v24299_v24 = vand.u32 4294901760, %v20940_v44 }
 0xbaf   : > { %9004 = vmatprep.subr.mxu0 %v24294_v57  ;;  %9188 = vmatmul.mubr.f32.gmra.mxu1 %v24295_v27 }
 0xbb0   : > { %9410 = vmatprep.subr.mxu1 %v20505_v58  ;;  %9007 = vmatpush1.msra.mxu0 %v24296_v3  ;;  %v24300_v58 = vld [vmem:[#allocation10_spill] sm:$0xff] }
 0xbb1   : > { %9412 = vmatpush1.msra.mxu1 %v20515_v46  ;;  %9010 = vmatprep.subr.mxu0 %v24297_v26  ;;  %v24301_v27 = vand.u32 4294901760, %v24300_v58  ;;  %v24302_v46 = vand.u32 4294901760, %v20493_v18  ;;  %v24305_v18 = vand.u32 4294901760, %v20957_v48 }
 0xbb2   : > { %9414 = vmatprep.subr.mxu1 %v20528_v50  ;;  %9013 = vmatpush1.msra.mxu0 %v24298_v17  ;;  %v24303_v50 = vand.u32 4294901760, %v20503_v5  ;;  %v24307_v5 = vand.u32 4294901760, %v20539_v9  ;;  %v24311_v9 = vand.u32 4294901760, %v20603_v60  ;;  %v24316_v60 = vand.u32 4294901760, %v24269_v1 }
 0xbb3   : > { %9046 = vmatprep.mubr.f32.mxu0 %v24215_v43  ;;  %9193 = vmatprep.mubr.f32.mxu1 %v24215_v43 }
 0xbb4   : > { %9416 = vmatpush1.msra.mxu1 %v20541_v53  ;;  %9049 = vmatmul.mubr.f32.vlgmr.msra.gmra.mxu0 %v20917_v16  ;;  %v24304_v53 = vand.u32 4294901760, %v20513_v39  ;;  %v24308_v39 = vand.u32 4294901760, %v20552_v6  ;;  %v24312_v6 = vand.u32 4294901760, %v20613_v61  ;;  %v24318_v61 = vand.u32 4294901760, %v24273_v23 }
 0xbb5   : > { %9197 = vmatmul.mubr.f32.gmra.mxu1 %v24299_v24  ;;  %9215 = vmatprep.subr.mxu0 %v24301_v27 }
 0xbb6   : > { %9418 = vmatprep.subr.mxu1 %v20573_v19  ;;  %9219 = vmatpush1.msra.mxu0 %v24302_v46  ;;  %v24306_v19 = vand.u32 4294901760, %v20526_v11  ;;  %v24310_v11 = vand.u32 4294901760, %v20591_v35  ;;  %v24314_v35 = vand.u32 4294901760, %v24264_v59  ;;  %v24334_v59 = vld [vmem:[#allocation67_spill] sm:$0xff] }
 0xbb7   : > { %9420 = vmatpush1.msra.mxu1 %v20582_v52  ;;  %9223 = vmatprep.subr.mxu0 %v24303_v50  ;;  %v24309_v52 = vand.u32 4294901760, %v20563_v4  ;;  %v24313_v4 = vand.u32 4294901760, %v20623_v12  ;;  %v24320_v12 = vand.u32 4294901760, %v24277_v20 }
 0xbb8   : > { %9422 = vmatprep.subr.mxu1 %v20593_v2  ;;  %9054 = vmatprep.mubr.f32.mxu0 %v24215_v43  ;;  %v24315_v2 = vand.u32 4294901760, %v24267_v54 }
 0xbb9   : > { %9202 = vmatprep.mubr.f32.mxu1 %v24215_v43  ;;  %9227 = vmatpush1.msra.mxu0 %v24304_v53 }
 0xbba   : > { %9424 = vmatpush1.msra.mxu1 %v20605_v45  ;;  %9057 = vmatmul.mubr.f32.gmra.mxu0 %v20923_v36  ;;  %v24317_v45 = vand.u32 4294901760, %v24271_v13  ;;  %v24329_v36 = vld [vmem:[#allocation86_spill] sm:$0xff] }
 0xbbb   : > { %9206 = vmatmul.mubr.f32.gmra.mxu1 %v24305_v18  ;;  %9231 = vmatprep.subr.mxu0 %v24306_v19 }
 0xbbc   : > { %9426 = vmatprep.subr.mxu1 %v20615_v21  ;;  %9235 = vmatpush1.msra.mxu0 %v24307_v5  ;;  %v24319_v21 = vand.u32 4294901760, %v24275_v51 }
 0xbbd   : > { %9428 = vmatpush1.msra.mxu1 %v20625_v56  ;;  %9239 = vmatprep.subr.mxu0 %v24308_v39  ;;  %v24321_v56 = vand.u32 4294901760, %v24279_v42 }
 0xbbe   : > { %9430 = vmatprep.subr.mxu1 %v20635_v41  ;;  %9062 = vmatprep.mubr.f32.mxu0 %v24215_v43  ;;  %v24322_v41 = vand.u32 4294901760, %v24281_v29 }
 0xbbf   : > { %9243 = vmatpush1.msra.mxu0 %v24309_v52  ;;  %9432 = vmatpush1.msra.mxu1 %v20645_v34  ;;  %v24323_v34 = vand.u32 4294901760, %v24283_v37 }
 0xbc0   : > { %9065 = vmatmul.mubr.f32.gmra.mxu0 %v20940_v44  ;;  %9247 = vmatprep.subr.mxu0 %v24310_v11  ;;  %v24330_v44 = vand.u32 4294901760, %v24291_v33  ;;  %v24336_v33 = vand.u32 4294901760, %v24297_v26 }
 0xbc1   : > { %9434 = vmatprep.subr.mxu1 %v20677_v25  ;;  %9251 = vmatpush1.msra.mxu0 %v24311_v9  ;;  %v24325_v25 = vand.u32 4294901760, %v24287_v22  ;;  %v24332_v22 = vand.u32 4294901760, %v24293_v49  ;;  %v24338_v49 = vld [vmem:[#allocation65_spill] sm:$0xff] }
 0xbc2   : > { %9436 = vmatpush1.msra.mxu1 %v20686_v10  ;;  %9255 = vmatprep.subr.mxu0 %v24312_v6  ;;  %v24326_v10 = vld [vmem:[#allocation7_spill] sm:$0xff] }
 0xbc3   : > { %9438 = vmatprep.subr.mxu1 %v20697_v7  ;;  %9070 = vmatprep.mubr.f32.mxu0 %v24215_v43  ;;  %v24327_v7 = vld [vmem:[#allocation78_spill] sm:$0xff] }
 0xbc4   : > { %9259 = vmatpush1.msra.mxu0 %v24313_v4  ;;  %9440 = vmatpush1.msra.mxu1 %v20709_v14  ;;  %v24324_v14 = vand.u32 4294901760, %v24285_v28  ;;  %v24328_v16 = vand.u32 4294901760, %v24327_v7  ;;  %v24333_v28 = vand.u32 4294901760, %v24294_v57  ;;  %v24339_v57 = vld [vmem:[#allocation12_spill] sm:$0xff] }
 0xbc5   : > { %9073 = vmatmul.mubr.f32.gmra.mxu0 %v20957_v48  ;;  %9263 = vmatprep.subr.mxu0 %v24314_v35  ;;  %v24331_v48 = vand.u32 4294901760, %v24292_v47  ;;  %v24337_v47 = vand.u32 4294901760, %v24298_v17 }
 0xbc6   : > { %9442 = vmatprep.subr.mxu1 %v24265_v38  ;;  %9267 = vmatpush1.msra.mxu0 %v24315_v2  ;;  %v24335_v38 = vand.u32 4294901760, %v24296_v3 }
 0xbc7   : > { %9444 = vmatpush1.msra.mxu1 %v24266_v40  ;;  %9271 = vmatprep.subr.mxu0 %v24316_v60  ;;  %v21155_v40 = vld [vmem:[%s23233_s5 + $0x10] sm:$0xff] }
 0xbc8   : > { %9446 = vmatprep.subr.mxu1 %v24268_v31  ;;  %9275 = vmatpush1.msra.mxu0 %v24317_v45  ;;  %24340 = vst [vmem:[#allocation87_spill] sm:$0xff] %v21155_v40 }
 0xbc9   : > { %9448 = vmatpush1.msra.mxu1 %v24270_v8  ;;  %9279 = vmatprep.subr.mxu0 %v24318_v61 }
 0xbca   : > { %9450 = vmatprep.subr.mxu1 %v24272_v62  ;;  %9283 = vmatpush1.msra.mxu0 %v24319_v21 }
 0xbcb   : > { %9452 = vmatpush1.msra.mxu1 %v24274_v63  ;;  %9287 = vmatprep.subr.mxu0 %v24320_v12 }
 0xbcc   : > { %9454 = vmatprep.subr.mxu1 %v24276_v32  ;;  %9291 = vmatpush1.msra.mxu0 %v24321_v56 }
 0xbcd   : > { %9456 = vmatpush1.msra.mxu1 %v24278_v15  ;;  %9295 = vmatprep.subr.mxu0 %v24322_v41 }
 0xbce   : > { %9458 = vmatprep.subr.mxu1 %v24280_v55  ;;  %9299 = vmatpush1.msra.mxu0 %v24323_v34 }
 0xbcf   : > { %9460 = vmatpush1.msra.mxu1 %v24282_v30  ;;  %9303 = vmatprep.subr.mxu0 %v24324_v14 }
 0xbd0   : > { %9462 = vmatprep.subr.mxu1 %v24284_v0  ;;  %9307 = vmatpush1.msra.mxu0 %v24325_v25 }
 0xbd1   : > { %9464 = vmatpush1.msra.mxu1 %v24326_v10  ;;  %9497 = vmatprep.mubr.f32.mxu1 %v24215_v43 }
 0xbd2   : > { %9311 = vmatprep.subr.mxu0 %v24328_v16  ;;  %9499 = vmatmul.mubr.f32.vlgmr.msra.gmra.mxu1 %v24329_v36  ;;  %v14452_v16 = vld [vmem:[%s23234_s6 + $0x10] ss:$0 sm:$0xff] }
 0xbd3   : > { %9315 = vmatpush1.msra.mxu0 %v24330_v44  ;;  %9504 = vmatprep.mubr.f32.mxu1 %v24215_v43 }
 0xbd4   : > { %9319 = vmatprep.subr.mxu0 %v24331_v48  ;;  %9372 = vmatprep.mubr.f32.mxu0 %v24215_v43 }
 0xbd5   : > { %9323 = vmatpush1.msra.mxu0 %v24332_v22 }
 0xbd6   : > { %9327 = vmatprep.subr.mxu0 %v24333_v28  ;;  %9506 = vmatmul.mubr.f32.gmra.mxu1 %v24334_v59 }
 0xbd7   : > { %9331 = vmatpush1.msra.mxu0 %v24335_v38  ;;  %9511 = vmatprep.mubr.f32.mxu1 %v24215_v43 }
 0xbd8   : > { %9335 = vmatprep.subr.mxu0 %v24336_v33  ;;  %v14453_v33 = vld [vmem:[%s23234_s6 + $0x11] ss:$0 sm:$0xff] }
 0xbd9   : > { %9339 = vmatpush1.msra.mxu0 %v24337_v47 }
 0xbda   : > { %9374 = vmatmul.mubr.f32.vlgmr.msra.gmra.mxu0 %v24329_v36  ;;  %9513 = vmatmul.mubr.f32.gmra.mxu1 %v24338_v49 }
 0xbdb   : > { %9379 = vmatprep.mubr.f32.mxu0 %v24215_v43  ;;  %9518 = vmatprep.mubr.f32.mxu1 %v24215_v43 }
 0xbde   : > { %9381 = vmatmul.mubr.f32.gmra.mxu0 %v24334_v59  ;;  %9520 = vmatmul.mubr.f32.gmra.mxu1 %v24339_v57 }
 0xbdf   : > { %9386 = vmatprep.mubr.f32.mxu0 %v24215_v43 }
 0xbe2   : > { %9388 = vmatmul.mubr.f32.gmra.mxu0 %v24338_v49 }
 0xbe3   : > { %9393 = vmatprep.mubr.f32.mxu0 %v24215_v43 }
 0xbe6   : > { %9395 = vmatmul.mubr.f32.gmra.mxu0 %v24339_v57 }
 0xc45   : > { %v8892_v54 = vpop.f32.mrf.mxu1 }
 0xc47   : > { %v8894_v31 = vpop.f32.mrf.mxu1 }
 0xc49   : > { %v8899_v1 = vpop.f32.mrf.mxu1 }
 0xc4b   : > { %v8901_v13 = vpop.f32.mrf.mxu1 }
 0xc4d   : > { %v8627_v8 = vpop.f32.mrf.mxu0 }
 0xc4e   : > { %v8906_v23 = vpop.f32.mrf.mxu1  ;;  %v8893_v39 = vadd.f32 %v8892_v54, %v8627_v8 }
 0xc4f   : > { %v8629_v62 = vpop.f32.mrf.mxu0 }
 0xc50   : > { %v8908_v51 = vpop.f32.mrf.mxu1  ;;  %v8895_v9 = vadd.f32 %v8894_v31, %v8629_v62 }
 0xc53   : > { %v8638_v63 = vpop.f32.mrf.mxu0 }
 0xc54   : > { %v8913_v20 = vpop.f32.mrf.mxu1  ;;  %v8900_v35 = vadd.f32 %v8899_v1, %v8638_v63 }
 0xc55   : > { %v8640_v32 = vpop.f32.mrf.mxu0 }
 0xc56   : > { %v8915_v43 = vpop.f32.mrf.mxu1  ;;  %v8902_v45 = vadd.f32 %v8901_v13, %v8640_v32 }
 0xc59   : > { %v8649_v15 = vpop.f32.mrf.mxu0 }
 0xc5a   : > { %v8907_v12 = vadd.f32 %v8906_v23, %v8649_v15 }
 0xc5b   : > { %v8651_v42 = vpop.f32.mrf.mxu0 }
 0xc5c   : > { %v8909_v10 = vadd.f32 %v8908_v51, %v8651_v42 }
 0xc5e   : > { %v8660_v29 = vpop.f32.mrf.mxu0 }
 0xc5f   : > { %v8914_v28 = vadd.f32 %v8913_v20, %v8660_v29 }
 0xc60   : > { %v8662_v37 = vpop.f32.mrf.mxu0 }
 0xc61   : > { %v8916_v1 = vadd.f32 %v8915_v43, %v8662_v37 }
 0xc6a   : > { %v9180_v55 = vpop.f32.mrf.mxu1 }
 0xc6c   : > { %v9182_v30 = vpop.f32.mrf.mxu1 }
 0xc6f   : > { %v9189_v0 = vpop.f32.mrf.mxu1 }
 0xc71   : > { %v9191_v26 = vpop.f32.mrf.mxu1 }
 0xc74   : > { %v9050_v3 = vpop.f32.mrf.mxu0 }
 0xc75   : > { %v9198_v24 = vpop.f32.mrf.mxu1  ;;  %v9051_v6 = vadd.f32 %v9050_v3, %v8893_v39 }
 0xc76   : > { %v9052_v17 = vpop.f32.mrf.mxu0 }
 0xc77   : > { %v9200_v27 = vpop.f32.mrf.mxu1  ;;  %v9053_v2 = vadd.f32 %v9052_v17, %v8895_v9  ;;  %v9181_v21 = vadd.f32 %v9180_v55, %v9051_v6 }
 0xc79   : > { %v9183_v25 = vadd.f32 %v9182_v30, %v9053_v2 }
 0xc7a   : > { %v9058_v58 = vpop.f32.mrf.mxu0 }
 0xc7b   : > { %v9207_v50 = vpop.f32.mrf.mxu1  ;;  %v9059_v61 = vadd.f32 %v9058_v58, %v8900_v35 }
 0xc7c   : > { %v9060_v46 = vpop.f32.mrf.mxu0 }
 0xc7d   : > { %v21157_v18 = vpop.f32.mrf.mxu1  ;;  %v9061_v34 = vadd.f32 %v9060_v46, %v8902_v45  ;;  %v9190_v22 = vadd.f32 %v9189_v0, %v9059_v61 }
 0xc7f   : > { %v9192_v31 = vadd.f32 %v9191_v26, %v9061_v34 }
 0xc80   : > { %v9066_v53 = vpop.f32.mrf.mxu0 }
 0xc81   : > { %v9067_v7 = vadd.f32 %v9066_v53, %v8907_v12 }
 0xc82   : > { %v9068_v19 = vpop.f32.mrf.mxu0 }
 0xc83   : > { %v9069_v59 = vadd.f32 %v9068_v19, %v8909_v10  ;;  %v9199_v13 = vadd.f32 %v9198_v24, %v9067_v7 }
 0xc85   : > { %v9074_v52 = vpop.f32.mrf.mxu0  ;;  %v9201_v15 = vadd.f32 %v9200_v27, %v9069_v59 }
 0xc86   : > { %v9075_v62 = vadd.f32 %v9074_v52, %v8914_v28 }
 0xc87   : > { %v9076_v60 = vpop.f32.mrf.mxu0 }
 0xc88   : > { %v9077_v42 = vadd.f32 %v9076_v60, %v8916_v1  ;;  %v9208_v43 = vadd.f32 %v9207_v50, %v9075_v62 }
 0xc8a   : > { %v9210_v27 = vadd.f32 %v21157_v18, %v9077_v42 }
 0xc92   : > { %v9500_v5 = vpop.f32.mrf.mxu1 }
 0xc94   : > { %v9502_v11 = vpop.f32.mrf.mxu1 }
 0xc96   : > { %v9507_v4 = vpop.f32.mrf.mxu1 }
 0xc98   : > { %v9509_v56 = vpop.f32.mrf.mxu1 }
 0xc9a   : > { %v9375_v41 = vpop.f32.mrf.mxu0  ;;  %v9514_v38 = vpop.f32.mrf.mxu1 }
 0xc9b   : > { %v9376_v14 = vadd.f32 %v9375_v41, %v9181_v21 }
 0xc9c   : > { %v9377_v36 = vpop.f32.mrf.mxu0  ;;  %v9516_v32 = vpop.f32.mrf.mxu1 }
 0xc9d   : > { %v9501_v44 = vadd.f32 %v9500_v5, %v9376_v14  ;;  %v9378_v48 = vadd.f32 %v9377_v36, %v9183_v25 }
 0xc9e   : > { %v9382_v47 = vpop.f32.mrf.mxu0  ;;  %v9521_v37 = vpop.f32.mrf.mxu1 }
 0xc9f   : > { %v21165_v49 = vadd.f32 %v14452_v16, %v9501_v44  ;;  %v9503_v57 = vadd.f32 %v9502_v11, %v9378_v48  ;;  %v9383_v54 = vadd.f32 %v9382_v47, %v9190_v22 }
 0xca0   : > { %v9384_v8 = vpop.f32.mrf.mxu0  ;;  %v9523_v11 = vpop.f32.mrf.mxu1 }
 0xca1   : > { %24341 = vst [vmem:[#allocation91_spill] sm:$0xff] %v21165_v49  ;;  %v9538_v23 = vadd.f32 %v14453_v33, %v9503_v57  ;;  %v9508_v63 = vadd.f32 %v9507_v4, %v9383_v54  ;;  %v9385_v51 = vadd.f32 %v9384_v8, %v9192_v31 }
 0xca2   : > { %v9389_v20 = vpop.f32.mrf.mxu0 }
 0xca3   : > { %9542 = vst [vmem:[#allocation3] sm:$0xff] %v9538_v23  ;;  %v21167_v55 = vadd.f32 %v14452_v16, %v9508_v63  ;;  %v9510_v29 = vadd.f32 %v9509_v56, %v9385_v51  ;;  %v9390_v30 = vadd.f32 %v9389_v20, %v9199_v13 }
 0xca4   : > { %v9391_v0 = vpop.f32.mrf.mxu0 }
 0xca5   : > { %24342 = vst [vmem:[#allocation88_spill] sm:$0xff] %v21167_v55  ;;  %v9539_v3 = vadd.f32 %v14453_v33, %v9510_v29  ;;  %v9515_v17 = vadd.f32 %v9514_v38, %v9390_v30  ;;  %v9392_v26 = vadd.f32 %v9391_v0, %v9201_v15 }
 0xca6   : > { %v9396_v24 = vpop.f32.mrf.mxu0 }
 0xca7   : > { %9543 = vst [vmem:[#allocation3 + $0x8] sm:$0xff] %v9539_v3  ;;  %v21169_v58 = vadd.f32 %v14452_v16, %v9515_v17  ;;  %v9517_v46 = vadd.f32 %v9516_v32, %v9392_v26  ;;  %v9397_v53 = vadd.f32 %v9396_v24, %v9208_v43 }
 0xca8   : > { %v9398_v19 = vpop.f32.mrf.mxu0 }
 0xca9   : > { %24343 = vst [vmem:[#allocation90_spill] sm:$0xff] %v21169_v58  ;;  %v9540_v5 = vadd.f32 %v14453_v33, %v9517_v46  ;;  %v9522_v39 = vadd.f32 %v9521_v37, %v9397_v53  ;;  %v9399_v52 = vadd.f32 %v9398_v19, %v9210_v27 }
 0xcab   : > { %9544 = vst [vmem:[#allocation3 + $0x10] sm:$0xff] %v9540_v5  ;;  %v21172_v9 = vadd.f32 %v14452_v16, %v9522_v39  ;;  %v9524_v6 = vadd.f32 %v9523_v11, %v9399_v52 }
 0xcad   : > { %24344 = vst [vmem:[#allocation71_spill] sm:$0xff] %v21172_v9  ;;  %v9541_v4 = vadd.f32 %v14453_v33, %v9524_v6 }
 0xcaf   : > { %9545 = vst [vmem:[#allocation3 + $0x18] sm:$0xff] %v9541_v4 }
 0xcb0 LB: >> { %v24345_v40 = vld [vmem:[#allocation87_spill] sm:$0xff]  ;;  %s14455_s24 = sshll.u32 %s17135_s23, 8  ;;  %s21882_s26 = sshll.u32 %s17135_s23, 3  ;;  %s17135_s23 = sphi %s21174_s23, %s9552_s23  }
 0xcb1   : >> { %v21180_v50 = vand.u32 4294901760, %v24345_v40  ;;  %s21190_s25 = scalar_lea.vmem %s17248_s16, %s14455_s24  ;;  %s11463_s27 = scalar_lea.vmem [#allocation3], %s21882_s26 }
 0xcb2   : >> { %v9556_v2 = vld [vmem:[%s21190_s25] sm:$0xff]  ;;  %v9557_v60 = vld [vmem:[%s21190_s25 + $0x8] sm:$0xff]  ;;  %v9558_v45 = vld [vmem:[%s21190_s25 + $0x10] sm:$0xff]  ;;  %s11815_s28 = scalar_lea.vmem %s17243_s13, %s21882_s26  ;;  %s12039_s29 = scalar_lea.vmem [#allocation2], %s21882_s26 }
 0xcb3   : >> { %16212 = vmatprep.subr.mxu0 %v21180_v50  ;;  %v21185_v18 = vsub.f32 %v24345_v40, %v21180_v50  ;;  %v9589_v61 = vsel %vm386_vm0, %v9556_v2, 0  ;;  %v9592_v21 = vsel %vm386_vm0, %v9557_v60, 0  ;;  %v9595_v12 = vsel %vm386_vm0, %v9558_v45, 0  ;;  %v9559_v56 = vld [vmem:[%s21190_s25 + $0x18] sm:$0xff]  ;;  %v9560_v41 = vld [vmem:[%s21190_s25 + $0x20] sm:$0xff]  ;;  %v9561_v34 = vld [vmem:[%s21190_s25 + $0x28] sm:$0xff] }
 0xcb4   : >> { %16213 = vmatpush3.msra.mxu0 %v21180_v50  ;;  %v21207_v25 = vand.u32 4294901760, %v9589_v61  ;;  %v21209_v10 = vand.u32 4294901760, %v9592_v21  ;;  %v21211_v7 = vand.u32 4294901760, %v9595_v12  ;;  %v9562_v16 = vld [vmem:[%s21190_s25 + $0x30] sm:$0xff]  ;;  %v9598_v36 = vsel %vm386_vm0, %v9559_v56, 0  ;;  %v9563_v28 = vld [vmem:[%s21190_s25 + $0x38] sm:$0xff] }
 0xcb5   : >> { %v21193_v35 = vand.u32 4294901760, %v21185_v18  ;;  %16312 = vmatprep.subr.mxu0 %v21185_v18  ;;  %v9601_v44 = vsel %vm386_vm0, %v9560_v41, 0  ;;  %v9604_v48 = vsel %vm386_vm0, %v9561_v34, 0  ;;  %v9607_v22 = vsel %vm386_vm0, %v9562_v16, 0  ;;  %v9564_v0 = vld [vmem:[%s21190_s25 + $0x40] sm:$0xff]  ;;  %v9565_v37 = vld [vmem:[%s21190_s25 + $0x48] sm:$0xff] }
 0xcb6   : >> { %v21220_v38 = vsub.f32 %v9589_v61, %v21207_v25  ;;  %16264 = vmatprep.mubr.f32.mxu1 %v21207_v25  ;;  %v21224_v33 = vsub.f32 %v9592_v21, %v21209_v10  ;;  %v21227_v47 = vsub.f32 %v9595_v12, %v21211_v7  ;;  %v21229_v57 = vand.u32 4294901760, %v9598_v36  ;;  %v9566_v24 = vld [vmem:[%s21190_s25 + $0x50] sm:$0xff]  ;;  %v9567_v6 = vld [vmem:[%s21190_s25 + $0x58] sm:$0xff]  ;;  %v9568_v4 = vld [vmem:[%s21190_s25 + $0x60] sm:$0xff]  ;;  %s9552_s23 = sadd.s32 1, %s17135_s23  }
 0xcb7   : >> { %v10104_v14 = vsub.f32 %v21185_v18, %v21193_v35  ;;  %v21231_v54 = vand.u32 4294901760, %v9601_v44  ;;  %v21233_v31 = vand.u32 4294901760, %v9604_v48  ;;  %v21235_v1 = vand.u32 4294901760, %v9607_v22  ;;  %v9569_v21 = vld [vmem:[%s21190_s25 + $0x68] sm:$0xff]  ;;  %v9570_v12 = vld [vmem:[%s21190_s25 + $0x70] sm:$0xff]  ;;  %v9580_v40 = vld [vmem:[%s21190_s25 + $0xc0] sm:$0xff] }
 0xcb8   : >> { %v23612_v8 = vand.u32 4294901760, %v21220_v38  ;;  %v23611_v13 = vand.u32 4294901760, %v21224_v33  ;;  %v23609_v62 = vand.u32 4294901760, %v21227_v47  ;;  %v9610_v23 = vsel %vm386_vm0, %v9563_v28, 0  ;;  %p9549_p6 = scmp.ge.s32.totalorder %s9552_s23, 4  }
 0xcb9   : >> { %v10105_v59 = vand.u32 4294901760, %v10104_v14  ;;  %v21242_v63 = vsub.f32 %v9598_v36, %v21229_v57  ;;  %v21245_v51 = vsub.f32 %v9601_v44, %v21231_v54  ;;  %v21248_v32 = vsub.f32 %v9604_v48, %v21233_v31 }
 0xcba   : >> { %v21251_v20 = vsub.f32 %v9607_v22, %v21235_v1  ;;  %v9753_v15 = vsub.f32 %v21220_v38, %v23612_v8  ;;  %v9763_v42 = vsub.f32 %v21224_v33, %v23611_v13  ;;  %v9773_v29 = vsub.f32 %v21227_v47, %v23609_v62 }
 0xcbb   : >> { %16262 = vmatprep.subr.mxu1 %v10105_v59  ;;  %v21264_v30 = vand.u32 4294901760, %v9610_v23  ;;  %v23608_v3 = vand.u32 4294901760, %v21242_v63  ;;  %v23606_v17 = vand.u32 4294901760, %v21245_v51  ;;  %v23604_v26 = vand.u32 4294901760, %v21248_v32 }
 0xcbc   : >> { %16263 = vmatpush3.msra.mxu1 %v10105_v59  ;;  %v23603_v43 = vand.u32 4294901760, %v21251_v20  ;;  %v9754_v46 = vand.u32 4294901760, %v9753_v15  ;;  %v9764_v53 = vand.u32 4294901760, %v9763_v42  ;;  %v9774_v27 = vand.u32 4294901760, %v9773_v29 }
 0xcbd   : >> { %16265 = vmatmul.mubr.f32.vlgmr.msra.gmra.mxu1 %v21209_v10  ;;  %16362 = vmatprep.subr.mxu1 %v21180_v50  ;;  %v21276_v19 = vsub.f32 %v9610_v23, %v21264_v30  ;;  %v9783_v5 = vsub.f32 %v21242_v63, %v23608_v3  ;;  %v9793_v39 = vsub.f32 %v21245_v51, %v23606_v17  ;;  %v9613_v60 = vsel %vm386_vm0, %v9564_v0, 0  ;;  %v9571_v23 = vld [vmem:[%s21190_s25 + $0x78] sm:$0xff]  ;;  %v9578_v17 = vld [vmem:[%s21190_s25 + $0xb0] sm:$0xff] }
 0xcbe   : >> { %16363 = vmatpush3.msra.mxu1 %v21180_v50  ;;  %16267 = vmatprep.mubr.f32.mxu1 %v21211_v7  ;;  %v9803_v52 = vsub.f32 %v21248_v32, %v23604_v26  ;;  %v9813_v11 = vsub.f32 %v21251_v20, %v23603_v43  ;;  %v9616_v45 = vsel %vm386_vm0, %v9565_v37, 0  ;;  %v9619_v61 = vsel %vm386_vm0, %v9566_v24, 0  ;;  %v9577_v26 = vld [vmem:[%s21190_s25 + $0xa8] sm:$0xff] }
 0xcbf   : >> { %16462 = vmatprep.subr.mxu1 %v21180_v50  ;;  %16214 = vmatprep.mubr.f32.mxu0 %v9754_v46  ;;  %v23602_v2 = vand.u32 4294901760, %v21276_v19  ;;  %v9784_v56 = vand.u32 4294901760, %v9783_v5  ;;  %v9794_v41 = vand.u32 4294901760, %v9793_v39  ;;  %v21302_v16 = vand.u32 4294901760, %v9613_v60 }
 0xcc0   : >> { %16215 = vmatmul.mubr.f32.vlgmr.msra.gmra.mxu0 %v9764_v53  ;;  %v9804_v34 = vand.u32 4294901760, %v9803_v52  ;;  %v9814_v14 = vand.u32 4294901760, %v9813_v11  ;;  %v21304_v36 = vand.u32 4294901760, %v9616_v45  ;;  %v21306_v44 = vand.u32 4294901760, %v9619_v61 }
 0xcc1   : >> { %16268 = vmatmul.mubr.f32.gmra.mxu1 %v21229_v57  ;;  %16313 = vmatpush3.msra.mxu0 %v21185_v18  ;;  %v9622_v48 = vsel %vm386_vm0, %v9567_v6, 0  ;;  %v9625_v22 = vsel %vm386_vm0, %v9568_v4, 0  ;;  %v9628_v28 = vsel %vm386_vm0, %v9569_v21, 0  ;;  %v9631_v59 = vsel %vm386_vm0, %v9570_v12, 0 }
 0xcc2   : >> { %16270 = vmatprep.mubr.f32.mxu1 %v21231_v54  ;;  %16217 = vmatprep.mubr.f32.mxu0 %v9774_v27  ;;  %24346 = vst [vmem:[#allocation135_spill] sm:$0xff] %v21304_v36  ;;  %24347 = vst [vmem:[#allocation136_spill] sm:$0xff] %v21306_v44  ;;  %v9823_v18 = vsub.f32 %v21276_v19, %v23602_v2  ;;  %v21319_v15 = vsub.f32 %v9613_v60, %v21302_v16  ;;  %v21328_v0 = vand.u32 4294901760, %v9622_v48 }
 0xcc3   : >> { %16412 = vmatprep.subr.mxu0 %v21193_v35  ;;  %v21322_v42 = vsub.f32 %v9616_v45, %v21304_v36  ;;  %v21325_v29 = vsub.f32 %v9619_v61, %v21306_v44  ;;  %v21330_v37 = vand.u32 4294901760, %v9625_v22  ;;  %v21332_v24 = vand.u32 4294901760, %v9628_v28 }
 0xcc4   : >> { %16218 = vmatmul.mubr.f32.gmra.mxu0 %v9784_v56  ;;  %24348 = vst [vmem:[#allocation137_spill] sm:$0xff] %v21328_v0  ;;  %v21334_v46 = vand.u32 4294901760, %v9631_v59  ;;  %v23601_v53 = vand.u32 4294901760, %v21319_v15  ;;  %v9634_v39 = vsel %vm386_vm0, %v9571_v23, 0  ;;  %v21341_v52 = vsub.f32 %v9622_v48, %v21328_v0  ;;  %v9573_v48 = vld [vmem:[%s21190_s25 + $0x88] sm:$0xff] }
 0xcc5   : >> { %16271 = vmatmul.mubr.f32.gmra.mxu1 %v21233_v31  ;;  %24349 = vst [vmem:[#allocation138_spill] sm:$0xff] %v21330_v37  ;;  %24350 = vst [vmem:[#allocation139_spill] sm:$0xff] %v21332_v24  ;;  %16220 = vmatprep.mubr.f32.mxu0 %v9794_v41  ;;  %v23600_v27 = vand.u32 4294901760, %v21322_v42  ;;  %v23599_v5 = vand.u32 4294901760, %v21325_v29  ;;  %v21344_v11 = vsub.f32 %v9625_v22, %v21330_v37  ;;  %v9824_v4 = vand.u32 4294901760, %v9823_v18  ;;  %v9572_v41 = vld [vmem:[%s21190_s25 + $0x80] sm:$0xff] }
 0xcc6   : >> { %16273 = vmatprep.mubr.f32.mxu1 %v21235_v1  ;;  %24351 = vst [vmem:[#allocation140_spill] sm:$0xff] %v21334_v46  ;;  %v21347_v6 = vsub.f32 %v9628_v28, %v21332_v24  ;;  %v9833_v60 = vsub.f32 %v21319_v15, %v23601_v53  ;;  %v21353_v45 = vand.u32 4294901760, %v9634_v39  ;;  %v23605_v12 = vand.u32 4294901760, %v21341_v52  ;;  %v9576_v53 = vld [vmem:[%s21190_s25 + $0xa0] sm:$0xff] }
 0xcc7   : >> { %v9843_v61 = vsub.f32 %v21322_v42, %v23600_v27  ;;  %v9853_v21 = vsub.f32 %v21325_v29, %v23599_v5  ;;  %v21364_v56 = vsub.f32 %v9631_v59, %v21334_v46  ;;  %v23607_v28 = vand.u32 4294901760, %v21344_v11  ;;  %v9575_v27 = vld [vmem:[%s21190_s25 + $0x98] sm:$0xff] }
 0xcc8   : >> { %24352 = vst [vmem:[#allocation141_spill] sm:$0xff] %v21353_v45  ;;  %16221 = vmatmul.mubr.f32.gmra.mxu0 %v9804_v34  ;;  %v9574_v34 = vld [vmem:[%s21190_s25 + $0x90] sm:$0xff]  ;;  %v9834_v22 = vand.u32 4294901760, %v9833_v60  ;;  %v23610_v23 = vand.u32 4294901760, %v21347_v6  ;;  %v21372_v18 = vsub.f32 %v9634_v39, %v21353_v45  ;;  %v9863_v59 = vsub.f32 %v21341_v52, %v23605_v12 }
 0xcc9   : >> { %16274 = vmatmul.mubr.f32.gmra.mxu1 %v21264_v30  ;;  %16223 = vmatprep.mubr.f32.mxu0 %v9814_v14  ;;  %v9637_v5 = vsel %vm386_vm0, %v9572_v41, 0  ;;  %v9640_v14 = vsel %vm386_vm0, %v9573_v48, 0  ;;  %v9643_v60 = vsel %vm386_vm0, %v9574_v34, 0  ;;  %v9844_v2 = vand.u32 4294901760, %v9843_v61 }
 0xcca   : >> { %16276 = vmatprep.mubr.f32.mxu1 %v21302_v16  ;;  %v9854_v43 = vand.u32 4294901760, %v9853_v21  ;;  %v23613_v39 = vand.u32 4294901760, %v21364_v56  ;;  %v9873_v41 = vsub.f32 %v21344_v11, %v23607_v28  ;;  %v21389_v12 = vand.u32 4294901760, %v9637_v5 }
 0xccb   : >> { %v21391_v48 = vand.u32 4294901760, %v9640_v14  ;;  %v21393_v34 = vand.u32 4294901760, %v9643_v60  ;;  %v9646_v61 = vsel %vm386_vm0, %v9575_v27, 0  ;;  %v9649_v21 = vsel %vm386_vm0, %v9576_v53, 0 }
 0xccc   : >> { %16224 = vmatmul.mubr.f32.gmra.mxu0 %v9824_v4  ;;  %24353 = vst [vmem:[#allocation142_spill] sm:$0xff] %v21389_v12  ;;  %v9883_v4 = vsub.f32 %v21347_v6, %v23610_v23  ;;  %v21404_v3 = vsub.f32 %v9637_v5, %v21389_v12  ;;  %v9652_v62 = vsel %vm386_vm0, %v9577_v26, 0  ;;  %v21411_v27 = vand.u32 4294901760, %v9646_v61 }
 0xccd   : >> { %16277 = vmatmul.mubr.f32.gmra.mxu1 %v21304_v36  ;;  %16226 = vmatprep.mubr.f32.mxu0 %v9834_v22  ;;  %24354 = vst [vmem:[#allocation143_spill] sm:$0xff] %v21391_v48  ;;  %24355 = vst [vmem:[#allocation144_spill] sm:$0xff] %v21393_v34  ;;  %v9864_v22 = vand.u32 4294901760, %v9863_v59  ;;  %v21409_v23 = vsub.f32 %v9640_v14, %v21391_v48  ;;  %v21413_v53 = vand.u32 4294901760, %v9649_v21  ;;  %v9655_v59 = vsel %vm386_vm0, %v9578_v17, 0  ;;  %v9579_v14 = vld [vmem:[%s21190_s25 + $0xb8] sm:$0xff] }
 0xcce   : >> { %16279 = vmatprep.mubr.f32.mxu1 %v21306_v44  ;;  %24356 = vst [vmem:[#allocation145_spill] sm:$0xff] %v21411_v27  ;;  %v9874_v13 = vand.u32 4294901760, %v9873_v41  ;;  %v9893_v5 = vsub.f32 %v21364_v56, %v23613_v39  ;;  %v21424_v8 = vand.u32 4294901760, %v9652_v62  ;;  %v9884_v28 = vand.u32 4294901760, %v9883_v4  ;;  %v9582_v39 = vld [vmem:[%s21190_s25 + $0xd0] sm:$0xff] }
 0xccf   : >> { %24357 = vst [vmem:[#allocation146_spill] sm:$0xff] %v21413_v53  ;;  %v21428_v17 = vsub.f32 %v9646_v61, %v21411_v27  ;;  %v24359_v41 = vand.u32 4294901760, %v21372_v18  ;;  %v21438_v4 = vsub.f32 %v9649_v21, %v21413_v53  ;;  %v9658_v26 = vsel %vm386_vm0, %v9579_v14, 0  ;;  %v9584_v21 = vld [vmem:[%s21190_s25 + $0xe0] sm:$0xff] }
 0xcd0   : >> { %16227 = vmatmul.mubr.f32.gmra.mxu0 %v9844_v2  ;;  %v21421_v2 = vsub.f32 %v9643_v60, %v21393_v34  ;;  %v9894_v61 = vand.u32 4294901760, %v9893_v5  ;;  %v24360_v58 = vand.u32 4294901760, %v21404_v3  ;;  %v21447_v49 = vsub.f32 %v9652_v62, %v21424_v8 }
 0xcd1   : >> { %16280 = vmatmul.mubr.f32.gmra.mxu1 %v21328_v0  ;;  %16229 = vmatprep.mubr.f32.mxu0 %v9854_v43  ;;  %v21430_v43 = vand.u32 4294901760, %v9655_v59  ;;  %v9903_v60 = vsub.f32 %v21372_v18, %v24359_v41  ;;  %v9581_v41 = vld [vmem:[%s21190_s25 + $0xc8] sm:$0xff]  ;;  %v9661_v5 = vsel %vm386_vm0, %v9580_v40, 0  ;;  %v24361_v62 = vand.u32 4294901760, %v21409_v23 }
 0xcd2   : >> { %16282 = vmatprep.mubr.f32.mxu1 %v21330_v37  ;;  %v9664_v40 = vsel %vm386_vm0, %v9581_v41, 0  ;;  %v9585_v37 = vld [vmem:[%s21190_s25 + $0xe8] sm:$0xff] }
 0xcd3   : >> { %24358 = vst [vmem:[#allocation147_spill] sm:$0xff] %v21430_v43  ;;  %v21453_v14 = vsub.f32 %v9655_v59, %v21430_v43  ;;  %v9923_v9 = vsub.f32 %v21409_v23, %v24361_v62  ;;  %v24362_v59 = vand.u32 4294901760, %v21421_v2 }
 0xcd4   : >> { %16230 = vmatmul.mubr.f32.gmra.mxu0 %v9864_v22  ;;  %v9913_v22 = vsub.f32 %v21404_v3, %v24360_v58  ;;  %v9904_v58 = vand.u32 4294901760, %v9903_v60  ;;  %v9583_v60 = vld [vmem:[%s21190_s25 + $0xd8] sm:$0xff] }
 0xcd5   : >> { %16283 = vmatmul.mubr.f32.gmra.mxu1 %v21332_v24  ;;  %16232 = vmatprep.mubr.f32.mxu0 %v9874_v13  ;;  %v21455_v13 = vand.u32 4294901760, %v9658_v26  ;;  %v9924_v41 = vand.u32 4294901760, %v9923_v9  ;;  %v21486_v24 = vand.u32 4294901760, %v9664_v40  ;;  %v9673_v9 = vsel %vm386_vm0, %v9584_v21, 0 }
 0xcd6   : >> { %16285 = vmatprep.mubr.f32.mxu1 %v21334_v46  ;;  %v9914_v55 = vand.u32 4294901760, %v9913_v22  ;;  %v21467_v46 = vand.u32 4294901760, %v9661_v5 }
 0xcd7   : >> { %v21507_v21 = vsub.f32 %v9664_v40, %v21486_v24 }
 0xcd8   : >> { %16233 = vmatmul.mubr.f32.gmra.mxu0 %v9884_v28  ;;  %24363 = vst [vmem:[#allocation148_spill] sm:$0xff] %v21467_v46  ;;  %v9667_v28 = vsel %vm386_vm0, %v9582_v39, 0  ;;  %v24365_v39 = vand.u32 4294901760, %v21438_v4 }
 0xcd9   : >> { %16286 = vmatmul.mubr.f32.gmra.mxu1 %v21353_v45  ;;  %16235 = vmatprep.mubr.f32.mxu0 %v9894_v61  ;;  %v9933_v45 = vsub.f32 %v21421_v2, %v24362_v59  ;;  %v21479_v59 = vsub.f32 %v9658_v26, %v21455_v13  ;;  %v21489_v61 = vsub.f32 %v9661_v5, %v21467_v46  ;;  %v21491_v22 = vand.u32 4294901760, %v9667_v28 }
 0xcda   : >> { %16288 = vmatprep.mubr.f32.mxu1 %v21389_v12  ;;  %v24364_v12 = vand.u32 4294901760, %v21428_v17  ;;  %v9670_v26 = vsel %vm386_vm0, %v9583_v60, 0 }
 0xcdb   : >> { %v21514_v44 = vsub.f32 %v9667_v28, %v21491_v22 }
 0xcdc   : >> { %v9943_v62 = vsub.f32 %v21428_v17, %v24364_v12  ;;  %16236 = vmatmul.mubr.f32.gmra.mxu0 %v9904_v58  ;;  %v9934_v12 = vand.u32 4294901760, %v9933_v45  ;;  %v9586_v58 = vld [vmem:[%s21190_s25 + $0xf0] sm:$0xff]  ;;  %v24367_v45 = vand.u32 4294901760, %v21453_v14 }
 0xcdd   : >> { %16289 = vmatmul.mubr.f32.gmra.mxu1 %v21391_v48  ;;  %v9953_v48 = vsub.f32 %v21438_v4, %v24365_v39  ;;  %16238 = vmatprep.mubr.f32.mxu0 %v9914_v55  ;;  %v24366_v39 = vand.u32 4294901760, %v21447_v49 }
 0xcde   : >> { %16291 = vmatprep.mubr.f32.mxu1 %v21393_v34  ;;  %v9944_v34 = vand.u32 4294901760, %v9943_v62  ;;  %v9973_v5 = vsub.f32 %v21453_v14, %v24367_v45  ;;  %v21509_v62 = vand.u32 4294901760, %v9670_v26  ;;  %v21516_v45 = vand.u32 4294901760, %v9673_v9 }
 0xcdf   : >> { %v9963_v55 = vsub.f32 %v21447_v49, %v24366_v39  ;;  %v9954_v60 = vand.u32 4294901760, %v9953_v48  ;;  %v23649_v39 = vand.u32 4294901760, %v21489_v61  ;;  %v9587_v48 = vld [vmem:[%s21190_s25 + $0xf8] sm:$0xff] }
 0xce0   : >> { %16239 = vmatmul.mubr.f32.gmra.mxu0 %v9924_v41  ;;  %v9679_v41 = vsel %vm386_vm0, %v9586_v58, 0  ;;  %v9974_v40 = vand.u32 4294901760, %v9973_v5  ;;  %v21527_v28 = vsub.f32 %v9670_v26, %v21509_v62  ;;  %v24369_v26 = vand.u32 4294901760, %v21507_v21 }
 0xce1   : >> { %16292 = vmatmul.mubr.f32.gmra.mxu1 %v21411_v27  ;;  %v9676_v27 = vsel %vm386_vm0, %v9585_v37, 0  ;;  %16241 = vmatprep.mubr.f32.mxu0 %v9934_v12  ;;  %v9964_v0 = vand.u32 4294901760, %v9963_v55  ;;  %v21531_v58 = vand.u32 4294901760, %v9679_v41  ;;  %v9993_v55 = vsub.f32 %v21489_v61, %v23649_v39 }
 0xce2   : >> { %16294 = vmatprep.mubr.f32.mxu1 %v21413_v53  ;;  %v24368_v53 = vand.u32 4294901760, %v21479_v59  ;;  %v21529_v12 = vand.u32 4294901760, %v9676_v27 }
 0xce4   : >> { %v9983_v36 = vsub.f32 %v21479_v59, %v24368_v53  ;;  %16242 = vmatmul.mubr.f32.gmra.mxu0 %v9944_v34  ;;  %v21538_v34 = vsub.f32 %v9673_v9, %v21516_v45  ;;  %v9682_v53 = vsel %vm386_vm0, %v9587_v48, 0  ;;  %v21548_v39 = vsub.f32 %v9676_v27, %v21529_v12 }
 0xce5   : >> { %16295 = vmatmul.mubr.f32.gmra.mxu1 %v21424_v8  ;;  %16244 = vmatprep.mubr.f32.mxu0 %v9954_v60  ;;  %v10003_v60 = vsub.f32 %v21507_v21, %v24369_v26  ;;  %v21550_v5 = vand.u32 4294901760, %v9682_v53  ;;  %v9994_v9 = vand.u32 4294901760, %v9993_v55 }
 0xce6   : >> { %16297 = vmatprep.mubr.f32.mxu1 %v21430_v43  ;;  %v9984_v37 = vand.u32 4294901760, %v9983_v36  ;;  %v23652_v43 = vand.u32 4294901760, %v21527_v28  ;;  %v24370_v36 = vand.u32 4294901760, %v21514_v44 }
 0xce7   : >> { %v10004_v26 = vand.u32 4294901760, %v10003_v60  ;;  %v21566_v55 = vsub.f32 %v9682_v53, %v21550_v5 }
 0xce8   : >> { %16245 = vmatmul.mubr.f32.gmra.mxu0 %v9964_v0  ;;  %v10013_v48 = vsub.f32 %v21514_v44, %v24370_v36  ;;  %v23653_v0 = vand.u32 4294901760, %v21538_v34  ;;  %v10023_v27 = vsub.f32 %v21527_v28, %v23652_v43 }
 0xce9   : >> { %16298 = vmatmul.mubr.f32.gmra.mxu1 %v21455_v13  ;;  %16247 = vmatprep.mubr.f32.mxu0 %v9974_v40  ;;  %v10042_v40 = vand.u32 4294901760, %v21548_v39  ;;  %v10062_v53 = vand.u32 4294901760, %v21566_v55 }
 0xcea   : >> { %16300 = vmatprep.mubr.f32.mxu1 %v21467_v46  ;;  %v21557_v46 = vsub.f32 %v9679_v41, %v21531_v58  ;;  %v10014_v36 = vand.u32 4294901760, %v10013_v48  ;;  %v10033_v41 = vsub.f32 %v21538_v34, %v23653_v0  ;;  %v10024_v60 = vand.u32 4294901760, %v10023_v27 }
 0xceb   : >> { %v10043_v43 = vsub.f32 %v21548_v39, %v10042_v40 }
 0xcec   : >> { %16248 = vmatmul.mubr.f32.gmra.mxu0 %v9984_v37  ;;  %v23654_v37 = vand.u32 4294901760, %v21557_v46 }
 0xced   : >> { %16301 = vmatmul.mubr.f32.gmra.mxu1 %v21486_v24  ;;  %16250 = vmatprep.mubr.f32.mxu0 %v9994_v9  ;;  %v10034_v9 = vand.u32 4294901760, %v10033_v41  ;;  %v10044_v0 = vand.u32 4294901760, %v10043_v43  ;;  %v24371_v41 = vand.u32 4294901760, %v21220_v38  ;;  %v24373_v43 = vand.u32 4294901760, %v21227_v47 }
 0xcee   : >> { %16303 = vmatprep.mubr.f32.mxu1 %v21491_v22  ;;  %v10053_v48 = vsub.f32 %v21557_v46, %v23654_v37  ;;  %v24372_v37 = vand.u32 4294901760, %v21224_v33 }
 0xcf0   : >> { %16251 = vmatmul.mubr.f32.gmra.mxu0 %v10004_v26  ;;  %v10063_v26 = vsub.f32 %v21566_v55, %v10062_v53  ;;  %v10054_v27 = vand.u32 4294901760, %v10053_v48 }
 0xcf1   : >> { %16304 = vmatmul.mubr.f32.gmra.mxu1 %v21509_v62  ;;  %16253 = vmatprep.mubr.f32.mxu0 %v10014_v36 }
 0xcf2   : >> { %16306 = vmatprep.mubr.f32.mxu1 %v21516_v45  ;;  %v10064_v36 = vand.u32 4294901760, %v10063_v26 }
 0xcf4   : >> { %16254 = vmatmul.mubr.f32.gmra.mxu0 %v10024_v60  ;;  %v24374_v60 = vand.u32 4294901760, %v21242_v63 }
 0xcf5   : >> { %16307 = vmatmul.mubr.f32.gmra.mxu1 %v21529_v12  ;;  %16256 = vmatprep.mubr.f32.mxu0 %v10034_v9 }
 0xcf6   : >> { %16309 = vmatprep.mubr.f32.mxu1 %v21531_v58 }
 0xcf8   : >> { %16257 = vmatmul.mubr.f32.gmra.mxu0 %v10044_v0  ;;  %v24375_v0 = vand.u32 4294901760, %v21245_v51 }
 0xcf9   : >> { %16310 = vmatmul.mubr.f32.gmra.mxu1 %v21550_v5  ;;  %16259 = vmatprep.mubr.f32.mxu0 %v10054_v27 }
 0xcfa   : >> { %16364 = vmatprep.mubr.f32.mxu1 %v24371_v41 }
 0xcfc   : >> { %16260 = vmatmul.mubr.f32.gmra.mxu0 %v10064_v36 }
 0xcfd   : >> { %16365 = vmatmul.mubr.f32.vlgmr.msra.gmra.mxu1 %v24372_v37  ;;  %16314 = vmatprep.mubr.f32.mxu0 %v21220_v38  ;;  %v24376_v37 = vand.u32 4294901760, %v21248_v32  ;;  %v24378_v38 = vand.u32 4294901760, %v21276_v19 }
 0xcfe   : >> { %16463 = vmatpush3.msra.mxu1 %v21180_v50  ;;  %16367 = vmatprep.mubr.f32.mxu1 %v24373_v43  ;;  %v24377_v50 = vand.u32 4294901760, %v21251_v20 }
 0xd00   : >> { %16315 = vmatmul.mubr.f32.vlgmr.msra.gmra.mxu0 %v21224_v33  ;;  %v24379_v33 = vand.u32 4294901760, %v21319_v15 }
 0xd01   : >> { %16368 = vmatmul.mubr.f32.gmra.mxu1 %v24374_v60  ;;  %16413 = vmatpush3.msra.mxu0 %v21193_v35  ;;  %v24380_v35 = vand.u32 4294901760, %v21322_v42 }
 0xd02   : >> { %16370 = vmatprep.mubr.f32.mxu1 %v24375_v0  ;;  %16317 = vmatprep.mubr.f32.mxu0 %v21227_v47  ;;  %v24381_v47 = vand.u32 4294901760, %v21325_v29 }
 0xd04   : >> { %16318 = vmatmul.mubr.f32.gmra.mxu0 %v21242_v63  ;;  %v24382_v63 = vand.u32 4294901760, %v21341_v52 }
 0xd05   : >> { %16371 = vmatmul.mubr.f32.gmra.mxu1 %v24376_v37  ;;  %16320 = vmatprep.mubr.f32.mxu0 %v21245_v51  ;;  %v24383_v51 = vand.u32 4294901760, %v21344_v11 }
 0xd06   : >> { %16373 = vmatprep.mubr.f32.mxu1 %v24377_v50 }
 0xd08   : >> { %16321 = vmatmul.mubr.f32.gmra.mxu0 %v21248_v32  ;;  %v24384_v32 = vand.u32 4294901760, %v21347_v6 }
 0xd09   : >> { %16374 = vmatmul.mubr.f32.gmra.mxu1 %v24378_v38  ;;  %16323 = vmatprep.mubr.f32.mxu0 %v21251_v20  ;;  %v24385_v20 = vand.u32 4294901760, %v21364_v56 }
 0xd0a   : >> { %16376 = vmatprep.mubr.f32.mxu1 %v24379_v33 }
 0xd0c   : >> { %16324 = vmatmul.mubr.f32.gmra.mxu0 %v21276_v19  ;;  %v24386_v19 = vand.u32 4294901760, %v21372_v18 }
 0xd0d   : >> { %16377 = vmatmul.mubr.f32.gmra.mxu1 %v24380_v35  ;;  %16326 = vmatprep.mubr.f32.mxu0 %v21319_v15  ;;  %v24387_v15 = vand.u32 4294901760, %v21404_v3 }
 0xd0e   : >> { %16379 = vmatprep.mubr.f32.mxu1 %v24381_v47 }
 0xd10   : >> { %16327 = vmatmul.mubr.f32.gmra.mxu0 %v21322_v42  ;;  %v24388_v42 = vand.u32 4294901760, %v21409_v23 }
 0xd11   : >> { %16380 = vmatmul.mubr.f32.gmra.mxu1 %v24382_v63  ;;  %16329 = vmatprep.mubr.f32.mxu0 %v21325_v29  ;;  %v24389_v29 = vand.u32 4294901760, %v21421_v2 }
 0xd12   : >> { %16382 = vmatprep.mubr.f32.mxu1 %v24383_v51 }
 0xd14   : >> { %16330 = vmatmul.mubr.f32.gmra.mxu0 %v21341_v52  ;;  %v24390_v52 = vand.u32 4294901760, %v21428_v17 }
 0xd15   : >> { %16383 = vmatmul.mubr.f32.gmra.mxu1 %v24384_v32  ;;  %16332 = vmatprep.mubr.f32.mxu0 %v21344_v11  ;;  %v24391_v11 = vand.u32 4294901760, %v21438_v4 }
 0xd16   : >> { %16385 = vmatprep.mubr.f32.mxu1 %v24385_v20 }
 0xd18   : >> { %16333 = vmatmul.mubr.f32.gmra.mxu0 %v21347_v6  ;;  %v24392_v6 = vand.u32 4294901760, %v21447_v49 }
 0xd19   : >> { %16386 = vmatmul.mubr.f32.gmra.mxu1 %v24386_v19  ;;  %16335 = vmatprep.mubr.f32.mxu0 %v21364_v56  ;;  %v24393_v56 = vand.u32 4294901760, %v21453_v14 }
 0xd1a   : >> { %16388 = vmatprep.mubr.f32.mxu1 %v24387_v15 }
 0xd1c   : >> { %16336 = vmatmul.mubr.f32.gmra.mxu0 %v21372_v18  ;;  %v24396_v18 = vand.u32 4294901760, %v21507_v21 }
 0xd1d   : >> { %16389 = vmatmul.mubr.f32.gmra.mxu1 %v24388_v42  ;;  %16338 = vmatprep.mubr.f32.mxu0 %v21404_v3  ;;  %v24394_v3 = vand.u32 4294901760, %v21479_v59 }
 0xd1e   : >> { %16391 = vmatprep.mubr.f32.mxu1 %v24389_v29 }
 0xd20   : >> { %16339 = vmatmul.mubr.f32.gmra.mxu0 %v21409_v23  ;;  %v24395_v23 = vand.u32 4294901760, %v21489_v61 }
 0xd21   : >> { %16392 = vmatmul.mubr.f32.gmra.mxu1 %v24390_v52  ;;  %16341 = vmatprep.mubr.f32.mxu0 %v21421_v2  ;;  %v24397_v2 = vand.u32 4294901760, %v21514_v44 }
 0xd22   : >> { %16394 = vmatprep.mubr.f32.mxu1 %v24391_v11 }
 0xd24   : >> { %16342 = vmatmul.mubr.f32.gmra.mxu0 %v21428_v17  ;;  %v24398_v17 = vand.u32 4294901760, %v21527_v28 }
 0xd25   : >> { %16395 = vmatmul.mubr.f32.gmra.mxu1 %v24392_v6  ;;  %16344 = vmatprep.mubr.f32.mxu0 %v21438_v4  ;;  %v24400_v4 = vand.u32 4294901760, %v21557_v46 }
 0xd26   : >> { %16397 = vmatprep.mubr.f32.mxu1 %v24393_v56 }
 0xd28   : >> { %16345 = vmatmul.mubr.f32.gmra.mxu0 %v21447_v49  ;;  %v24399_v49 = vand.u32 4294901760, %v21538_v34 }
 0xd29   : >> { %16398 = vmatmul.mubr.f32.gmra.mxu1 %v24394_v3  ;;  %16347 = vmatprep.mubr.f32.mxu0 %v21453_v14  ;;  %v24412_v14 = vld [vmem:[#allocation146_spill] sm:$0xff] }
 0xd2a   : >> { %16400 = vmatprep.mubr.f32.mxu1 %v24395_v23 }
 0xd2c   : >> { %16348 = vmatmul.mubr.f32.gmra.mxu0 %v21479_v59  ;;  %v24414_v59 = vld [vmem:[#allocation148_spill] sm:$0xff] }
 0xd2d   : >> { %16401 = vmatmul.mubr.f32.gmra.mxu1 %v24396_v18  ;;  %16350 = vmatprep.mubr.f32.mxu0 %v21489_v61  ;;  %v24413_v61 = vld [vmem:[#allocation147_spill] sm:$0xff] }
 0xd2e   : >> { %16403 = vmatprep.mubr.f32.mxu1 %v24397_v2 }
 0xd30   : >> { %16351 = vmatmul.mubr.f32.gmra.mxu0 %v21507_v21 }
 0xd31   : >> { %16404 = vmatmul.mubr.f32.gmra.mxu1 %v24398_v17  ;;  %16353 = vmatprep.mubr.f32.mxu0 %v21514_v44  ;;  %v24410_v44 = vld [vmem:[#allocation144_spill] sm:$0xff] }
 0xd32   : >> { %16406 = vmatprep.mubr.f32.mxu1 %v24399_v49 }
 0xd34   : >> { %16354 = vmatmul.mubr.f32.gmra.mxu0 %v21527_v28 }
 0xd35   : >> { %16407 = vmatmul.mubr.f32.gmra.mxu1 %v10042_v40  ;;  %16356 = vmatprep.mubr.f32.mxu0 %v21538_v34 }
 0xd36   : >> { %16409 = vmatprep.mubr.f32.mxu1 %v24400_v4 }
 0xd38   : >> { %16357 = vmatmul.mubr.f32.gmra.mxu0 %v21548_v39 }
 0xd39   : >> { %16410 = vmatmul.mubr.f32.gmra.mxu1 %v10062_v53  ;;  %16359 = vmatprep.mubr.f32.mxu0 %v21557_v46  ;;  %v24411_v46 = vld [vmem:[#allocation145_spill] sm:$0xff] }
 0xd3a   : >> { %16464 = vmatprep.mubr.f32.mxu1 %v21207_v25 }
 0xd3c   : >> { %16360 = vmatmul.mubr.f32.gmra.mxu0 %v21566_v55 }
 0xd3d   : >> { %16465 = vmatmul.mubr.f32.vlgmr.msra.gmra.mxu1 %v21209_v10  ;;  %16414 = vmatprep.mubr.f32.mxu0 %v21207_v25  ;;  %v24401_v25 = vld [vmem:[#allocation135_spill] sm:$0xff] }
 0xd3e   : >> { %16467 = vmatprep.mubr.f32.mxu1 %v21211_v7 }
 0xd40   : >> { %16415 = vmatmul.mubr.f32.vlgmr.msra.gmra.mxu0 %v21209_v10  ;;  %v24402_v10 = vld [vmem:[#allocation136_spill] sm:$0xff] }
 0xd41   : >> { %16468 = vmatmul.mubr.f32.gmra.mxu1 %v21229_v57  ;;  %16417 = vmatprep.mubr.f32.mxu0 %v21211_v7  ;;  %v24403_v7 = vld [vmem:[#allocation137_spill] sm:$0xff] }
 0xd42   : >> { %16470 = vmatprep.mubr.f32.mxu1 %v21231_v54 }
 0xd44   : >> { %16418 = vmatmul.mubr.f32.gmra.mxu0 %v21229_v57  ;;  %v24404_v57 = vld [vmem:[#allocation138_spill] sm:$0xff] }
 0xd45   : >> { %16471 = vmatmul.mubr.f32.gmra.mxu1 %v21233_v31  ;;  %16420 = vmatprep.mubr.f32.mxu0 %v21231_v54  ;;  %v24405_v54 = vld [vmem:[#allocation139_spill] sm:$0xff] }
 0xd46   : >> { %16473 = vmatprep.mubr.f32.mxu1 %v21235_v1 }
 0xd48   : >> { %16421 = vmatmul.mubr.f32.gmra.mxu0 %v21233_v31  ;;  %v24406_v31 = vld [vmem:[#allocation140_spill] sm:$0xff] }
 0xd49   : >> { %16474 = vmatmul.mubr.f32.gmra.mxu1 %v21264_v30  ;;  %16423 = vmatprep.mubr.f32.mxu0 %v21235_v1  ;;  %v24407_v1 = vld [vmem:[#allocation141_spill] sm:$0xff] }
 0xd4a   : >> { %16476 = vmatprep.mubr.f32.mxu1 %v21302_v16 }
 0xd4c   : >> { %16424 = vmatmul.mubr.f32.gmra.mxu0 %v21264_v30  ;;  %v24408_v30 = vld [vmem:[#allocation142_spill] sm:$0xff] }
 0xd4d   : >> { %16477 = vmatmul.mubr.f32.gmra.mxu1 %v24401_v25  ;;  %16426 = vmatprep.mubr.f32.mxu0 %v21302_v16  ;;  %v24409_v16 = vld [vmem:[#allocation143_spill] sm:$0xff] }
 0xd4e   : >> { %16479 = vmatprep.mubr.f32.mxu1 %v24402_v10 }
 0xd50   : >> { %16427 = vmatmul.mubr.f32.gmra.mxu0 %v24401_v25 }
 0xd51   : >> { %16480 = vmatmul.mubr.f32.gmra.mxu1 %v24403_v7  ;;  %16429 = vmatprep.mubr.f32.mxu0 %v24402_v10 }
 0xd52   : >> { %16482 = vmatprep.mubr.f32.mxu1 %v24404_v57 }
 0xd54   : >> { %16430 = vmatmul.mubr.f32.gmra.mxu0 %v24403_v7 }
 0xd55   : >> { %16483 = vmatmul.mubr.f32.gmra.mxu1 %v24405_v54  ;;  %16432 = vmatprep.mubr.f32.mxu0 %v24404_v57 }
 0xd56   : >> { %16485 = vmatprep.mubr.f32.mxu1 %v24406_v31 }
 0xd58   : >> { %16433 = vmatmul.mubr.f32.gmra.mxu0 %v24405_v54 }
 0xd59   : >> { %16486 = vmatmul.mubr.f32.gmra.mxu1 %v24407_v1  ;;  %16435 = vmatprep.mubr.f32.mxu0 %v24406_v31 }
 0xd5a   : >> { %16488 = vmatprep.mubr.f32.mxu1 %v24408_v30 }
 0xd5c   : >> { %16436 = vmatmul.mubr.f32.gmra.mxu0 %v24407_v1 }
 0xd5d   : >> { %16489 = vmatmul.mubr.f32.gmra.mxu1 %v24409_v16  ;;  %16438 = vmatprep.mubr.f32.mxu0 %v24408_v30 }
 0xd5e   : >> { %16491 = vmatprep.mubr.f32.mxu1 %v24410_v44 }
 0xd60   : >> { %16439 = vmatmul.mubr.f32.gmra.mxu0 %v24409_v16 }
 0xd61   : >> { %16492 = vmatmul.mubr.f32.gmra.mxu1 %v24411_v46  ;;  %16441 = vmatprep.mubr.f32.mxu0 %v24410_v44 }
 0xd62   : >> { %16494 = vmatprep.mubr.f32.mxu1 %v24412_v14 }
 0xd64   : >> { %16442 = vmatmul.mubr.f32.gmra.mxu0 %v24411_v46 }
 0xd65   : >> { %16495 = vmatmul.mubr.f32.gmra.mxu1 %v21424_v8  ;;  %16444 = vmatprep.mubr.f32.mxu0 %v24412_v14 }
 0xd66   : >> { %16497 = vmatprep.mubr.f32.mxu1 %v24413_v61 }
 0xd68   : >> { %16445 = vmatmul.mubr.f32.gmra.mxu0 %v21424_v8 }
 0xd69   : >> { %16498 = vmatmul.mubr.f32.gmra.mxu1 %v21455_v13  ;;  %16447 = vmatprep.mubr.f32.mxu0 %v24413_v61 }
 0xd6a   : >> { %16500 = vmatprep.mubr.f32.mxu1 %v24414_v59 }
 0xd6c   : >> { %16448 = vmatmul.mubr.f32.gmra.mxu0 %v21455_v13 }
 0xd6d   : >> { %16501 = vmatmul.mubr.f32.gmra.mxu1 %v21486_v24  ;;  %16450 = vmatprep.mubr.f32.mxu0 %v24414_v59 }
 0xd6e   : >> { %16503 = vmatprep.mubr.f32.mxu1 %v21491_v22 }
 0xd70   : >> { %16451 = vmatmul.mubr.f32.gmra.mxu0 %v21486_v24 }
 0xd71   : >> { %16504 = vmatmul.mubr.f32.gmra.mxu1 %v21509_v62  ;;  %16453 = vmatprep.mubr.f32.mxu0 %v21491_v22 }
 0xd72   : >> { %16506 = vmatprep.mubr.f32.mxu1 %v21516_v45 }
 0xd74   : >> { %16454 = vmatmul.mubr.f32.gmra.mxu0 %v21509_v62 }
 0xd75   : >> { %16507 = vmatmul.mubr.f32.gmra.mxu1 %v21529_v12  ;;  %16456 = vmatprep.mubr.f32.mxu0 %v21516_v45 }
 0xd76   : >> { %16509 = vmatprep.mubr.f32.mxu1 %v21531_v58 }
 0xd78   : >> { %16457 = vmatmul.mubr.f32.gmra.mxu0 %v21529_v12 }
 0xd79   : >> { %16510 = vmatmul.mubr.f32.gmra.mxu1 %v21550_v5  ;;  %16459 = vmatprep.mubr.f32.mxu0 %v21531_v58 }
 0xd7c   : >> { %16460 = vmatmul.mubr.f32.gmra.mxu0 %v21550_v5 }
 0xd7d   : >> { %v16266_v8 = vpop.f32.mrf.mxu1 }
 0xd7f   : >> { %v10142_v24 = vpop.f32.mrf.mxu1 }
 0xd80   : >> { %v16216_v22 = vpop.f32.mrf.mxu0 }
 0xd81   : >> { %v16269_v13 = vpop.f32.mrf.mxu1  ;;  %v21749_v21 = vadd.f32 %v16266_v8, %v16216_v22 }
 0xd82   : >> { %v9756_v62 = vpop.f32.mrf.mxu0 }
 0xd83   : >> { %v10154_v39 = vpop.f32.mrf.mxu1  ;;  %v21751_v28 = vadd.f32 %v10142_v24, %v9756_v62 }
 0xd84   : >> { %v16219_v45 = vpop.f32.mrf.mxu0 }
 0xd85   : >> { %v16272_v34 = vpop.f32.mrf.mxu1  ;;  %v21753_v40 = vadd.f32 %v16269_v13, %v16219_v45 }
 0xd86   : >> { %v9776_v12 = vpop.f32.mrf.mxu0 }
 0xd87   : >> { %v10166_v55 = vpop.f32.mrf.mxu1  ;;  %v21755_v53 = vadd.f32 %v10154_v39, %v9776_v12 }
 0xd88   : >> { %v16222_v9 = vpop.f32.mrf.mxu0 }
 0xd89   : >> { %v16275_v58 = vpop.f32.mrf.mxu1  ;;  %v21757_v5 = vadd.f32 %v16272_v34, %v16222_v9 }
 0xd8a   : >> { %v9796_v26 = vpop.f32.mrf.mxu0 }
 0xd8b   : >> { %v10178_v48 = vpop.f32.mrf.mxu1  ;;  %v21759_v27 = vadd.f32 %v10166_v55, %v9796_v26 }
 0xd8c   : >> { %v16225_v41 = vpop.f32.mrf.mxu0 }
 0xd8d   : >> { %v16278_v36 = vpop.f32.mrf.mxu1  ;;  %v21761_v43 = vadd.f32 %v16275_v58, %v16225_v41 }
 0xd8e   : >> { %v9816_v0 = vpop.f32.mrf.mxu0 }
 0xd8f   : >> { %v10190_v60 = vpop.f32.mrf.mxu1  ;;  %v21763_v37 = vadd.f32 %v10178_v48, %v9816_v0 }
 0xd90   : >> { %v16228_v38 = vpop.f32.mrf.mxu0 }
 0xd91   : >> { %v16281_v50 = vpop.f32.mrf.mxu1  ;;  %v21765_v33 = vadd.f32 %v16278_v36, %v16228_v38 }
 0xd92   : >> { %v9836_v47 = vpop.f32.mrf.mxu0 }
 0xd93   : >> { %v10202_v35 = vpop.f32.mrf.mxu1  ;;  %v21767_v63 = vadd.f32 %v10190_v60, %v9836_v47 }
 0xd94   : >> { %v16231_v32 = vpop.f32.mrf.mxu0 }
 0xd95   : >> { %v16284_v51 = vpop.f32.mrf.mxu1  ;;  %v21769_v20 = vadd.f32 %v16281_v50, %v16231_v32 }
 0xd96   : >> { %v9856_v15 = vpop.f32.mrf.mxu0 }
 0xd97   : >> { %v10214_v19 = vpop.f32.mrf.mxu1  ;;  %v21771_v42 = vadd.f32 %v10202_v35, %v9856_v15 }
 0xd98   : >> { %v16234_v52 = vpop.f32.mrf.mxu0 }
 0xd99   : >> { %v16287_v29 = vpop.f32.mrf.mxu1  ;;  %v21773_v11 = vadd.f32 %v16284_v51, %v16234_v52 }
 0xd9a   : >> { %v9876_v56 = vpop.f32.mrf.mxu0 }
 0xd9b   : >> { %v10226_v6 = vpop.f32.mrf.mxu1  ;;  %v21775_v3 = vadd.f32 %v10214_v19, %v9876_v56 }
 0xd9c   : >> { %v16237_v18 = vpop.f32.mrf.mxu0 }
 0xd9d   : >> { %v16290_v23 = vpop.f32.mrf.mxu1  ;;  %v21777_v2 = vadd.f32 %v16287_v29, %v16237_v18 }
 0xd9e   : >> { %v9896_v49 = vpop.f32.mrf.mxu0 }
 0xd9f   : >> { %v10238_v17 = vpop.f32.mrf.mxu1  ;;  %v21779_v4 = vadd.f32 %v10226_v6, %v9896_v49 }
 0xda0   : >> { %v16240_v10 = vpop.f32.mrf.mxu0 }
 0xda1   : >> { %v16293_v25 = vpop.f32.mrf.mxu1  ;;  %v21781_v7 = vadd.f32 %v16290_v23, %v16240_v10 }
 0xda2   : >> { %v9916_v54 = vpop.f32.mrf.mxu0 }
 0xda3   : >> { %v10250_v57 = vpop.f32.mrf.mxu1  ;;  %v21783_v31 = vadd.f32 %v10238_v17, %v9916_v54 }
 0xda4   : >> { %v16243_v30 = vpop.f32.mrf.mxu0 }
 0xda5   : >> { %v16296_v1 = vpop.f32.mrf.mxu1  ;;  %v21785_v16 = vadd.f32 %v16293_v25, %v16243_v30 }
 0xda6   : >> { %v9936_v46 = vpop.f32.mrf.mxu0 }
 0xda7   : >> { %v10262_v44 = vpop.f32.mrf.mxu1  ;;  %v21787_v14 = vadd.f32 %v10250_v57, %v9936_v46 }
 0xda8   : >> { %v16246_v59 = vpop.f32.mrf.mxu0 }
 0xda9   : >> { %24415 = vst [vmem:[#allocation135_spill] sm:$0xff] %v21787_v14  ;;  %v16299_v61 = vpop.f32.mrf.mxu1  ;;  %v21789_v8 = vadd.f32 %v16296_v1, %v16246_v59 }
 0xdaa   : >> { %v9956_v13 = vpop.f32.mrf.mxu0 }
 0xdab   : >> { %24416 = vst [vmem:[#allocation136_spill] sm:$0xff] %v21789_v8  ;;  %v10274_v24 = vpop.f32.mrf.mxu1  ;;  %v21791_v22 = vadd.f32 %v10262_v44, %v9956_v13  ;;  %v24449_v8 = vld [vmem:[#allocation90_spill] sm:$0xff] }
 0xdac   : >> { %v16249_v62 = vpop.f32.mrf.mxu0 }
 0xdad   : >> { %v16302_v39 = vpop.f32.mrf.mxu1  ;;  %v21793_v34 = vadd.f32 %v16299_v61, %v16249_v62 }
 0xdae   : >> { %v9976_v55 = vpop.f32.mrf.mxu0 }
 0xdaf   : >> { %v10286_v45 = vpop.f32.mrf.mxu1  ;;  %v21795_v12 = vadd.f32 %v10274_v24, %v9976_v55 }
 0xdb0   : >> { %v16252_v9 = vpop.f32.mrf.mxu0 }
 0xdb1   : >> { %24417 = vst [vmem:[#allocation137_spill] sm:$0xff] %v21795_v12  ;;  %v16305_v58 = vpop.f32.mrf.mxu1  ;;  %v21797_v48 = vadd.f32 %v16302_v39, %v16252_v9 }
 0xdb2   : >> { %v9996_v36 = vpop.f32.mrf.mxu0 }
 0xdb3   : >> { %24418 = vst [vmem:[#allocation138_spill] sm:$0xff] %v21797_v48  ;;  %v10298_v26 = vpop.f32.mrf.mxu1  ;;  %v21799_v41 = vadd.f32 %v10286_v45, %v9996_v36 }
 0xdb4   : >> { %v16255_v0 = vpop.f32.mrf.mxu0 }
 0xdb5   : >> { %v16308_v60 = vpop.f32.mrf.mxu1  ;;  %v21801_v50 = vadd.f32 %v16305_v58, %v16255_v0 }
 0xdb6   : >> { %v10016_v35 = vpop.f32.mrf.mxu0 }
 0xdb7   : >> { %v10310_v38 = vpop.f32.mrf.mxu1  ;;  %v21803_v47 = vadd.f32 %v10298_v26, %v10016_v35 }
 0xdb8   : >> { %v16258_v32 = vpop.f32.mrf.mxu0 }
 0xdb9   : >> { %24419 = vst [vmem:[#allocation139_spill] sm:$0xff] %v21803_v47  ;;  %v16311_v51 = vpop.f32.mrf.mxu1  ;;  %v21805_v19 = vadd.f32 %v16308_v60, %v16258_v32 }
 0xdba   : >> { %v10036_v29 = vpop.f32.mrf.mxu0 }
 0xdbb   : >> { %24420 = vst [vmem:[#allocation140_spill] sm:$0xff] %v21805_v19  ;;  %v10322_v15 = vpop.f32.mrf.mxu1  ;;  %v21807_v52 = vadd.f32 %v10310_v38, %v10036_v29 }
 0xdbc   : >> { %v16261_v56 = vpop.f32.mrf.mxu0 }
 0xdbd   : >> { %v21809_v6 = vpop.f32.mrf.mxu1  ;;  %v21811_v23 = vadd.f32 %v16311_v51, %v16261_v56 }
 0xdbe   : >> { %v10056_v17 = vpop.f32.mrf.mxu0 }
 0xdbf   : >> { %v21813_v18 = vpop.f32.mrf.mxu1  ;;  %v21815_v49 = vadd.f32 %v10322_v15, %v10056_v17 }
 0xdc0   : >> { %v21817_v10 = vpop.f32.mrf.mxu0 }
 0xdc1   : >> { %24421 = vst [vmem:[#allocation141_spill] sm:$0xff] %v21815_v49  ;;  %v16369_v25 = vpop.f32.mrf.mxu1 }
 0xdc2   : >> { %v21819_v54 = vpop.f32.mrf.mxu0 }
 0xdc3   : >> { %v10709_v57 = vpop.f32.mrf.mxu1 }
 0xdc4   : >> { %v16319_v30 = vpop.f32.mrf.mxu0 }
 0xdc5   : >> { %v21821_v1 = vpop.f32.mrf.mxu1  ;;  %v10424_v44 = vadd.f32 %v16319_v30, %v21753_v40 }
 0xdc6   : >> { %v10416_v61 = vpop.f32.mrf.mxu0 }
 0xdc7   : >> { %v21824_v46 = vpop.f32.mrf.mxu1  ;;  %v21826_v59 = vadd.f32 %v16369_v25, %v10424_v44  ;;  %v10417_v24 = vadd.f32 %v10416_v61, %v21755_v53 }
 0xdc8   : >> { %v21829_v39 = vpop.f32.mrf.mxu0 }
 0xdc9   : >> { %v16375_v13 = vpop.f32.mrf.mxu1  ;;  %v21831_v62 = vadd.f32 %v10709_v57, %v10417_v24 }
 0xdca   : >> { %v21833_v55 = vpop.f32.mrf.mxu0 }
 0xdcb   : >> { %v10741_v45 = vpop.f32.mrf.mxu1 }
 0xdcc   : >> { %v16325_v9 = vpop.f32.mrf.mxu0 }
 0xdcd   : >> { %v16378_v58 = vpop.f32.mrf.mxu1  ;;  %v10452_v26 = vadd.f32 %v16325_v9, %v21761_v43 }
 0xdce   : >> { %v10444_v36 = vpop.f32.mrf.mxu0 }
 0xdcf   : >> { %v21836_v40 = vpop.f32.mrf.mxu1  ;;  %v21838_v60 = vadd.f32 %v16375_v13, %v10452_v26  ;;  %v10445_v0 = vadd.f32 %v10444_v36, %v21763_v37 }
 0xdd0   : >> { %v16328_v38 = vpop.f32.mrf.mxu0 }
 0xdd1   : >> { %v16381_v53 = vpop.f32.mrf.mxu1  ;;  %v21841_v35 = vadd.f32 %v10741_v45, %v10445_v0  ;;  %v10466_v51 = vadd.f32 %v16328_v38, %v21765_v33 }
 0xdd2   : >> { %v21846_v15 = vpop.f32.mrf.mxu0 }
 0xdd3   : >> { %v21844_v32 = vpop.f32.mrf.mxu1  ;;  %v21848_v29 = vadd.f32 %v16378_v58, %v10466_v51 }
 0xdd4   : >> { %v16331_v56 = vpop.f32.mrf.mxu0 }
 0xdd5   : >> { %v21850_v43 = vpop.f32.mrf.mxu1  ;;  %v10480_v17 = vadd.f32 %v16331_v56, %v21769_v20 }
 0xdd6   : >> { %v21853_v57 = vpop.f32.mrf.mxu0 }
 0xdd7   : >> { %v10789_v25 = vpop.f32.mrf.mxu1  ;;  %v21855_v37 = vadd.f32 %v16381_v53, %v10480_v17 }
 0xdd8   : >> { %v21857_v44 = vpop.f32.mrf.mxu0 }
 0xdd9   : >> { %v16387_v30 = vpop.f32.mrf.mxu1 }
 0xdda   : >> { %v10486_v61 = vpop.f32.mrf.mxu0 }
 0xddb   : >> { %v21859_v33 = vpop.f32.mrf.mxu1  ;;  %v10487_v24 = vadd.f32 %v10486_v61, %v21775_v3 }
 0xddc   : >> { %v16337_v45 = vpop.f32.mrf.mxu0 }
 0xddd   : >> { %v21862_v13 = vpop.f32.mrf.mxu1  ;;  %v21864_v58 = vadd.f32 %v10789_v25, %v10487_v24  ;;  %v10508_v20 = vadd.f32 %v16337_v45, %v21777_v2 }
 0xdde   : >> { %24422 = vst [vmem:[#allocation142_spill] sm:$0xff] %v21862_v13  ;;  %v21867_v26 = vpop.f32.mrf.mxu0 }
 0xddf   : >> { %24423 = vst [vmem:[#allocation143_spill] sm:$0xff] %v21864_v58  ;;  %v10821_v9 = vpop.f32.mrf.mxu1  ;;  %v21869_v36 = vadd.f32 %v16387_v30, %v10508_v20 }
 0xde0   : >> { %v21871_v53 = vpop.f32.mrf.mxu0 }
 0xde1   : >> { %24424 = vst [vmem:[#allocation144_spill] sm:$0xff] %v21869_v36  ;;  %v16393_v0 = vpop.f32.mrf.mxu1  ;;  %v10438_v36 = vadd.f32 %v21829_v39, %v21757_v5  ;;  %v10431_v5 = vadd.f32 %v21833_v55, %v21759_v27 }
 0xde2   : >> { %v10514_v51 = vpop.f32.mrf.mxu0 }
 0xde3   : >> { %v21873_v38 = vpop.f32.mrf.mxu1  ;;  %v10515_v3 = vadd.f32 %v10514_v51, %v21783_v31  ;;  %v10734_v27 = vadd.f32 %v21821_v1, %v10438_v36 }
 0xde4   : >> { %24425 = vst [vmem:[#allocation145_spill] sm:$0xff] %v21873_v38  ;;  %v16343_v17 = vpop.f32.mrf.mxu0 }
 0xde5   : >> { %v21876_v56 = vpop.f32.mrf.mxu1  ;;  %v21878_v25 = vadd.f32 %v10821_v9, %v10515_v3  ;;  %v10536_v2 = vadd.f32 %v16343_v17, %v21785_v16  ;;  %v11464_v16 = vld [vmem:[%s11463_s27] sm:$0xff] }
 0xde6   : >> { %24426 = vst [vmem:[#allocation146_spill] sm:$0xff] %v21876_v56  ;;  %v21884_v30 = vpop.f32.mrf.mxu0 }
 0xde7   : >> { %24427 = vst [vmem:[#allocation147_spill] sm:$0xff] %v21878_v25  ;;  %v10853_v61 = vpop.f32.mrf.mxu1  ;;  %24428 = vst [vmem:[#allocation148_spill] sm:$0xff] %v21884_v30  ;;  %v21886_v24 = vadd.f32 %v16393_v0, %v10536_v2  ;;  %v24435_v2 = vld [vmem:[#allocation32_spill] sm:$0xff] }
 0xde8   : >> { %v21888_v20 = vpop.f32.mrf.mxu0  ;;  %v11473_v48 = vrot.slane %v11464_v16, %v24435_v2 }
 0xde9   : >> { %24429 = vst [vmem:[#allocation149_spill] sm:$0xff] %v21886_v24  ;;  %v16399_v45 = vpop.f32.mrf.mxu1  ;;  %24430 = vst [vmem:[#allocation150_spill] sm:$0xff] %v21888_v20 }
 0xdea   : >> { %v10542_v31 = vpop.f32.mrf.mxu0  ;;  %v11481_v56 = vcombine.high %v11473_v48, %v11473_v48 }
 0xdeb   : >> { %v21890_v49 = vpop.f32.mrf.mxu1  ;;  %v10543_v51 = vadd.f32 %v10542_v31, %v21791_v22 }
 0xdec   : >> { %24431 = vst [vmem:[#allocation151_spill] sm:$0xff] %v21890_v49  ;;  %v16349_v3 = vpop.f32.mrf.mxu0 }
 0xded   : >> { %v21893_v9 = vpop.f32.mrf.mxu1  ;;  %v21896_v17 = vadd.f32 %v10853_v61, %v10543_v51  ;;  %v10564_v19 = vadd.f32 %v16349_v3, %v21793_v34  ;;  %v11466_v34 = vcombine.high %v11464_v16, %v11464_v16 }
 0xdee   : >> { %24432 = vst [vmem:[#allocation152_spill] sm:$0xff] %v21893_v9  ;;  %v21899_v0 = vpop.f32.mrf.mxu0  ;;  %v11489_v9 = vrot.slane %v11473_v48, %v24435_v2 }
 0xdef   : >> { %24433 = vst [vmem:[#allocation153_spill] sm:$0xff] %v21896_v17  ;;  %v10885_v47 = vpop.f32.mrf.mxu1  ;;  %24434 = vst [vmem:[#allocation154_spill] sm:$0xff] %v21899_v0  ;;  %v21902_v12 = vadd.f32 %v16399_v45, %v10564_v19 }
 0xdf0   : >> { %v21904_v24 = vpop.f32.mrf.mxu0  ;;  %v11511_v25 = vcombine.high %v11489_v9, %v11489_v9 }
 0xdf1   : >> { %24436 = vst [vmem:[#allocation155_spill] sm:$0xff] %v21902_v12  ;;  %v16405_v49 = vpop.f32.mrf.mxu1  ;;  %24437 = vst [vmem:[#allocation156_spill] sm:$0xff] %v21904_v24  ;;  %v24442_v24 = vld [vmem:[#allocation39_spill] sm:$0xff] }
 0xdf2   : >> { %v10570_v31 = vpop.f32.mrf.mxu0  ;;  %v11518_v0 = vrot.slane %v11489_v9, %v24442_v24  ;;  %v11526_v9 = vrot.slane %v11511_v25, %v24442_v24 }
 0xdf3   : >> { %v21906_v22 = vpop.f32.mrf.mxu1  ;;  %v10571_v61 = vadd.f32 %v10570_v31, %v21799_v41  ;;  %v11480_v41 = vrot.slane %v11466_v34, %v24435_v2 }
 0xdf4   : >> { %24438 = vst [vmem:[#allocation157_spill] sm:$0xff] %v21906_v22  ;;  %v16355_v3 = vpop.f32.mrf.mxu0  ;;  %v11503_v22 = vrot.slane %v11481_v56, %v24435_v2  ;;  %v10410_v56 = vadd.f32 %v21817_v10, %v21749_v21  ;;  %v21938_v30 = vadd.f32 %v11518_v0, %v24449_v8  ;;  %v10403_v21 = vadd.f32 %v21819_v54, %v21751_v28 }
 0xdf5   : >> { %v21910_v51 = vpop.f32.mrf.mxu1  ;;  %v21912_v17 = vadd.f32 %v10885_v47, %v10571_v61  ;;  %v10592_v19 = vadd.f32 %v16355_v3, %v21801_v50  ;;  %v11482_v61 = vcombine.high %v11480_v41, %v11480_v41  ;;  %v24446_v3 = vld [vmem:[#allocation88_spill] sm:$0xff]  ;;  %v11496_v34 = vrot.slane %v11480_v41, %v24435_v2 }
 0xdf6   : >> { %24439 = vst [vmem:[#allocation158_spill] sm:$0xff] %v21910_v51  ;;  %v21915_v12 = vpop.f32.mrf.mxu0  ;;  %v11513_v16 = vcombine.high %v11503_v22, %v11503_v22  ;;  %v11556_v51 = vadd.f32 %v11518_v0, %v24446_v3 }
 0xdf7   : >> { %24440 = vst [vmem:[#allocation159_spill] sm:$0xff] %v21912_v17  ;;  %v10917_v45 = vpop.f32.mrf.mxu1  ;;  %24441 = vst [vmem:[#allocation160_spill] sm:$0xff] %v21915_v12  ;;  %v21919_v38 = vadd.f32 %v16405_v49, %v10592_v19  ;;  %v11522_v17 = vrot.slane %v11503_v22, %v24442_v24  ;;  %v21947_v41 = vrot.slane %v11482_v61, %v24435_v2 }
 0xdf8   : >> { %v21922_v31 = vpop.f32.mrf.mxu0  ;;  %v11530_v22 = vrot.slane %v11513_v16, %v24442_v24  ;;  %v21967_v2 = vadd.f32 %v11526_v9, %v24446_v3 }
 0xdf9   : >> { %24443 = vst [vmem:[#allocation161_spill] sm:$0xff] %v21919_v38  ;;  %v16411_v48 = vpop.f32.mrf.mxu1  ;;  %24444 = vst [vmem:[#allocation162_spill] sm:$0xff] %v21922_v31  ;;  %v24447_v31 = vld [vmem:[#allocation91_spill] sm:$0xff]  ;;  %v21952_v14 = vadd.f32 %v11522_v17, %v24446_v3  ;;  %v21961_v28 = vadd.f32 %v11522_v17, %v24449_v8 }
 0xdfa   : >> { %v10598_v50 = vpop.f32.mrf.mxu0  ;;  %v11555_v12 = vadd.f32 %v11518_v0, %v24447_v31  ;;  %v21988_v58 = vadd.f32 %v11530_v22, %v24447_v31 }
 0xdfb   : >> { %v21924_v47 = vpop.f32.mrf.mxu1  ;;  %v10599_v49 = vadd.f32 %v10598_v50, %v21807_v52 }
 0xdfc   : >> { %24445 = vst [vmem:[#allocation163_spill] sm:$0xff] %v21924_v47  ;;  %v16361_v38 = vpop.f32.mrf.mxu0  ;;  %v24448_v47 = vld [vmem:[#allocation71_spill] sm:$0xff]  ;;  %24454 = vst [vmem:[#allocation168_spill] sm:$0xff] %v21988_v58 }
 0xdfd   : >> { %v16466_v19 = vpop.f32.mrf.mxu1  ;;  %v21935_v20 = vadd.f32 %v11518_v0, %v24448_v47  ;;  %v21943_v52 = vadd.f32 %v10917_v45, %v10599_v49  ;;  %v10620_v10 = vadd.f32 %v16361_v38, %v21811_v23  ;;  %v21955_v0 = vadd.f32 %v11522_v17, %v24447_v31 }
 0xdfe   : >> { %v21949_v50 = vpop.f32.mrf.mxu0  ;;  %v21958_v16 = vadd.f32 %v11522_v17, %v24448_v47  ;;  %v10702_v23 = vadd.f32 %v21809_v6, %v10410_v56  ;;  %v11534_v45 = vrot.slane %v11496_v34, %v24442_v24  ;;  %v21971_v49 = vadd.f32 %v11526_v9, %v24447_v31 }
 0xdff   : >> { %24450 = vst [vmem:[#allocation164_spill] sm:$0xff] %v21943_v52  ;;  %v11273_v25 = vpop.f32.mrf.mxu1  ;;  %24451 = vst [vmem:[#allocation165_spill] sm:$0xff] %v21949_v50  ;;  %v21964_v54 = vadd.f32 %v16411_v48, %v10620_v10  ;;  %v21974_v52 = vadd.f32 %v11526_v9, %v24448_v47  ;;  %v21977_v17 = vadd.f32 %v11526_v9, %v24449_v8 }
 0xe00   : >> { %v16416_v61 = vpop.f32.mrf.mxu0  ;;  %v11512_v50 = vcombine.high %v11496_v34, %v11496_v34  ;;  %v10694_v6 = vadd.f32 %v21813_v18, %v10403_v21  ;;  %v21981_v10 = vadd.f32 %v11530_v22, %v24446_v3  ;;  %v21991_v9 = vadd.f32 %v11530_v22, %v24448_v47 }
 0xe01   : >> { %24452 = vst [vmem:[#allocation166_spill] sm:$0xff] %v21964_v54  ;;  %v16469_v38 = vpop.f32.mrf.mxu1  ;;  %v11022_v48 = vadd.f32 %v16416_v61, %v10702_v23  ;;  %v11538_v54 = vrot.slane %v21947_v41, %v24442_v24  ;;  %v21994_v18 = vadd.f32 %v11530_v22, %v24449_v8  ;;  %v21997_v61 = vadd.f32 %v11534_v45, %v24446_v3 }
 0xe02   : >> { %24453 = vst [vmem:[#allocation167_spill] sm:$0xff] %v21981_v10  ;;  %v11015_v13 = vpop.f32.mrf.mxu0  ;;  %24455 = vst [vmem:[#allocation169_spill] sm:$0xff] %v21991_v9  ;;  %v22000_v10 = vadd.f32 %v11534_v45, %v24447_v31  ;;  %v22005_v58 = vadd.f32 %v11534_v45, %v24448_v47  ;;  %v22008_v9 = vadd.f32 %v11534_v45, %v24449_v8 }
 0xe03   : >> { %v11285_v56 = vpop.f32.mrf.mxu1  ;;  %v11280_v34 = vadd.f32 %v16466_v19, %v11022_v48  ;;  %v11016_v21 = vadd.f32 %v11015_v13, %v10694_v6  ;;  %24456 = vst [vmem:[#allocation170_spill] sm:$0xff] %v21997_v61  ;;  %v22011_v19 = vrot.slane %v11512_v50, %v24442_v24  ;;  %v22019_v61 = vadd.f32 %v11538_v54, %v24447_v31 }
 0xe04   : >> { %24457 = vst [vmem:[#allocation171_spill] sm:$0xff] %v22000_v10  ;;  %v16419_v39 = vpop.f32.mrf.mxu0  ;;  %v22015_v10 = vadd.f32 %v11538_v54, %v24446_v3  ;;  %v22022_v45 = vadd.f32 %v11538_v54, %v24448_v47  ;;  %v22025_v50 = vadd.f32 %v11538_v54, %v24449_v8 }
 0xe05   : >> { %v16472_v23 = vpop.f32.mrf.mxu1  ;;  %v11588_v13 = vadd.f32 %v11556_v51, %v11280_v34  ;;  %v11274_v22 = vadd.f32 %v11273_v25, %v11016_v21  ;;  %v11034_v6 = vadd.f32 %v16419_v39, %v21826_v59  ;;  %v10726_v21 = vadd.f32 %v21824_v46, %v10431_v5 }
 0xe06   : >> { %v11027_v55 = vpop.f32.mrf.mxu0  ;;  %24458 = vst [vmem:[#allocation172_spill] sm:$0xff] %v22022_v45  ;;  %v22031_v36 = vadd.f32 %v22011_v19, %v24446_v3  ;;  %v22035_v45 = vadd.f32 %v22011_v19, %v24447_v31 }
 0xe07   : >> { %v11297_v48 = vpop.f32.mrf.mxu1  ;;  %v11587_v51 = vadd.f32 %v11555_v12, %v11274_v22  ;;  %v11292_v25 = vadd.f32 %v16469_v38, %v11034_v6  ;;  %v11028_v59 = vadd.f32 %v11027_v55, %v21831_v62  ;;  %vm11620_vm1 = vcmp.ge.f32.partialorder %v11588_v13, 0.0 }
 0xe08   : >> { %v16422_v39 = vpop.f32.mrf.mxu0  ;;  %v11652_v1 = vmul.f32 0.2, %v11588_v13  ;;  %24459 = vst [vmem:[#allocation173_spill] sm:$0xff] %v22031_v36  ;;  %24460 = vst [vmem:[#allocation174_spill] sm:$0xff] %v22035_v45  ;;  %v10459_v62 = vadd.f32 %v21846_v15, %v21767_v63  ;;  %v22042_v55 = vadd.f32 %v22011_v19, %v24448_v47  ;;  %v24461_v36 = vld [vmem:[#allocation5_spill] sm:$0xff] }
 0xe09   : >> { %v16475_v34 = vpop.f32.mrf.mxu1  ;;  %v11590_v54 = vadd.f32 %v21935_v20, %v11292_v25  ;;  %v11286_v12 = vadd.f32 %v11285_v56, %v11028_v59  ;;  %v11046_v38 = vadd.f32 %v16422_v39, %v10734_v27  ;;  %vm11619_vm2 = vcmp.ge.f32.partialorder %v11587_v51, 0.0 }
 0xe0a   : >> { %v11039_v46 = vpop.f32.mrf.mxu0  ;;  %v11684_v5 = vsel %vm11620_vm1, %v11588_v13, %v11652_v1  ;;  %v11651_v6 = vmul.f32 0.2, %v11587_v51  ;;  %v10473_v27 = vadd.f32 %v21853_v57, %v21771_v42 }
 0xe0b   : >> { %v11309_v22 = vpop.f32.mrf.mxu1  ;;  %v11589_v3 = vadd.f32 %v21938_v30, %v11286_v12  ;;  %v11304_v31 = vadd.f32 %v16472_v23, %v11046_v38  ;;  %v11040_v45 = vadd.f32 %v11039_v46, %v10726_v21  ;;  %v11720_v20 = vmul.f32 %v24461_v36, %v11684_v5 }
 0xe0c   : >> { %v16425_v25 = vpop.f32.mrf.mxu0  ;;  %v11683_v59 = vsel %vm11619_vm2, %v11587_v51, %v11651_v6  ;;  %vm11622_vm13 = vcmp.ge.f32.partialorder %v11590_v54, 0.0  ;;  %v11654_v63 = vmul.f32 0.2, %v11590_v54  ;;  %v11514_v30 = vcombine.high %v21947_v41, %v21947_v41 }
 0xe0d   : >> { %v16478_v56 = vpop.f32.mrf.mxu1  ;;  %v11592_v15 = vadd.f32 %v21952_v14, %v11304_v31  ;;  %v11298_v13 = vadd.f32 %v11297_v48, %v11040_v45  ;;  %v11058_v39 = vadd.f32 %v16425_v25, %v21838_v60  ;;  %11753 = vadd.xlane.f32.xlu0 %v11720_v20  ;;  %v10758_v23 = vadd.f32 %v21836_v40, %v10459_v62 }
 0xe0e   : >> { %v11051_v21 = vpop.f32.mrf.mxu0  ;;  %v11719_v12 = vmul.f32 %v24461_v36, %v11683_v59  ;;  %v11686_v42 = vsel %vm11622_vm13, %v11590_v54, %v11654_v63  ;;  %v11653_v57 = vmul.f32 0.2, %v11589_v3  ;;  %vm11621_vm15 = vcmp.ge.f32.partialorder %v11589_v3, 0.0 }
 0xe0f   : >> { %v11321_v1 = vpop.f32.mrf.mxu1  ;;  %v11591_v51 = vadd.f32 %v21955_v0, %v11298_v13  ;;  %v11052_v38 = vadd.f32 %v11051_v21, %v21841_v35  ;;  %v11316_v14 = vadd.f32 %v16475_v34, %v11058_v39  ;;  %v10774_v60 = vadd.f32 %v21844_v32, %v10473_v27 }
 0xe10   : >> { %v10494_v48 = vadd.f32 %v21857_v44, %v21773_v11  ;;  %v16428_v41 = vpop.f32.mrf.mxu0  ;;  %vm11624_vm1 = vcmp.ge.f32.partialorder %v11592_v15, 0.0  ;;  %v11656_v40 = vmul.f32 0.2, %v11592_v15  ;;  %v11722_v0 = vmul.f32 %v24461_v36, %v11686_v42 }
 0xe11   : >> { %v16481_v31 = vpop.f32.mrf.mxu1  ;;  %v11594_v45 = vadd.f32 %v21958_v16, %v11316_v14  ;;  %v11070_v54 = vadd.f32 %v16428_v41, %v21848_v29  ;;  %v11310_v62 = vadd.f32 %v11309_v22, %v11052_v38  ;;  %11751 = vadd.xlane.f32.xlu0 %v11719_v12  ;;  %v11685_v5 = vsel %vm11621_vm15, %v11589_v3, %v11653_v57  ;;  %v24462_v41 = vld [vmem:[#allocation143_spill] sm:$0xff] }
 0xe12   : >> { %v11063_v34 = vpop.f32.mrf.mxu0  ;;  %v11688_v46 = vsel %vm11624_vm1, %v11592_v15, %v11656_v40  ;;  %vm11623_vm2 = vcmp.ge.f32.partialorder %v11591_v51, 0.0  ;;  %v11655_v32 = vmul.f32 0.2, %v11591_v51  ;;  %v10798_v16 = vadd.f32 %v21850_v43, %v10494_v48 }
 0xe13   : >> { %v11333_v35 = vpop.f32.mrf.mxu1  ;;  %v11593_v6 = vadd.f32 %v21961_v28, %v11310_v62  ;;  %v11064_v11 = vadd.f32 %v11063_v34, %v10758_v23  ;;  %v11328_v44 = vadd.f32 %v16478_v56, %v11070_v54  ;;  %v11724_v20 = vmul.f32 %v24461_v36, %v11688_v46  ;;  %v24465_v46 = vld [vmem:[#allocation144_spill] sm:$0xff] }
 0xe14   : >> { %v16431_v29 = vpop.f32.mrf.mxu0  ;;  %v11687_v22 = vsel %vm11623_vm2, %v11591_v51, %v11655_v32  ;;  %vm11626_vm13 = vcmp.ge.f32.partialorder %v11594_v45, 0.0  ;;  %v11658_v25 = vmul.f32 0.2, %v11594_v45  ;;  %v10501_v59 = vadd.f32 %v21867_v26, %v21779_v4 }
 0xe15   : >> { %v16484_v27 = vpop.f32.mrf.mxu1  ;;  %v11082_v3 = vadd.f32 %v16431_v29, %v21855_v37  ;;  %v11322_v63 = vadd.f32 %v11321_v1, %v11064_v11  ;;  %11757 = vadd.xlane.f32.xlu0 %v11722_v0  ;;  %11761 = vadd.xlane.f32.xlu1 %v11724_v20  ;;  %vm11625_vm15 = vcmp.ge.f32.partialorder %v11593_v6, 0.0  ;;  %v11596_v56 = vadd.f32 %v21967_v2, %v11328_v44 }
 0xe16   : >> { %v11075_v15 = vpop.f32.mrf.mxu0  ;;  %v11721_v13 = vmul.f32 %v24461_v36, %v11685_v5  ;;  %v11723_v43 = vmul.f32 %v24461_v36, %v11687_v22  ;;  %v11657_v39 = vmul.f32 0.2, %v11593_v6  ;;  %v11690_v4 = vsel %vm11626_vm13, %v11594_v45, %v11658_v25 }
 0xe17   : >> { %v11345_v28 = vpop.f32.mrf.mxu1  ;;  %v11595_v23 = vadd.f32 %v21971_v49, %v11322_v63  ;;  %v11076_v21 = vadd.f32 %v11075_v15, %v10774_v60  ;;  %v11340_v12 = vadd.f32 %v16481_v31, %v11082_v3  ;;  %v10522_v26 = vadd.f32 %v21871_v53, %v21781_v7  ;;  %v24468_v3 = vld [vmem:[#allocation148_spill] sm:$0xff]  ;;  %v24470_v15 = vld [vmem:[#allocation150_spill] sm:$0xff] }
 0xe18   : >> { %v16434_v1 = vpop.f32.mrf.mxu0  ;;  %v11689_v42 = vsel %vm11625_vm15, %v11593_v6, %v11657_v39  ;;  %v22077_v2 = vadd.f32 %v22011_v19, %v24449_v8  ;;  %v22080_v57 = vrot.slane %v11514_v30, %v24442_v24  ;;  %v10806_v31 = vadd.f32 %v21859_v33, %v10501_v59  ;;  %v24464_v33 = vld [vmem:[#allocation167_spill] sm:$0xff] }
 0xe19   : >> { %v16487_v37 = vpop.f32.mrf.mxu1  ;;  %v11598_v51 = vadd.f32 %v21974_v52, %v11340_v12  ;;  %v11094_v49 = vadd.f32 %v16434_v1, %v10798_v16  ;;  %v11334_v38 = vadd.f32 %v11333_v35, %v11076_v21  ;;  %11755 = vadd.xlane.f32.xlu0 %v11721_v13  ;;  %11759 = vadd.xlane.f32.xlu1 %v11723_v43  ;;  %vm11627_vm1 = vcmp.ge.f32.partialorder %v11595_v23, 0.0  ;;  %v24463_v52 = vld [vmem:[#allocation142_spill] sm:$0xff]  ;;  %v24467_v59 = vld [vmem:[#allocation135_spill] sm:$0xff] }
 0xe1a   : >> { %v11087_v7 = vpop.f32.mrf.mxu0  ;;  %v11726_v53 = vmul.f32 %v24461_v36, %v11690_v4  ;;  %v11659_v60 = vmul.f32 0.2, %v11595_v23  ;;  %v11660_v48 = vmul.f32 0.2, %v11596_v56  ;;  %vm11628_vm2 = vcmp.ge.f32.partialorder %v11596_v56, 0.0 }
 0xe1b   : >> { %v11357_v14 = vpop.f32.mrf.mxu1  ;;  %v11597_v19 = vadd.f32 %v21977_v17, %v11334_v38  ;;  %v11088_v24 = vadd.f32 %v11087_v7, %v24462_v41  ;;  %v11352_v30 = vadd.f32 %v16484_v27, %v11094_v49  ;;  %v10830_v45 = vadd.f32 %v24463_v52, %v10522_v26  ;;  %v24466_v27 = vld [vmem:[#allocation168_spill] sm:$0xff]  ;;  %v24471_v26 = vld [vmem:[#allocation169_spill] sm:$0xff] }
 0xe1c   : >> { %v16437_v54 = vpop.f32.mrf.mxu0  ;;  %v11691_v62 = vsel %vm11627_vm1, %v11595_v23, %v11659_v60  ;;  %v11725_v0 = vmul.f32 %v24461_v36, %v11689_v42  ;;  %v11662_v35 = vmul.f32 0.2, %v11598_v51  ;;  %v11692_v20 = vsel %vm11628_vm2, %v11596_v56, %v11660_v48 }
 0xe1d   : >> { %v16490_v40 = vpop.f32.mrf.mxu1  ;;  %v11600_v34 = vadd.f32 %v24464_v33, %v11352_v30  ;;  %v11106_v5 = vadd.f32 %v16437_v54, %v24465_v46  ;;  %v11346_v32 = vadd.f32 %v11345_v28, %v11088_v24  ;;  %11765 = vadd.xlane.f32.xlu1 %v11726_v53  ;;  %v11727_v17 = vmul.f32 %v24461_v36, %v11691_v62  ;;  %v24469_v28 = vld [vmem:[#allocation136_spill] sm:$0xff]  ;;  %v24472_v53 = vld [vmem:[#allocation147_spill] sm:$0xff]  ;;  %v24474_v24 = vld [vmem:[#allocation146_spill] sm:$0xff] }
 0xe1e   : >> { %v11099_v11 = vpop.f32.mrf.mxu0  ;;  %vm11629_vm13 = vcmp.ge.f32.partialorder %v11597_v19, 0.0  ;;  %v11661_v44 = vmul.f32 0.2, %v11597_v19  ;;  %vm11630_vm15 = vcmp.ge.f32.partialorder %v11598_v51, 0.0  ;;  %v10529_v63 = vadd.f32 %v24468_v3, %v24467_v59  ;;  %v24475_v54 = vld [vmem:[#allocation170_spill] sm:$0xff] }
 0xe1f   : >> { %v11369_v6 = vpop.f32.mrf.mxu1  ;;  %v11599_v16 = vadd.f32 %v24466_v27, %v11346_v32  ;;  %v11100_v29 = vadd.f32 %v11099_v11, %v10806_v31  ;;  %v11364_v22 = vadd.f32 %v16487_v37, %v11106_v5  ;;  %11767 = vadd.xlane.f32.xlu0 %v11727_v17  ;;  %vm11632_vm1 = vcmp.ge.f32.partialorder %v11600_v34, 0.0  ;;  %v24477_v32 = vld [vmem:[#allocation171_spill] sm:$0xff]  ;;  %v24478_v27 = vld [vmem:[#allocation137_spill] sm:$0xff]  ;;  %v24480_v59 = vld [vmem:[#allocation138_spill] sm:$0xff] }
 0xe20   : >> { %v10550_v13 = vadd.f32 %v24470_v15, %v24469_v28  ;;  %v16440_v43 = vpop.f32.mrf.mxu0  ;;  %v11693_v39 = vsel %vm11629_vm13, %v11597_v19, %v11661_v44  ;;  %v11664_v23 = vmul.f32 0.2, %v11600_v34  ;;  %v11694_v37 = vsel %vm11630_vm15, %v11598_v51, %v11662_v35  ;;  %v24473_v19 = vld [vmem:[#allocation145_spill] sm:$0xff] }
 0xe21   : >> { %v16493_v25 = vpop.f32.mrf.mxu1  ;;  %v11118_v21 = vadd.f32 %v16440_v43, %v10830_v45  ;;  %v11358_v12 = vadd.f32 %v11357_v14, %v11100_v29  ;;  %11763 = vadd.xlane.f32.xlu1 %v11725_v0  ;;  %v11729_v56 = vmul.f32 %v24461_v36, %v11693_v39  ;;  %v11602_v1 = vadd.f32 %v24471_v26, %v11364_v22  ;;  %v24476_v0 = vld [vmem:[#allocation149_spill] sm:$0xff]  ;;  %v24479_v29 = vld [vmem:[#allocation154_spill] sm:$0xff] }
 0xe22   : >> { %v11111_v42 = vpop.f32.mrf.mxu0  ;;  %v11728_v49 = vmul.f32 %v24461_v36, %v11692_v20  ;;  %v11696_v38 = vsel %vm11632_vm1, %v11600_v34, %v11664_v23  ;;  %v11663_v31 = vmul.f32 0.2, %v11599_v16  ;;  %vm11631_vm2 = vcmp.ge.f32.partialorder %v11599_v16, 0.0 }
 0xe23   : >> { %v11381_v4 = vpop.f32.mrf.mxu1  ;;  %v11601_v7 = vadd.f32 %v21994_v18, %v11358_v12  ;;  %v11112_v60 = vadd.f32 %v11111_v42, %v24472_v53  ;;  %v11376_v48 = vadd.f32 %v16490_v40, %v11118_v21  ;;  %11771 = vadd.xlane.f32.xlu0 %v11729_v56  ;;  %v10838_v41 = vadd.f32 %v24473_v19, %v10529_v63  ;;  %v24482_v42 = vld [vmem:[#allocation153_spill] sm:$0xff] }
 0xe24   : >> { %v10862_v30 = vadd.f32 %v24474_v24, %v10550_v13  ;;  %v16443_v51 = vpop.f32.mrf.mxu0  ;;  %v11732_v52 = vmul.f32 %v24461_v36, %v11696_v38  ;;  %v11730_v45 = vmul.f32 %v24461_v36, %v11694_v37  ;;  %v11695_v46 = vsel %vm11631_vm2, %v11599_v16, %v11663_v31 }
 0xe25   : >> { %v16496_v14 = vpop.f32.mrf.mxu1  ;;  %v11604_v62 = vadd.f32 %v24475_v54, %v11376_v48  ;;  %v11130_v35 = vadd.f32 %v16443_v51, %v24476_v0  ;;  %v11370_v18 = vadd.f32 %v11369_v6, %v11112_v60  ;;  %11769 = vadd.xlane.f32.xlu1 %v11728_v49  ;;  %vm11633_vm13 = vcmp.ge.f32.partialorder %v11601_v7, 0.0  ;;  %v24481_v6 = vld [vmem:[#allocation156_spill] sm:$0xff] }
 0xe26   : >> { %v11123_v33 = vpop.f32.mrf.mxu0  ;;  %v11665_v34 = vmul.f32 0.2, %v11601_v7  ;;  %vm11634_vm15 = vcmp.ge.f32.partialorder %v11602_v1, 0.0  ;;  %v11666_v5 = vmul.f32 0.2, %v11602_v1  ;;  %v10557_v22 = vadd.f32 %v24479_v29, %v24478_v27  ;;  %v24490_v29 = vld [vmem:[#allocation172_spill] sm:$0xff] }
 0xe27   : >> { %v11393_v40 = vpop.f32.mrf.mxu1  ;;  %v11603_v17 = vadd.f32 %v24477_v32, %v11370_v18  ;;  %v11124_v11 = vadd.f32 %v11123_v33, %v10838_v41  ;;  %v11388_v44 = vadd.f32 %v16493_v25, %v11130_v35  ;;  %11777 = vadd.xlane.f32.xlu0 %v11732_v52  ;;  %vm11636_vm1 = vcmp.ge.f32.partialorder %v11604_v62, 0.0  ;;  %v24487_v18 = vld [vmem:[#allocation160_spill] sm:$0xff] }
 0xe28   : >> { %v10578_v3 = vadd.f32 %v24481_v6, %v24480_v59  ;;  %v16446_v63 = vpop.f32.mrf.mxu0  ;;  %v11697_v28 = vsel %vm11633_vm13, %v11601_v7, %v11665_v34  ;;  %v11668_v15 = vmul.f32 0.2, %v11604_v62  ;;  %v11731_v21 = vmul.f32 %v24461_v36, %v11695_v46  ;;  %v24484_v7 = vld [vmem:[#allocation152_spill] sm:$0xff]  ;;  %v24489_v34 = vld [vmem:[#allocation162_spill] sm:$0xff] }
 0xe29   : >> { %v16499_v20 = vpop.f32.mrf.mxu1  ;;  %v11606_v16 = vadd.f32 %v22005_v58, %v11388_v44  ;;  %v11142_v13 = vadd.f32 %v16446_v63, %v10862_v30  ;;  %v11382_v43 = vadd.f32 %v11381_v4, %v11124_v11  ;;  %11773 = vadd.xlane.f32.xlu1 %v11730_v45  ;;  %v11733_v25 = vmul.f32 %v24461_v36, %v11697_v28  ;;  %v24483_v4 = vld [vmem:[#allocation151_spill] sm:$0xff] }
 0xe2a   : >> { %v11135_v23 = vpop.f32.mrf.mxu0  ;;  %v11700_v12 = vsel %vm11636_vm1, %v11604_v62, %v11668_v15  ;;  %v11698_v56 = vsel %vm11634_vm15, %v11602_v1, %v11666_v5  ;;  %v11667_v37 = vmul.f32 0.2, %v11603_v17  ;;  %vm11635_vm2 = vcmp.ge.f32.partialorder %v11603_v17, 0.0  ;;  %v24485_v1 = vld [vmem:[#allocation155_spill] sm:$0xff] }
 0xe2b   : >> { %v11405_v39 = vpop.f32.mrf.mxu1  ;;  %v11605_v26 = vadd.f32 %v22008_v9, %v11382_v43  ;;  %v11136_v49 = vadd.f32 %v11135_v23, %v24482_v42  ;;  %v11400_v38 = vadd.f32 %v16496_v14, %v11142_v13  ;;  %11779 = vadd.xlane.f32.xlu0 %v11733_v25  ;;  %v10870_v31 = vadd.f32 %v24483_v4, %v10557_v22  ;;  %v24491_v15 = vld [vmem:[#allocation159_spill] sm:$0xff] }
 0xe2c   : >> { %v10894_v53 = vadd.f32 %v24484_v7, %v10578_v3  ;;  %v16449_v60 = vpop.f32.mrf.mxu0  ;;  %v11736_v48 = vmul.f32 %v24461_v36, %v11700_v12  ;;  %v11670_v19 = vmul.f32 0.2, %v11606_v16  ;;  %v11734_v51 = vmul.f32 %v24461_v36, %v11698_v56 }
 0xe2d   : >> { %v16502_v58 = vpop.f32.mrf.mxu1  ;;  %v11608_v41 = vadd.f32 %v22015_v10, %v11400_v38  ;;  %v11154_v24 = vadd.f32 %v16449_v60, %v24485_v1  ;;  %v11394_v30 = vadd.f32 %v11393_v40, %v11136_v49  ;;  %11775 = vadd.xlane.f32.xlu1 %v11731_v21  ;;  %vm11637_vm13 = vcmp.ge.f32.partialorder %v11605_v26, 0.0  ;;  %v24486_v10 = vld [vmem:[#allocation139_spill] sm:$0xff]  ;;  %v24488_v40 = vld [vmem:[#allocation140_spill] sm:$0xff]  ;;  %v24493_v21 = vld [vmem:[#allocation158_spill] sm:$0xff] }
 0xe2e   : >> { %v11147_v14 = vpop.f32.mrf.mxu0  ;;  %v11669_v52 = vmul.f32 0.2, %v11605_v26  ;;  %v11699_v45 = vsel %vm11635_vm2, %v11603_v17, %v11667_v37  ;;  %vm11638_vm15 = vcmp.ge.f32.partialorder %v11606_v16, 0.0  ;;  %v10585_v33 = vadd.f32 %v24487_v18, %v24486_v10  ;;  %v24495_v49 = vld [vmem:[#allocation161_spill] sm:$0xff]  ;;  %v24496_v60 = vld [vmem:[#allocation174_spill] sm:$0xff] }
 0xe2f   : >> { %v11417_v9 = vpop.f32.mrf.mxu1  ;;  %v11607_v54 = vadd.f32 %v22019_v61, %v11394_v30  ;;  %v11148_v62 = vadd.f32 %v11147_v14, %v10870_v31  ;;  %v11412_v0 = vadd.f32 %v16499_v20, %v11154_v24  ;;  %11785 = vadd.xlane.f32.xlu0 %v11736_v48  ;;  %vm11640_vm1 = vcmp.ge.f32.partialorder %v11608_v41, 0.0  ;;  %v24497_v1 = vld [vmem:[#allocation141_spill] sm:$0xff] }
 0xe30   : >> { %v10606_v46 = vadd.f32 %v24489_v34, %v24488_v40  ;;  %v16452_v5 = vpop.f32.mrf.mxu0  ;;  %v11701_v32 = vsel %vm11637_vm13, %v11605_v26, %v11669_v52  ;;  %v11672_v11 = vmul.f32 0.2, %v11608_v41  ;;  %v11702_v20 = vsel %vm11638_vm15, %v11606_v16, %v11670_v19  ;;  %v24494_v26 = vld [vmem:[#allocation173_spill] sm:$0xff] }
 0xe31   : >> { %v16505_v35 = vpop.f32.mrf.mxu1  ;;  %v11166_v44 = vadd.f32 %v16452_v5, %v10894_v53  ;;  %v11406_v17 = vadd.f32 %v11405_v39, %v11148_v62  ;;  %11781 = vadd.xlane.f32.xlu1 %v11734_v51  ;;  %v11737_v61 = vmul.f32 %v24461_v36, %v11701_v32  ;;  %v11610_v22 = vadd.f32 %v24490_v29, %v11412_v0  ;;  %v24492_v39 = vld [vmem:[#allocation157_spill] sm:$0xff]  ;;  %v24499_v62 = vld [vmem:[#allocation88_spill] sm:$0xff] }
 0xe32   : >> { %v11159_v59 = vpop.f32.mrf.mxu0  ;;  %v11735_v6 = vmul.f32 %v24461_v36, %v11699_v45  ;;  %v11704_v3 = vsel %vm11640_vm1, %v11608_v41, %v11672_v11  ;;  %v11671_v63 = vmul.f32 0.2, %v11607_v54  ;;  %vm11639_vm2 = vcmp.ge.f32.partialorder %v11607_v54, 0.0  ;;  %v24498_v24 = vld [vmem:[#allocation165_spill] sm:$0xff]  ;;  %v24500_v5 = vld [vmem:[#allocation164_spill] sm:$0xff] }
 0xe33   : >> { %v11429_v27 = vpop.f32.mrf.mxu1  ;;  %v11609_v28 = vadd.f32 %v22025_v50, %v11406_v17  ;;  %v11160_v13 = vadd.f32 %v11159_v59, %v24491_v15  ;;  %v11424_v43 = vadd.f32 %v16502_v58, %v11166_v44  ;;  %11787 = vadd.xlane.f32.xlu0 %v11737_v61  ;;  %v10902_v23 = vadd.f32 %v24492_v39, %v10585_v33  ;;  %v24501_v17 = vld [vmem:[#allocation163_spill] sm:$0xff] }
 0xe34   : >> { %v10926_v12 = vadd.f32 %v24493_v21, %v10606_v46  ;;  %v16455_v16 = vpop.f32.mrf.mxu0  ;;  %v11740_v56 = vmul.f32 %v24461_v36, %v11704_v3  ;;  %v11738_v37 = vmul.f32 %v24461_v36, %v11702_v20  ;;  %v11703_v7 = vsel %vm11639_vm2, %v11607_v54, %v11671_v63  ;;  %v24502_v20 = vld [vmem:[#allocation91_spill] sm:$0xff] }
 0xe35   : >> { %v16508_v25 = vpop.f32.mrf.mxu1  ;;  %v11612_v42 = vadd.f32 %v24494_v26, %v11424_v43  ;;  %v11178_v38 = vadd.f32 %v16455_v16, %v24495_v49  ;;  %v11418_v50 = vadd.f32 %v11417_v9, %v11160_v13  ;;  %11783 = vadd.xlane.f32.xlu1 %v11735_v6  ;;  %vm11641_vm13 = vcmp.ge.f32.partialorder %v11609_v28, 0.0  ;;  %v24503_v6 = vld [vmem:[#allocation166_spill] sm:$0xff] }
 0xe36   : >> { %v11171_v58 = vpop.f32.mrf.mxu0  ;;  %v11673_v4 = vmul.f32 0.2, %v11609_v28  ;;  %vm11642_vm15 = vcmp.ge.f32.partialorder %v11610_v22, 0.0  ;;  %v11674_v53 = vmul.f32 0.2, %v11610_v22  ;;  %v10613_v30 = vadd.f32 %v24498_v24, %v24497_v1 }
 0xe37   : >> { %v11441_v31 = vpop.f32.mrf.mxu1  ;;  %v11611_v48 = vadd.f32 %v24496_v60, %v11418_v50  ;;  %v11172_v19 = vadd.f32 %v11171_v58, %v10902_v23  ;;  %v11436_v41 = vadd.f32 %v16505_v35, %v11178_v38  ;;  %11793 = vadd.xlane.f32.xlu0 %v11740_v56  ;;  %vm11644_vm1 = vcmp.ge.f32.partialorder %v11612_v42, 0.0 }
 0xe38   : >> { %v16458_v14 = vpop.f32.mrf.mxu0  ;;  %v11705_v51 = vsel %vm11641_vm13, %v11609_v28, %v11673_v4  ;;  %v11676_v9 = vmul.f32 0.2, %v11612_v42  ;;  %v11584_v54 = vadd.f32 %v22080_v57, %v24499_v62  ;;  %v11739_v35 = vmul.f32 %v24461_v36, %v11703_v7 }
 0xe39   : >> { %v11190_v52 = vadd.f32 %v16458_v14, %v10926_v12  ;;  %v11430_v45 = vadd.f32 %v11429_v27, %v11172_v19  ;;  %11789 = vadd.xlane.f32.xlu1 %v11738_v37  ;;  %v11741_v0 = vmul.f32 %v24461_v36, %v11705_v51  ;;  %v11614_v10 = vadd.f32 %v22042_v55, %v11436_v41  ;;  %v16511_v33 = vpop.f32.mrf.mxu1 }
 0xe3a   : >> { %v11183_v18 = vpop.f32.mrf.mxu0  ;;  %v11708_v40 = vsel %vm11644_vm1, %v11612_v42, %v11676_v9  ;;  %v11706_v34 = vsel %vm11642_vm15, %v11610_v22, %v11674_v53  ;;  %v11675_v44 = vmul.f32 0.2, %v11611_v48  ;;  %v10934_v61 = vadd.f32 %v24501_v17, %v10613_v30 }
 0xe3b   : >> { %v11613_v46 = vadd.f32 %v22077_v2, %v11430_v45  ;;  %v11184_v32 = vadd.f32 %v11183_v18, %v24500_v5  ;;  %v11448_v11 = vadd.f32 %v16508_v25, %v11190_v52  ;;  %11795 = vadd.xlane.f32.xlu0 %v11741_v0  ;;  %v11583_v55 = vadd.f32 %v22080_v57, %v24502_v20  ;;  %v11453_v28 = vpop.f32.mrf.mxu1 }
 0xe3c   : >> { %v16461_v27 = vpop.f32.mrf.mxu0  ;;  %v11744_v29 = vmul.f32 %v24461_v36, %v11708_v40  ;;  %vm11643_vm2 = vcmp.ge.f32.partialorder %v11611_v48, 0.0  ;;  %v11586_v63 = vadd.f32 %v22080_v57, %v24448_v47  ;;  %v11585_v15 = vadd.f32 %v22080_v57, %v24449_v8 }
 0xe3d   : >> { %v11616_v59 = vadd.f32 %v11584_v54, %v11448_v11  ;;  %v11202_v3 = vadd.f32 %v16461_v27, %v24503_v6  ;;  %v11442_v22 = vadd.f32 %v11441_v31, %v11184_v32  ;;  %11791 = vadd.xlane.f32.xlu1 %v11739_v35  ;;  %vm11645_vm13 = vcmp.ge.f32.partialorder %v11613_v46, 0.0  ;;  %v24504_v27 = vld [vmem:[#allocation57_spill] sm:$0xff] }
 0xe3e   : >> { %v11195_v2 = vpop.f32.mrf.mxu0  ;;  %v11742_v13 = vmul.f32 %v24461_v36, %v11706_v34  ;;  %v11677_v43 = vmul.f32 0.2, %v11613_v46  ;;  %v11707_v39 = vsel %vm11643_vm2, %v11611_v48, %v11675_v44  ;;  %v11678_v23 = vmul.f32 0.2, %v11614_v10 }
 0xe3f   : >> { %v11196_v25 = vadd.f32 %v11195_v2, %v10934_v61  ;;  %11801 = vadd.xlane.f32.xlu0 %v11744_v29  ;;  %vm11648_vm15 = vcmp.ge.f32.partialorder %v11616_v59, 0.0  ;;  %v11615_v21 = vadd.f32 %v11583_v55, %v11442_v22  ;;  %v11460_v12 = vadd.f32 %v16511_v33, %v11202_v3  ;;  %v24505_v55 = vld [vmem:[#allocation58_spill] sm:$0xff]  ;;  %v24506_v3 = vld [vmem:[#allocation59_spill] sm:$0xff] }
 0xe40   : >> { %v11709_v16 = vsel %vm11645_vm13, %v11613_v46, %v11677_v43  ;;  %v11680_v56 = vmul.f32 0.2, %v11616_v59  ;;  %vm11646_vm1 = vcmp.ge.f32.partialorder %v11614_v10, 0.0  ;;  %v11743_v8 = vmul.f32 %v24461_v36, %v11707_v39 }
 0xe41   : >> { %v11454_v37 = vadd.f32 %v11453_v28, %v11196_v25  ;;  %11797 = vadd.xlane.f32.xlu1 %v11742_v13  ;;  %v11745_v47 = vmul.f32 %v24461_v36, %v11709_v16  ;;  %v11618_v57 = vadd.f32 %v11586_v63, %v11460_v12  ;;  %v11710_v49 = vsel %vm11646_vm1, %v11614_v10, %v11678_v23  ;;  %v24507_v12 = vld [vmem:[#allocation60_spill] sm:$0xff] }
 0xe42   : >> { %v11712_v26 = vsel %vm11648_vm15, %v11616_v59, %v11680_v56  ;;  %v11679_v38 = vmul.f32 0.2, %v11615_v21  ;;  %vm11647_vm13 = vcmp.ge.f32.partialorder %v11615_v21, 0.0  ;;  %v11746_v4 = vmul.f32 %v24461_v36, %v11710_v49 }
 0xe43   : >> { %v11617_v42 = vadd.f32 %v11585_v15, %v11454_v37  ;;  %11803 = vadd.xlane.f32.xlu0 %v11745_v47  ;;  %v11748_v50 = vmul.f32 %v24461_v36, %v11712_v26  ;;  %v11682_v60 = vmul.f32 0.2, %v11618_v57  ;;  %vm11650_vm15 = vcmp.ge.f32.partialorder %v11618_v57, 0.0 }
 0xe44   : >> { %v11711_v53 = vsel %vm11647_vm13, %v11615_v21, %v11679_v38 }
 0xe45   : >> { %11799 = vadd.xlane.f32.xlu1 %v11743_v8  ;;  %vm11649_vm2 = vcmp.ge.f32.partialorder %v11617_v42, 0.0  ;;  %v11681_v58 = vmul.f32 0.2, %v11617_v42  ;;  %v11747_v48 = vmul.f32 %v24461_v36, %v11711_v53  ;;  %v11714_v19 = vsel %vm11650_vm15, %v11618_v57, %v11682_v60 }
 0xe46   : >> { %v11750_v41 = vmul.f32 %v24461_v36, %v11714_v19 }
 0xe47   : >> { %11809 = vadd.xlane.f32.xlu0 %v11748_v50  ;;  %v11713_v31 = vsel %vm11649_vm2, %v11617_v42, %v11681_v58 }
 0xe48   : >> { %v11749_v7 = vmul.f32 %v24461_v36, %v11713_v31 }
 0xe49   : >> { %11805 = vadd.xlane.f32.xlu1 %v11746_v4 }
 0xe4b   : >> { %11811 = vadd.xlane.f32.xlu0 %v11749_v7 }
 0xe4d   : >> { %11807 = vadd.xlane.f32.xlu1 %v11747_v48 }
 0xe51   : >> { %11813 = vadd.xlane.f32.xlu1 %v11750_v41 }
 0xe96   : >> { %v11754_v1 = vpop.xlane.xlu0 %11753 }
 0xe97   : >> { %v11860_v22 = vrot.slane %v11754_v1, %v24506_v3 }
 0xe9a   : >> { %v11752_v24 = vpop.xlane.xlu0 %11751 }
 0xe9b   : >> { %v11855_v20 = vrot.slane %v11752_v24, %v24504_v27 }
 0xe9d   : >> { %v11862_v13 = vsel %vm3346_vm3, %v11860_v22, %v11855_v20 }
 0xe9e   : >> { %v11758_v30 = vpop.xlane.xlu0 %11757  ;;  %v11762_v14 = vpop.xlane.xlu1 %11761 }
 0xe9f   : >> { %v11884_v63 = vrot.slane %v11762_v14, %v24506_v3  ;;  %v11874_v16 = vrot.slane %v11758_v30, %v24507_v12 }
 0xea2   : >> { %v11760_v51 = vpop.xlane.xlu1 %11759  ;;  %v11756_v9 = vpop.xlane.xlu0 %11755 }
 0xea3   : >> { %v11867_v29 = vrot.slane %v11756_v9, %v24505_v55  ;;  %v11880_v59 = vrot.slane %v11760_v51, %v24504_v27 }
 0xea5   : >> { %v11869_v43 = vsel %vm3353_vm4, %v11867_v29, %v11862_v13  ;;  %v11885_v25 = vsel %vm3346_vm3, %v11884_v63, %v11880_v59  ;;  %v11816_v29 = vld [vmem:[%s11815_s28] sm:$0xff] }
 0xea6   : >> { %v11766_v52 = vpop.xlane.xlu1 %11765  ;;  %v11876_v8 = vsel %vm3360_vm5, %v11874_v16, %v11869_v43  ;;  %vm11817_vm1 = vcmp.gt.f32.partialorder %v11816_v29, 0.0 }
 0xea7   : >> { %v11894_v57 = vrot.slane %v11766_v52, %v24507_v12 }
 0xea8   : >> { %v11768_v45 = vpop.xlane.xlu0 %11767 }
 0xea9   : >> { %v11899_v39 = vrot.slane %v11768_v45, %v24504_v27 }
 0xeaa   : >> { %v11764_v62 = vpop.xlane.xlu1 %11763 }
 0xeab   : >> { %v11889_v2 = vrot.slane %v11764_v62, %v24505_v55 }
 0xeac   : >> { %v11772_v54 = vpop.xlane.xlu0 %11771 }
 0xead   : >> { %v11890_v56 = vsel %vm3353_vm4, %v11889_v2, %v11885_v25  ;;  %v11908_v49 = vrot.slane %v11772_v54, %v24505_v55 }
 0xeae   : >> { %v11770_v0 = vpop.xlane.xlu1 %11769  ;;  %v11895_v60 = vsel %vm3360_vm5, %v11894_v57, %v11890_v56 }
 0xeaf   : >> { %v11903_v28 = vrot.slane %v11770_v0, %v24506_v3 }
 0xeb0   : >> { %v11778_v10 = vpop.xlane.xlu0 %11777 }
 0xeb1   : >> { %v11904_v37 = vsel %vm3346_vm3, %v11903_v28, %v11899_v39  ;;  %v11922_v47 = vrot.slane %v11778_v10, %v24506_v3 }
 0xeb2   : >> { %v11774_v18 = vpop.xlane.xlu1 %11773  ;;  %v11909_v48 = vsel %vm3353_vm4, %v11908_v49, %v11904_v37  ;;  %v24509_v49 = vld [vmem:[#allocation90_spill] sm:$0xff] (%p9549_p6) }
 0xeb3   : >> { %v11913_v26 = vrot.slane %v11774_v18, %v24507_v12 }
 0xeb4   : >> { %v11780_v35 = vpop.xlane.xlu0 %11779 }
 0xeb5   : >> { %v11927_v19 = vrot.slane %v11780_v35, %v24505_v55  ;;  %v11914_v1 = vsel %vm3360_vm5, %v11913_v26, %v11909_v48 }
 0xeb6   : >> { %v11776_v33 = vpop.xlane.xlu1 %11775 }
 0xeb7   : >> { %v11918_v23 = vrot.slane %v11776_v33, %v24504_v27 }
 0xeb8   : >> { %v11786_v40 = vpop.xlane.xlu0 %11785 }
 0xeb9   : >> { %v11923_v58 = vsel %vm3346_vm3, %v11922_v47, %v11918_v23  ;;  %v11941_v4 = vrot.slane %v11786_v40, %v24506_v3 }
 0xeba   : >> { %v11782_v34 = vpop.xlane.xlu1 %11781  ;;  %v11928_v51 = vsel %vm3353_vm4, %v11927_v19, %v11923_v58 }
 0xebb   : >> { %v11932_v31 = vrot.slane %v11782_v34, %v24507_v12 }
 0xebc   : >> { %v11788_v46 = vpop.xlane.xlu0 %11787 }
 0xebd   : >> { %v11946_v9 = vrot.slane %v11788_v46, %v24505_v55  ;;  %v11933_v62 = vsel %vm3360_vm5, %v11932_v31, %v11928_v51 }
 0xebe   : >> { %v11784_v5 = vpop.xlane.xlu1 %11783 }
 0xebf   : >> { %v11937_v42 = vrot.slane %v11784_v5, %v24504_v27  ;;  %v12011_v5 = vsel %vm3495_vm6, %v11895_v60, %v11876_v8  ;;  %v24508_v8 = vld [vmem:[#allocation71_spill] sm:$0xff] (%p9549_p6) }
 0xec0   : >> { %v11794_v32 = vpop.xlane.xlu0 %11793  ;;  %v22246_v57 = vand.u32 (%p9549_p6), 4294901760, %v24508_v8 }
 0xec1   : >> { %v11960_v41 = vrot.slane %v11794_v32, %v24506_v3  ;;  %v11942_v24 = vsel %vm3346_vm3, %v11941_v4, %v11937_v42  ;;  %v24511_v4 = vld [vmem:[#allocation91_spill] sm:$0xff] (%p9549_p6) }
 0xec2   : >> { %v11790_v11 = vpop.xlane.xlu1 %11789  ;;  %v11947_v35 = vsel %vm3353_vm4, %v11946_v9, %v11942_v24  ;;  %v22255_v31 = vand.u32 (%p9549_p6), 4294901760, %v24511_v4  ;;  %16512 = vmatprep.subr.mxu0 (%p9549_p6), %v22246_v57  ;;  %v12196_v36 = vsub.f32 (%p9549_p6), %v24508_v8, %v22246_v57  ;;  %v12690_v8 = vld [vmem:[%s23235_s7 + $0x68] sm:$0xff] (%p9549_p6) }
 0xec3   : >> { %v11951_v30 = vrot.slane %v11790_v11, %v24507_v12  ;;  %16513 = vmatpush3.msra.mxu0 (%p9549_p6), %v22246_v57 }
 0xec4   : >> { %v11796_v44 = vpop.xlane.xlu0 %11795  ;;  %v12217_v9 = vsub.f32 (%p9549_p6), %v24511_v4, %v22255_v31 }
 0xec5   : >> { %v11965_v54 = vrot.slane %v11796_v44, %v24505_v55  ;;  %v11952_v32 = vsel %vm3360_vm5, %v11951_v30, %v11947_v35  ;;  %v12013_v44 = vsel %vm3497_vm7, %v11914_v1, %v12011_v5 }
 0xec6   : >> { %v11792_v17 = vpop.xlane.xlu1 %11791  ;;  %v12015_v59 = vsel %vm3499_vm8, %v11933_v62, %v12013_v44  ;;  %v22292_v35 = vand.u32 (%p9549_p6), 4294901760, %v12217_v9 }
 0xec7   : >> { %v11956_v38 = vrot.slane %v11792_v17, %v24504_v27  ;;  %v12017_v22 = vsel %vm3501_vm9, %v11952_v32, %v12015_v59 }
 0xec8   : >> { %v11802_v61 = vpop.xlane.xlu0 %11801  ;;  %v12219_v44 = vsub.f32 (%p9549_p6), %v12217_v9, %v22292_v35 }
 0xec9   : >> { %v11979_v14 = vrot.slane %v11802_v61, %v24506_v3  ;;  %v11961_v52 = vsel %vm3346_vm3, %v11960_v41, %v11956_v38  ;;  %v22249_v38 = vand.u32 (%p9549_p6), 4294901760, %v24509_v49 }
 0xeca   : >> { %v11798_v6 = vpop.xlane.xlu1 %11797  ;;  %v11966_v11 = vsel %vm3353_vm4, %v11965_v54, %v11961_v52 }
 0xecb   : >> { %v11970_v45 = vrot.slane %v11798_v6, %v24507_v12  ;;  %v12203_v24 = vsub.f32 (%p9549_p6), %v24509_v49, %v22249_v38  ;;  %16514 = vmatprep.subr.mxu0 (%p9549_p6), %v22249_v38  ;;  %v12689_v49 = vld [vmem:[%s23235_s7 + $0x60] sm:$0xff] (%p9549_p6) }
 0xecc   : >> { %v11804_v15 = vpop.xlane.xlu0 %11803  ;;  %16515 = vmatpush3.msra.mxu0 (%p9549_p6), %v22249_v38 }
 0xecd   : >> { %v11984_v33 = vrot.slane %v11804_v15, %v24505_v55  ;;  %v11971_v17 = vsel %vm3360_vm5, %v11970_v45, %v11966_v11  ;;  %v22276_v45 = vand.u32 (%p9549_p6), 4294901760, %v12196_v36  ;;  %v22281_v54 = vand.u32 (%p9549_p6), 4294901760, %v12203_v24 }
 0xece   : >> { %v11800_v21 = vpop.xlane.xlu1 %11799  ;;  %v12019_v63 = vsel %vm3503_vm10, %v11971_v17, %v12017_v22 }
 0xecf   : >> { %v11975_v7 = vrot.slane %v11800_v21, %v24504_v27 }
 0xed0   : >> { %v11810_v50 = vpop.xlane.xlu0 %11809 }
 0xed1   : >> { %v11980_v0 = vsel %vm3346_vm3, %v11979_v14, %v11975_v7  ;;  %v11998_v40 = vrot.slane %v11810_v50, %v24506_v3  ;;  %v24510_v50 = vld [vmem:[#allocation88_spill] sm:$0xff] (%p9549_p6) }
 0xed2   : >> { %v11806_v53 = vpop.xlane.xlu1 %11805  ;;  %v11985_v61 = vsel %vm3353_vm4, %v11984_v33, %v11980_v0  ;;  %v22252_v58 = vand.u32 (%p9549_p6), 4294901760, %v24510_v50 }
 0xed3   : >> { %v11989_v10 = vrot.slane %v11806_v53, %v24507_v12 }
 0xed4   : >> { %v11812_v34 = vpop.xlane.xlu0 %11811  ;;  %v12210_v14 = vsub.f32 (%p9549_p6), %v24510_v50, %v22252_v58  ;;  %16516 = vmatprep.subr.mxu0 (%p9549_p6), %v22252_v58  ;;  %v22414_v50 = vand.u32 (%p9549_p6), 4294901760, %v12689_v49 }
 0xed5   : >> { %v11990_v6 = vsel %vm3360_vm5, %v11989_v10, %v11985_v61  ;;  %16517 = vmatpush3.msra.mxu0 (%p9549_p6), %v22252_v58 }
 0xed6   : >> { %v11808_v18 = vpop.xlane.xlu1 %11807  ;;  %v12021_v13 = vsel %vm3505_vm11, %v11990_v6, %v12019_v63  ;;  %v22288_v10 = vand.u32 (%p9549_p6), 4294901760, %v12210_v14  ;;  %16518 = vmatprep.subr.mxu0 (%p9549_p6), %v22255_v31 }
 0xed7   : >> { %v11994_v46 = vrot.slane %v11808_v18, %v24504_v27  ;;  %v12003_v27 = vrot.slane %v11812_v34, %v24505_v55  ;;  %16519 = vmatpush3.msra.mxu0 (%p9549_p6), %v22255_v31 }
 0xed8   : > { %v12212_v32 = vsub.f32 (%p9549_p6), %v12210_v14, %v22288_v10  ;;  %16540 = vmatprep.subr.mxu0 (%p9549_p6), %v12196_v36 }
 0xed9   : >> { %v11999_v20 = vsel %vm3346_vm3, %v11998_v40, %v11994_v46  ;;  %v12198_v40 = vsub.f32 (%p9549_p6), %v12196_v36, %v22276_v45  ;;  %v12205_v46 = vsub.f32 (%p9549_p6), %v12203_v24, %v22281_v54 }
 0xeda   : >> { %v11814_v3 = vpop.xlane.xlu1 %11813  ;;  %v12004_v28 = vsel %vm3353_vm4, %v12003_v27, %v11999_v20 }
 0xedb   : >> { %v12008_v2 = vrot.slane %v11814_v3, %v24507_v12  ;;  %v12199_v61 = vand.u32 (%p9549_p6), 4294901760, %v12198_v40 }
 0xedd   : >> { %v12009_v15 = vsel %vm3360_vm5, %v12008_v2, %v12004_v28  ;;  %16526 = vmatprep.subr.mxu1 (%p9549_p6), %v12199_v61  ;;  %v12213_v2 = vand.u32 (%p9549_p6), 4294901760, %v12212_v32 }
 0xede   : >> { %v12023_v43 = vsel %vm3507_vm12, %v12009_v15, %v12021_v13  ;;  %16527 = vmatpush3.msra.mxu1 (%p9549_p6), %v12199_v61  ;;  %v12220_v15 = vand.u32 (%p9549_p6), 4294901760, %v12219_v44  ;;  %v12682_v61 = vld [vmem:[%s23235_s7 + $0x28] sm:$0xff] (%p9549_p6) }
 0xedf   : >> { %v12025_v25 = vsel %vm11817_vm1, %v12023_v43, -1e+30 }
 0xee0   : >> { %v12026_v55 = vsel %vm3511_vm14, %v12025_v25, -inf }
 0xee1   : >> { %12027 = vmax.xlane.f32.xlu0 %v12026_v55  ;;  %v12691_v55 = vld [vmem:[%s23235_s7 + $0x70] sm:$0xff] (%p9549_p6) }
 0xf6a   : >> { %v12028_v39 = vpop.xlane.xlu0 %12027 }
 0xf6b   : >> { %v12029_v23 = vsub.f32 %v12025_v25, %v12028_v39  ;;  %v12692_v25 = vld [vmem:[%s23235_s7 + $0x78] sm:$0xff] (%p9549_p6) }
 0xf6c   : > { %v22335_v39 = vand.u32 (%p9549_p6), 4294901760, %v12692_v25 }
 0xf6d   : >> { %v12030_v21 = vmul.f32 1.442695, %v12029_v23  ;;  %v22341_v23 = vand.u32 (%p9549_p6), 4294901760, %v12691_v55 }
 0xf6f   : >> { %17101 = vpow2.f32 %v12030_v21  ;;  %v22348_v21 = vsub.f32 (%p9549_p6), %v12692_v25, %v22335_v39 }
 0xf7c   : >> { %v17102_v12 = vpop.eup %17101 }
 0xf7d   : >> { %v12032_v16 = vmul.f32 %v17102_v12, %v11816_v29  ;;  %v12206_v29 = vand.u32 (%p9549_p6), 4294901760, %v12205_v46  ;;  %v22355_v12 = vsub.f32 (%p9549_p6), %v12691_v55, %v22341_v23  ;;  %v12683_v46 = vld [vmem:[%s23235_s7 + $0x30] sm:$0xff] (%p9549_p6) }
 0xf7e   : > { %v22499_v44 = vand.u32 (%p9549_p6), 4294901760, %v12683_v46 }
 0xf7f   : >> { %v12033_v56 = vsel %vm3511_vm14, %v12032_v16, 0.0  ;;  %16528 = vmatprep.subr.mxu1 (%p9549_p6), %v12206_v29 }
 0xf80   : >> { %12034 = vadd.xlane.f32.xlu1 %v12033_v56  ;;  %16529 = vmatpush3.msra.mxu1 (%p9549_p6), %v12206_v29  ;;  %v22371_v56 = vand.u32 (%p9549_p6), 4294901760, %v22355_v12 }
 0xf81   : > { %16530 = vmatprep.subr.mxu1 (%p9549_p6), %v12213_v2 }
 0xf82   : > { %16531 = vmatpush3.msra.mxu1 (%p9549_p6), %v12213_v2  ;;  %24513 = vst [vmem:[#allocation66_spill] sm:$0xff] (%p9549_p6), %v22371_v56 }
 0xf83   : > { %16532 = vmatprep.subr.mxu1 (%p9549_p6), %v12220_v15 }
 0xf84   : > { %16533 = vmatpush3.msra.mxu1 (%p9549_p6), %v12220_v15 }
 0xf85   : > { %16554 = vmatprep.subr.mxu1 (%p9549_p6), %v22246_v57 }
0x1009   : >> { %v12035_v37 = vpop.xlane.xlu1 %12034 }
0x100a   : >> { %v12036_v47 = vadd.f32 1e-16, %v12035_v37 }
0x100c   : >> { %17103 = vrcp.f32 %v12036_v47  ;;  %v12829_v47 = vsub.f32 (%p9549_p6), %v22355_v12, %v22371_v56 }
0x1018   : > { %9551 = sbr.rel (!%p9549_p6) target bundleno = 3248 (0xcb0), region = 148 }
0x1019   : >> { %v17104_v26 = vpop.eup %17103 }
0x101a   : >> { %v12038_v42 = vmul.f32 %v17104_v26, %v12032_v16  ;;  %v22362_v16 = vand.u32 (%p9549_p6), 4294901760, %v22348_v21 }
0x101c   : >> { %12040 = vst.msk [vmem:[%s12039_s29] sm:$0xff] %vm3511_vm14, %v12038_v42  ;;  %24512 = vst [vmem:[#allocation64_spill] sm:$0xff] (%p9549_p6), %v22362_v16  ;;  %v12822_v37 = vsub.f32 (%p9549_p6), %v22348_v21, %v22362_v16  ;;  %v12830_v42 = vand.u32 (%p9549_p6), 4294901760, %v12829_v47 }
0x101e   : > { %v12823_v26 = vand.u32 4294901760, %v12822_v37 }
0x1023   : > { %v12041_v7 = vld [vmem:[#allocation2] sm:$0xff]  ;;  %v12042_v53 = vld [vmem:[#allocation2 + $0x8] sm:$0xff]  ;;  %v12043_v19 = vld [vmem:[#allocation2 + $0x10] sm:$0xff] }
0x1024   : > { %v12050_v60 = vsel %vm3511_vm14, %v12041_v7, 0  ;;  %v12053_v48 = vsel %vm3511_vm14, %v12042_v53, 0  ;;  %v12044_v41 = vld [vmem:[#allocation2 + $0x18] sm:$0xff]  ;;  %v12056_v51 = vsel %vm3511_vm14, %v12043_v19, 0  ;;  %v12687_v53 = vld [vmem:[%s23235_s7 + $0x50] sm:$0xff] }
0x1025   : > { %v22262_v1 = vand.u32 4294901760, %v12050_v60  ;;  %v22266_v30 = vand.u32 4294901760, %v12053_v48  ;;  %v12059_v52 = vsel %vm3511_vm14, %v12044_v41, 0  ;;  %v22290_v18 = vand.u32 4294901760, %v12056_v51 }
0x1026   : > { %v22294_v33 = vand.u32 4294901760, %v12059_v52  ;;  %v22442_v41 = vand.u32 4294901760, %v12687_v53 }
0x1027   : > { %v22279_v62 = vsub.f32 %v12050_v60, %v22262_v1  ;;  %v22284_v0 = vsub.f32 %v12053_v48, %v22266_v30  ;;  %16534 = vmatprep.mubr.f32.mxu1 %v22262_v1  ;;  %v22304_v11 = vsub.f32 %v12056_v51, %v22290_v18 }
0x1028   : > { %v22308_v17 = vsub.f32 %v12059_v52, %v22294_v33  ;;  %16535 = vmatmul.mubr.f32.vlgmr.msra.gmra.mxu1 %v22266_v30 }
0x1029   : > { %v12132_v34 = vand.u32 4294901760, %v22279_v62  ;;  %v12142_v5 = vand.u32 4294901760, %v22284_v0  ;;  %v12152_v6 = vand.u32 4294901760, %v22304_v11  ;;  %16555 = vmatpush3.msra.mxu1 %v22246_v57  ;;  %16537 = vmatprep.mubr.f32.mxu1 %v22290_v18 }
0x102a   : > { %v12162_v27 = vand.u32 4294901760, %v22308_v17  ;;  %16556 = vmatprep.subr.mxu1 %v22249_v38 }
0x102b   : > { %v12133_v20 = vsub.f32 %v22279_v62, %v12132_v34  ;;  %v12143_v59 = vsub.f32 %v22284_v0, %v12142_v5  ;;  %v12153_v63 = vsub.f32 %v22304_v11, %v12152_v6  ;;  %16557 = vmatpush3.msra.mxu1 %v22249_v38 }
0x102c   : > { %v12163_v28 = vsub.f32 %v22308_v17, %v12162_v27  ;;  %16538 = vmatmul.mubr.f32.gmra.mxu1 %v22294_v33  ;;  %16558 = vmatprep.subr.mxu1 %v22252_v58 }
0x102d   : > { %v12134_v3 = vand.u32 4294901760, %v12133_v20  ;;  %v12144_v22 = vand.u32 4294901760, %v12143_v59  ;;  %v12154_v13 = vand.u32 4294901760, %v12153_v63  ;;  %16559 = vmatpush3.msra.mxu1 %v22252_v58  ;;  %16562 = vmatprep.mubr.f32.mxu1 %v12132_v34  ;;  %v22514_v59 = vsub.f32 %v12683_v46, %v22499_v44 }
0x102e   : > { %v12164_v43 = vand.u32 4294901760, %v12163_v28  ;;  %16560 = vmatprep.subr.mxu1 %v22255_v31 }
0x102f   : > { %16520 = vmatprep.mubr.f32.mxu0 %v12134_v3  ;;  %16561 = vmatpush3.msra.mxu1 %v22255_v31  ;;  %v12681_v3 = vld [vmem:[%s23235_s7 + $0x20] sm:$0xff]  ;;  %v22526_v63 = vand.u32 4294901760, %v22514_v59 }
0x1030   : > { %16521 = vmatmul.mubr.f32.vlgmr.msra.gmra.mxu0 %v12144_v22  ;;  %16563 = vmatmul.mubr.f32.vlgmr.msra.gmra.mxu1 %v12142_v5  ;;  %v22532_v15 = vand.u32 4294901760, %v12681_v3 }
0x1031   : > { %16541 = vmatpush3.msra.mxu0 %v12196_v36  ;;  %16523 = vmatprep.mubr.f32.mxu0 %v12154_v13  ;;  %v12686_v36 = vld [vmem:[%s23235_s7 + $0x48] sm:$0xff]  ;;  %24521 = vst [vmem:[#allocation4_spill] sm:$0xff] %v22526_v63  ;;  %v12680_v13 = vld [vmem:[%s23235_s7 + $0x18] sm:$0xff]  ;;  %v12885_v25 = vsub.f32 %v22514_v59, %v22526_v63 }
0x1032   : > { %16542 = vmatprep.subr.mxu0 %v12203_v24  ;;  %16582 = vmatprep.subr.mxu1 %v22246_v57  ;;  %v22458_v51 = vand.u32 4294901760, %v12686_v36  ;;  %v22543_v37 = vand.u32 4294901760, %v12680_v13  ;;  %v22547_v47 = vsub.f32 %v12681_v3, %v22532_v15 }
0x1033   : > { %16543 = vmatpush3.msra.mxu0 %v12203_v24  ;;  %16583 = vmatpush3.msra.mxu1 %v22246_v57  ;;  %v22406_v57 = vand.u32 4294901760, %v12690_v8 }
0x1034   : > { %16524 = vmatmul.mubr.f32.gmra.mxu0 %v12164_v43  ;;  %16544 = vmatprep.subr.mxu0 %v12210_v14 }
0x1035   : > { %16545 = vmatpush3.msra.mxu0 %v12210_v14  ;;  %16548 = vmatprep.mubr.f32.mxu0 %v22279_v62  ;;  %v22455_v14 = vsub.f32 %v12687_v53, %v22442_v41  ;;  %v22562_v53 = vand.u32 4294901760, %v22547_v47 }
0x1036   : > { %16546 = vmatprep.subr.mxu0 %v12217_v9  ;;  %16584 = vmatprep.subr.mxu1 %v22249_v38 }
0x1037   : > { %16547 = vmatpush3.msra.mxu0 %v12217_v9  ;;  %16565 = vmatprep.mubr.f32.mxu1 %v12152_v6  ;;  %v12685_v9 = vld [vmem:[%s23235_s7 + $0x40] sm:$0xff]  ;;  %v22467_v62 = vand.u32 4294901760, %v22455_v14  ;;  %v22516_v6 = vand.u32 4294901760, %v12682_v61  ;;  %24523 = vst [vmem:[#allocation80_spill] sm:$0xff] %v22562_v53 }
0x1038   : > { %16549 = vmatmul.mubr.f32.vlgmr.msra.gmra.mxu0 %v22284_v0  ;;  %16568 = vmatprep.subr.mxu0 %v22276_v45  ;;  %v22472_v0 = vsub.f32 %v12686_v36, %v22458_v51 }
0x1039   : > { %16569 = vmatpush3.msra.mxu0 %v22276_v45  ;;  %16551 = vmatprep.mubr.f32.mxu0 %v22304_v11  ;;  %24517 = vst [vmem:[#allocation70_spill] sm:$0xff] %v22467_v62  ;;  %v22529_v28 = vsub.f32 %v12682_v61, %v22516_v6 }
0x103a   : > { %16570 = vmatprep.subr.mxu0 %v22281_v54  ;;  %16585 = vmatpush3.msra.mxu1 %v22249_v38  ;;  %v22412_v38 = vsub.f32 %v12690_v8, %v22406_v57  ;;  %v22487_v34 = vand.u32 4294901760, %v22472_v0 }
0x103b   : > { %16571 = vmatpush3.msra.mxu0 %v22281_v54  ;;  %16566 = vmatmul.mubr.f32.gmra.mxu1 %v12162_v27  ;;  %v22469_v54 = vand.u32 4294901760, %v12685_v9  ;;  %v22541_v55 = vand.u32 4294901760, %v22529_v28 }
0x103c   : > { %16552 = vmatmul.mubr.f32.gmra.mxu0 %v22308_v17  ;;  %16572 = vmatprep.subr.mxu0 %v22288_v10  ;;  %v22422_v4 = vand.u32 4294901760, %v22412_v38  ;;  %24518 = vst [vmem:[#allocation62_spill] sm:$0xff] %v22487_v34  ;;  %v12864_v17 = vsub.f32 %v22472_v0, %v22487_v34 }
0x103d   : > { %16573 = vmatpush3.msra.mxu0 %v22288_v10  ;;  %16576 = vmatprep.mubr.f32.mxu0 %v22262_v1  ;;  %v12684_v10 = vld [vmem:[%s23235_s7 + $0x38] sm:$0xff]  ;;  %24522 = vst [vmem:[#allocation63_spill] sm:$0xff] %v22541_v55  ;;  %v12892_v8 = vsub.f32 %v22529_v28, %v22541_v55 }
0x103e   : > { %16574 = vmatprep.subr.mxu0 %v22292_v35  ;;  %16586 = vmatprep.subr.mxu1 %v22252_v58  ;;  %24514 = vst [vmem:[#allocation61_spill] sm:$0xff] %v22422_v4  ;;  %v12836_v60 = vsub.f32 %v22412_v38, %v22422_v4  ;;  %v22483_v40 = vand.u32 4294901760, %v12684_v10  ;;  %v12865_v27 = vand.u32 4294901760, %v12864_v17 }
0x103f   : > { %16575 = vmatpush3.msra.mxu0 %v22292_v35  ;;  %16587 = vmatpush3.msra.mxu1 %v22252_v58  ;;  %v12688_v58 = vld [vmem:[%s23235_s7 + $0x58] sm:$0xff]  ;;  %v12857_v35 = vsub.f32 %v22455_v14, %v22467_v62  ;;  %v12893_v36 = vand.u32 4294901760, %v12892_v8 }
0x1040   : > { %16577 = vmatmul.mubr.f32.vlgmr.msra.gmra.mxu0 %v22266_v30  ;;  %16590 = vmatprep.mubr.f32.mxu1 %v22262_v1  ;;  %v22427_v7 = vand.u32 4294901760, %v12688_v58  ;;  %v12837_v1 = vand.u32 4294901760, %v12836_v60  ;;  %v22497_v11 = vsub.f32 %v12684_v10, %v22483_v40  ;;  %v12678_v60 = vld [vmem:[%s23235_s7 + $0x8] sm:$0xff] }
0x1041   : > { %16579 = vmatprep.mubr.f32.mxu0 %v22290_v18  ;;  %16588 = vmatprep.subr.mxu1 %v22255_v31  ;;  %v12858_v5 = vand.u32 4294901760, %v12857_v35 }
0x1042   : > { %16589 = vmatpush3.msra.mxu1 %v22255_v31  ;;  %16596 = vmatprep.subr.mxu0 %v22335_v39  ;;  %v22425_v31 = vsub.f32 %v12689_v49, %v22414_v50  ;;  %v22440_v19 = vsub.f32 %v12688_v58, %v22427_v7  ;;  %v22511_v29 = vand.u32 4294901760, %v22497_v11  ;;  %v22556_v49 = vsub.f32 %v12680_v13, %v22543_v37 }
0x1043   : > { %16591 = vmatmul.mubr.f32.vlgmr.msra.gmra.mxu1 %v22266_v30  ;;  %16634 = vmatprep.subr.mxu1 %v12823_v26 }
0x1044   : > { %16580 = vmatmul.mubr.f32.gmra.mxu0 %v22294_v33  ;;  %16593 = vmatprep.mubr.f32.mxu1 %v22290_v18  ;;  %v22437_v48 = vand.u32 4294901760, %v22425_v31  ;;  %v22452_v30 = vand.u32 4294901760, %v22440_v19  ;;  %24520 = vst [vmem:[#allocation75_spill] sm:$0xff] %v22511_v29  ;;  %v12878_v2 = vsub.f32 %v22497_v11, %v22511_v29 }
0x1045   : > { %16635 = vmatpush3.msra.mxu1 %v12823_v26  ;;  %16597 = vmatpush3.msra.mxu0 %v22335_v39  ;;  %v12679_v26 = vld [vmem:[%s23235_s7 + $0x10] sm:$0xff] }
0x1046   : > { %16636 = vmatprep.subr.mxu1 %v12830_v42  ;;  %16598 = vmatprep.subr.mxu0 %v22341_v23  ;;  %24515 = vst [vmem:[#allocation68_spill] sm:$0xff] %v22437_v48  ;;  %v12843_v24 = vsub.f32 %v22425_v31, %v22437_v48  ;;  %24516 = vst [vmem:[#allocation74_spill] sm:$0xff] %v22452_v30  ;;  %v12850_v45 = vsub.f32 %v22440_v19, %v22452_v30  ;;  %v12879_v43 = vand.u32 4294901760, %v12878_v2 }
0x1047   : > { %16637 = vmatpush3.msra.mxu1 %v12830_v42  ;;  %16599 = vmatpush3.msra.mxu0 %v22341_v23  ;;  %v12886_v42 = vand.u32 4294901760, %v12885_v25  ;;  %v22558_v58 = vand.u32 4294901760, %v12679_v26 }
0x1048   : > { %16594 = vmatmul.mubr.f32.gmra.mxu1 %v22294_v33  ;;  %16600 = vmatprep.subr.mxu0 %v22406_v57  ;;  %v12844_v52 = vand.u32 4294901760, %v12843_v24  ;;  %v12851_v18 = vand.u32 4294901760, %v12850_v45  ;;  %v22481_v33 = vsub.f32 %v12685_v9, %v22469_v54  ;;  %v22574_v9 = vand.u32 4294901760, %v12678_v60  ;;  %v12677_v45 = vld [vmem:[%s23235_s7] sm:$0xff] }
0x1049   : > { %16601 = vmatpush3.msra.mxu0 %v22406_v57  ;;  %16638 = vmatprep.subr.mxu1 %v12837_v1  ;;  %v22572_v24 = vsub.f32 %v12679_v26, %v22558_v58  ;;  %v22591_v46 = vand.u32 4294901760, %v12677_v45 }
0x104a   : > { %16602 = vmatprep.subr.mxu0 %v22414_v50  ;;  %16639 = vmatpush3.msra.mxu1 %v12837_v1  ;;  %v22494_v32 = vand.u32 4294901760, %v22481_v33  ;;  %v22569_v1 = vand.u32 4294901760, %v22556_v49  ;;  %v22589_v35 = vsub.f32 %v12678_v60, %v22574_v9 }
0x104b   : > { %16603 = vmatpush3.msra.mxu0 %v22414_v50  ;;  %16640 = vmatprep.subr.mxu1 %v12844_v52 }
0x104c   : > { %16604 = vmatprep.subr.mxu0 %v22427_v7  ;;  %16641 = vmatpush3.msra.mxu1 %v12844_v52  ;;  %24519 = vst [vmem:[#allocation73_spill] sm:$0xff] %v22494_v32  ;;  %v12871_v20 = vsub.f32 %v22481_v33, %v22494_v32  ;;  %24524 = vst [vmem:[#allocation77_spill] sm:$0xff] %v22569_v1  ;;  %v12899_v52 = vsub.f32 %v22547_v47, %v22562_v53 }
0x104d   : > { %16605 = vmatpush3.msra.mxu0 %v22427_v7  ;;  %16642 = vmatprep.subr.mxu1 %v12851_v18  ;;  %v12906_v10 = vsub.f32 %v22556_v49, %v22569_v1 }
0x104e   : > { %16606 = vmatprep.subr.mxu0 %v22442_v41  ;;  %16643 = vmatpush3.msra.mxu1 %v12851_v18  ;;  %v12872_v22 = vand.u32 4294901760, %v12871_v20  ;;  %v22586_v18 = vand.u32 4294901760, %v22572_v24  ;;  %v22598_v20 = vand.u32 4294901760, %v22589_v35 }
0x104f   : > { %16607 = vmatpush3.msra.mxu0 %v22442_v41  ;;  %16644 = vmatprep.subr.mxu1 %v12858_v5  ;;  %v12907_v17 = vand.u32 4294901760, %v12906_v10 }
0x1050   : > { %16608 = vmatprep.subr.mxu0 %v22458_v51  ;;  %16645 = vmatpush3.msra.mxu1 %v12858_v5  ;;  %24525 = vst [vmem:[#allocation84_spill] sm:$0xff] %v22586_v18  ;;  %v12900_v5 = vand.u32 4294901760, %v12899_v52  ;;  %v12913_v61 = vsub.f32 %v22572_v24, %v22586_v18  ;;  %24526 = vst [vmem:[#allocation79_spill] sm:$0xff] %v22598_v20 }
0x1051   : > { %16609 = vmatpush3.msra.mxu0 %v22458_v51  ;;  %16646 = vmatprep.subr.mxu1 %v12865_v27 }
0x1052   : > { %16610 = vmatprep.subr.mxu0 %v22469_v54  ;;  %16647 = vmatpush3.msra.mxu1 %v12865_v27  ;;  %v22601_v27 = vsub.f32 %v12677_v45, %v22591_v46  ;;  %v12914_v3 = vand.u32 4294901760, %v12913_v61 }
0x1053   : > { %16611 = vmatpush3.msra.mxu0 %v22469_v54  ;;  %16648 = vmatprep.subr.mxu1 %v12872_v22 }
0x1054   : > { %16612 = vmatprep.subr.mxu0 %v22483_v40  ;;  %16649 = vmatpush3.msra.mxu1 %v12872_v22  ;;  %24527 = vst [vmem:[#allocation92_spill] sm:$0xff] %v22601_v27  ;;  %v12920_v22 = vsub.f32 %v22589_v35, %v22598_v20  ;;  %v22608_v2 = vand.u32 4294901760, %v22601_v27 }
0x1055   : > { %16613 = vmatpush3.msra.mxu0 %v22483_v40  ;;  %16650 = vmatprep.subr.mxu1 %v12879_v43 }
0x1056   : > { %16614 = vmatprep.subr.mxu0 %v22499_v44  ;;  %16651 = vmatpush3.msra.mxu1 %v12879_v43  ;;  %24528 = vst [vmem:[#allocation81_spill] sm:$0xff] %v22608_v2  ;;  %v12921_v13 = vand.u32 4294901760, %v12920_v22  ;;  %v12927_v43 = vsub.f32 %v22601_v27, %v22608_v2 }
0x1057   : > { %16615 = vmatpush3.msra.mxu0 %v22499_v44  ;;  %16652 = vmatprep.subr.mxu1 %v12886_v42 }
0x1058   : > { %16616 = vmatprep.subr.mxu0 %v22516_v6  ;;  %16653 = vmatpush3.msra.mxu1 %v12886_v42  ;;  %v12928_v25 = vand.u32 4294901760, %v12927_v43 }
0x1059   : > { %16617 = vmatpush3.msra.mxu0 %v22516_v6  ;;  %16654 = vmatprep.subr.mxu1 %v12893_v36 }
0x105a   : > { %16618 = vmatprep.subr.mxu0 %v22532_v15  ;;  %16655 = vmatpush3.msra.mxu1 %v12893_v36 }
0x105b   : > { %16619 = vmatpush3.msra.mxu0 %v22532_v15  ;;  %16656 = vmatprep.subr.mxu1 %v12900_v5 }
0x105c   : > { %16620 = vmatprep.subr.mxu0 %v22543_v37  ;;  %16657 = vmatpush3.msra.mxu1 %v12900_v5 }
0x105d   : > { %16621 = vmatpush3.msra.mxu0 %v22543_v37  ;;  %16658 = vmatprep.subr.mxu1 %v12907_v17 }
0x105e   : > { %16622 = vmatprep.subr.mxu0 %v22558_v58  ;;  %16659 = vmatpush3.msra.mxu1 %v12907_v17  ;;  %v24529_v17 = vld [vmem:[#allocation8_spill] sm:$0xff] }
0x105f   : > { %16623 = vmatpush3.msra.mxu0 %v22558_v58  ;;  %16660 = vmatprep.subr.mxu1 %v12914_v3 }
0x1060   : > { %16624 = vmatprep.subr.mxu0 %v22574_v9  ;;  %16661 = vmatpush3.msra.mxu1 %v12914_v3 }
0x1061   : > { %16625 = vmatpush3.msra.mxu0 %v22574_v9  ;;  %16662 = vmatprep.subr.mxu1 %v12921_v13 }
0x1062   : > { %16626 = vmatprep.subr.mxu0 %v22591_v46  ;;  %16663 = vmatpush3.msra.mxu1 %v12921_v13 }
0x1063   : > { %16627 = vmatpush3.msra.mxu0 %v22591_v46  ;;  %16664 = vmatprep.subr.mxu1 %v12928_v25 }
0x1064   : > { %16672 = vmatprep.subr.mxu0 %v22348_v21  ;;  %16665 = vmatpush3.msra.mxu1 %v12928_v25 }
0x1065   : > { %16710 = vmatprep.subr.mxu1 %v22335_v39 }
0x10e8   : > { %v16536_v60 = vpop.f32.mrf.mxu1 }
0x10ea   : > { %v12257_v52 = vpop.f32.mrf.mxu1 }
0x10ec   : > { %v16539_v10 = vpop.f32.mrf.mxu1 }
0x10ee   : > { %v12269_v22 = vpop.f32.mrf.mxu1 }
0x10f0   : > { %v16522_v26 = vpop.f32.mrf.mxu0  ;;  %v16564_v2 = vpop.f32.mrf.mxu1 }
0x10f1   : > { %v12147_v61 = vadd.f32 %v16522_v26, %v24529_v17 }
0x10f2   : > { %v12136_v42 = vpop.f32.mrf.mxu0  ;;  %v12453_v1 = vpop.f32.mrf.mxu1 }
0x10f3   : > { %v12137_v43 = vadd.f32 %v24529_v17, %v12136_v42  ;;  %v12264_v25 = vadd.f32 %v16536_v60, %v12147_v61 }
0x10f4   : > { %v16525_v8 = vpop.f32.mrf.mxu0 }
0x10f5   : > { %v12167_v13 = vadd.f32 %v16525_v8, %v24529_v17  ;;  %v12258_v18 = vadd.f32 %v12257_v52, %v12137_v43 }
0x10f6   : > { %v12156_v36 = vpop.f32.mrf.mxu0 }
0x10f7   : > { %v12157_v53 = vadd.f32 %v24529_v17, %v12156_v36  ;;  %v12276_v63 = vadd.f32 %v16539_v10, %v12167_v13 }
0x10f8   : > { %v16550_v45 = vpop.f32.mrf.mxu0 }
0x10f9   : > { %v12363_v55 = vadd.f32 %v16550_v45, %v12264_v25  ;;  %v12270_v34 = vadd.f32 %v12269_v22, %v12157_v53 }
0x10fa   : > { %v12355_v5 = vpop.f32.mrf.mxu0 }
0x10fb   : > { %v12356_v32 = vadd.f32 %v12355_v5, %v12258_v18  ;;  %v12462_v62 = vadd.f32 %v16564_v2, %v12363_v55  ;;  %v16567_v26 = vpop.f32.mrf.mxu1 }
0x10fc   : > { %v16553_v3 = vpop.f32.mrf.mxu0 }
0x10fd   : > { %v12377_v48 = vadd.f32 %v16553_v3, %v12276_v63  ;;  %v12454_v4 = vadd.f32 %v12453_v1, %v12356_v32  ;;  %v12469_v42 = vpop.f32.mrf.mxu1 }
0x10fe   : > { %v12369_v20 = vpop.f32.mrf.mxu0 }
0x10ff   : > { %v12370_v8 = vadd.f32 %v12369_v20, %v12270_v34  ;;  %v12478_v61 = vadd.f32 %v16567_v26, %v12377_v48 }
0x1100   : > { %v16578_v29 = vpop.f32.mrf.mxu0 }
0x1101   : > { %v12567_v60 = vadd.f32 %v16578_v29, %v12462_v62  ;;  %v12470_v43 = vadd.f32 %v12469_v42, %v12370_v8 }
0x1102   : > { %v12560_v30 = vpop.f32.mrf.mxu0 }
0x1103   : > { %v16592_v16 = vpop.f32.mrf.mxu1  ;;  %v12561_v52 = vadd.f32 %v12560_v30, %v12454_v4 }
0x1104   : > { %v16581_v56 = vpop.f32.mrf.mxu0  ;;  %v12660_v27 = vadd.f32 %v16592_v16, %v12567_v60 }
0x1105   : > { %v12653_v45 = vpop.f32.mrf.mxu1  ;;  %v12579_v10 = vadd.f32 %v16581_v56, %v12478_v61 }
0x1106   : > { %v12572_v36 = vpop.f32.mrf.mxu0  ;;  %v22619_v17 = vand.u32 4294901760, %v12660_v27  ;;  %v12654_v53 = vadd.f32 %v12653_v45, %v12561_v52 }
0x1107   : > { %v12573_v32 = vadd.f32 %v12572_v36, %v12470_v43 }
0x1108   : > { %v16595_v55 = vpop.f32.mrf.mxu1  ;;  %v22622_v18 = vsub.f32 %v12660_v27, %v22619_v17  ;;  %v22624_v63 = vand.u32 4294901760, %v12654_v53 }
0x1109   : > { %v12672_v34 = vadd.f32 %v16595_v55, %v12579_v10 }
0x110a   : > { %v12665_v62 = vpop.f32.mrf.mxu1  ;;  %v12790_v48 = vand.u32 4294901760, %v22622_v18  ;;  %v12779_v4 = vsub.f32 %v12654_v53, %v22624_v63  ;;  %16666 = vmatprep.mubr.f32.mxu1 %v22624_v63 }
0x110b   : > { %v22628_v16 = vand.u32 4294901760, %v12672_v34  ;;  %v12666_v30 = vadd.f32 %v12665_v62, %v12573_v32  ;;  %16667 = vmatmul.mubr.f32.vlgmr.msra.gmra.mxu1 %v22619_v17 }
0x110c   : > { %16711 = vmatpush3.msra.mxu1 %v22335_v39  ;;  %v12780_v1 = vand.u32 4294901760, %v12779_v4  ;;  %v12791_v20 = vsub.f32 %v22622_v18, %v12790_v48 }
0x110d   : > { %v22633_v56 = vsub.f32 %v12672_v34, %v22628_v16  ;;  %v22635_v29 = vand.u32 4294901760, %v12666_v30  ;;  %16712 = vmatprep.subr.mxu1 %v22341_v23 }
0x110e   : > { %16713 = vmatpush3.msra.mxu1 %v22341_v23  ;;  %v12781_v2 = vsub.f32 %v12779_v4, %v12780_v1  ;;  %v12792_v13 = vand.u32 4294901760, %v12791_v20  ;;  %v13487_v20 = vld [vmem:[%s23236_s8 + $0x40] sm:$0xff] }
0x110f   : > { %v22643_v27 = vsub.f32 %v12666_v30, %v22635_v29  ;;  %16669 = vmatprep.mubr.f32.mxu1 %v22635_v29  ;;  %v12810_v5 = vand.u32 4294901760, %v22633_v56  ;;  %16714 = vmatprep.subr.mxu1 %v22406_v57 }
0x1110   : > { %16670 = vmatmul.mubr.f32.gmra.mxu1 %v22628_v16  ;;  %v12782_v22 = vand.u32 4294901760, %v12781_v2 }
0x1111   : > { %16715 = vmatpush3.msra.mxu1 %v22406_v57  ;;  %16742 = vmatprep.mubr.f32.mxu1 %v12780_v1  ;;  %v12800_v3 = vand.u32 4294901760, %v22643_v27  ;;  %v12811_v26 = vsub.f32 %v22633_v56, %v12810_v5 }
0x1112   : > { %16716 = vmatprep.subr.mxu1 %v22414_v50  ;;  %16628 = vmatprep.mubr.f32.mxu0 %v12782_v22  ;;  %v13486_v22 = vld [vmem:[%s23236_s8 + $0x38] sm:$0xff] }
0x1113   : > { %16717 = vmatpush3.msra.mxu1 %v22414_v50  ;;  %v12801_v25 = vsub.f32 %v22643_v27, %v12800_v3  ;;  %16629 = vmatmul.mubr.f32.vlgmr.msra.gmra.mxu0 %v12792_v13  ;;  %v12812_v8 = vand.u32 4294901760, %v12811_v26  ;;  %v22910_v26 = vand.u32 4294901760, %v13486_v22 }
0x1114   : > { %16718 = vmatprep.subr.mxu1 %v22427_v7  ;;  %16673 = vmatpush3.msra.mxu0 %v22348_v21  ;;  %v24532_v21 = vld [vmem:[#allocation66_spill] sm:$0xff] }
0x1115   : > { %16719 = vmatpush3.msra.mxu1 %v22427_v7  ;;  %v12802_v42 = vand.u32 4294901760, %v12801_v25  ;;  %16674 = vmatprep.subr.mxu0 %v22355_v12 }
0x1116   : > { %16720 = vmatprep.subr.mxu1 %v22442_v41  ;;  %16675 = vmatpush3.msra.mxu0 %v22355_v12  ;;  %v24533_v12 = vld [vmem:[#allocation61_spill] sm:$0xff] }
0x1117   : > { %16721 = vmatpush3.msra.mxu1 %v22442_v41  ;;  %16631 = vmatprep.mubr.f32.mxu0 %v12802_v42  ;;  %v13485_v42 = vld [vmem:[%s23236_s8 + $0x30] sm:$0xff] }
0x1118   : > { %16676 = vmatprep.subr.mxu0 %v22412_v38  ;;  %16722 = vmatprep.subr.mxu1 %v22458_v51 }
0x1119   : > { %16632 = vmatmul.mubr.f32.gmra.mxu0 %v12812_v8  ;;  %16723 = vmatpush3.msra.mxu1 %v22458_v51 }
0x111a   : > { %16677 = vmatpush3.msra.mxu0 %v22412_v38  ;;  %16704 = vmatprep.mubr.f32.mxu0 %v12779_v4  ;;  %v24535_v38 = vld [vmem:[#allocation74_spill] sm:$0xff] }
0x111b   : > { %16678 = vmatprep.subr.mxu0 %v22425_v31  ;;  %16724 = vmatprep.subr.mxu1 %v22469_v54 }
0x111c   : > { %16679 = vmatpush3.msra.mxu0 %v22425_v31  ;;  %16725 = vmatpush3.msra.mxu1 %v22469_v54  ;;  %v24537_v31 = vld [vmem:[#allocation62_spill] sm:$0xff] }
0x111d   : > { %16680 = vmatprep.subr.mxu0 %v22440_v19  ;;  %16726 = vmatprep.subr.mxu1 %v22483_v40 }
0x111e   : > { %16681 = vmatpush3.msra.mxu0 %v22440_v19  ;;  %16727 = vmatpush3.msra.mxu1 %v22483_v40  ;;  %v24539_v19 = vld [vmem:[#allocation75_spill] sm:$0xff] }
0x111f   : > { %16682 = vmatprep.subr.mxu0 %v22455_v14  ;;  %16728 = vmatprep.subr.mxu1 %v22499_v44 }
0x1120   : > { %16683 = vmatpush3.msra.mxu0 %v22455_v14  ;;  %16729 = vmatpush3.msra.mxu1 %v22499_v44  ;;  %v24541_v14 = vld [vmem:[#allocation63_spill] sm:$0xff] }
0x1121   : > { %16684 = vmatprep.subr.mxu0 %v22472_v0  ;;  %16730 = vmatprep.subr.mxu1 %v22516_v6 }
0x1122   : > { %16685 = vmatpush3.msra.mxu0 %v22472_v0  ;;  %16731 = vmatpush3.msra.mxu1 %v22516_v6  ;;  %v24544_v0 = vld [vmem:[#allocation84_spill] sm:$0xff] }
0x1123   : > { %16686 = vmatprep.subr.mxu0 %v22481_v33  ;;  %16732 = vmatprep.subr.mxu1 %v22532_v15 }
0x1124   : > { %16687 = vmatpush3.msra.mxu0 %v22481_v33  ;;  %16733 = vmatpush3.msra.mxu1 %v22532_v15  ;;  %v24545_v33 = vld [vmem:[#allocation79_spill] sm:$0xff] }
0x1125   : > { %16688 = vmatprep.subr.mxu0 %v22497_v11  ;;  %16734 = vmatprep.subr.mxu1 %v22543_v37 }
0x1126   : > { %16689 = vmatpush3.msra.mxu0 %v22497_v11  ;;  %16735 = vmatpush3.msra.mxu1 %v22543_v37  ;;  %v13494_v11 = vld [vmem:[%s23236_s8 + $0x78] sm:$0xff] }
0x1127   : > { %16690 = vmatprep.subr.mxu0 %v22514_v59  ;;  %16736 = vmatprep.subr.mxu1 %v22558_v58 }
0x1128   : > { %16691 = vmatpush3.msra.mxu0 %v22514_v59  ;;  %16737 = vmatpush3.msra.mxu1 %v22558_v58  ;;  %v13493_v59 = vld [vmem:[%s23236_s8 + $0x70] sm:$0xff] }
0x1129   : > { %16692 = vmatprep.subr.mxu0 %v22529_v28  ;;  %16738 = vmatprep.subr.mxu1 %v22574_v9 }
0x112a   : > { %16693 = vmatpush3.msra.mxu0 %v22529_v28  ;;  %16739 = vmatpush3.msra.mxu1 %v22574_v9  ;;  %v22807_v28 = vand.u32 4294901760, %v13493_v59 }
0x112b   : > { %16694 = vmatprep.subr.mxu0 %v22547_v47  ;;  %16740 = vmatprep.subr.mxu1 %v22591_v46 }
0x112c   : > { %16695 = vmatpush3.msra.mxu0 %v22547_v47  ;;  %16741 = vmatpush3.msra.mxu1 %v22591_v46  ;;  %v13490_v47 = vld [vmem:[%s23236_s8 + $0x58] sm:$0xff] }
0x112d   : > { %16696 = vmatprep.subr.mxu0 %v22556_v49  ;;  %16743 = vmatmul.mubr.f32.vlgmr.msra.gmra.mxu1 %v12790_v48 }
0x112e   : > { %16786 = vmatprep.subr.mxu1 %v22335_v39  ;;  %16697 = vmatpush3.msra.mxu0 %v22556_v49 }
0x112f   : > { %16745 = vmatprep.mubr.f32.mxu1 %v12800_v3  ;;  %16787 = vmatpush3.msra.mxu1 %v22335_v39  ;;  %v24530_v39 = vld [vmem:[#allocation92_spill] sm:$0xff] }
0x1130   : > { %16698 = vmatprep.subr.mxu0 %v22572_v24  ;;  %16788 = vmatprep.subr.mxu1 %v22341_v23 }
0x1131   : > { %16699 = vmatpush3.msra.mxu0 %v22572_v24  ;;  %16789 = vmatpush3.msra.mxu1 %v22341_v23  ;;  %v24531_v23 = vld [vmem:[#allocation64_spill] sm:$0xff] }
0x1132   : > { %16700 = vmatprep.subr.mxu0 %v22589_v35  ;;  %16746 = vmatmul.mubr.f32.gmra.mxu1 %v12810_v5  ;;  %v22897_v5 = vand.u32 4294901760, %v13487_v20 }
0x1133   : > { %16790 = vmatprep.subr.mxu1 %v22406_v57  ;;  %16701 = vmatpush3.msra.mxu0 %v22589_v35  ;;  %v13489_v35 = vld [vmem:[%s23236_s8 + $0x50] sm:$0xff] }
0x1134   : > { %16791 = vmatpush3.msra.mxu1 %v22406_v57  ;;  %16818 = vmatprep.mubr.f32.mxu1 %v22624_v63  ;;  %v24534_v57 = vld [vmem:[#allocation68_spill] sm:$0xff]  ;;  %v22836_v60 = vand.u32 4294901760, %v13489_v35  ;;  %v22908_v25 = vsub.f32 %v13487_v20, %v22897_v5 }
0x1135   : > { %16702 = vmatprep.subr.mxu0 %v24530_v39  ;;  %16792 = vmatprep.subr.mxu1 %v22414_v50 }
0x1136   : > { %16703 = vmatpush3.msra.mxu0 %v24530_v39  ;;  %16793 = vmatpush3.msra.mxu1 %v22414_v50  ;;  %v24536_v50 = vld [vmem:[#allocation70_spill] sm:$0xff]  ;;  %v22855_v10 = vsub.f32 %v13489_v35, %v22836_v60  ;;  %v22920_v39 = vand.u32 4294901760, %v22908_v25 }
0x1137   : > { %16705 = vmatmul.mubr.f32.vlgmr.msra.gmra.mxu0 %v22622_v18  ;;  %16748 = vmatprep.subr.mxu0 %v24531_v23 }
0x1138   : > { %16794 = vmatprep.subr.mxu1 %v22427_v7  ;;  %16707 = vmatprep.mubr.f32.mxu0 %v22643_v27  ;;  %24554 = vst [vmem:[#allocation89_spill] sm:$0xff] %v22920_v39 }
0x1139   : > { %16749 = vmatpush3.msra.mxu0 %v24531_v23  ;;  %16795 = vmatpush3.msra.mxu1 %v22427_v7  ;;  %v24538_v7 = vld [vmem:[#allocation73_spill] sm:$0xff]  ;;  %v22923_v23 = vsub.f32 %v13486_v22, %v22910_v26 }
0x113a   : > { %16750 = vmatprep.subr.mxu0 %v24532_v21  ;;  %16796 = vmatprep.subr.mxu1 %v22442_v41 }
0x113b   : > { %16751 = vmatpush3.msra.mxu0 %v24532_v21  ;;  %16797 = vmatpush3.msra.mxu1 %v22442_v41  ;;  %v24540_v41 = vld [vmem:[#allocation4_spill] sm:$0xff]  ;;  %v22925_v21 = vand.u32 4294901760, %v13485_v42 }
0x113c   : > { %16708 = vmatmul.mubr.f32.gmra.mxu0 %v22633_v56  ;;  %16752 = vmatprep.subr.mxu0 %v24533_v12 }
0x113d   : > { %16798 = vmatprep.subr.mxu1 %v22458_v51  ;;  %16753 = vmatpush3.msra.mxu0 %v24533_v12  ;;  %v13484_v12 = vld [vmem:[%s23236_s8 + $0x28] sm:$0xff] }
0x113e   : > { %16780 = vmatprep.mubr.f32.mxu0 %v22624_v63  ;;  %16799 = vmatpush3.msra.mxu1 %v22458_v51  ;;  %v24542_v51 = vld [vmem:[#allocation80_spill] sm:$0xff]  ;;  %v22871_v63 = vand.u32 4294901760, %v22855_v10 }
0x113f   : > { %16754 = vmatprep.subr.mxu0 %v24534_v57  ;;  %16800 = vmatprep.subr.mxu1 %v22469_v54 }
0x1140   : > { %16755 = vmatpush3.msra.mxu0 %v24534_v57  ;;  %16801 = vmatpush3.msra.mxu1 %v22469_v54  ;;  %v24543_v54 = vld [vmem:[#allocation77_spill] sm:$0xff]  ;;  %24552 = vst [vmem:[#allocation69_spill] sm:$0xff] %v22871_v63 }
0x1141   : > { %16756 = vmatprep.subr.mxu0 %v24535_v38  ;;  %16802 = vmatprep.subr.mxu1 %v22483_v40 }
0x1142   : > { %16757 = vmatpush3.msra.mxu0 %v24535_v38  ;;  %16803 = vmatpush3.msra.mxu1 %v22483_v40  ;;  %v24546_v40 = vld [vmem:[#allocation81_spill] sm:$0xff]  ;;  %v13673_v38 = vsub.f32 %v22908_v25, %v22920_v39 }
0x1143   : > { %16758 = vmatprep.subr.mxu0 %v24536_v50  ;;  %16804 = vmatprep.subr.mxu1 %v22499_v44 }
0x1144   : > { %16759 = vmatpush3.msra.mxu0 %v24536_v50  ;;  %16805 = vmatpush3.msra.mxu1 %v22499_v44  ;;  %v22799_v44 = vand.u32 4294901760, %v13494_v11  ;;  %v22935_v50 = vand.u32 4294901760, %v22923_v23 }
0x1145   : > { %16760 = vmatprep.subr.mxu0 %v24537_v31  ;;  %16806 = vmatprep.subr.mxu1 %v22516_v6 }
0x1146   : > { %16761 = vmatpush3.msra.mxu0 %v24537_v31  ;;  %16807 = vmatpush3.msra.mxu1 %v22516_v6  ;;  %v22805_v6 = vsub.f32 %v13494_v11, %v22799_v44  ;;  %24555 = vst [vmem:[#allocation94_spill] sm:$0xff] %v22935_v50  ;;  %v22938_v31 = vsub.f32 %v13485_v42, %v22925_v21 }
0x1147   : > { %16762 = vmatprep.subr.mxu0 %v24538_v7  ;;  %16808 = vmatprep.subr.mxu1 %v22532_v15 }
0x1148   : > { %16763 = vmatpush3.msra.mxu0 %v24538_v7  ;;  %16809 = vmatpush3.msra.mxu1 %v22532_v15  ;;  %v13492_v15 = vld [vmem:[%s23236_s8 + $0x68] sm:$0xff]  ;;  %v22821_v49 = vand.u32 4294901760, %v22805_v6  ;;  %v22941_v7 = vand.u32 4294901760, %v13484_v12 }
0x1149   : > { %16764 = vmatprep.subr.mxu0 %v24539_v19  ;;  %16810 = vmatprep.subr.mxu1 %v22543_v37  ;;  %v22826_v24 = vand.u32 4294901760, %v13492_v15 }
0x114a   : > { %16765 = vmatpush3.msra.mxu0 %v24539_v19  ;;  %16811 = vmatpush3.msra.mxu1 %v22543_v37  ;;  %v13491_v37 = vld [vmem:[%s23236_s8 + $0x60] sm:$0xff]  ;;  %24547 = vst [vmem:[#allocation9_spill] sm:$0xff] %v22821_v49  ;;  %v13624_v61 = vsub.f32 %v22805_v6, %v22821_v49 }
0x114b   : > { %16766 = vmatprep.subr.mxu0 %v24540_v41  ;;  %16812 = vmatprep.subr.mxu1 %v22558_v58  ;;  %v22845_v43 = vsub.f32 %v13492_v15, %v22826_v24  ;;  %v13483_v19 = vld [vmem:[%s23236_s8 + $0x20] sm:$0xff] }
0x114c   : > { %16767 = vmatpush3.msra.mxu0 %v24540_v41  ;;  %16813 = vmatpush3.msra.mxu1 %v22558_v58  ;;  %v22824_v58 = vsub.f32 %v13493_v59, %v22807_v28  ;;  %v13674_v41 = vand.u32 4294901760, %v13673_v38 }
0x114d   : > { %16768 = vmatprep.subr.mxu0 %v24541_v14  ;;  %16814 = vmatprep.subr.mxu1 %v22574_v9  ;;  %v22861_v55 = vand.u32 4294901760, %v22845_v43 }
0x114e   : > { %16769 = vmatpush3.msra.mxu0 %v24541_v14  ;;  %16815 = vmatpush3.msra.mxu1 %v22574_v9  ;;  %v22828_v9 = vand.u32 4294901760, %v13491_v37  ;;  %v22842_v52 = vand.u32 4294901760, %v22824_v58  ;;  %v13680_v14 = vsub.f32 %v22923_v23, %v22935_v50 }
0x114f   : > { %16770 = vmatprep.subr.mxu0 %v24542_v51  ;;  %16816 = vmatprep.subr.mxu1 %v22591_v46  ;;  %24549 = vst [vmem:[#allocation76_spill] sm:$0xff] %v22861_v55  ;;  %v13638_v62 = vsub.f32 %v22845_v43, %v22861_v55 }
0x1150   : > { %16771 = vmatpush3.msra.mxu0 %v24542_v51  ;;  %16817 = vmatpush3.msra.mxu1 %v22591_v46  ;;  %v22834_v46 = vand.u32 4294901760, %v13490_v47  ;;  %24548 = vst [vmem:[#allocation83_spill] sm:$0xff] %v22842_v52  ;;  %v22848_v36 = vsub.f32 %v13491_v37, %v22828_v9  ;;  %v13631_v53 = vsub.f32 %v22824_v58, %v22842_v52  ;;  %v22950_v51 = vand.u32 4294901760, %v22938_v31 }
0x1151   : > { %16772 = vmatprep.subr.mxu0 %v24543_v54  ;;  %16819 = vmatmul.mubr.f32.vlgmr.msra.gmra.mxu1 %v22619_v17  ;;  %v13639_v30 = vand.u32 4294901760, %v13638_v62  ;;  %v13480_v62 = vld [vmem:[%s23236_s8 + $0x8] sm:$0xff] }
0x1152   : > { %16773 = vmatpush3.msra.mxu0 %v24543_v54  ;;  %16821 = vmatprep.mubr.f32.mxu1 %v22635_v29  ;;  %v22852_v45 = vsub.f32 %v13490_v47, %v22834_v46  ;;  %v22864_v18 = vand.u32 4294901760, %v22848_v36  ;;  %v13632_v34 = vand.u32 4294901760, %v13631_v53  ;;  %24556 = vst [vmem:[#allocation93_spill] sm:$0xff] %v22950_v51  ;;  %v22952_v54 = vand.u32 4294901760, %v13483_v19  ;;  %v13481_v47 = vld [vmem:[%s23236_s8 + $0x10] sm:$0xff] }
0x1153   : > { %16774 = vmatprep.subr.mxu0 %v24544_v0  ;;  %v13687_v11 = vsub.f32 %v22938_v31, %v22950_v51  ;;  %v22982_v53 = vand.u32 4294901760, %v13481_v47 }
0x1154   : > { %16775 = vmatpush3.msra.mxu0 %v24544_v0  ;;  %24550 = vst [vmem:[#allocation85_spill] sm:$0xff] %v22864_v18  ;;  %v22868_v32 = vand.u32 4294901760, %v22852_v45  ;;  %v13645_v48 = vsub.f32 %v22848_v36, %v22864_v18  ;;  %v22955_v0 = vsub.f32 %v13484_v12, %v22941_v7  ;;  %v22964_v59 = vsub.f32 %v13483_v19, %v22952_v54 }
0x1155   : > { %16776 = vmatprep.subr.mxu0 %v24545_v33  ;;  %16822 = vmatmul.mubr.f32.gmra.mxu1 %v22628_v16  ;;  %v13688_v35 = vand.u32 4294901760, %v13687_v11 }
0x1156   : > { %16777 = vmatpush3.msra.mxu0 %v24545_v33  ;;  %24551 = vst [vmem:[#allocation72_spill] sm:$0xff] %v22868_v32  ;;  %v13652_v4 = vsub.f32 %v22852_v45, %v22868_v32  ;;  %v13646_v56 = vand.u32 4294901760, %v13645_v48  ;;  %v13482_v33 = vld [vmem:[%s23236_s8 + $0x18] sm:$0xff]  ;;  %v22970_v37 = vand.u32 4294901760, %v22955_v0 }
0x1157   : > { %16778 = vmatprep.subr.mxu0 %v24546_v40  ;;  %v22966_v15 = vand.u32 4294901760, %v13482_v33 }
0x1158   : > { %16779 = vmatpush3.msra.mxu0 %v24546_v40  ;;  %v13653_v27 = vand.u32 4294901760, %v13652_v4  ;;  %v13681_v40 = vand.u32 4294901760, %v13680_v14  ;;  %24557 = vst [vmem:[#allocation6_spill] sm:$0xff] %v22970_v37 }
0x1159   : > { %16781 = vmatmul.mubr.f32.vlgmr.msra.gmra.mxu0 %v22619_v17  ;;  %16824 = vmatprep.subr.mxu0 %v22799_v44  ;;  %v13625_v17 = vand.u32 4294901760, %v13624_v61  ;;  %v22977_v61 = vand.u32 4294901760, %v22964_v59 }
0x115a   : > { %16783 = vmatprep.mubr.f32.mxu0 %v22635_v29  ;;  %16825 = vmatpush3.msra.mxu0 %v22799_v44  ;;  %v13659_v29 = vsub.f32 %v22855_v10, %v22871_v63 }
0x115b   : > { %16826 = vmatprep.subr.mxu0 %v22807_v28  ;;  %16862 = vmatprep.subr.mxu1 %v13625_v17  ;;  %24558 = vst [vmem:[#allocation11_spill] sm:$0xff] %v22977_v61  ;;  %v13701_v48 = vsub.f32 %v22964_v59, %v22977_v61 }
0x115c   : > { %16827 = vmatpush3.msra.mxu0 %v22807_v28  ;;  %16863 = vmatpush3.msra.mxu1 %v13625_v17  ;;  %v13660_v3 = vand.u32 4294901760, %v13659_v29  ;;  %v22980_v17 = vsub.f32 %v13482_v33, %v22966_v15  ;;  %v13479_v29 = vld [vmem:[%s23236_s8] sm:$0xff] }
0x115d   : > { %16784 = vmatmul.mubr.f32.gmra.mxu0 %v22628_v16  ;;  %16828 = vmatprep.subr.mxu0 %v22826_v24  ;;  %v13488_v16 = vld [vmem:[%s23236_s8 + $0x48] sm:$0xff]  ;;  %v13702_v20 = vand.u32 4294901760, %v13701_v48  ;;  %v23015_v42 = vand.u32 4294901760, %v13479_v29 }
0x115e   : > { %16829 = vmatpush3.msra.mxu0 %v22826_v24  ;;  %16864 = vmatprep.subr.mxu1 %v13632_v34  ;;  %v22887_v1 = vand.u32 4294901760, %v13488_v16  ;;  %v22994_v4 = vand.u32 4294901760, %v22980_v17 }
0x115f   : > { %16830 = vmatprep.subr.mxu0 %v22828_v9  ;;  %16865 = vmatpush3.msra.mxu1 %v13632_v34  ;;  %v13694_v34 = vsub.f32 %v22955_v0, %v22970_v37  ;;  %v23025_v38 = vsub.f32 %v13479_v29, %v23015_v42 }
0x1160   : > { %16831 = vmatpush3.msra.mxu0 %v22828_v9  ;;  %16866 = vmatprep.subr.mxu1 %v13639_v30  ;;  %v22895_v2 = vsub.f32 %v13488_v16, %v22887_v1  ;;  %24559 = vst [vmem:[#allocation13_spill] sm:$0xff] %v22994_v4  ;;  %v22997_v16 = vsub.f32 %v13481_v47, %v22982_v53 }
0x1161   : > { %16832 = vmatprep.subr.mxu0 %v22834_v46  ;;  %16867 = vmatpush3.msra.mxu1 %v13639_v30  ;;  %v22999_v30 = vand.u32 4294901760, %v13480_v62  ;;  %24564 = vst [vmem:[#allocation67_spill] sm:$0xff] %v23025_v38  ;;  %v23032_v14 = vand.u32 4294901760, %v23025_v38 }
0x1162   : > { %16833 = vmatpush3.msra.mxu0 %v22834_v46  ;;  %16868 = vmatprep.subr.mxu1 %v13646_v56  ;;  %v22905_v13 = vand.u32 4294901760, %v22895_v2  ;;  %24560 = vst [vmem:[#allocation10_spill] sm:$0xff] %v22997_v16  ;;  %v23009_v22 = vand.u32 4294901760, %v22997_v16 }
0x1163   : > { %16834 = vmatprep.subr.mxu0 %v22836_v60  ;;  %16869 = vmatpush3.msra.mxu1 %v13646_v56  ;;  %v13695_v56 = vand.u32 4294901760, %v13694_v34  ;;  %24565 = vst [vmem:[#allocation65_spill] sm:$0xff] %v23032_v14 }
0x1164   : > { %16835 = vmatpush3.msra.mxu0 %v22836_v60  ;;  %24553 = vst [vmem:[#allocation82_spill] sm:$0xff] %v22905_v13  ;;  %16870 = vmatprep.subr.mxu1 %v13653_v27  ;;  %v13666_v8 = vsub.f32 %v22895_v2, %v22905_v13  ;;  %24561 = vst [vmem:[#allocation7_spill] sm:$0xff] %v23009_v22  ;;  %v13715_v12 = vsub.f32 %v22997_v16, %v23009_v22 }
0x1165   : > { %16836 = vmatprep.subr.mxu0 %v22887_v1  ;;  %16871 = vmatpush3.msra.mxu1 %v13653_v27  ;;  %v13708_v27 = vsub.f32 %v22980_v17, %v22994_v4 }
0x1166   : > { %16837 = vmatpush3.msra.mxu0 %v22887_v1  ;;  %16872 = vmatprep.subr.mxu1 %v13660_v3  ;;  %v13667_v57 = vand.u32 4294901760, %v13666_v8  ;;  %v13716_v19 = vand.u32 4294901760, %v13715_v12 }
0x1167   : > { %16838 = vmatprep.subr.mxu0 %v22897_v5  ;;  %16873 = vmatpush3.msra.mxu1 %v13660_v3  ;;  %v23012_v3 = vsub.f32 %v13480_v62, %v22999_v30  ;;  %v13709_v8 = vand.u32 4294901760, %v13708_v27 }
0x1168   : > { %16839 = vmatpush3.msra.mxu0 %v22897_v5  ;;  %16874 = vmatprep.subr.mxu1 %v13667_v57 }
0x1169   : > { %16840 = vmatprep.subr.mxu0 %v22910_v26  ;;  %16875 = vmatpush3.msra.mxu1 %v13667_v57  ;;  %24562 = vst [vmem:[#allocation78_spill] sm:$0xff] %v23012_v3  ;;  %v23021_v57 = vand.u32 4294901760, %v23012_v3 }
0x116a   : > { %16841 = vmatpush3.msra.mxu0 %v22910_v26  ;;  %16876 = vmatprep.subr.mxu1 %v13674_v41 }
0x116b   : > { %16842 = vmatprep.subr.mxu0 %v22925_v21  ;;  %16877 = vmatpush3.msra.mxu1 %v13674_v41  ;;  %24563 = vst [vmem:[#allocation86_spill] sm:$0xff] %v23021_v57  ;;  %v13722_v41 = vsub.f32 %v23012_v3, %v23021_v57 }
0x116c   : > { %16843 = vmatpush3.msra.mxu0 %v22925_v21  ;;  %16878 = vmatprep.subr.mxu1 %v13681_v40 }
0x116d   : > { %16844 = vmatprep.subr.mxu0 %v22941_v7  ;;  %16879 = vmatpush3.msra.mxu1 %v13681_v40  ;;  %v13723_v33 = vand.u32 4294901760, %v13722_v41  ;;  %v13729_v40 = vsub.f32 %v23025_v38, %v23032_v14 }
0x116e   : > { %16845 = vmatpush3.msra.mxu0 %v22941_v7  ;;  %16880 = vmatprep.subr.mxu1 %v13688_v35 }
0x116f   : > { %16846 = vmatprep.subr.mxu0 %v22952_v54  ;;  %16881 = vmatpush3.msra.mxu1 %v13688_v35  ;;  %v13730_v11 = vand.u32 4294901760, %v13729_v40 }
0x1170   : > { %16847 = vmatpush3.msra.mxu0 %v22952_v54  ;;  %16882 = vmatprep.subr.mxu1 %v13695_v56 }
0x1171   : > { %16848 = vmatprep.subr.mxu0 %v22966_v15  ;;  %16883 = vmatpush3.msra.mxu1 %v13695_v56 }
0x1172   : > { %16849 = vmatpush3.msra.mxu0 %v22966_v15  ;;  %16884 = vmatprep.subr.mxu1 %v13702_v20 }
0x1173   : > { %16850 = vmatprep.subr.mxu0 %v22982_v53  ;;  %16885 = vmatpush3.msra.mxu1 %v13702_v20 }
0x1174   : > { %16851 = vmatpush3.msra.mxu0 %v22982_v53  ;;  %16886 = vmatprep.subr.mxu1 %v13709_v8 }
0x1175   : > { %16852 = vmatprep.subr.mxu0 %v22999_v30  ;;  %16887 = vmatpush3.msra.mxu1 %v13709_v8  ;;  %v14458_v8 = vld [vmem:[%s23234_s6 + $0x18] ss:$0 sm:$0xff] }
0x1176   : > { %16853 = vmatpush3.msra.mxu0 %v22999_v30  ;;  %16888 = vmatprep.subr.mxu1 %v13716_v19 }
0x1177   : > { %16854 = vmatprep.subr.mxu0 %v23015_v42  ;;  %16889 = vmatpush3.msra.mxu1 %v13716_v19 }
0x1178   : > { %16855 = vmatpush3.msra.mxu0 %v23015_v42  ;;  %16890 = vmatprep.subr.mxu1 %v13723_v33 }
0x1179   : > { %16900 = vmatprep.subr.mxu0 %v22805_v6  ;;  %16891 = vmatpush3.msra.mxu1 %v13723_v33 }
0x117a   : > { %16892 = vmatprep.subr.mxu1 %v13730_v11 }
0x117b   : > { %16893 = vmatpush3.msra.mxu1 %v13730_v11 }
0x117c   : > { %16938 = vmatprep.subr.mxu1 %v22799_v44 }
0x11cb   : > { %v16668_v47 = vpop.f32.mrf.mxu1 }
0x11cd   : > { %v12965_v34 = vpop.f32.mrf.mxu1 }
0x11d0   : > { %v16671_v48 = vpop.f32.mrf.mxu1 }
0x11d2   : > { %v12977_v29 = vpop.f32.mrf.mxu1 }
0x11d3   : > { %v16630_v35 = vpop.f32.mrf.mxu0 }
0x11d4   : > { %v12795_v41 = vadd.f32 %v16630_v35, %v14458_v8 }
0x11d5   : > { %v12784_v62 = vpop.f32.mrf.mxu0 }
0x11d6   : > { %v12785_v40 = vadd.f32 %v14458_v8, %v12784_v62  ;;  %v12972_v57 = vadd.f32 %v16668_v47, %v12795_v41 }
0x11d8   : > { %v12966_v37 = vadd.f32 %v12965_v34, %v12785_v40 }
0x11d9   : > { %v16633_v56 = vpop.f32.mrf.mxu0 }
0x11da   : > { %v12815_v14 = vadd.f32 %v16633_v56, %v14458_v8 }
0x11db   : > { %v12804_v27 = vpop.f32.mrf.mxu0 }
0x11dc   : > { %v12805_v51 = vadd.f32 %v14458_v8, %v12804_v27  ;;  %v12984_v39 = vadd.f32 %v16671_v48, %v12815_v14 }
0x11de   : > { %v12978_v55 = vadd.f32 %v12977_v29, %v12805_v51 }
0x11ed   : > { %v16744_v20 = vpop.f32.mrf.mxu1 }
0x11ef   : > { %v13197_v19 = vpop.f32.mrf.mxu1 }
0x11f2   : > { %v16747_v11 = vpop.f32.mrf.mxu1 }
0x11f4   : > { %v13213_v4 = vpop.f32.mrf.mxu1 }
0x11f7   : > { %v16706_v12 = vpop.f32.mrf.mxu0 }
0x11f8   : > { %v13095_v61 = vadd.f32 %v16706_v12, %v12972_v57 }
0x11f9   : > { %v13087_v33 = vpop.f32.mrf.mxu0 }
0x11fa   : > { %v13088_v50 = vadd.f32 %v13087_v33, %v12966_v37  ;;  %v13206_v18 = vadd.f32 %v16744_v20, %v13095_v61 }
0x11fc   : > { %v16709_v22 = vpop.f32.mrf.mxu0  ;;  %v13198_v38 = vadd.f32 %v13197_v19, %v13088_v50 }
0x11fd   : > { %v13109_v32 = vadd.f32 %v16709_v22, %v12984_v39 }
0x11fe   : > { %v13101_v63 = vpop.f32.mrf.mxu0 }
0x11ff   : > { %v13102_v62 = vadd.f32 %v13101_v63, %v12978_v55  ;;  %v13222_v41 = vadd.f32 %v16747_v11, %v13109_v32 }
0x1201   : > { %v13214_v48 = vadd.f32 %v13213_v4, %v13102_v62 }
0x1211   : > { %v16820_v13 = vpop.f32.mrf.mxu1 }
0x1213   : > { %v13445_v49 = vpop.f32.mrf.mxu1 }
0x1215   : > { %v16823_v57 = vpop.f32.mrf.mxu1 }
0x1217   : > { %v13457_v55 = vpop.f32.mrf.mxu1 }
0x1219   : > { %v16782_v52 = vpop.f32.mrf.mxu0 }
0x121a   : > { %v13347_v35 = vadd.f32 %v16782_v52, %v13206_v18 }
0x121b   : > { %v13340_v3 = vpop.f32.mrf.mxu0 }
0x121c   : > { %v13452_v56 = vadd.f32 %v16820_v13, %v13347_v35  ;;  %v13341_v47 = vadd.f32 %v13340_v3, %v13198_v38 }
0x121d   : > { %v16785_v16 = vpop.f32.mrf.mxu0 }
0x121e   : > { %vm13468_vm0 = vcmp.ge.f32.partialorder %v13452_v56, 0.0  ;;  %v13472_v34 = vmul.f32 0.01, %v13452_v56  ;;  %v13446_v37 = vadd.f32 %v13445_v49, %v13341_v47  ;;  %v13359_v14 = vadd.f32 %v16785_v16, %v13222_v41 }
0x121f   : > { %v13352_v27 = vpop.f32.mrf.mxu0 }
0x1220   : > { %v13476_v39 = vsel %vm13468_vm0, %v13452_v56, %v13472_v34  ;;  %vm13467_vm3 = vcmp.ge.f32.partialorder %v13446_v37, 0.0  ;;  %v13471_v51 = vmul.f32 0.01, %v13446_v37  ;;  %v13464_v61 = vadd.f32 %v16823_v57, %v13359_v14 }
0x1221   : > { %v23041_v22 = vand.u32 4294901760, %v13476_v39  ;;  %v13353_v52 = vadd.f32 %v13352_v27, %v13214_v48 }
0x1222   : > { %v13475_v18 = vsel %vm13467_vm3, %v13446_v37, %v13471_v51  ;;  %vm13470_vm4 = vcmp.ge.f32.partialorder %v13464_v61, 0.0  ;;  %v13474_v63 = vmul.f32 0.01, %v13464_v61 }
0x1223   : > { %v23044_v32 = vsub.f32 %v13476_v39, %v23041_v22  ;;  %v13458_v13 = vadd.f32 %v13457_v55, %v13353_v52  ;;  %v23046_v50 = vand.u32 4294901760, %v13475_v18 }
0x1224   : > { %v13478_v49 = vsel %vm13470_vm4, %v13464_v61, %v13474_v63 }
0x1225   : > { %v13592_v4 = vand.u32 4294901760, %v23044_v32  ;;  %vm13469_vm5 = vcmp.ge.f32.partialorder %v13458_v13, 0.0  ;;  %v13473_v16 = vmul.f32 0.01, %v13458_v13  ;;  %16894 = vmatprep.mubr.f32.mxu1 %v23046_v50  ;;  %v23050_v3 = vand.u32 4294901760, %v13478_v49 }
0x1226   : > { %16895 = vmatmul.mubr.f32.vlgmr.msra.gmra.mxu1 %v23041_v22  ;;  %v13581_v38 = vsub.f32 %v13475_v18, %v23046_v50 }
0x1227   : > { %v13477_v29 = vsel %vm13469_vm5, %v13458_v13, %v13473_v16  ;;  %16939 = vmatpush3.msra.mxu1 %v22799_v44  ;;  %v23056_v20 = vsub.f32 %v13478_v49, %v23050_v3  ;;  %v13593_v19 = vsub.f32 %v23044_v32, %v13592_v4 }
0x1228   : > { %16940 = vmatprep.subr.mxu1 %v22807_v28  ;;  %v23059_v8 = vand.u32 4294901760, %v13477_v29  ;;  %v13582_v12 = vand.u32 4294901760, %v13581_v38 }
0x1229   : > { %16941 = vmatpush3.msra.mxu1 %v22807_v28  ;;  %v13612_v11 = vand.u32 4294901760, %v23056_v20  ;;  %v13594_v56 = vand.u32 4294901760, %v13593_v19 }
0x122a   : > { %16897 = vmatprep.mubr.f32.mxu1 %v23059_v8  ;;  %16942 = vmatprep.subr.mxu1 %v22826_v24  ;;  %v13583_v33 = vsub.f32 %v13581_v38, %v13582_v12  ;;  %v23068_v40 = vsub.f32 %v13477_v29, %v23059_v8 }
0x122b   : > { %16898 = vmatmul.mubr.f32.gmra.mxu1 %v23050_v3  ;;  %v13613_v41 = vsub.f32 %v23056_v20, %v13612_v11 }
0x122c   : > { %16943 = vmatpush3.msra.mxu1 %v22826_v24  ;;  %16970 = vmatprep.mubr.f32.mxu1 %v13582_v12  ;;  %v13584_v35 = vand.u32 4294901760, %v13583_v33  ;;  %v13602_v62 = vand.u32 4294901760, %v23068_v40 }
0x122d   : > { %16944 = vmatprep.subr.mxu1 %v22828_v9  ;;  %v13614_v34 = vand.u32 4294901760, %v13613_v41 }
0x122e   : > { %16945 = vmatpush3.msra.mxu1 %v22828_v9  ;;  %16856 = vmatprep.mubr.f32.mxu0 %v13584_v35  ;;  %v13603_v47 = vsub.f32 %v23068_v40, %v13602_v62 }
0x122f   : > { %16946 = vmatprep.subr.mxu1 %v22834_v46  ;;  %16857 = vmatmul.mubr.f32.vlgmr.msra.gmra.mxu0 %v13594_v56 }
0x1230   : > { %16901 = vmatpush3.msra.mxu0 %v22805_v6  ;;  %16947 = vmatpush3.msra.mxu1 %v22834_v46  ;;  %v13604_v57 = vand.u32 4294901760, %v13603_v47  ;;  %v24566_v6 = vld [vmem:[#allocation10_spill] sm:$0xff] }
0x1231   : > { %16902 = vmatprep.subr.mxu0 %v22824_v58  ;;  %16948 = vmatprep.subr.mxu1 %v22836_v60 }
0x1232   : > { %16903 = vmatpush3.msra.mxu0 %v22824_v58  ;;  %16949 = vmatpush3.msra.mxu1 %v22836_v60  ;;  %v24567_v58 = vld [vmem:[#allocation78_spill] sm:$0xff] }
0x1233   : > { %16859 = vmatprep.mubr.f32.mxu0 %v13604_v57  ;;  %16904 = vmatprep.subr.mxu0 %v22845_v43 }
0x1234   : > { %16950 = vmatprep.subr.mxu1 %v22887_v1  ;;  %16860 = vmatmul.mubr.f32.gmra.mxu0 %v13614_v34 }
0x1235   : > { %16905 = vmatpush3.msra.mxu0 %v22845_v43  ;;  %16951 = vmatpush3.msra.mxu1 %v22887_v1  ;;  %v24574_v43 = vld [vmem:[#allocation69_spill] sm:$0xff] }
0x1236   : > { %16906 = vmatprep.subr.mxu0 %v22848_v36  ;;  %16932 = vmatprep.mubr.f32.mxu0 %v13581_v38 }
0x1237   : > { %16952 = vmatprep.subr.mxu1 %v22897_v5  ;;  %16907 = vmatpush3.msra.mxu0 %v22848_v36  ;;  %v24575_v36 = vld [vmem:[#allocation82_spill] sm:$0xff] }
0x1238   : > { %16953 = vmatpush3.msra.mxu1 %v22897_v5  ;;  %16908 = vmatprep.subr.mxu0 %v22852_v45 }
0x1239   : > { %16954 = vmatprep.subr.mxu1 %v22910_v26  ;;  %16909 = vmatpush3.msra.mxu0 %v22852_v45  ;;  %v24576_v45 = vld [vmem:[#allocation89_spill] sm:$0xff] }
0x123a   : > { %16955 = vmatpush3.msra.mxu1 %v22910_v26  ;;  %16910 = vmatprep.subr.mxu0 %v22855_v10 }
0x123b   : > { %16956 = vmatprep.subr.mxu1 %v22925_v21  ;;  %16911 = vmatpush3.msra.mxu0 %v22855_v10  ;;  %v24577_v10 = vld [vmem:[#allocation94_spill] sm:$0xff] }
0x123c   : > { %16957 = vmatpush3.msra.mxu1 %v22925_v21  ;;  %16912 = vmatprep.subr.mxu0 %v22895_v2 }
0x123d   : > { %16958 = vmatprep.subr.mxu1 %v22941_v7  ;;  %16913 = vmatpush3.msra.mxu0 %v22895_v2  ;;  %v24579_v2 = vld [vmem:[#allocation6_spill] sm:$0xff] }
0x123e   : > { %16959 = vmatpush3.msra.mxu1 %v22941_v7  ;;  %16914 = vmatprep.subr.mxu0 %v22908_v25 }
0x123f   : > { %16960 = vmatprep.subr.mxu1 %v22952_v54  ;;  %16915 = vmatpush3.msra.mxu0 %v22908_v25  ;;  %v24581_v25 = vld [vmem:[#allocation13_spill] sm:$0xff] }
0x1240   : > { %16961 = vmatpush3.msra.mxu1 %v22952_v54  ;;  %16916 = vmatprep.subr.mxu0 %v22923_v23 }
0x1241   : > { %16962 = vmatprep.subr.mxu1 %v22966_v15  ;;  %16917 = vmatpush3.msra.mxu0 %v22923_v23  ;;  %v24583_v23 = vld [vmem:[#allocation86_spill] sm:$0xff] }
0x1242   : > { %16963 = vmatpush3.msra.mxu1 %v22966_v15  ;;  %16918 = vmatprep.subr.mxu0 %v22938_v31 }
0x1243   : > { %16964 = vmatprep.subr.mxu1 %v22982_v53  ;;  %16919 = vmatpush3.msra.mxu0 %v22938_v31 }
0x1244   : > { %16965 = vmatpush3.msra.mxu1 %v22982_v53  ;;  %16920 = vmatprep.subr.mxu0 %v22955_v0 }
0x1245   : > { %16966 = vmatprep.subr.mxu1 %v22999_v30  ;;  %16921 = vmatpush3.msra.mxu0 %v22955_v0 }
0x1246   : > { %16967 = vmatpush3.msra.mxu1 %v22999_v30  ;;  %16922 = vmatprep.subr.mxu0 %v22964_v59 }
0x1247   : > { %16968 = vmatprep.subr.mxu1 %v23015_v42  ;;  %16923 = vmatpush3.msra.mxu0 %v22964_v59 }
0x1248   : > { %16969 = vmatpush3.msra.mxu1 %v23015_v42  ;;  %16924 = vmatprep.subr.mxu0 %v22980_v17 }
0x1249   : > { %16971 = vmatmul.mubr.f32.vlgmr.msra.gmra.mxu1 %v13592_v4  ;;  %17014 = vmatprep.subr.mxu1 %v22799_v44 }
0x124a   : > { %16925 = vmatpush3.msra.mxu0 %v22980_v17  ;;  %16973 = vmatprep.mubr.f32.mxu1 %v13602_v62 }
0x124b   : > { %17015 = vmatpush3.msra.mxu1 %v22799_v44  ;;  %16926 = vmatprep.subr.mxu0 %v24566_v6  ;;  %v24568_v44 = vld [vmem:[#allocation67_spill] sm:$0xff] }
0x124c   : > { %17016 = vmatprep.subr.mxu1 %v22807_v28  ;;  %16927 = vmatpush3.msra.mxu0 %v24566_v6 }
0x124d   : > { %17017 = vmatpush3.msra.mxu1 %v22807_v28  ;;  %16928 = vmatprep.subr.mxu0 %v24567_v58  ;;  %v24569_v28 = vld [vmem:[#allocation9_spill] sm:$0xff] }
0x124e   : > { %16974 = vmatmul.mubr.f32.gmra.mxu1 %v13612_v11  ;;  %17018 = vmatprep.subr.mxu1 %v22826_v24 }
0x124f   : > { %16929 = vmatpush3.msra.mxu0 %v24567_v58  ;;  %17019 = vmatpush3.msra.mxu1 %v22826_v24  ;;  %v24570_v24 = vld [vmem:[#allocation83_spill] sm:$0xff] }
0x1250   : > { %17046 = vmatprep.mubr.f32.mxu1 %v23046_v50  ;;  %16930 = vmatprep.subr.mxu0 %v24568_v44 }
0x1251   : > { %17020 = vmatprep.subr.mxu1 %v22828_v9  ;;  %16931 = vmatpush3.msra.mxu0 %v24568_v44 }
0x1252   : > { %17021 = vmatpush3.msra.mxu1 %v22828_v9  ;;  %16933 = vmatmul.mubr.f32.vlgmr.msra.gmra.mxu0 %v23044_v32  ;;  %v24571_v9 = vld [vmem:[#allocation76_spill] sm:$0xff] }
0x1253   : > { %16976 = vmatprep.subr.mxu0 %v24569_v28  ;;  %17022 = vmatprep.subr.mxu1 %v22834_v46 }
0x1254   : > { %16935 = vmatprep.mubr.f32.mxu0 %v23068_v40  ;;  %16977 = vmatpush3.msra.mxu0 %v24569_v28 }
0x1255   : > { %17023 = vmatpush3.msra.mxu1 %v22834_v46  ;;  %16978 = vmatprep.subr.mxu0 %v24570_v24  ;;  %v24572_v46 = vld [vmem:[#allocation85_spill] sm:$0xff] }
0x1256   : > { %17024 = vmatprep.subr.mxu1 %v22836_v60  ;;  %16979 = vmatpush3.msra.mxu0 %v24570_v24 }
0x1257   : > { %17025 = vmatpush3.msra.mxu1 %v22836_v60  ;;  %16936 = vmatmul.mubr.f32.gmra.mxu0 %v23056_v20  ;;  %v24573_v60 = vld [vmem:[#allocation72_spill] sm:$0xff] }
0x1258   : > { %16980 = vmatprep.subr.mxu0 %v24571_v9  ;;  %17026 = vmatprep.subr.mxu1 %v22887_v1 }
0x1259   : > { %16981 = vmatpush3.msra.mxu0 %v24571_v9  ;;  %17008 = vmatprep.mubr.f32.mxu0 %v23046_v50 }
0x125a   : > { %17027 = vmatpush3.msra.mxu1 %v22887_v1  ;;  %16982 = vmatprep.subr.mxu0 %v24572_v46  ;;  %v24578_v1 = vld [vmem:[#allocation93_spill] sm:$0xff] }
0x125b   : > { %17028 = vmatprep.subr.mxu1 %v22897_v5  ;;  %16983 = vmatpush3.msra.mxu0 %v24572_v46 }
0x125c   : > { %17029 = vmatpush3.msra.mxu1 %v22897_v5  ;;  %16984 = vmatprep.subr.mxu0 %v24573_v60  ;;  %v24580_v5 = vld [vmem:[#allocation11_spill] sm:$0xff] }
0x125d   : > { %17030 = vmatprep.subr.mxu1 %v22910_v26  ;;  %16985 = vmatpush3.msra.mxu0 %v24573_v60 }
0x125e   : > { %17031 = vmatpush3.msra.mxu1 %v22910_v26  ;;  %16986 = vmatprep.subr.mxu0 %v24574_v43  ;;  %v24582_v26 = vld [vmem:[#allocation7_spill] sm:$0xff] }
0x125f   : > { %17032 = vmatprep.subr.mxu1 %v22925_v21  ;;  %16987 = vmatpush3.msra.mxu0 %v24574_v43 }
0x1260   : > { %17033 = vmatpush3.msra.mxu1 %v22925_v21  ;;  %16988 = vmatprep.subr.mxu0 %v24575_v36  ;;  %v24584_v21 = vld [vmem:[#allocation65_spill] sm:$0xff] }
0x1261   : > { %17034 = vmatprep.subr.mxu1 %v22941_v7  ;;  %16989 = vmatpush3.msra.mxu0 %v24575_v36 }
0x1262   : > { %17035 = vmatpush3.msra.mxu1 %v22941_v7  ;;  %16990 = vmatprep.subr.mxu0 %v24576_v45 }
0x1263   : > { %17036 = vmatprep.subr.mxu1 %v22952_v54  ;;  %16991 = vmatpush3.msra.mxu0 %v24576_v45 }
0x1264   : > { %17037 = vmatpush3.msra.mxu1 %v22952_v54  ;;  %16992 = vmatprep.subr.mxu0 %v24577_v10 }
0x1265   : > { %17038 = vmatprep.subr.mxu1 %v22966_v15  ;;  %16993 = vmatpush3.msra.mxu0 %v24577_v10 }
0x1266   : > { %17039 = vmatpush3.msra.mxu1 %v22966_v15  ;;  %16994 = vmatprep.subr.mxu0 %v24578_v1 }
0x1267   : > { %17040 = vmatprep.subr.mxu1 %v22982_v53  ;;  %16995 = vmatpush3.msra.mxu0 %v24578_v1 }
0x1268   : > { %17041 = vmatpush3.msra.mxu1 %v22982_v53  ;;  %16996 = vmatprep.subr.mxu0 %v24579_v2 }
0x1269   : > { %17042 = vmatprep.subr.mxu1 %v22999_v30  ;;  %16997 = vmatpush3.msra.mxu0 %v24579_v2 }
0x126a   : > { %17043 = vmatpush3.msra.mxu1 %v22999_v30  ;;  %16998 = vmatprep.subr.mxu0 %v24580_v5 }
0x126b   : > { %17044 = vmatprep.subr.mxu1 %v23015_v42  ;;  %16999 = vmatpush3.msra.mxu0 %v24580_v5 }
0x126c   : > { %17045 = vmatpush3.msra.mxu1 %v23015_v42  ;;  %17000 = vmatprep.subr.mxu0 %v24581_v25  ;;  %v14459_v42 = vld [vmem:[%s23234_s6 + $0x19] ss:$0 sm:$0xff] }
0x126d   : > { %17047 = vmatmul.mubr.f32.vlgmr.msra.gmra.mxu1 %v23041_v22  ;;  %17001 = vmatpush3.msra.mxu0 %v24581_v25 }
0x126e   : > { %17049 = vmatprep.mubr.f32.mxu1 %v23059_v8  ;;  %17002 = vmatprep.subr.mxu0 %v24582_v26 }
0x126f   : > { %17003 = vmatpush3.msra.mxu0 %v24582_v26 }
0x1270   : > { %17004 = vmatprep.subr.mxu0 %v24583_v23 }
0x1271   : > { %17050 = vmatmul.mubr.f32.gmra.mxu1 %v23050_v3  ;;  %17005 = vmatpush3.msra.mxu0 %v24583_v23 }
0x1272   : > { %17006 = vmatprep.subr.mxu0 %v24584_v21 }
0x1273   : > { %17007 = vmatpush3.msra.mxu0 %v24584_v21 }
0x1274   : > { %17009 = vmatmul.mubr.f32.vlgmr.msra.gmra.mxu0 %v23041_v22 }
0x1275   : > { %17011 = vmatprep.mubr.f32.mxu0 %v23059_v8 }
0x1278   : > { %17012 = vmatmul.mubr.f32.gmra.mxu0 %v23050_v3 }
0x12e6   : > { %v16896_v31 = vpop.f32.mrf.mxu1 }
0x12e8   : > { %v13767_v7 = vpop.f32.mrf.mxu1 }
0x12eb   : > { %v16899_v0 = vpop.f32.mrf.mxu1 }
0x12ed   : > { %v13779_v15 = vpop.f32.mrf.mxu1 }
0x12ef   : > { %v16858_v54 = vpop.f32.mrf.mxu0 }
0x12f0   : > { %v13597_v48 = vadd.f32 %v16858_v54, %v14459_v42 }
0x12f1   : > { %v13586_v59 = vpop.f32.mrf.mxu0 }
0x12f2   : > { %v13587_v51 = vadd.f32 %v14459_v42, %v13586_v59  ;;  %v13774_v22 = vadd.f32 %v16896_v31, %v13597_v48 }
0x12f4   : > { %v16861_v17 = vpop.f32.mrf.mxu0  ;;  %v13768_v32 = vadd.f32 %v13767_v7, %v13587_v51 }
0x12f5   : > { %v13617_v61 = vadd.f32 %v16861_v17, %v14459_v42 }
0x12f6   : > { %v13606_v30 = vpop.f32.mrf.mxu0 }
0x12f7   : > { %v13607_v18 = vadd.f32 %v14459_v42, %v13606_v30  ;;  %v13786_v49 = vadd.f32 %v16899_v0, %v13617_v61 }
0x12f9   : > { %v13780_v3 = vadd.f32 %v13779_v15, %v13607_v18 }
0x1309   : > { %v16972_v53 = vpop.f32.mrf.mxu1 }
0x130b   : > { %v13999_v37 = vpop.f32.mrf.mxu1 }
0x130e   : > { %v16975_v27 = vpop.f32.mrf.mxu1 }
0x1310   : > { %v14015_v52 = vpop.f32.mrf.mxu1 }
0x1312   : > { %v16934_v14 = vpop.f32.mrf.mxu0 }
0x1313   : > { %v13897_v63 = vadd.f32 %v16934_v14, %v13774_v22 }
0x1314   : > { %v13889_v39 = vpop.f32.mrf.mxu0 }
0x1315   : > { %v13890_v50 = vadd.f32 %v13889_v39, %v13768_v32  ;;  %v14008_v38 = vadd.f32 %v16972_v53, %v13897_v63 }
0x1317   : > { %v16937_v55 = vpop.f32.mrf.mxu0  ;;  %v14000_v19 = vadd.f32 %v13999_v37, %v13890_v50 }
0x1318   : > { %v13911_v16 = vadd.f32 %v16937_v55, %v13786_v49 }
0x1319   : > { %v13903_v4 = vpop.f32.mrf.mxu0 }
0x131a   : > { %v13904_v8 = vadd.f32 %v13903_v4, %v13780_v3  ;;  %v14024_v35 = vadd.f32 %v16975_v27, %v13911_v16 }
0x131c   : > { %v14016_v57 = vadd.f32 %v14015_v52, %v13904_v8 }
0x132d   : > { %v17048_v13 = vpop.f32.mrf.mxu1 }
0x132f   : > { %v14247_v29 = vpop.f32.mrf.mxu1 }
0x1331   : > { %v17051_v62 = vpop.f32.mrf.mxu1 }
0x1333   : > { %v14259_v44 = vpop.f32.mrf.mxu1 }
0x1334   : > { %v17010_v20 = vpop.f32.mrf.mxu0 }
0x1335   : > { %v14149_v12 = vadd.f32 %v17010_v20, %v14008_v38 }
0x1336   : > { %v14142_v33 = vpop.f32.mrf.mxu0 }
0x1337   : > { %v14254_v40 = vadd.f32 %v17048_v13, %v14149_v12  ;;  %v14143_v11 = vadd.f32 %v14142_v33, %v14000_v19 }
0x1338   : > { %v17013_v56 = vpop.f32.mrf.mxu0 }
0x1339   : > { %14270 = vst [vmem:[%s17253_s18 + $0x8] sm:$0xff] %v14254_v40  ;;  %v14248_v47 = vadd.f32 %v14247_v29, %v14143_v11  ;;  %v14161_v41 = vadd.f32 %v17013_v56, %v14024_v35 }
0x133a   : > { %v14154_v34 = vpop.f32.mrf.mxu0 }
0x133b   : > { %14269 = vst [vmem:[%s17253_s18] sm:$0xff] %v14248_v47  ;;  %v14266_v6 = vadd.f32 %v17051_v62, %v14161_v41  ;;  %v14155_v58 = vadd.f32 %v14154_v34, %v14016_v57 }
0x133d   : > { %14272 = vst [vmem:[%s17253_s18 + $0x18] sm:$0xff] %v14266_v6  ;;  %v14260_v28 = vadd.f32 %v14259_v44, %v14155_v58 }
0x133f   : > { %14271 = vst [vmem:[%s17253_s18 + $0x10] sm:$0xff] %v14260_v28 }
0x1340 PF: > { %s19_s30 = sadd.s32 1, %s17123_s30  }
0x1341   : > { %p16_p7 = scmp.ge.s32.totalorder %s19_s30, 10  }
0x1343   :  { %18 = sbr.rel (!%p16_p7) target bundleno = 1 (0x1), region = 159 }

</bundles_post_ra>
